<compile_context>
chip_gen: v7x
topology: tpu7x:2x2x1
jax: 0.10.0
libtpu: 0.0.40
codegen_flags: <defaults>
</compile_context>

<pallas_src>
import functools

import jax
import jax.numpy as jnp
from jax.experimental import pallas as pl
from jax.experimental.pallas import tpu as pltpu

LANE = 128


def _silu(x):
    return x * jax.nn.sigmoid(x)


def _rup(x, m=LANE):
    return ((x + m - 1) // m) * m


def _pick_tile_m(m, row_bytes, budget=16 * 2**20):
    """Largest power-of-two tile (>=8, multiple of 16 when >=16) that divides M,
    fits a double-buffered VMEM budget, and leaves >=2 grid programs."""
    cands = [t for t in (1024, 512, 256, 128, 64, 32, 16, 8) if m % t == 0]
    fit = [t for t in cands if 2 * t * row_bytes <= budget]
    cands = fit or cands[-1:]
    if not cands:
        return m
    for t in cands:                      # prefer >=2 programs (megacore / overlap)
        if m // t >= 2:
            return t
    return cands[-1]


def _cparams(est_bytes):
    limit = int(min(64 * 2**20, max(16 * 2**20, 2 * est_bytes + 4 * 2**20)))
    return pltpu.CompilerParams(dimension_semantics=("parallel",),
                                vmem_limit_bytes=limit)


# ---------------------------------------------------------------------------
# cv1: fused 1x1 conv + folded-BN bias + SiLU, emitting the two split chunks
# ---------------------------------------------------------------------------
def _cv1_kernel(x_ref, w_ref, b_ref, o1_ref, o2_ref, *, cp):
    y = jnp.dot(x_ref[...], w_ref[...], preferred_element_type=jnp.float32)
    y = _silu(y + b_ref[...])
    o1_ref[...] = y[:, :cp].astype(o1_ref.dtype)
    o2_ref[...] = y[:, cp:].astype(o2_ref.dtype)


def conv1x1_cv1(x2d, w, b, cp):
    m, kin = x2d.shape
    row_bytes = (kin + 2 * cp) * 2 + 2 * cp * 2
    tm = _pick_tile_m(m, row_bytes)
    est = 2 * (tm * kin * 2 + kin * 2 * cp * 2 + 2 * tm * cp * 2) + tm * 2 * cp * 4
    return pl.pallas_call(
        functools.partial(_cv1_kernel, cp=cp),
        out_shape=(jax.ShapeDtypeStruct((m, cp), jnp.bfloat16),
                   jax.ShapeDtypeStruct((m, cp), jnp.bfloat16)),
        grid=(m // tm,),
        in_specs=[pl.BlockSpec((tm, kin), lambda i: (i, 0)),
                  pl.BlockSpec((kin, 2 * cp), lambda i: (0, 0)),
                  pl.BlockSpec((1, 2 * cp), lambda i: (0, 0))],
        out_specs=(pl.BlockSpec((tm, cp), lambda i: (i, 0)),
                   pl.BlockSpec((tm, cp), lambda i: (i, 0))),
        compiler_params=_cparams(est),
    )(x2d, w, b)


# ---------------------------------------------------------------------------
# cv2: fused multi-chunk 1x1 conv (no concat) + folded-BN bias + SiLU
# ---------------------------------------------------------------------------
def _cv2_kernel(*refs):
    *x_refs, w_ref, b_ref, o_ref = refs
    acc = jnp.dot(x_refs[0][...], w_ref[0], preferred_element_type=jnp.float32)
    for j in range(1, len(x_refs)):
        acc = acc + jnp.dot(x_refs[j][...], w_ref[j],
                            preferred_element_type=jnp.float32)
    o_ref[...] = _silu(acc + b_ref[...]).astype(o_ref.dtype)


def conv1x1_cv2(chunks, w, b, cout_p):
    m, cp = chunks[0].shape
    nch = len(chunks)
    row_bytes = nch * cp * 2 + cout_p * 4
    tm = _pick_tile_m(m, row_bytes)
    est = 2 * (nch * tm * cp * 2 + nch * cp * cout_p * 2 + tm * cout_p * 4)
    in_specs = [pl.BlockSpec((tm, cp), lambda i: (i, 0)) for _ in range(nch)]
    in_specs += [pl.BlockSpec((nch, cp, cout_p), lambda i: (0, 0, 0)),
                 pl.BlockSpec((1, cout_p), lambda i: (0, 0))]
    return pl.pallas_call(
        _cv2_kernel,
        out_shape=jax.ShapeDtypeStruct((m, cout_p), jnp.float32),
        grid=(m // tm,),
        in_specs=in_specs,
        out_specs=pl.BlockSpec((tm, cout_p), lambda i: (i, 0)),
        compiler_params=_cparams(est),
    )(*chunks, w, b)


# ---------------------------------------------------------------------------
# Fused Bottleneck: 3x3 conv -> SiLU -> 3x3 conv -> SiLU -> (+ residual)
# One kernel invocation per image; intermediate activation never leaves VMEM.
# Each 3x3 conv is 9 shifted matmuls over a zero-bordered, flattened
# (H+3, W+2, C) layout held in VMEM scratch (no im2col materialization).
# ---------------------------------------------------------------------------
def _bottleneck_kernel(y_ref, w1_ref, b1_ref, w2_ref, b2_ref, o_ref,
                       xp_ref, hp_ref, acc_ref, *, H, W, add_residual):
    Wp = W + 2
    HWp = H * Wp

    def conv3x3(src_ref, w_ref):
        acc_ref[...] = jnp.zeros_like(acc_ref)
        for t in range(9):
            off = (t // 3) * Wp + (t % 3)
            acc_ref[...] += jnp.dot(src_ref[off:off + HWp, :], w_ref[t],
                                    preferred_element_type=jnp.float32)

    # scatter the (H*W, C) input into the zero-bordered padded layout
    xp_ref[...] = jnp.zeros_like(xp_ref)
    for r in range(H):
        xp_ref[(r + 1) * Wp + 1:(r + 1) * Wp + 1 + W, :] = (
            y_ref[0, r * W:(r + 1) * W, :])

    # conv1: 9 shifted matmuls + bias + SiLU, re-padded into VMEM scratch
    conv3x3(xp_ref, w1_ref)
    h = _silu(acc_ref[...] + b1_ref[...])
    hp_ref[...] = jnp.zeros_like(hp_ref)
    for r in range(H):
        hp_ref[(r + 1) * Wp + 1:(r + 1) * Wp + 1 + W, :] = (
            h[r * Wp:r * Wp + W, :].astype(hp_ref.dtype))

    # conv2: 9 shifted matmuls + bias + SiLU + fused residual add
    conv3x3(hp_ref, w2_ref)
    o2 = _silu(acc_ref[...] + b2_ref[...])
    for r in range(H):
        row = o2[r * Wp:r * Wp + W, :]
        if add_residual:
            row = row + y_ref[0, r * W:(r + 1) * W, :].astype(jnp.float32)
        o_ref[0, r * W:(r + 1) * W, :] = row.astype(o_ref.dtype)


def bottleneck_fused(y, w1, b1, w2, b2, H, W, add_residual=True):
    n, hw, cp = y.shape
    Wp = W + 2
    pad_rows = (H + 3) * Wp
    est = (2 * (2 * hw * cp * 2 + 2 * 9 * cp * cp * 2)
           + 2 * pad_rows * cp * 2 + H * Wp * cp * 4)
    return pl.pallas_call(
        functools.partial(_bottleneck_kernel, H=H, W=W,
                          add_residual=add_residual),
        out_shape=jax.ShapeDtypeStruct((n, hw, cp), jnp.bfloat16),
        grid=(n,),
        in_specs=[pl.BlockSpec((1, hw, cp), lambda i: (i, 0, 0)),
                  pl.BlockSpec((9, cp, cp), lambda i: (0, 0, 0)),
                  pl.BlockSpec((1, cp), lambda i: (0, 0)),
                  pl.BlockSpec((9, cp, cp), lambda i: (0, 0, 0)),
                  pl.BlockSpec((1, cp), lambda i: (0, 0))],
        out_specs=pl.BlockSpec((1, hw, cp), lambda i: (i, 0, 0)),
        scratch_shapes=[pltpu.VMEM((pad_rows, cp), jnp.bfloat16),   # padded x
                        pltpu.VMEM((pad_rows, cp), jnp.bfloat16),   # padded h
                        pltpu.VMEM((H * Wp, cp), jnp.float32)],     # f32 acc
        compiler_params=_cparams(est),
    )(y, w1, b1, w2, b2)


# ---------------------------------------------------------------------------
# Deterministic parameter construction (conv + folded BN), packed for TPU
# ---------------------------------------------------------------------------
def fold_bn(w, gamma, beta, mean, var, eps=1e-5):
    scale = gamma / jnp.sqrt(var + eps)
    return w * scale[:, None, None, None], beta - mean * scale


def make_raw_conv(key, cin, cout, k):
    kw, k1, k2, k3, k4 = jax.random.split(key, 5)
    w = jax.random.normal(kw, (cout, cin, k, k), jnp.float32) / ((cin * k * k) ** 0.5)
    gamma = jax.random.uniform(k1, (cout,), jnp.float32, 0.5, 1.5)
    beta = jax.random.normal(k2, (cout,), jnp.float32) * 0.1
    mean = jax.random.normal(k3, (cout,), jnp.float32) * 0.1
    var = jax.random.uniform(k4, (cout,), jnp.float32, 0.5, 1.5)
    w_f, b_f = fold_bn(w, gamma, beta, mean, var)
    return {"w4d": w_f, "bias": b_f, "k": k}


def _pack_cv1(p, cin, c, cin_p, cp):
    wt = jnp.transpose(p["w4d"][:, :, 0, 0])                      # (cin, 2c)
    w = jnp.zeros((cin_p, 2 * cp), jnp.float32)
    w = w.at[:cin, :c].set(wt[:, :c])
    w = w.at[:cin, cp:cp + c].set(wt[:, c:])
    b = jnp.zeros((1, 2 * cp), jnp.float32)
    b = b.at[0, :c].set(p["bias"][:c])
    b = b.at[0, cp:cp + c].set(p["bias"][c:])
    return w.astype(jnp.bfloat16), b


def _pack_3x3(p, c, cp):
    w4 = p["w4d"]                                                  # OIHW (c,c,3,3)
    w = jnp.zeros((9, cp, cp), jnp.float32)
    for dy in range(3):
        for dx in range(3):
            w = w.at[dy * 3 + dx, :c, :c].set(jnp.transpose(w4[:, :, dy, dx]))
    b = jnp.zeros((1, cp), jnp.float32).at[0, :c].set(p["bias"])
    return w.astype(jnp.bfloat16), b


def _pack_cv2(p, c, nch, cout, cp, cout_p):
    wt = jnp.transpose(p["w4d"][:, :, 0, 0])                       # (nch*c, cout)
    w = jnp.zeros((nch, cp, cout_p), jnp.float32)
    for j in range(nch):
        w = w.at[j, :c, :cout].set(wt[j * c:(j + 1) * c, :])
    b = jnp.zeros((1, cout_p), jnp.float32).at[0, :cout].set(p["bias"])
    return w.astype(jnp.bfloat16), b


def make_c2f_params(key, cin, cout, n=1, expand=0.5, shortcut=True):
    c = int(cout * expand)
    keys = jax.random.split(key, 2 + 2 * n)
    raw = {
        "cv1": make_raw_conv(keys[0], cin, 2 * c, 1),
        "cv2": make_raw_conv(keys[1], (2 + n) * c, cout, 1),
        "m": [(make_raw_conv(keys[2 + 2 * i], c, c, 3),
               make_raw_conv(keys[3 + 2 * i], c, c, 3)) for i in range(n)],
    }
    cp, cin_p, cout_p = _rup(c), _rup(cin), _rup(cout)
    packed = {
        "cv1": _pack_cv1(raw["cv1"], cin, c, cin_p, cp),
        "cv2": _pack_cv2(raw["cv2"], c, 2 + n, cout, cp, cout_p),
        "m": [(_pack_3x3(p1, c, cp), _pack_3x3(p2, c, cp)) for p1, p2 in raw["m"]],
    }
    return {"c": c, "cp": cp, "cin": cin, "cin_p": cin_p, "cout": cout,
            "cout_p": cout_p, "n": n, "shortcut": shortcut,
            "raw": raw, "packed": packed}


# ---------------------------------------------------------------------------
# C2f forward (Pallas) and a pure-JAX f32 reference for verification
# ---------------------------------------------------------------------------
def c2f_forward(params, x_nchw):
    n, cin, h, w = x_nchw.shape
    cp, cin_p = params["cp"], params["cin_p"]
    cout, cout_p = params["cout"], params["cout_p"]

    x = jnp.transpose(x_nchw, (0, 2, 3, 1))                       # NCHW -> NHWC
    x = jnp.pad(x, ((0, 0), (0, 0), (0, 0), (0, cin_p - cin)))
    x2d = x.astype(jnp.bfloat16).reshape(n * h * w, cin_p)

    w1, b1 = params["packed"]["cv1"]
    y1, y2 = conv1x1_cv1(x2d, w1, b1, cp)                         # split chunks

    ys = [y1, y2]
    add = params["shortcut"]                                      # cin == cout == c
    for (wc1, bc1), (wc2, bc2) in params["packed"]["m"]:
        prev = ys[-1].reshape(n, h * w, cp)
        nxt = bottleneck_fused(prev, wc1, bc1, wc2, bc2, h, w, add_residual=add)
        ys.append(nxt.reshape(n * h * w, cp))

    w2, b2 = params["packed"]["cv2"]
    out2d = conv1x1_cv2(ys, w2, b2, cout_p)                       # no concat
    out = out2d.reshape(n, h, w, cout_p)[..., :cout]
    return jnp.transpose(out, (0, 3, 1, 2))                       # NHWC -> NCHW


def _conv_ref(x_nhwc, p):
    k = p["k"]
    w = jnp.transpose(p["w4d"], (2, 3, 1, 0))                     # OIHW -> HWIO
    pad = k // 2
    y = jax.lax.conv_general_dilated(
        x_nhwc, w, (1, 1), [(pad, pad), (pad, pad)],
        dimension_numbers=("NHWC", "HWIO", "NHWC"))
    return _silu(y + p["bias"])


def c2f_ref(params, x_nchw):
    x = jnp.transpose(x_nchw, (0, 2, 3, 1))
    c, raw = params["c"], params["raw"]
    y0 = _conv_ref(x, raw["cv1"])
    ys = [y0[..., :c], y0[..., c:]]
    for p1, p2 in raw["m"]:
        h = _conv_ref(ys[-1], p1)
        out = _conv_ref(h, p2)
        ys.append(ys[-1] + out if params["shortcut"] else out)
    cat = jnp.concatenate(ys, axis=-1)
    return jnp.transpose(_conv_ref(cat, raw["cv2"]), (0, 3, 1, 2))


if __name__ == "__main__":
    key = jax.random.PRNGKey(0)
    kx, kp = jax.random.split(key)

    # C2f(channels_in=8, channels_out=8, number=2, shortcut=True)
    N, Cin, H, W = 2, 8, 16, 16
    Cout, num = 8, 2

    x = jax.random.normal(kx, (N, Cin, H, W), jnp.float32)
    params = make_c2f_params(kp, Cin, Cout, n=num, expand=0.5, shortcut=True)

    fwd = jax.jit(functools.partial(c2f_forward, params))
    out = jax.block_until_ready(fwd(x))

    ref = c2f_ref(params, x)
    assert out.shape == (N, Cout, H, W), out.shape
    max_err = float(jnp.max(jnp.abs(out - ref)))
    mean_err = float(jnp.mean(jnp.abs(out - ref)))
    # Kernel datapath is bf16 (MXU-native) end to end; reference is f32, so a
    # loose-but-meaningful tolerance is used (a layout/indexing bug gives O(1)).
    assert jnp.allclose(out, ref, atol=1.2e-1, rtol=5e-2), (max_err, mean_err)
    assert mean_err < 3e-2, (max_err, mean_err)
    print("KERNEL_OK")
</pallas_src>

<mosaic_0001>
module attributes {stable_mosaic.version = 11 : i64} {
  func.func @_cv1_kernel(%arg0: i32, %arg1: memref<256x128xbf16, #tpu.memory_space<vmem>>, %arg2: memref<128x256xbf16, #tpu.memory_space<vmem>>, %arg3: memref<1x256xf32, #tpu.memory_space<vmem>>, %arg4: memref<256x128xbf16, #tpu.memory_space<vmem>>, %arg5: memref<256x128xbf16, #tpu.memory_space<vmem>>) attributes {dimension_semantics = [#tpu.dimension_semantics<parallel>], iteration_bounds = array<i64: 2>, scalar_prefetch = 0 : i64, scratch_operands = 0 : i64, tpu.core_type = #tpu.core_type<tc>, window_params = [{transform_indices = @transform_0, window_bounds = array<i64: 256, 128>}, {pipeline_mode = #tpu.pipeline_mode<synchronous>, transform_indices = @transform_1, window_bounds = array<i64: 128, 256>}, {pipeline_mode = #tpu.pipeline_mode<synchronous>, transform_indices = @transform_2, window_bounds = array<i64: 1, 256>}, {transform_indices = @transform_3, window_bounds = array<i64: 256, 128>}, {transform_indices = @transform_4, window_bounds = array<i64: 256, 128>}]} {
    %c0 = arith.constant 0 : index
    %c0_0 = arith.constant 0 : index
    %0 = vector.load %arg1[%c0, %c0_0] : memref<256x128xbf16, #tpu.memory_space<vmem>>, vector<256x128xbf16>
    %c0_1 = arith.constant 0 : index
    %c0_2 = arith.constant 0 : index
    %1 = vector.load %arg2[%c0_1, %c0_2] : memref<128x256xbf16, #tpu.memory_space<vmem>>, vector<128x256xbf16>
    %cst = arith.constant dense<0.000000e+00> : vector<256x256xf32>
    %2 = tpu.matmul %0, %1, %cst {dimension_numbers = #tpu.dot_dimension_numbers<[1], [0], [0], [1], [0, 0, 1, 1], [], []>} : vector<256x128xbf16>, vector<128x256xbf16>, vector<256x256xf32> -> vector<256x256xf32>
    %c0_3 = arith.constant 0 : index
    %c0_4 = arith.constant 0 : index
    %3 = vector.load %arg3[%c0_3, %c0_4] : memref<1x256xf32, #tpu.memory_space<vmem>>, vector<1x256xf32>
    %4 = vector.broadcast %3 : vector<1x256xf32> to vector<256x256xf32>
    %5 = arith.addf %2, %4 : vector<256x256xf32>
    %6 = arith.negf %5 : vector<256x256xf32>
    %7 = math.exp %6 : vector<256x256xf32>
    %cst_5 = arith.constant 1.000000e+00 : f32
    %8 = vector.broadcast %cst_5 : f32 to vector<256x256xf32>
    %9 = arith.addf %8, %7 : vector<256x256xf32>
    %10 = arith.divf %8, %9 : vector<256x256xf32>
    %11 = arith.mulf %5, %10 : vector<256x256xf32>
    %12 = vector.extract_strided_slice %11 {offsets = [0, 0], sizes = [256, 128], strides = [1, 1]} : vector<256x256xf32> to vector<256x128xf32>
    %13 = arith.truncf %12 : vector<256x128xf32> to vector<256x128xbf16>
    %c0_6 = arith.constant 0 : index
    %c0_7 = arith.constant 0 : index
    %14 = vector.load %arg4[%c0_6, %c0_7] : memref<256x128xbf16, #tpu.memory_space<vmem>>, vector<256x128xbf16>
    tpu.vector_store %arg4[%c0_6, %c0_7], %13 {strides = array<i32>} : memref<256x128xbf16, #tpu.memory_space<vmem>>, vector<256x128xbf16>,
    %15 = vector.extract_strided_slice %11 {offsets = [0, 128], sizes = [256, 128], strides = [1, 1]} : vector<256x256xf32> to vector<256x128xf32>
    %16 = arith.truncf %15 : vector<256x128xf32> to vector<256x128xbf16>
    %c0_8 = arith.constant 0 : index
    %c0_9 = arith.constant 0 : index
    %17 = vector.load %arg5[%c0_8, %c0_9] : memref<256x128xbf16, #tpu.memory_space<vmem>>, vector<256x128xbf16>
    tpu.vector_store %arg5[%c0_8, %c0_9], %16 {strides = array<i32>} : memref<256x128xbf16, #tpu.memory_space<vmem>>, vector<256x128xbf16>,
    return
  }
  func.func @transform_0(%arg0: i32) -> (i32, i32) {
    %c0_i32 = arith.constant 0 : i32
    %c0_i32_0 = arith.constant 0 : i32
    return %arg0, %c0_i32 : i32, i32
  }
  func.func @transform_1(%arg0: i32) -> (i32, i32) {
    %c0_i32 = arith.constant 0 : i32
    %c0_i32_0 = arith.constant 0 : i32
    %c0_i32_1 = arith.constant 0 : i32
    return %c0_i32, %c0_i32_0 : i32, i32
  }
  func.func @transform_2(%arg0: i32) -> (i32, i32) {
    %c0_i32 = arith.constant 0 : i32
    %c0_i32_0 = arith.constant 0 : i32
    %c0_i32_1 = arith.constant 0 : i32
    return %c0_i32, %c0_i32_0 : i32, i32
  }
  func.func @transform_3(%arg0: i32) -> (i32, i32) {
    %c0_i32 = arith.constant 0 : i32
    %c0_i32_0 = arith.constant 0 : i32
    return %arg0, %c0_i32 : i32, i32
  }
  func.func @transform_4(%arg0: i32) -> (i32, i32) {
    %c0_i32 = arith.constant 0 : i32
    %c0_i32_0 = arith.constant 0 : i32
    return %arg0, %c0_i32 : i32, i32
  }
}

module attributes {stable_mosaic.version = 11 : i64} {
  func.func @_cv2_kernel(%arg0: i32, %arg1: memref<256x128xbf16, #tpu.memory_space<vmem>>, %arg2: memref<256x128xbf16, #tpu.memory_space<vmem>>, %arg3: memref<256x128xbf16, #tpu.memory_space<vmem>>, %arg4: memref<256x128xbf16, #tpu.memory_space<vmem>>, %arg5: memref<4x128x128xbf16, #tpu.memory_space<vmem>>, %arg6: memref<1x128xf32, #tpu.memory_space<vmem>>, %arg7: memref<256x128xf32, #tpu.memory_space<vmem>>) attributes {dimension_semantics = [#tpu.dimension_semantics<parallel>], iteration_bounds = array<i64: 2>, scalar_prefetch = 0 : i64, scratch_operands = 0 : i64, tpu.core_type = #tpu.core_type<tc>, window_params = [{transform_indices = @transform_0, window_bounds = array<i64: 256, 128>}, {transform_indices = @transform_1, window_bounds = array<i64: 256, 128>}, {transform_indices = @transform_2, window_bounds = array<i64: 256, 128>}, {transform_indices = @transform_3, window_bounds = array<i64: 256, 128>}, {pipeline_mode = #tpu.pipeline_mode<synchronous>, transform_indices = @transform_4, window_bounds = array<i64: 4, 128, 128>}, {pipeline_mode = #tpu.pipeline_mode<synchronous>, transform_indices = @transform_5, window_bounds = array<i64: 1, 128>}, {transform_indices = @transform_6, window_bounds = array<i64: 256, 128>}]} {
    %c0 = arith.constant 0 : index
    %c0_0 = arith.constant 0 : index
    %0 = vector.load %arg1[%c0, %c0_0] : memref<256x128xbf16, #tpu.memory_space<vmem>>, vector<256x128xbf16>
    %c0_1 = arith.constant 0 : index
    %c0_2 = arith.constant 0 : index
    %c0_3 = arith.constant 0 : index
    %1 = vector.load %arg5[%c0_1, %c0_2, %c0_3] : memref<4x128x128xbf16, #tpu.memory_space<vmem>>, vector<1x128x128xbf16>
    %2 = vector.shape_cast %1 : vector<1x128x128xbf16> to vector<128x128xbf16>
    %cst = arith.constant dense<0.000000e+00> : vector<256x128xf32>
    %3 = tpu.matmul %0, %2, %cst {dimension_numbers = #tpu.dot_dimension_numbers<[1], [0], [0], [1], [0, 0, 1, 1], [], []>} : vector<256x128xbf16>, vector<128x128xbf16>, vector<256x128xf32> -> vector<256x128xf32>
    %c0_4 = arith.constant 0 : index
    %c0_5 = arith.constant 0 : index
    %4 = vector.load %arg2[%c0_4, %c0_5] : memref<256x128xbf16, #tpu.memory_space<vmem>>, vector<256x128xbf16>
    %c1 = arith.constant 1 : index
    %c0_6 = arith.constant 0 : index
    %c0_7 = arith.constant 0 : index
    %5 = vector.load %arg5[%c1, %c0_6, %c0_7] : memref<4x128x128xbf16, #tpu.memory_space<vmem>>, vector<1x128x128xbf16>
    %6 = vector.shape_cast %5 : vector<1x128x128xbf16> to vector<128x128xbf16>
    %cst_8 = arith.constant dense<0.000000e+00> : vector<256x128xf32>
    %7 = tpu.matmul %4, %6, %cst_8 {dimension_numbers = #tpu.dot_dimension_numbers<[1], [0], [0], [1], [0, 0, 1, 1], [], []>} : vector<256x128xbf16>, vector<128x128xbf16>, vector<256x128xf32> -> vector<256x128xf32>
    %8 = arith.addf %3, %7 : vector<256x128xf32>
    %c0_9 = arith.constant 0 : index
    %c0_10 = arith.constant 0 : index
    %9 = vector.load %arg3[%c0_9, %c0_10] : memref<256x128xbf16, #tpu.memory_space<vmem>>, vector<256x128xbf16>
    %c2 = arith.constant 2 : index
    %c0_11 = arith.constant 0 : index
    %c0_12 = arith.constant 0 : index
    %10 = vector.load %arg5[%c2, %c0_11, %c0_12] : memref<4x128x128xbf16, #tpu.memory_space<vmem>>, vector<1x128x128xbf16>
    %11 = vector.shape_cast %10 : vector<1x128x128xbf16> to vector<128x128xbf16>
    %cst_13 = arith.constant dense<0.000000e+00> : vector<256x128xf32>
    %12 = tpu.matmul %9, %11, %cst_13 {dimension_numbers = #tpu.dot_dimension_numbers<[1], [0], [0], [1], [0, 0, 1, 1], [], []>} : vector<256x128xbf16>, vector<128x128xbf16>, vector<256x128xf32> -> vector<256x128xf32>
    %13 = arith.addf %8, %12 : vector<256x128xf32>
    %c0_14 = arith.constant 0 : index
    %c0_15 = arith.constant 0 : index
    %14 = vector.load %arg4[%c0_14, %c0_15] : memref<256x128xbf16, #tpu.memory_space<vmem>>, vector<256x128xbf16>
    %c3 = arith.constant 3 : index
    %c0_16 = arith.constant 0 : index
    %c0_17 = arith.constant 0 : index
    %15 = vector.load %arg5[%c3, %c0_16, %c0_17] : memref<4x128x128xbf16, #tpu.memory_space<vmem>>, vector<1x128x128xbf16>
    %16 = vector.shape_cast %15 : vector<1x128x128xbf16> to vector<128x128xbf16>
    %cst_18 = arith.constant dense<0.000000e+00> : vector<256x128xf32>
    %17 = tpu.matmul %14, %16, %cst_18 {dimension_numbers = #tpu.dot_dimension_numbers<[1], [0], [0], [1], [0, 0, 1, 1], [], []>} : vector<256x128xbf16>, vector<128x128xbf16>, vector<256x128xf32> -> vector<256x128xf32>
    %18 = arith.addf %13, %17 : vector<256x128xf32>
    %c0_19 = arith.constant 0 : index
    %c0_20 = arith.constant 0 : index
    %19 = vector.load %arg6[%c0_19, %c0_20] : memref<1x128xf32, #tpu.memory_space<vmem>>, vector<1x128xf32>
    %20 = vector.broadcast %19 : vector<1x128xf32> to vector<256x128xf32>
    %21 = arith.addf %18, %20 : vector<256x128xf32>
    %22 = arith.negf %21 : vector<256x128xf32>
    %23 = math.exp %22 : vector<256x128xf32>
    %cst_21 = arith.constant 1.000000e+00 : f32
    %24 = vector.broadcast %cst_21 : f32 to vector<256x128xf32>
    %25 = arith.addf %24, %23 : vector<256x128xf32>
    %26 = arith.divf %24, %25 : vector<256x128xf32>
    %27 = arith.mulf %21, %26 : vector<256x128xf32>
    %c0_22 = arith.constant 0 : index
    %c0_23 = arith.constant 0 : index
    %28 = vector.load %arg7[%c0_22, %c0_23] : memref<256x128xf32, #tpu.memory_space<vmem>>, vector<256x128xf32>
    tpu.vector_store %arg7[%c0_22, %c0_23], %27 {strides = array<i32>} : memref<256x128xf32, #tpu.memory_space<vmem>>, vector<256x128xf32>,
    return
  }
  func.func @transform_0(%arg0: i32) -> (i32, i32) {
    %c0_i32 = arith.constant 0 : i32
    %c0_i32_0 = arith.constant 0 : i32
    return %arg0, %c0_i32 : i32, i32
  }
  func.func @transform_1(%arg0: i32) -> (i32, i32) {
    %c0_i32 = arith.constant 0 : i32
    %c0_i32_0 = arith.constant 0 : i32
    return %arg0, %c0_i32 : i32, i32
  }
  func.func @transform_2(%arg0: i32) -> (i32, i32) {
    %c0_i32 = arith.constant 0 : i32
    %c0_i32_0 = arith.constant 0 : i32
    return %arg0, %c0_i32 : i32, i32
  }
  func.func @transform_3(%arg0: i32) -> (i32, i32) {
    %c0_i32 = arith.constant 0 : i32
    %c0_i32_0 = arith.constant 0 : i32
    return %arg0, %c0_i32 : i32, i32
  }
  func.func @transform_4(%arg0: i32) -> (i32, i32, i32) {
    %c0_i32 = arith.constant 0 : i32
    %c0_i32_0 = arith.constant 0 : i32
    %c0_i32_1 = arith.constant 0 : i32
    %c0_i32_2 = arith.constant 0 : i32
    return %c0_i32, %c0_i32_0, %c0_i32_1 : i32, i32, i32
  }
  func.func @transform_5(%arg0: i32) -> (i32, i32) {
    %c0_i32 = arith.constant 0 : i32
    %c0_i32_0 = arith.constant 0 : i32
    %c0_i32_1 = arith.constant 0 : i32
    return %c0_i32, %c0_i32_0 : i32, i32
  }
  func.func @transform_6(%arg0: i32) -> (i32, i32) {
    %c0_i32 = arith.constant 0 : i32
    %c0_i32_0 = arith.constant 0 : i32
    return %arg0, %c0_i32 : i32, i32
  }
}

module attributes {stable_mosaic.version = 11 : i64} {
  func.func @_bottleneck_kernel(%arg0: i32, %arg1: memref<1x256x128xbf16, #tpu.memory_space<vmem>>, %arg2: memref<9x128x128xbf16, #tpu.memory_space<vmem>>, %arg3: memref<1x128xf32, #tpu.memory_space<vmem>>, %arg4: memref<9x128x128xbf16, #tpu.memory_space<vmem>>, %arg5: memref<1x128xf32, #tpu.memory_space<vmem>>, %arg6: memref<1x256x128xbf16, #tpu.memory_space<vmem>>, %arg7: memref<342x128xbf16, #tpu.memory_space<vmem>>, %arg8: memref<342x128xbf16, #tpu.memory_space<vmem>>, %arg9: memref<288x128xf32, #tpu.memory_space<vmem>>) attributes {dimension_semantics = [#tpu.dimension_semantics<parallel>], iteration_bounds = array<i64: 2>, scalar_prefetch = 0 : i64, scratch_operands = 3 : i64, tpu.core_type = #tpu.core_type<tc>, window_params = [{transform_indices = @transform_0, window_bounds = array<i64: 1, 256, 128>}, {pipeline_mode = #tpu.pipeline_mode<synchronous>, transform_indices = @transform_1, window_bounds = array<i64: 9, 128, 128>}, {pipeline_mode = #tpu.pipeline_mode<synchronous>, transform_indices = @transform_2, window_bounds = array<i64: 1, 128>}, {pipeline_mode = #tpu.pipeline_mode<synchronous>, transform_indices = @transform_3, window_bounds = array<i64: 9, 128, 128>}, {pipeline_mode = #tpu.pipeline_mode<synchronous>, transform_indices = @transform_4, window_bounds = array<i64: 1, 128>}, {transform_indices = @transform_5, window_bounds = array<i64: 1, 256, 128>}]} {
    %cst = arith.constant 0.000000e+00 : bf16
    %0 = vector.broadcast %cst : bf16 to vector<342x128xbf16>
    %c0 = arith.constant 0 : index
    %c0_0 = arith.constant 0 : index
    %1 = vector.load %arg7[%c0, %c0_0] : memref<342x128xbf16, #tpu.memory_space<vmem>>, vector<342x128xbf16>
    tpu.vector_store %arg7[%c0, %c0_0], %0 {strides = array<i32>} : memref<342x128xbf16, #tpu.memory_space<vmem>>, vector<342x128xbf16>,
    %c0_1 = arith.constant 0 : index
    %c0_2 = arith.constant 0 : index
    %c0_3 = arith.constant 0 : index
    %2 = vector.load %arg1[%c0_1, %c0_2, %c0_3] : memref<1x256x128xbf16, #tpu.memory_space<vmem>>, vector<1x16x128xbf16>
    %3 = vector.shape_cast %2 : vector<1x16x128xbf16> to vector<16x128xbf16>
    %c19 = arith.constant 19 : index
    %c0_4 = arith.constant 0 : index
    %4 = vector.load %arg7[%c19, %c0_4] : memref<342x128xbf16, #tpu.memory_space<vmem>>, vector<16x128xbf16>
    tpu.vector_store %arg7[%c19, %c0_4], %3 {strides = array<i32>} : memref<342x128xbf16, #tpu.memory_space<vmem>>, vector<16x128xbf16>,
    %c0_5 = arith.constant 0 : index
    %c16 = arith.constant 16 : index
    %c0_6 = arith.constant 0 : index
    %5 = vector.load %arg1[%c0_5, %c16, %c0_6] : memref<1x256x128xbf16, #tpu.memory_space<vmem>>, vector<1x16x128xbf16>
    %6 = vector.shape_cast %5 : vector<1x16x128xbf16> to vector<16x128xbf16>
    %c37 = arith.constant 37 : index
    %c0_7 = arith.constant 0 : index
    %7 = vector.load %arg7[%c37, %c0_7] : memref<342x128xbf16, #tpu.memory_space<vmem>>, vector<16x128xbf16>
    tpu.vector_store %arg7[%c37, %c0_7], %6 {strides = array<i32>} : memref<342x128xbf16, #tpu.memory_space<vmem>>, vector<16x128xbf16>,
    %c0_8 = arith.constant 0 : index
    %c32 = arith.constant 32 : index
    %c0_9 = arith.constant 0 : index
    %8 = vector.load %arg1[%c0_8, %c32, %c0_9] : memref<1x256x128xbf16, #tpu.memory_space<vmem>>, vector<1x16x128xbf16>
    %9 = vector.shape_cast %8 : vector<1x16x128xbf16> to vector<16x128xbf16>
    %c55 = arith.constant 55 : index
    %c0_10 = arith.constant 0 : index
    %10 = vector.load %arg7[%c55, %c0_10] : memref<342x128xbf16, #tpu.memory_space<vmem>>, vector<16x128xbf16>
    tpu.vector_store %arg7[%c55, %c0_10], %9 {strides = array<i32>} : memref<342x128xbf16, #tpu.memory_space<vmem>>, vector<16x128xbf16>,
    %c0_11 = arith.constant 0 : index
    %c48 = arith.constant 48 : index
    %c0_12 = arith.constant 0 : index
    %11 = vector.load %arg1[%c0_11, %c48, %c0_12] : memref<1x256x128xbf16, #tpu.memory_space<vmem>>, vector<1x16x128xbf16>
    %12 = vector.shape_cast %11 : vector<1x16x128xbf16> to vector<16x128xbf16>
    %c73 = arith.constant 73 : index
    %c0_13 = arith.constant 0 : index
    %13 = vector.load %arg7[%c73, %c0_13] : memref<342x128xbf16, #tpu.memory_space<vmem>>, vector<16x128xbf16>
    tpu.vector_store %arg7[%c73, %c0_13], %12 {strides = array<i32>} : memref<342x128xbf16, #tpu.memory_space<vmem>>, vector<16x128xbf16>,
    %c0_14 = arith.constant 0 : index
    %c64 = arith.constant 64 : index
    %c0_15 = arith.constant 0 : index
    %14 = vector.load %arg1[%c0_14, %c64, %c0_15] : memref<1x256x128xbf16, #tpu.memory_space<vmem>>, vector<1x16x128xbf16>
    %15 = vector.shape_cast %14 : vector<1x16x128xbf16> to vector<16x128xbf16>
    %c91 = arith.constant 91 : index
    %c0_16 = arith.constant 0 : index
    %16 = vector.load %arg7[%c91, %c0_16] : memref<342x128xbf16, #tpu.memory_space<vmem>>, vector<16x128xbf16>
    tpu.vector_store %arg7[%c91, %c0_16], %15 {strides = array<i32>} : memref<342x128xbf16, #tpu.memory_space<vmem>>, vector<16x128xbf16>,
    %c0_17 = arith.constant 0 : index
    %c80 = arith.constant 80 : index
    %c0_18 = arith.constant 0 : index
    %17 = vector.load %arg1[%c0_17, %c80, %c0_18] : memref<1x256x128xbf16, #tpu.memory_space<vmem>>, vector<1x16x128xbf16>
    %18 = vector.shape_cast %17 : vector<1x16x128xbf16> to vector<16x128xbf16>
    %c109 = arith.constant 109 : index
    %c0_19 = arith.constant 0 : index
    %19 = vector.load %arg7[%c109, %c0_19] : memref<342x128xbf16, #tpu.memory_space<vmem>>, vector<16x128xbf16>
    tpu.vector_store %arg7[%c109, %c0_19], %18 {strides = array<i32>} : memref<342x128xbf16, #tpu.memory_space<vmem>>, vector<16x128xbf16>,
    %c0_20 = arith.constant 0 : index
    %c96 = arith.constant 96 : index
    %c0_21 = arith.constant 0 : index
    %20 = vector.load %arg1[%c0_20, %c96, %c0_21] : memref<1x256x128xbf16, #tpu.memory_space<vmem>>, vector<1x16x128xbf16>
    %21 = vector.shape_cast %20 : vector<1x16x128xbf16> to vector<16x128xbf16>
    %c127 = arith.constant 127 : index
    %c0_22 = arith.constant 0 : index
    %22 = vector.load %arg7[%c127, %c0_22] : memref<342x128xbf16, #tpu.memory_space<vmem>>, vector<16x128xbf16>
    tpu.vector_store %arg7[%c127, %c0_22], %21 {strides = array<i32>} : memref<342x128xbf16, #tpu.memory_space<vmem>>, vector<16x128xbf16>,
    %c0_23 = arith.constant 0 : index
    %c112 = arith.constant 112 : index
    %c0_24 = arith.constant 0 : index
    %23 = vector.load %arg1[%c0_23, %c112, %c0_24] : memref<1x256x128xbf16, #tpu.memory_space<vmem>>, vector<1x16x128xbf16>
    %24 = vector.shape_cast %23 : vector<1x16x128xbf16> to vector<16x128xbf16>
    %c145 = arith.constant 145 : index
    %c0_25 = arith.constant 0 : index
    %25 = vector.load %arg7[%c145, %c0_25] : memref<342x128xbf16, #tpu.memory_space<vmem>>, vector<16x128xbf16>
    tpu.vector_store %arg7[%c145, %c0_25], %24 {strides = array<i32>} : memref<342x128xbf16, #tpu.memory_space<vmem>>, vector<16x128xbf16>,
    %c0_26 = arith.constant 0 : index
    %c128 = arith.constant 128 : index
    %c0_27 = arith.constant 0 : index
    %26 = vector.load %arg1[%c0_26, %c128, %c0_27] : memref<1x256x128xbf16, #tpu.memory_space<vmem>>, vector<1x16x128xbf16>
    %27 = vector.shape_cast %26 : vector<1x16x128xbf16> to vector<16x128xbf16>
    %c163 = arith.constant 163 : index
    %c0_28 = arith.constant 0 : index
    %28 = vector.load %arg7[%c163, %c0_28] : memref<342x128xbf16, #tpu.memory_space<vmem>>, vector<16x128xbf16>
    tpu.vector_store %arg7[%c163, %c0_28], %27 {strides = array<i32>} : memref<342x128xbf16, #tpu.memory_space<vmem>>, vector<16x128xbf16>,
    %c0_29 = arith.constant 0 : index
    %c144 = arith.constant 144 : index
    %c0_30 = arith.constant 0 : index
    %29 = vector.load %arg1[%c0_29, %c144, %c0_30] : memref<1x256x128xbf16, #tpu.memory_space<vmem>>, vector<1x16x128xbf16>
    %30 = vector.shape_cast %29 : vector<1x16x128xbf16> to vector<16x128xbf16>
    %c181 = arith.constant 181 : index
    %c0_31 = arith.constant 0 : index
    %31 = vector.load %arg7[%c181, %c0_31] : memref<342x128xbf16, #tpu.memory_space<vmem>>, vector<16x128xbf16>
    tpu.vector_store %arg7[%c181, %c0_31], %30 {strides = array<i32>} : memref<342x128xbf16, #tpu.memory_space<vmem>>, vector<16x128xbf16>,
    %c0_32 = arith.constant 0 : index
    %c160 = arith.constant 160 : index
    %c0_33 = arith.constant 0 : index
    %32 = vector.load %arg1[%c0_32, %c160, %c0_33] : memref<1x256x128xbf16, #tpu.memory_space<vmem>>, vector<1x16x128xbf16>
    %33 = vector.shape_cast %32 : vector<1x16x128xbf16> to vector<16x128xbf16>
    %c199 = arith.constant 199 : index
    %c0_34 = arith.constant 0 : index
    %34 = vector.load %arg7[%c199, %c0_34] : memref<342x128xbf16, #tpu.memory_space<vmem>>, vector<16x128xbf16>
    tpu.vector_store %arg7[%c199, %c0_34], %33 {strides = array<i32>} : memref<342x128xbf16, #tpu.memory_space<vmem>>, vector<16x128xbf16>,
    %c0_35 = arith.constant 0 : index
    %c176 = arith.constant 176 : index
    %c0_36 = arith.constant 0 : index
    %35 = vector.load %arg1[%c0_35, %c176, %c0_36] : memref<1x256x128xbf16, #tpu.memory_space<vmem>>, vector<1x16x128xbf16>
    %36 = vector.shape_cast %35 : vector<1x16x128xbf16> to vector<16x128xbf16>
    %c217 = arith.constant 217 : index
    %c0_37 = arith.constant 0 : index
    %37 = vector.load %arg7[%c217, %c0_37] : memref<342x128xbf16, #tpu.memory_space<vmem>>, vector<16x128xbf16>
    tpu.vector_store %arg7[%c217, %c0_37], %36 {strides = array<i32>} : memref<342x128xbf16, #tpu.memory_space<vmem>>, vector<16x128xbf16>,
    %c0_38 = arith.constant 0 : index
    %c192 = arith.constant 192 : index
    %c0_39 = arith.constant 0 : index
    %38 = vector.load %arg1[%c0_38, %c192, %c0_39] : memref<1x256x128xbf16, #tpu.memory_space<vmem>>, vector<1x16x128xbf16>
    %39 = vector.shape_cast %38 : vector<1x16x128xbf16> to vector<16x128xbf16>
    %c235 = arith.constant 235 : index
    %c0_40 = arith.constant 0 : index
    %40 = vector.load %arg7[%c235, %c0_40] : memref<342x128xbf16, #tpu.memory_space<vmem>>, vector<16x128xbf16>
    tpu.vector_store %arg7[%c235, %c0_40], %39 {strides = array<i32>} : memref<342x128xbf16, #tpu.memory_space<vmem>>, vector<16x128xbf16>,
    %c0_41 = arith.constant 0 : index
    %c208 = arith.constant 208 : index
    %c0_42 = arith.constant 0 : index
    %41 = vector.load %arg1[%c0_41, %c208, %c0_42] : memref<1x256x128xbf16, #tpu.memory_space<vmem>>, vector<1x16x128xbf16>
    %42 = vector.shape_cast %41 : vector<1x16x128xbf16> to vector<16x128xbf16>
    %c253 = arith.constant 253 : index
    %c0_43 = arith.constant 0 : index
    %43 = vector.load %arg7[%c253, %c0_43] : memref<342x128xbf16, #tpu.memory_space<vmem>>, vector<16x128xbf16>
    tpu.vector_store %arg7[%c253, %c0_43], %42 {strides = array<i32>} : memref<342x128xbf16, #tpu.memory_space<vmem>>, vector<16x128xbf16>,
    %c0_44 = arith.constant 0 : index
    %c224 = arith.constant 224 : index
    %c0_45 = arith.constant 0 : index
    %44 = vector.load %arg1[%c0_44, %c224, %c0_45] : memref<1x256x128xbf16, #tpu.memory_space<vmem>>, vector<1x16x128xbf16>
    %45 = vector.shape_cast %44 : vector<1x16x128xbf16> to vector<16x128xbf16>
    %c271 = arith.constant 271 : index
    %c0_46 = arith.constant 0 : index
    %46 = vector.load %arg7[%c271, %c0_46] : memref<342x128xbf16, #tpu.memory_space<vmem>>, vector<16x128xbf16>
    tpu.vector_store %arg7[%c271, %c0_46], %45 {strides = array<i32>} : memref<342x128xbf16, #tpu.memory_space<vmem>>, vector<16x128xbf16>,
    %c0_47 = arith.constant 0 : index
    %c240 = arith.constant 240 : index
    %c0_48 = arith.constant 0 : index
    %47 = vector.load %arg1[%c0_47, %c240, %c0_48] : memref<1x256x128xbf16, #tpu.memory_space<vmem>>, vector<1x16x128xbf16>
    %48 = vector.shape_cast %47 : vector<1x16x128xbf16> to vector<16x128xbf16>
    %c289 = arith.constant 289 : index
    %c0_49 = arith.constant 0 : index
    %49 = vector.load %arg7[%c289, %c0_49] : memref<342x128xbf16, #tpu.memory_space<vmem>>, vector<16x128xbf16>
    tpu.vector_store %arg7[%c289, %c0_49], %48 {strides = array<i32>} : memref<342x128xbf16, #tpu.memory_space<vmem>>, vector<16x128xbf16>,
    %cst_50 = arith.constant 0.000000e+00 : f32
    %50 = vector.broadcast %cst_50 : f32 to vector<288x128xf32>
    %c0_51 = arith.constant 0 : index
    %c0_52 = arith.constant 0 : index
    %51 = vector.load %arg9[%c0_51, %c0_52] : memref<288x128xf32, #tpu.memory_space<vmem>>, vector<288x128xf32>
    tpu.vector_store %arg9[%c0_51, %c0_52], %50 {strides = array<i32>} : memref<288x128xf32, #tpu.memory_space<vmem>>, vector<288x128xf32>,
    %c0_53 = arith.constant 0 : index
    %c0_54 = arith.constant 0 : index
    %52 = vector.load %arg9[%c0_53, %c0_54] : memref<288x128xf32, #tpu.memory_space<vmem>>, vector<288x128xf32>
    %c0_55 = arith.constant 0 : index
    %c0_56 = arith.constant 0 : index
    %53 = vector.load %arg7[%c0_55, %c0_56] : memref<342x128xbf16, #tpu.memory_space<vmem>>, vector<288x128xbf16>
    %c0_57 = arith.constant 0 : index
    %c0_58 = arith.constant 0 : index
    %c0_59 = arith.constant 0 : index
    %54 = vector.load %arg2[%c0_57, %c0_58, %c0_59] : memref<9x128x128xbf16, #tpu.memory_space<vmem>>, vector<1x128x128xbf16>
    %55 = vector.shape_cast %54 : vector<1x128x128xbf16> to vector<128x128xbf16>
    %cst_60 = arith.constant dense<0.000000e+00> : vector<288x128xf32>
    %56 = tpu.matmul %53, %55, %cst_60 {dimension_numbers = #tpu.dot_dimension_numbers<[1], [0], [0], [1], [0, 0, 1, 1], [], []>} : vector<288x128xbf16>, vector<128x128xbf16>, vector<288x128xf32> -> vector<288x128xf32>
    %57 = arith.addf %52, %56 : vector<288x128xf32>
    %c0_61 = arith.constant 0 : index
    %c0_62 = arith.constant 0 : index
    %58 = vector.load %arg9[%c0_61, %c0_62] : memref<288x128xf32, #tpu.memory_space<vmem>>, vector<288x128xf32>
    tpu.vector_store %arg9[%c0_61, %c0_62], %57 {strides = array<i32>} : memref<288x128xf32, #tpu.memory_space<vmem>>, vector<288x128xf32>,
    %c0_63 = arith.constant 0 : index
    %c0_64 = arith.constant 0 : index
    %59 = vector.load %arg9[%c0_63, %c0_64] : memref<288x128xf32, #tpu.memory_space<vmem>>, vector<288x128xf32>
    %c1 = arith.constant 1 : index
    %c0_65 = arith.constant 0 : index
    %60 = vector.load %arg7[%c1, %c0_65] : memref<342x128xbf16, #tpu.memory_space<vmem>>, vector<288x128xbf16>
    %c1_66 = arith.constant 1 : index
    %c0_67 = arith.constant 0 : index
    %c0_68 = arith.constant 0 : index
    %61 = vector.load %arg2[%c1_66, %c0_67, %c0_68] : memref<9x128x128xbf16, #tpu.memory_space<vmem>>, vector<1x128x128xbf16>
    %62 = vector.shape_cast %61 : vector<1x128x128xbf16> to vector<128x128xbf16>
    %cst_69 = arith.constant dense<0.000000e+00> : vector<288x128xf32>
    %63 = tpu.matmul %60, %62, %cst_69 {dimension_numbers = #tpu.dot_dimension_numbers<[1], [0], [0], [1], [0, 0, 1, 1], [], []>} : vector<288x128xbf16>, vector<128x128xbf16>, vector<288x128xf32> -> vector<288x128xf32>
    %64 = arith.addf %59, %63 : vector<288x128xf32>
    %c0_70 = arith.constant 0 : index
    %c0_71 = arith.constant 0 : index
    %65 = vector.load %arg9[%c0_70, %c0_71] : memref<288x128xf32, #tpu.memory_space<vmem>>, vector<288x128xf32>
    tpu.vector_store %arg9[%c0_70, %c0_71], %64 {strides = array<i32>} : memref<288x128xf32, #tpu.memory_space<vmem>>, vector<288x128xf32>,
    %c0_72 = arith.constant 0 : index
    %c0_73 = arith.constant 0 : index
    %66 = vector.load %arg9[%c0_72, %c0_73] : memref<288x128xf32, #tpu.memory_space<vmem>>, vector<288x128xf32>
    %c2 = arith.constant 2 : index
    %c0_74 = arith.constant 0 : index
    %67 = vector.load %arg7[%c2, %c0_74] : memref<342x128xbf16, #tpu.memory_space<vmem>>, vector<288x128xbf16>
    %c2_75 = arith.constant 2 : index
    %c0_76 = arith.constant 0 : index
    %c0_77 = arith.constant 0 : index
    %68 = vector.load %arg2[%c2_75, %c0_76, %c0_77] : memref<9x128x128xbf16, #tpu.memory_space<vmem>>, vector<1x128x128xbf16>
    %69 = vector.shape_cast %68 : vector<1x128x128xbf16> to vector<128x128xbf16>
    %cst_78 = arith.constant dense<0.000000e+00> : vector<288x128xf32>
    %70 = tpu.matmul %67, %69, %cst_78 {dimension_numbers = #tpu.dot_dimension_numbers<[1], [0], [0], [1], [0, 0, 1, 1], [], []>} : vector<288x128xbf16>, vector<128x128xbf16>, vector<288x128xf32> -> vector<288x128xf32>
    %71 = arith.addf %66, %70 : vector<288x128xf32>
    %c0_79 = arith.constant 0 : index
    %c0_80 = arith.constant 0 : index
    %72 = vector.load %arg9[%c0_79, %c0_80] : memref<288x128xf32, #tpu.memory_space<vmem>>, vector<288x128xf32>
    tpu.vector_store %arg9[%c0_79, %c0_80], %71 {strides = array<i32>} : memref<288x128xf32, #tpu.memory_space<vmem>>, vector<288x128xf32>,
    %c0_81 = arith.constant 0 : index
    %c0_82 = arith.constant 0 : index
    %73 = vector.load %arg9[%c0_81, %c0_82] : memref<288x128xf32, #tpu.memory_space<vmem>>, vector<288x128xf32>
    %c18 = arith.constant 18 : index
    %c0_83 = arith.constant 0 : index
    %74 = vector.load %arg7[%c18, %c0_83] : memref<342x128xbf16, #tpu.memory_space<vmem>>, vector<288x128xbf16>
    %c3 = arith.constant 3 : index
    %c0_84 = arith.constant 0 : index
    %c0_85 = arith.constant 0 : index
    %75 = vector.load %arg2[%c3, %c0_84, %c0_85] : memref<9x128x128xbf16, #tpu.memory_space<vmem>>, vector<1x128x128xbf16>
    %76 = vector.shape_cast %75 : vector<1x128x128xbf16> to vector<128x128xbf16>
    %cst_86 = arith.constant dense<0.000000e+00> : vector<288x128xf32>
    %77 = tpu.matmul %74, %76, %cst_86 {dimension_numbers = #tpu.dot_dimension_numbers<[1], [0], [0], [1], [0, 0, 1, 1], [], []>} : vector<288x128xbf16>, vector<128x128xbf16>, vector<288x128xf32> -> vector<288x128xf32>
    %78 = arith.addf %73, %77 : vector<288x128xf32>
    %c0_87 = arith.constant 0 : index
    %c0_88 = arith.constant 0 : index
    %79 = vector.load %arg9[%c0_87, %c0_88] : memref<288x128xf32, #tpu.memory_space<vmem>>, vector<288x128xf32>
    tpu.vector_store %arg9[%c0_87, %c0_88], %78 {strides = array<i32>} : memref<288x128xf32, #tpu.memory_space<vmem>>, vector<288x128xf32>,
    %c0_89 = arith.constant 0 : index
    %c0_90 = arith.constant 0 : index
    %80 = vector.load %arg9[%c0_89, %c0_90] : memref<288x128xf32, #tpu.memory_space<vmem>>, vector<288x128xf32>
    %c19_91 = arith.constant 19 : index
    %c0_92 = arith.constant 0 : index
    %81 = vector.load %arg7[%c19_91, %c0_92] : memref<342x128xbf16, #tpu.memory_space<vmem>>, vector<288x128xbf16>
    %c4 = arith.constant 4 : index
    %c0_93 = arith.constant 0 : index
    %c0_94 = arith.constant 0 : index
    %82 = vector.load %arg2[%c4, %c0_93, %c0_94] : memref<9x128x128xbf16, #tpu.memory_space<vmem>>, vector<1x128x128xbf16>
    %83 = vector.shape_cast %82 : vector<1x128x128xbf16> to vector<128x128xbf16>
    %cst_95 = arith.constant dense<0.000000e+00> : vector<288x128xf32>
    %84 = tpu.matmul %81, %83, %cst_95 {dimension_numbers = #tpu.dot_dimension_numbers<[1], [0], [0], [1], [0, 0, 1, 1], [], []>} : vector<288x128xbf16>, vector<128x128xbf16>, vector<288x128xf32> -> vector<288x128xf32>
    %85 = arith.addf %80, %84 : vector<288x128xf32>
    %c0_96 = arith.constant 0 : index
    %c0_97 = arith.constant 0 : index
    %86 = vector.load %arg9[%c0_96, %c0_97] : memref<288x128xf32, #tpu.memory_space<vmem>>, vector<288x128xf32>
    tpu.vector_store %arg9[%c0_96, %c0_97], %85 {strides = array<i32>} : memref<288x128xf32, #tpu.memory_space<vmem>>, vector<288x128xf32>,
    %c0_98 = arith.constant 0 : index
    %c0_99 = arith.constant 0 : index
    %87 = vector.load %arg9[%c0_98, %c0_99] : memref<288x128xf32, #tpu.memory_space<vmem>>, vector<288x128xf32>
    %c20 = arith.constant 20 : index
    %c0_100 = arith.constant 0 : index
    %88 = vector.load %arg7[%c20, %c0_100] : memref<342x128xbf16, #tpu.memory_space<vmem>>, vector<288x128xbf16>
    %c5 = arith.constant 5 : index
    %c0_101 = arith.constant 0 : index
    %c0_102 = arith.constant 0 : index
    %89 = vector.load %arg2[%c5, %c0_101, %c0_102] : memref<9x128x128xbf16, #tpu.memory_space<vmem>>, vector<1x128x128xbf16>
    %90 = vector.shape_cast %89 : vector<1x128x128xbf16> to vector<128x128xbf16>
    %cst_103 = arith.constant dense<0.000000e+00> : vector<288x128xf32>
    %91 = tpu.matmul %88, %90, %cst_103 {dimension_numbers = #tpu.dot_dimension_numbers<[1], [0], [0], [1], [0, 0, 1, 1], [], []>} : vector<288x128xbf16>, vector<128x128xbf16>, vector<288x128xf32> -> vector<288x128xf32>
    %92 = arith.addf %87, %91 : vector<288x128xf32>
    %c0_104 = arith.constant 0 : index
    %c0_105 = arith.constant 0 : index
    %93 = vector.load %arg9[%c0_104, %c0_105] : memref<288x128xf32, #tpu.memory_space<vmem>>, vector<288x128xf32>
    tpu.vector_store %arg9[%c0_104, %c0_105], %92 {strides = array<i32>} : memref<288x128xf32, #tpu.memory_space<vmem>>, vector<288x128xf32>,
    %c0_106 = arith.constant 0 : index
    %c0_107 = arith.constant 0 : index
    %94 = vector.load %arg9[%c0_106, %c0_107] : memref<288x128xf32, #tpu.memory_space<vmem>>, vector<288x128xf32>
    %c36 = arith.constant 36 : index
    %c0_108 = arith.constant 0 : index
    %95 = vector.load %arg7[%c36, %c0_108] : memref<342x128xbf16, #tpu.memory_space<vmem>>, vector<288x128xbf16>
    %c6 = arith.constant 6 : index
    %c0_109 = arith.constant 0 : index
    %c0_110 = arith.constant 0 : index
    %96 = vector.load %arg2[%c6, %c0_109, %c0_110] : memref<9x128x128xbf16, #tpu.memory_space<vmem>>, vector<1x128x128xbf16>
    %97 = vector.shape_cast %96 : vector<1x128x128xbf16> to vector<128x128xbf16>
    %cst_111 = arith.constant dense<0.000000e+00> : vector<288x128xf32>
    %98 = tpu.matmul %95, %97, %cst_111 {dimension_numbers = #tpu.dot_dimension_numbers<[1], [0], [0], [1], [0, 0, 1, 1], [], []>} : vector<288x128xbf16>, vector<128x128xbf16>, vector<288x128xf32> -> vector<288x128xf32>
    %99 = arith.addf %94, %98 : vector<288x128xf32>
    %c0_112 = arith.constant 0 : index
    %c0_113 = arith.constant 0 : index
    %100 = vector.load %arg9[%c0_112, %c0_113] : memref<288x128xf32, #tpu.memory_space<vmem>>, vector<288x128xf32>
    tpu.vector_store %arg9[%c0_112, %c0_113], %99 {strides = array<i32>} : memref<288x128xf32, #tpu.memory_space<vmem>>, vector<288x128xf32>,
    %c0_114 = arith.constant 0 : index
    %c0_115 = arith.constant 0 : index
    %101 = vector.load %arg9[%c0_114, %c0_115] : memref<288x128xf32, #tpu.memory_space<vmem>>, vector<288x128xf32>
    %c37_116 = arith.constant 37 : index
    %c0_117 = arith.constant 0 : index
    %102 = vector.load %arg7[%c37_116, %c0_117] : memref<342x128xbf16, #tpu.memory_space<vmem>>, vector<288x128xbf16>
    %c7 = arith.constant 7 : index
    %c0_118 = arith.constant 0 : index
    %c0_119 = arith.constant 0 : index
    %103 = vector.load %arg2[%c7, %c0_118, %c0_119] : memref<9x128x128xbf16, #tpu.memory_space<vmem>>, vector<1x128x128xbf16>
    %104 = vector.shape_cast %103 : vector<1x128x128xbf16> to vector<128x128xbf16>
    %cst_120 = arith.constant dense<0.000000e+00> : vector<288x128xf32>
    %105 = tpu.matmul %102, %104, %cst_120 {dimension_numbers = #tpu.dot_dimension_numbers<[1], [0], [0], [1], [0, 0, 1, 1], [], []>} : vector<288x128xbf16>, vector<128x128xbf16>, vector<288x128xf32> -> vector<288x128xf32>
    %106 = arith.addf %101, %105 : vector<288x128xf32>
    %c0_121 = arith.constant 0 : index
    %c0_122 = arith.constant 0 : index
    %107 = vector.load %arg9[%c0_121, %c0_122] : memref<288x128xf32, #tpu.memory_space<vmem>>, vector<288x128xf32>
    tpu.vector_store %arg9[%c0_121, %c0_122], %106 {strides = array<i32>} : memref<288x128xf32, #tpu.memory_space<vmem>>, vector<288x128xf32>,
    %c0_123 = arith.constant 0 : index
    %c0_124 = arith.constant 0 : index
    %108 = vector.load %arg9[%c0_123, %c0_124] : memref<288x128xf32, #tpu.memory_space<vmem>>, vector<288x128xf32>
    %c38 = arith.constant 38 : index
    %c0_125 = arith.constant 0 : index
    %109 = vector.load %arg7[%c38, %c0_125] : memref<342x128xbf16, #tpu.memory_space<vmem>>, vector<288x128xbf16>
    %c8 = arith.constant 8 : index
    %c0_126 = arith.constant 0 : index
    %c0_127 = arith.constant 0 : index
    %110 = vector.load %arg2[%c8, %c0_126, %c0_127] : memref<9x128x128xbf16, #tpu.memory_space<vmem>>, vector<1x128x128xbf16>
    %111 = vector.shape_cast %110 : vector<1x128x128xbf16> to vector<128x128xbf16>
    %cst_128 = arith.constant dense<0.000000e+00> : vector<288x128xf32>
    %112 = tpu.matmul %109, %111, %cst_128 {dimension_numbers = #tpu.dot_dimension_numbers<[1], [0], [0], [1], [0, 0, 1, 1], [], []>} : vector<288x128xbf16>, vector<128x128xbf16>, vector<288x128xf32> -> vector<288x128xf32>
    %113 = arith.addf %108, %112 : vector<288x128xf32>
    %c0_129 = arith.constant 0 : index
    %c0_130 = arith.constant 0 : index
    %114 = vector.load %arg9[%c0_129, %c0_130] : memref<288x128xf32, #tpu.memory_space<vmem>>, vector<288x128xf32>
    tpu.vector_store %arg9[%c0_129, %c0_130], %113 {strides = array<i32>} : memref<288x128xf32, #tpu.memory_space<vmem>>, vector<288x128xf32>,
    %c0_131 = arith.constant 0 : index
    %c0_132 = arith.constant 0 : index
    %115 = vector.load %arg9[%c0_131, %c0_132] : memref<288x128xf32, #tpu.memory_space<vmem>>, vector<288x128xf32>
    %c0_133 = arith.constant 0 : index
    %c0_134 = arith.constant 0 : index
    %116 = vector.load %arg3[%c0_133, %c0_134] : memref<1x128xf32, #tpu.memory_space<vmem>>, vector<1x128xf32>
    %117 = vector.broadcast %116 : vector<1x128xf32> to vector<288x128xf32>
    %118 = arith.addf %115, %117 : vector<288x128xf32>
    %119 = arith.negf %118 : vector<288x128xf32>
    %120 = math.exp %119 : vector<288x128xf32>
    %cst_135 = arith.constant 1.000000e+00 : f32
    %121 = vector.broadcast %cst_135 : f32 to vector<288x128xf32>
    %122 = arith.addf %121, %120 : vector<288x128xf32>
    %123 = arith.divf %121, %122 : vector<288x128xf32>
    %124 = arith.mulf %118, %123 : vector<288x128xf32>
    %cst_136 = arith.constant 0.000000e+00 : bf16
    %125 = vector.broadcast %cst_136 : bf16 to vector<342x128xbf16>
    %c0_137 = arith.constant 0 : index
    %c0_138 = arith.constant 0 : index
    %126 = vector.load %arg8[%c0_137, %c0_138] : memref<342x128xbf16, #tpu.memory_space<vmem>>, vector<342x128xbf16>
    tpu.vector_store %arg8[%c0_137, %c0_138], %125 {strides = array<i32>} : memref<342x128xbf16, #tpu.memory_space<vmem>>, vector<342x128xbf16>,
    %127 = vector.extract_strided_slice %124 {offsets = [0, 0], sizes = [16, 128], strides = [1, 1]} : vector<288x128xf32> to vector<16x128xf32>
    %128 = arith.truncf %127 : vector<16x128xf32> to vector<16x128xbf16>
    %c19_139 = arith.constant 19 : index
    %c0_140 = arith.constant 0 : index
    %129 = vector.load %arg8[%c19_139, %c0_140] : memref<342x128xbf16, #tpu.memory_space<vmem>>, vector<16x128xbf16>
    tpu.vector_store %arg8[%c19_139, %c0_140], %128 {strides = array<i32>} : memref<342x128xbf16, #tpu.memory_space<vmem>>, vector<16x128xbf16>,
    %130 = vector.extract_strided_slice %124 {offsets = [18, 0], sizes = [16, 128], strides = [1, 1]} : vector<288x128xf32> to vector<16x128xf32>
    %131 = arith.truncf %130 : vector<16x128xf32> to vector<16x128xbf16>
    %c37_141 = arith.constant 37 : index
    %c0_142 = arith.constant 0 : index
    %132 = vector.load %arg8[%c37_141, %c0_142] : memref<342x128xbf16, #tpu.memory_space<vmem>>, vector<16x128xbf16>
    tpu.vector_store %arg8[%c37_141, %c0_142], %131 {strides = array<i32>} : memref<342x128xbf16, #tpu.memory_space<vmem>>, vector<16x128xbf16>,
    %133 = vector.extract_strided_slice %124 {offsets = [36, 0], sizes = [16, 128], strides = [1, 1]} : vector<288x128xf32> to vector<16x128xf32>
    %134 = arith.truncf %133 : vector<16x128xf32> to vector<16x128xbf16>
    %c55_143 = arith.constant 55 : index
    %c0_144 = arith.constant 0 : index
    %135 = vector.load %arg8[%c55_143, %c0_144] : memref<342x128xbf16, #tpu.memory_space<vmem>>, vector<16x128xbf16>
    tpu.vector_store %arg8[%c55_143, %c0_144], %134 {strides = array<i32>} : memref<342x128xbf16, #tpu.memory_space<vmem>>, vector<16x128xbf16>,
    %136 = vector.extract_strided_slice %124 {offsets = [54, 0], sizes = [16, 128], strides = [1, 1]} : vector<288x128xf32> to vector<16x128xf32>
    %137 = arith.truncf %136 : vector<16x128xf32> to vector<16x128xbf16>
    %c73_145 = arith.constant 73 : index
    %c0_146 = arith.constant 0 : index
    %138 = vector.load %arg8[%c73_145, %c0_146] : memref<342x128xbf16, #tpu.memory_space<vmem>>, vector<16x128xbf16>
    tpu.vector_store %arg8[%c73_145, %c0_146], %137 {strides = array<i32>} : memref<342x128xbf16, #tpu.memory_space<vmem>>, vector<16x128xbf16>,
    %139 = vector.extract_strided_slice %124 {offsets = [72, 0], sizes = [16, 128], strides = [1, 1]} : vector<288x128xf32> to vector<16x128xf32>
    %140 = arith.truncf %139 : vector<16x128xf32> to vector<16x128xbf16>
    %c91_147 = arith.constant 91 : index
    %c0_148 = arith.constant 0 : index
    %141 = vector.load %arg8[%c91_147, %c0_148] : memref<342x128xbf16, #tpu.memory_space<vmem>>, vector<16x128xbf16>
    tpu.vector_store %arg8[%c91_147, %c0_148], %140 {strides = array<i32>} : memref<342x128xbf16, #tpu.memory_space<vmem>>, vector<16x128xbf16>,
    %142 = vector.extract_strided_slice %124 {offsets = [90, 0], sizes = [16, 128], strides = [1, 1]} : vector<288x128xf32> to vector<16x128xf32>
    %143 = arith.truncf %142 : vector<16x128xf32> to vector<16x128xbf16>
    %c109_149 = arith.constant 109 : index
    %c0_150 = arith.constant 0 : index
    %144 = vector.load %arg8[%c109_149, %c0_150] : memref<342x128xbf16, #tpu.memory_space<vmem>>, vector<16x128xbf16>
    tpu.vector_store %arg8[%c109_149, %c0_150], %143 {strides = array<i32>} : memref<342x128xbf16, #tpu.memory_space<vmem>>, vector<16x128xbf16>,
    %145 = vector.extract_strided_slice %124 {offsets = [108, 0], sizes = [16, 128], strides = [1, 1]} : vector<288x128xf32> to vector<16x128xf32>
    %146 = arith.truncf %145 : vector<16x128xf32> to vector<16x128xbf16>
    %c127_151 = arith.constant 127 : index
    %c0_152 = arith.constant 0 : index
    %147 = vector.load %arg8[%c127_151, %c0_152] : memref<342x128xbf16, #tpu.memory_space<vmem>>, vector<16x128xbf16>
    tpu.vector_store %arg8[%c127_151, %c0_152], %146 {strides = array<i32>} : memref<342x128xbf16, #tpu.memory_space<vmem>>, vector<16x128xbf16>,
    %148 = vector.extract_strided_slice %124 {offsets = [126, 0], sizes = [16, 128], strides = [1, 1]} : vector<288x128xf32> to vector<16x128xf32>
    %149 = arith.truncf %148 : vector<16x128xf32> to vector<16x128xbf16>
    %c145_153 = arith.constant 145 : index
    %c0_154 = arith.constant 0 : index
    %150 = vector.load %arg8[%c145_153, %c0_154] : memref<342x128xbf16, #tpu.memory_space<vmem>>, vector<16x128xbf16>
    tpu.vector_store %arg8[%c145_153, %c0_154], %149 {strides = array<i32>} : memref<342x128xbf16, #tpu.memory_space<vmem>>, vector<16x128xbf16>,
    %151 = vector.extract_strided_slice %124 {offsets = [144, 0], sizes = [16, 128], strides = [1, 1]} : vector<288x128xf32> to vector<16x128xf32>
    %152 = arith.truncf %151 : vector<16x128xf32> to vector<16x128xbf16>
    %c163_155 = arith.constant 163 : index
    %c0_156 = arith.constant 0 : index
    %153 = vector.load %arg8[%c163_155, %c0_156] : memref<342x128xbf16, #tpu.memory_space<vmem>>, vector<16x128xbf16>
    tpu.vector_store %arg8[%c163_155, %c0_156], %152 {strides = array<i32>} : memref<342x128xbf16, #tpu.memory_space<vmem>>, vector<16x128xbf16>,
    %154 = vector.extract_strided_slice %124 {offsets = [162, 0], sizes = [16, 128], strides = [1, 1]} : vector<288x128xf32> to vector<16x128xf32>
    %155 = arith.truncf %154 : vector<16x128xf32> to vector<16x128xbf16>
    %c181_157 = arith.constant 181 : index
    %c0_158 = arith.constant 0 : index
    %156 = vector.load %arg8[%c181_157, %c0_158] : memref<342x128xbf16, #tpu.memory_space<vmem>>, vector<16x128xbf16>
    tpu.vector_store %arg8[%c181_157, %c0_158], %155 {strides = array<i32>} : memref<342x128xbf16, #tpu.memory_space<vmem>>, vector<16x128xbf16>,
    %157 = vector.extract_strided_slice %124 {offsets = [180, 0], sizes = [16, 128], strides = [1, 1]} : vector<288x128xf32> to vector<16x128xf32>
    %158 = arith.truncf %157 : vector<16x128xf32> to vector<16x128xbf16>
    %c199_159 = arith.constant 199 : index
    %c0_160 = arith.constant 0 : index
    %159 = vector.load %arg8[%c199_159, %c0_160] : memref<342x128xbf16, #tpu.memory_space<vmem>>, vector<16x128xbf16>
    tpu.vector_store %arg8[%c199_159, %c0_160], %158 {strides = array<i32>} : memref<342x128xbf16, #tpu.memory_space<vmem>>, vector<16x128xbf16>,
    %160 = vector.extract_strided_slice %124 {offsets = [198, 0], sizes = [16, 128], strides = [1, 1]} : vector<288x128xf32> to vector<16x128xf32>
    %161 = arith.truncf %160 : vector<16x128xf32> to vector<16x128xbf16>
    %c217_161 = arith.constant 217 : index
    %c0_162 = arith.constant 0 : index
    %162 = vector.load %arg8[%c217_161, %c0_162] : memref<342x128xbf16, #tpu.memory_space<vmem>>, vector<16x128xbf16>
    tpu.vector_store %arg8[%c217_161, %c0_162], %161 {strides = array<i32>} : memref<342x128xbf16, #tpu.memory_space<vmem>>, vector<16x128xbf16>,
    %163 = vector.extract_strided_slice %124 {offsets = [216, 0], sizes = [16, 128], strides = [1, 1]} : vector<288x128xf32> to vector<16x128xf32>
    %164 = arith.truncf %163 : vector<16x128xf32> to vector<16x128xbf16>
    %c235_163 = arith.constant 235 : index
    %c0_164 = arith.constant 0 : index
    %165 = vector.load %arg8[%c235_163, %c0_164] : memref<342x128xbf16, #tpu.memory_space<vmem>>, vector<16x128xbf16>
    tpu.vector_store %arg8[%c235_163, %c0_164], %164 {strides = array<i32>} : memref<342x128xbf16, #tpu.memory_space<vmem>>, vector<16x128xbf16>,
    %166 = vector.extract_strided_slice %124 {offsets = [234, 0], sizes = [16, 128], strides = [1, 1]} : vector<288x128xf32> to vector<16x128xf32>
    %167 = arith.truncf %166 : vector<16x128xf32> to vector<16x128xbf16>
    %c253_165 = arith.constant 253 : index
    %c0_166 = arith.constant 0 : index
    %168 = vector.load %arg8[%c253_165, %c0_166] : memref<342x128xbf16, #tpu.memory_space<vmem>>, vector<16x128xbf16>
    tpu.vector_store %arg8[%c253_165, %c0_166], %167 {strides = array<i32>} : memref<342x128xbf16, #tpu.memory_space<vmem>>, vector<16x128xbf16>,
    %169 = vector.extract_strided_slice %124 {offsets = [252, 0], sizes = [16, 128], strides = [1, 1]} : vector<288x128xf32> to vector<16x128xf32>
    %170 = arith.truncf %169 : vector<16x128xf32> to vector<16x128xbf16>
    %c271_167 = arith.constant 271 : index
    %c0_168 = arith.constant 0 : index
    %171 = vector.load %arg8[%c271_167, %c0_168] : memref<342x128xbf16, #tpu.memory_space<vmem>>, vector<16x128xbf16>
    tpu.vector_store %arg8[%c271_167, %c0_168], %170 {strides = array<i32>} : memref<342x128xbf16, #tpu.memory_space<vmem>>, vector<16x128xbf16>,
    %172 = vector.extract_strided_slice %124 {offsets = [270, 0], sizes = [16, 128], strides = [1, 1]} : vector<288x128xf32> to vector<16x128xf32>
    %173 = arith.truncf %172 : vector<16x128xf32> to vector<16x128xbf16>
    %c289_169 = arith.constant 289 : index
    %c0_170 = arith.constant 0 : index
    %174 = vector.load %arg8[%c289_169, %c0_170] : memref<342x128xbf16, #tpu.memory_space<vmem>>, vector<16x128xbf16>
    tpu.vector_store %arg8[%c289_169, %c0_170], %173 {strides = array<i32>} : memref<342x128xbf16, #tpu.memory_space<vmem>>, vector<16x128xbf16>,
    %cst_171 = arith.constant 0.000000e+00 : f32
    %175 = vector.broadcast %cst_171 : f32 to vector<288x128xf32>
    %c0_172 = arith.constant 0 : index
    %c0_173 = arith.constant 0 : index
    %176 = vector.load %arg9[%c0_172, %c0_173] : memref<288x128xf32, #tpu.memory_space<vmem>>, vector<288x128xf32>
    tpu.vector_store %arg9[%c0_172, %c0_173], %175 {strides = array<i32>} : memref<288x128xf32, #tpu.memory_space<vmem>>, vector<288x128xf32>,
    %c0_174 = arith.constant 0 : index
    %c0_175 = arith.constant 0 : index
    %177 = vector.load %arg9[%c0_174, %c0_175] : memref<288x128xf32, #tpu.memory_space<vmem>>, vector<288x128xf32>
    %c0_176 = arith.constant 0 : index
    %c0_177 = arith.constant 0 : index
    %178 = vector.load %arg8[%c0_176, %c0_177] : memref<342x128xbf16, #tpu.memory_space<vmem>>, vector<288x128xbf16>
    %c0_178 = arith.constant 0 : index
    %c0_179 = arith.constant 0 : index
    %c0_180 = arith.constant 0 : index
    %179 = vector.load %arg4[%c0_178, %c0_179, %c0_180] : memref<9x128x128xbf16, #tpu.memory_space<vmem>>, vector<1x128x128xbf16>
    %180 = vector.shape_cast %179 : vector<1x128x128xbf16> to vector<128x128xbf16>
    %cst_181 = arith.constant dense<0.000000e+00> : vector<288x128xf32>
    %181 = tpu.matmul %178, %180, %cst_181 {dimension_numbers = #tpu.dot_dimension_numbers<[1], [0], [0], [1], [0, 0, 1, 1], [], []>} : vector<288x128xbf16>, vector<128x128xbf16>, vector<288x128xf32> -> vector<288x128xf32>
    %182 = arith.addf %177, %181 : vector<288x128xf32>
    %c0_182 = arith.constant 0 : index
    %c0_183 = arith.constant 0 : index
    %183 = vector.load %arg9[%c0_182, %c0_183] : memref<288x128xf32, #tpu.memory_space<vmem>>, vector<288x128xf32>
    tpu.vector_store %arg9[%c0_182, %c0_183], %182 {strides = array<i32>} : memref<288x128xf32, #tpu.memory_space<vmem>>, vector<288x128xf32>,
    %c0_184 = arith.constant 0 : index
    %c0_185 = arith.constant 0 : index
    %184 = vector.load %arg9[%c0_184, %c0_185] : memref<288x128xf32, #tpu.memory_space<vmem>>, vector<288x128xf32>
    %c1_186 = arith.constant 1 : index
    %c0_187 = arith.constant 0 : index
    %185 = vector.load %arg8[%c1_186, %c0_187] : memref<342x128xbf16, #tpu.memory_space<vmem>>, vector<288x128xbf16>
    %c1_188 = arith.constant 1 : index
    %c0_189 = arith.constant 0 : index
    %c0_190 = arith.constant 0 : index
    %186 = vector.load %arg4[%c1_188, %c0_189, %c0_190] : memref<9x128x128xbf16, #tpu.memory_space<vmem>>, vector<1x128x128xbf16>
    %187 = vector.shape_cast %186 : vector<1x128x128xbf16> to vector<128x128xbf16>
    %cst_191 = arith.constant dense<0.000000e+00> : vector<288x128xf32>
    %188 = tpu.matmul %185, %187, %cst_191 {dimension_numbers = #tpu.dot_dimension_numbers<[1], [0], [0], [1], [0, 0, 1, 1], [], []>} : vector<288x128xbf16>, vector<128x128xbf16>, vector<288x128xf32> -> vector<288x128xf32>
    %189 = arith.addf %184, %188 : vector<288x128xf32>
    %c0_192 = arith.constant 0 : index
    %c0_193 = arith.constant 0 : index
    %190 = vector.load %arg9[%c0_192, %c0_193] : memref<288x128xf32, #tpu.memory_space<vmem>>, vector<288x128xf32>
    tpu.vector_store %arg9[%c0_192, %c0_193], %189 {strides = array<i32>} : memref<288x128xf32, #tpu.memory_space<vmem>>, vector<288x128xf32>,
    %c0_194 = arith.constant 0 : index
    %c0_195 = arith.constant 0 : index
    %191 = vector.load %arg9[%c0_194, %c0_195] : memref<288x128xf32, #tpu.memory_space<vmem>>, vector<288x128xf32>
    %c2_196 = arith.constant 2 : index
    %c0_197 = arith.constant 0 : index
    %192 = vector.load %arg8[%c2_196, %c0_197] : memref<342x128xbf16, #tpu.memory_space<vmem>>, vector<288x128xbf16>
    %c2_198 = arith.constant 2 : index
    %c0_199 = arith.constant 0 : index
    %c0_200 = arith.constant 0 : index
    %193 = vector.load %arg4[%c2_198, %c0_199, %c0_200] : memref<9x128x128xbf16, #tpu.memory_space<vmem>>, vector<1x128x128xbf16>
    %194 = vector.shape_cast %193 : vector<1x128x128xbf16> to vector<128x128xbf16>
    %cst_201 = arith.constant dense<0.000000e+00> : vector<288x128xf32>
    %195 = tpu.matmul %192, %194, %cst_201 {dimension_numbers = #tpu.dot_dimension_numbers<[1], [0], [0], [1], [0, 0, 1, 1], [], []>} : vector<288x128xbf16>, vector<128x128xbf16>, vector<288x128xf32> -> vector<288x128xf32>
    %196 = arith.addf %191, %195 : vector<288x128xf32>
    %c0_202 = arith.constant 0 : index
    %c0_203 = arith.constant 0 : index
    %197 = vector.load %arg9[%c0_202, %c0_203] : memref<288x128xf32, #tpu.memory_space<vmem>>, vector<288x128xf32>
    tpu.vector_store %arg9[%c0_202, %c0_203], %196 {strides = array<i32>} : memref<288x128xf32, #tpu.memory_space<vmem>>, vector<288x128xf32>,
    %c0_204 = arith.constant 0 : index
    %c0_205 = arith.constant 0 : index
    %198 = vector.load %arg9[%c0_204, %c0_205] : memref<288x128xf32, #tpu.memory_space<vmem>>, vector<288x128xf32>
    %c18_206 = arith.constant 18 : index
    %c0_207 = arith.constant 0 : index
    %199 = vector.load %arg8[%c18_206, %c0_207] : memref<342x128xbf16, #tpu.memory_space<vmem>>, vector<288x128xbf16>
    %c3_208 = arith.constant 3 : index
    %c0_209 = arith.constant 0 : index
    %c0_210 = arith.constant 0 : index
    %200 = vector.load %arg4[%c3_208, %c0_209, %c0_210] : memref<9x128x128xbf16, #tpu.memory_space<vmem>>, vector<1x128x128xbf16>
    %201 = vector.shape_cast %200 : vector<1x128x128xbf16> to vector<128x128xbf16>
    %cst_211 = arith.constant dense<0.000000e+00> : vector<288x128xf32>
    %202 = tpu.matmul %199, %201, %cst_211 {dimension_numbers = #tpu.dot_dimension_numbers<[1], [0], [0], [1], [0, 0, 1, 1], [], []>} : vector<288x128xbf16>, vector<128x128xbf16>, vector<288x128xf32> -> vector<288x128xf32>
    %203 = arith.addf %198, %202 : vector<288x128xf32>
    %c0_212 = arith.constant 0 : index
    %c0_213 = arith.constant 0 : index
    %204 = vector.load %arg9[%c0_212, %c0_213] : memref<288x128xf32, #tpu.memory_space<vmem>>, vector<288x128xf32>
    tpu.vector_store %arg9[%c0_212, %c0_213], %203 {strides = array<i32>} : memref<288x128xf32, #tpu.memory_space<vmem>>, vector<288x128xf32>,
    %c0_214 = arith.constant 0 : index
    %c0_215 = arith.constant 0 : index
    %205 = vector.load %arg9[%c0_214, %c0_215] : memref<288x128xf32, #tpu.memory_space<vmem>>, vector<288x128xf32>
    %c19_216 = arith.constant 19 : index
    %c0_217 = arith.constant 0 : index
    %206 = vector.load %arg8[%c19_216, %c0_217] : memref<342x128xbf16, #tpu.memory_space<vmem>>, vector<288x128xbf16>
    %c4_218 = arith.constant 4 : index
    %c0_219 = arith.constant 0 : index
    %c0_220 = arith.constant 0 : index
    %207 = vector.load %arg4[%c4_218, %c0_219, %c0_220] : memref<9x128x128xbf16, #tpu.memory_space<vmem>>, vector<1x128x128xbf16>
    %208 = vector.shape_cast %207 : vector<1x128x128xbf16> to vector<128x128xbf16>
    %cst_221 = arith.constant dense<0.000000e+00> : vector<288x128xf32>
    %209 = tpu.matmul %206, %208, %cst_221 {dimension_numbers = #tpu.dot_dimension_numbers<[1], [0], [0], [1], [0, 0, 1, 1], [], []>} : vector<288x128xbf16>, vector<128x128xbf16>, vector<288x128xf32> -> vector<288x128xf32>
    %210 = arith.addf %205, %209 : vector<288x128xf32>
    %c0_222 = arith.constant 0 : index
    %c0_223 = arith.constant 0 : index
    %211 = vector.load %arg9[%c0_222, %c0_223] : memref<288x128xf32, #tpu.memory_space<vmem>>, vector<288x128xf32>
    tpu.vector_store %arg9[%c0_222, %c0_223], %210 {strides = array<i32>} : memref<288x128xf32, #tpu.memory_space<vmem>>, vector<288x128xf32>,
    %c0_224 = arith.constant 0 : index
    %c0_225 = arith.constant 0 : index
    %212 = vector.load %arg9[%c0_224, %c0_225] : memref<288x128xf32, #tpu.memory_space<vmem>>, vector<288x128xf32>
    %c20_226 = arith.constant 20 : index
    %c0_227 = arith.constant 0 : index
    %213 = vector.load %arg8[%c20_226, %c0_227] : memref<342x128xbf16, #tpu.memory_space<vmem>>, vector<288x128xbf16>
    %c5_228 = arith.constant 5 : index
    %c0_229 = arith.constant 0 : index
    %c0_230 = arith.constant 0 : index
    %214 = vector.load %arg4[%c5_228, %c0_229, %c0_230] : memref<9x128x128xbf16, #tpu.memory_space<vmem>>, vector<1x128x128xbf16>
    %215 = vector.shape_cast %214 : vector<1x128x128xbf16> to vector<128x128xbf16>
    %cst_231 = arith.constant dense<0.000000e+00> : vector<288x128xf32>
    %216 = tpu.matmul %213, %215, %cst_231 {dimension_numbers = #tpu.dot_dimension_numbers<[1], [0], [0], [1], [0, 0, 1, 1], [], []>} : vector<288x128xbf16>, vector<128x128xbf16>, vector<288x128xf32> -> vector<288x128xf32>
    %217 = arith.addf %212, %216 : vector<288x128xf32>
    %c0_232 = arith.constant 0 : index
    %c0_233 = arith.constant 0 : index
    %218 = vector.load %arg9[%c0_232, %c0_233] : memref<288x128xf32, #tpu.memory_space<vmem>>, vector<288x128xf32>
    tpu.vector_store %arg9[%c0_232, %c0_233], %217 {strides = array<i32>} : memref<288x128xf32, #tpu.memory_space<vmem>>, vector<288x128xf32>,
    %c0_234 = arith.constant 0 : index
    %c0_235 = arith.constant 0 : index
    %219 = vector.load %arg9[%c0_234, %c0_235] : memref<288x128xf32, #tpu.memory_space<vmem>>, vector<288x128xf32>
    %c36_236 = arith.constant 36 : index
    %c0_237 = arith.constant 0 : index
    %220 = vector.load %arg8[%c36_236, %c0_237] : memref<342x128xbf16, #tpu.memory_space<vmem>>, vector<288x128xbf16>
    %c6_238 = arith.constant 6 : index
    %c0_239 = arith.constant 0 : index
    %c0_240 = arith.constant 0 : index
    %221 = vector.load %arg4[%c6_238, %c0_239, %c0_240] : memref<9x128x128xbf16, #tpu.memory_space<vmem>>, vector<1x128x128xbf16>
    %222 = vector.shape_cast %221 : vector<1x128x128xbf16> to vector<128x128xbf16>
    %cst_241 = arith.constant dense<0.000000e+00> : vector<288x128xf32>
    %223 = tpu.matmul %220, %222, %cst_241 {dimension_numbers = #tpu.dot_dimension_numbers<[1], [0], [0], [1], [0, 0, 1, 1], [], []>} : vector<288x128xbf16>, vector<128x128xbf16>, vector<288x128xf32> -> vector<288x128xf32>
    %224 = arith.addf %219, %223 : vector<288x128xf32>
    %c0_242 = arith.constant 0 : index
    %c0_243 = arith.constant 0 : index
    %225 = vector.load %arg9[%c0_242, %c0_243] : memref<288x128xf32, #tpu.memory_space<vmem>>, vector<288x128xf32>
    tpu.vector_store %arg9[%c0_242, %c0_243], %224 {strides = array<i32>} : memref<288x128xf32, #tpu.memory_space<vmem>>, vector<288x128xf32>,
    %c0_244 = arith.constant 0 : index
    %c0_245 = arith.constant 0 : index
    %226 = vector.load %arg9[%c0_244, %c0_245] : memref<288x128xf32, #tpu.memory_space<vmem>>, vector<288x128xf32>
    %c37_246 = arith.constant 37 : index
    %c0_247 = arith.constant 0 : index
    %227 = vector.load %arg8[%c37_246, %c0_247] : memref<342x128xbf16, #tpu.memory_space<vmem>>, vector<288x128xbf16>
    %c7_248 = arith.constant 7 : index
    %c0_249 = arith.constant 0 : index
    %c0_250 = arith.constant 0 : index
    %228 = vector.load %arg4[%c7_248, %c0_249, %c0_250] : memref<9x128x128xbf16, #tpu.memory_space<vmem>>, vector<1x128x128xbf16>
    %229 = vector.shape_cast %228 : vector<1x128x128xbf16> to vector<128x128xbf16>
    %cst_251 = arith.constant dense<0.000000e+00> : vector<288x128xf32>
    %230 = tpu.matmul %227, %229, %cst_251 {dimension_numbers = #tpu.dot_dimension_numbers<[1], [0], [0], [1], [0, 0, 1, 1], [], []>} : vector<288x128xbf16>, vector<128x128xbf16>, vector<288x128xf32> -> vector<288x128xf32>
    %231 = arith.addf %226, %230 : vector<288x128xf32>
    %c0_252 = arith.constant 0 : index
    %c0_253 = arith.constant 0 : index
    %232 = vector.load %arg9[%c0_252, %c0_253] : memref<288x128xf32, #tpu.memory_space<vmem>>, vector<288x128xf32>
    tpu.vector_store %arg9[%c0_252, %c0_253], %231 {strides = array<i32>} : memref<288x128xf32, #tpu.memory_space<vmem>>, vector<288x128xf32>,
    %c0_254 = arith.constant 0 : index
    %c0_255 = arith.constant 0 : index
    %233 = vector.load %arg9[%c0_254, %c0_255] : memref<288x128xf32, #tpu.memory_space<vmem>>, vector<288x128xf32>
    %c38_256 = arith.constant 38 : index
    %c0_257 = arith.constant 0 : index
    %234 = vector.load %arg8[%c38_256, %c0_257] : memref<342x128xbf16, #tpu.memory_space<vmem>>, vector<288x128xbf16>
    %c8_258 = arith.constant 8 : index
    %c0_259 = arith.constant 0 : index
    %c0_260 = arith.constant 0 : index
    %235 = vector.load %arg4[%c8_258, %c0_259, %c0_260] : memref<9x128x128xbf16, #tpu.memory_space<vmem>>, vector<1x128x128xbf16>
    %236 = vector.shape_cast %235 : vector<1x128x128xbf16> to vector<128x128xbf16>
    %cst_261 = arith.constant dense<0.000000e+00> : vector<288x128xf32>
    %237 = tpu.matmul %234, %236, %cst_261 {dimension_numbers = #tpu.dot_dimension_numbers<[1], [0], [0], [1], [0, 0, 1, 1], [], []>} : vector<288x128xbf16>, vector<128x128xbf16>, vector<288x128xf32> -> vector<288x128xf32>
    %238 = arith.addf %233, %237 : vector<288x128xf32>
    %c0_262 = arith.constant 0 : index
    %c0_263 = arith.constant 0 : index
    %239 = vector.load %arg9[%c0_262, %c0_263] : memref<288x128xf32, #tpu.memory_space<vmem>>, vector<288x128xf32>
    tpu.vector_store %arg9[%c0_262, %c0_263], %238 {strides = array<i32>} : memref<288x128xf32, #tpu.memory_space<vmem>>, vector<288x128xf32>,
    %c0_264 = arith.constant 0 : index
    %c0_265 = arith.constant 0 : index
    %240 = vector.load %arg9[%c0_264, %c0_265] : memref<288x128xf32, #tpu.memory_space<vmem>>, vector<288x128xf32>
    %c0_266 = arith.constant 0 : index
    %c0_267 = arith.constant 0 : index
    %241 = vector.load %arg5[%c0_266, %c0_267] : memref<1x128xf32, #tpu.memory_space<vmem>>, vector<1x128xf32>
    %242 = vector.broadcast %241 : vector<1x128xf32> to vector<288x128xf32>
    %243 = arith.addf %240, %242 : vector<288x128xf32>
    %244 = arith.negf %243 : vector<288x128xf32>
    %245 = math.exp %244 : vector<288x128xf32>
    %cst_268 = arith.constant 1.000000e+00 : f32
    %246 = vector.broadcast %cst_268 : f32 to vector<288x128xf32>
    %247 = arith.addf %246, %245 : vector<288x128xf32>
    %248 = arith.divf %246, %247 : vector<288x128xf32>
    %249 = arith.mulf %243, %248 : vector<288x128xf32>
    %250 = vector.extract_strided_slice %249 {offsets = [0, 0], sizes = [16, 128], strides = [1, 1]} : vector<288x128xf32> to vector<16x128xf32>
    %c0_269 = arith.constant 0 : index
    %c0_270 = arith.constant 0 : index
    %c0_271 = arith.constant 0 : index
    %251 = vector.load %arg1[%c0_269, %c0_270, %c0_271] : memref<1x256x128xbf16, #tpu.memory_space<vmem>>, vector<1x16x128xbf16>
    %252 = vector.shape_cast %251 : vector<1x16x128xbf16> to vector<16x128xbf16>
    %253 = arith.extf %252 : vector<16x128xbf16> to vector<16x128xf32>
    %254 = arith.addf %250, %253 : vector<16x128xf32>
    %255 = arith.truncf %254 : vector<16x128xf32> to vector<16x128xbf16>
    %c0_272 = arith.constant 0 : index
    %c0_273 = arith.constant 0 : index
    %c0_274 = arith.constant 0 : index
    %256 = vector.load %arg6[%c0_272, %c0_273, %c0_274] : memref<1x256x128xbf16, #tpu.memory_space<vmem>>, vector<1x16x128xbf16>
    %257 = vector.shape_cast %256 : vector<1x16x128xbf16> to vector<16x128xbf16>
    %258 = vector.shape_cast %255 : vector<16x128xbf16> to vector<1x16x128xbf16>
    tpu.vector_store %arg6[%c0_272, %c0_273, %c0_274], %258 {strides = array<i32>} : memref<1x256x128xbf16, #tpu.memory_space<vmem>>, vector<1x16x128xbf16>,
    %259 = vector.extract_strided_slice %249 {offsets = [18, 0], sizes = [16, 128], strides = [1, 1]} : vector<288x128xf32> to vector<16x128xf32>
    %c0_275 = arith.constant 0 : index
    %c16_276 = arith.constant 16 : index
    %c0_277 = arith.constant 0 : index
    %260 = vector.load %arg1[%c0_275, %c16_276, %c0_277] : memref<1x256x128xbf16, #tpu.memory_space<vmem>>, vector<1x16x128xbf16>
    %261 = vector.shape_cast %260 : vector<1x16x128xbf16> to vector<16x128xbf16>
    %262 = arith.extf %261 : vector<16x128xbf16> to vector<16x128xf32>
    %263 = arith.addf %259, %262 : vector<16x128xf32>
    %264 = arith.truncf %263 : vector<16x128xf32> to vector<16x128xbf16>
    %c0_278 = arith.constant 0 : index
    %c16_279 = arith.constant 16 : index
    %c0_280 = arith.constant 0 : index
    %265 = vector.load %arg6[%c0_278, %c16_279, %c0_280] : memref<1x256x128xbf16, #tpu.memory_space<vmem>>, vector<1x16x128xbf16>
    %266 = vector.shape_cast %265 : vector<1x16x128xbf16> to vector<16x128xbf16>
    %267 = vector.shape_cast %264 : vector<16x128xbf16> to vector<1x16x128xbf16>
    tpu.vector_store %arg6[%c0_278, %c16_279, %c0_280], %267 {strides = array<i32>} : memref<1x256x128xbf16, #tpu.memory_space<vmem>>, vector<1x16x128xbf16>,
    %268 = vector.extract_strided_slice %249 {offsets = [36, 0], sizes = [16, 128], strides = [1, 1]} : vector<288x128xf32> to vector<16x128xf32>
    %c0_281 = arith.constant 0 : index
    %c32_282 = arith.constant 32 : index
    %c0_283 = arith.constant 0 : index
    %269 = vector.load %arg1[%c0_281, %c32_282, %c0_283] : memref<1x256x128xbf16, #tpu.memory_space<vmem>>, vector<1x16x128xbf16>
    %270 = vector.shape_cast %269 : vector<1x16x128xbf16> to vector<16x128xbf16>
    %271 = arith.extf %270 : vector<16x128xbf16> to vector<16x128xf32>
    %272 = arith.addf %268, %271 : vector<16x128xf32>
    %273 = arith.truncf %272 : vector<16x128xf32> to vector<16x128xbf16>
    %c0_284 = arith.constant 0 : index
    %c32_285 = arith.constant 32 : index
    %c0_286 = arith.constant 0 : index
    %274 = vector.load %arg6[%c0_284, %c32_285, %c0_286] : memref<1x256x128xbf16, #tpu.memory_space<vmem>>, vector<1x16x128xbf16>
    %275 = vector.shape_cast %274 : vector<1x16x128xbf16> to vector<16x128xbf16>
    %276 = vector.shape_cast %273 : vector<16x128xbf16> to vector<1x16x128xbf16>
    tpu.vector_store %arg6[%c0_284, %c32_285, %c0_286], %276 {strides = array<i32>} : memref<1x256x128xbf16, #tpu.memory_space<vmem>>, vector<1x16x128xbf16>,
    %277 = vector.extract_strided_slice %249 {offsets = [54, 0], sizes = [16, 128], strides = [1, 1]} : vector<288x128xf32> to vector<16x128xf32>
    %c0_287 = arith.constant 0 : index
    %c48_288 = arith.constant 48 : index
    %c0_289 = arith.constant 0 : index
    %278 = vector.load %arg1[%c0_287, %c48_288, %c0_289] : memref<1x256x128xbf16, #tpu.memory_space<vmem>>, vector<1x16x128xbf16>
    %279 = vector.shape_cast %278 : vector<1x16x128xbf16> to vector<16x128xbf16>
    %280 = arith.extf %279 : vector<16x128xbf16> to vector<16x128xf32>
    %281 = arith.addf %277, %280 : vector<16x128xf32>
    %282 = arith.truncf %281 : vector<16x128xf32> to vector<16x128xbf16>
    %c0_290 = arith.constant 0 : index
    %c48_291 = arith.constant 48 : index
    %c0_292 = arith.constant 0 : index
    %283 = vector.load %arg6[%c0_290, %c48_291, %c0_292] : memref<1x256x128xbf16, #tpu.memory_space<vmem>>, vector<1x16x128xbf16>
    %284 = vector.shape_cast %283 : vector<1x16x128xbf16> to vector<16x128xbf16>
    %285 = vector.shape_cast %282 : vector<16x128xbf16> to vector<1x16x128xbf16>
    tpu.vector_store %arg6[%c0_290, %c48_291, %c0_292], %285 {strides = array<i32>} : memref<1x256x128xbf16, #tpu.memory_space<vmem>>, vector<1x16x128xbf16>,
    %286 = vector.extract_strided_slice %249 {offsets = [72, 0], sizes = [16, 128], strides = [1, 1]} : vector<288x128xf32> to vector<16x128xf32>
    %c0_293 = arith.constant 0 : index
    %c64_294 = arith.constant 64 : index
    %c0_295 = arith.constant 0 : index
    %287 = vector.load %arg1[%c0_293, %c64_294, %c0_295] : memref<1x256x128xbf16, #tpu.memory_space<vmem>>, vector<1x16x128xbf16>
    %288 = vector.shape_cast %287 : vector<1x16x128xbf16> to vector<16x128xbf16>
    %289 = arith.extf %288 : vector<16x128xbf16> to vector<16x128xf32>
    %290 = arith.addf %286, %289 : vector<16x128xf32>
    %291 = arith.truncf %290 : vector<16x128xf32> to vector<16x128xbf16>
    %c0_296 = arith.constant 0 : index
    %c64_297 = arith.constant 64 : index
    %c0_298 = arith.constant 0 : index
    %292 = vector.load %arg6[%c0_296, %c64_297, %c0_298] : memref<1x256x128xbf16, #tpu.memory_space<vmem>>, vector<1x16x128xbf16>
    %293 = vector.shape_cast %292 : vector<1x16x128xbf16> to vector<16x128xbf16>
    %294 = vector.shape_cast %291 : vector<16x128xbf16> to vector<1x16x128xbf16>
    tpu.vector_store %arg6[%c0_296, %c64_297, %c0_298], %294 {strides = array<i32>} : memref<1x256x128xbf16, #tpu.memory_space<vmem>>, vector<1x16x128xbf16>,
    %295 = vector.extract_strided_slice %249 {offsets = [90, 0], sizes = [16, 128], strides = [1, 1]} : vector<288x128xf32> to vector<16x128xf32>
    %c0_299 = arith.constant 0 : index
    %c80_300 = arith.constant 80 : index
    %c0_301 = arith.constant 0 : index
    %296 = vector.load %arg1[%c0_299, %c80_300, %c0_301] : memref<1x256x128xbf16, #tpu.memory_space<vmem>>, vector<1x16x128xbf16>
    %297 = vector.shape_cast %296 : vector<1x16x128xbf16> to vector<16x128xbf16>
    %298 = arith.extf %297 : vector<16x128xbf16> to vector<16x128xf32>
    %299 = arith.addf %295, %298 : vector<16x128xf32>
    %300 = arith.truncf %299 : vector<16x128xf32> to vector<16x128xbf16>
    %c0_302 = arith.constant 0 : index
    %c80_303 = arith.constant 80 : index
    %c0_304 = arith.constant 0 : index
    %301 = vector.load %arg6[%c0_302, %c80_303, %c0_304] : memref<1x256x128xbf16, #tpu.memory_space<vmem>>, vector<1x16x128xbf16>
    %302 = vector.shape_cast %301 : vector<1x16x128xbf16> to vector<16x128xbf16>
    %303 = vector.shape_cast %300 : vector<16x128xbf16> to vector<1x16x128xbf16>
    tpu.vector_store %arg6[%c0_302, %c80_303, %c0_304], %303 {strides = array<i32>} : memref<1x256x128xbf16, #tpu.memory_space<vmem>>, vector<1x16x128xbf16>,
    %304 = vector.extract_strided_slice %249 {offsets = [108, 0], sizes = [16, 128], strides = [1, 1]} : vector<288x128xf32> to vector<16x128xf32>
    %c0_305 = arith.constant 0 : index
    %c96_306 = arith.constant 96 : index
    %c0_307 = arith.constant 0 : index
    %305 = vector.load %arg1[%c0_305, %c96_306, %c0_307] : memref<1x256x128xbf16, #tpu.memory_space<vmem>>, vector<1x16x128xbf16>
    %306 = vector.shape_cast %305 : vector<1x16x128xbf16> to vector<16x128xbf16>
    %307 = arith.extf %306 : vector<16x128xbf16> to vector<16x128xf32>
    %308 = arith.addf %304, %307 : vector<16x128xf32>
    %309 = arith.truncf %308 : vector<16x128xf32> to vector<16x128xbf16>
    %c0_308 = arith.constant 0 : index
    %c96_309 = arith.constant 96 : index
    %c0_310 = arith.constant 0 : index
    %310 = vector.load %arg6[%c0_308, %c96_309, %c0_310] : memref<1x256x128xbf16, #tpu.memory_space<vmem>>, vector<1x16x128xbf16>
    %311 = vector.shape_cast %310 : vector<1x16x128xbf16> to vector<16x128xbf16>
    %312 = vector.shape_cast %309 : vector<16x128xbf16> to vector<1x16x128xbf16>
    tpu.vector_store %arg6[%c0_308, %c96_309, %c0_310], %312 {strides = array<i32>} : memref<1x256x128xbf16, #tpu.memory_space<vmem>>, vector<1x16x128xbf16>,
    %313 = vector.extract_strided_slice %249 {offsets = [126, 0], sizes = [16, 128], strides = [1, 1]} : vector<288x128xf32> to vector<16x128xf32>
    %c0_311 = arith.constant 0 : index
    %c112_312 = arith.constant 112 : index
    %c0_313 = arith.constant 0 : index
    %314 = vector.load %arg1[%c0_311, %c112_312, %c0_313] : memref<1x256x128xbf16, #tpu.memory_space<vmem>>, vector<1x16x128xbf16>
    %315 = vector.shape_cast %314 : vector<1x16x128xbf16> to vector<16x128xbf16>
    %316 = arith.extf %315 : vector<16x128xbf16> to vector<16x128xf32>
    %317 = arith.addf %313, %316 : vector<16x128xf32>
    %318 = arith.truncf %317 : vector<16x128xf32> to vector<16x128xbf16>
    %c0_314 = arith.constant 0 : index
    %c112_315 = arith.constant 112 : index
    %c0_316 = arith.constant 0 : index
    %319 = vector.load %arg6[%c0_314, %c112_315, %c0_316] : memref<1x256x128xbf16, #tpu.memory_space<vmem>>, vector<1x16x128xbf16>
    %320 = vector.shape_cast %319 : vector<1x16x128xbf16> to vector<16x128xbf16>
    %321 = vector.shape_cast %318 : vector<16x128xbf16> to vector<1x16x128xbf16>
    tpu.vector_store %arg6[%c0_314, %c112_315, %c0_316], %321 {strides = array<i32>} : memref<1x256x128xbf16, #tpu.memory_space<vmem>>, vector<1x16x128xbf16>,
    %322 = vector.extract_strided_slice %249 {offsets = [144, 0], sizes = [16, 128], strides = [1, 1]} : vector<288x128xf32> to vector<16x128xf32>
    %c0_317 = arith.constant 0 : index
    %c128_318 = arith.constant 128 : index
    %c0_319 = arith.constant 0 : index
    %323 = vector.load %arg1[%c0_317, %c128_318, %c0_319] : memref<1x256x128xbf16, #tpu.memory_space<vmem>>, vector<1x16x128xbf16>
    %324 = vector.shape_cast %323 : vector<1x16x128xbf16> to vector<16x128xbf16>
    %325 = arith.extf %324 : vector<16x128xbf16> to vector<16x128xf32>
    %326 = arith.addf %322, %325 : vector<16x128xf32>
    %327 = arith.truncf %326 : vector<16x128xf32> to vector<16x128xbf16>
    %c0_320 = arith.constant 0 : index
    %c128_321 = arith.constant 128 : index
    %c0_322 = arith.constant 0 : index
    %328 = vector.load %arg6[%c0_320, %c128_321, %c0_322] : memref<1x256x128xbf16, #tpu.memory_space<vmem>>, vector<1x16x128xbf16>
    %329 = vector.shape_cast %328 : vector<1x16x128xbf16> to vector<16x128xbf16>
    %330 = vector.shape_cast %327 : vector<16x128xbf16> to vector<1x16x128xbf16>
    tpu.vector_store %arg6[%c0_320, %c128_321, %c0_322], %330 {strides = array<i32>} : memref<1x256x128xbf16, #tpu.memory_space<vmem>>, vector<1x16x128xbf16>,
    %331 = vector.extract_strided_slice %249 {offsets = [162, 0], sizes = [16, 128], strides = [1, 1]} : vector<288x128xf32> to vector<16x128xf32>
    %c0_323 = arith.constant 0 : index
    %c144_324 = arith.constant 144 : index
    %c0_325 = arith.constant 0 : index
    %332 = vector.load %arg1[%c0_323, %c144_324, %c0_325] : memref<1x256x128xbf16, #tpu.memory_space<vmem>>, vector<1x16x128xbf16>
    %333 = vector.shape_cast %332 : vector<1x16x128xbf16> to vector<16x128xbf16>
    %334 = arith.extf %333 : vector<16x128xbf16> to vector<16x128xf32>
    %335 = arith.addf %331, %334 : vector<16x128xf32>
    %336 = arith.truncf %335 : vector<16x128xf32> to vector<16x128xbf16>
    %c0_326 = arith.constant 0 : index
    %c144_327 = arith.constant 144 : index
    %c0_328 = arith.constant 0 : index
    %337 = vector.load %arg6[%c0_326, %c144_327, %c0_328] : memref<1x256x128xbf16, #tpu.memory_space<vmem>>, vector<1x16x128xbf16>
    %338 = vector.shape_cast %337 : vector<1x16x128xbf16> to vector<16x128xbf16>
    %339 = vector.shape_cast %336 : vector<16x128xbf16> to vector<1x16x128xbf16>
    tpu.vector_store %arg6[%c0_326, %c144_327, %c0_328], %339 {strides = array<i32>} : memref<1x256x128xbf16, #tpu.memory_space<vmem>>, vector<1x16x128xbf16>,
    %340 = vector.extract_strided_slice %249 {offsets = [180, 0], sizes = [16, 128], strides = [1, 1]} : vector<288x128xf32> to vector<16x128xf32>
    %c0_329 = arith.constant 0 : index
    %c160_330 = arith.constant 160 : index
    %c0_331 = arith.constant 0 : index
    %341 = vector.load %arg1[%c0_329, %c160_330, %c0_331] : memref<1x256x128xbf16, #tpu.memory_space<vmem>>, vector<1x16x128xbf16>
    %342 = vector.shape_cast %341 : vector<1x16x128xbf16> to vector<16x128xbf16>
    %343 = arith.extf %342 : vector<16x128xbf16> to vector<16x128xf32>
    %344 = arith.addf %340, %343 : vector<16x128xf32>
    %345 = arith.truncf %344 : vector<16x128xf32> to vector<16x128xbf16>
    %c0_332 = arith.constant 0 : index
    %c160_333 = arith.constant 160 : index
    %c0_334 = arith.constant 0 : index
    %346 = vector.load %arg6[%c0_332, %c160_333, %c0_334] : memref<1x256x128xbf16, #tpu.memory_space<vmem>>, vector<1x16x128xbf16>
    %347 = vector.shape_cast %346 : vector<1x16x128xbf16> to vector<16x128xbf16>
    %348 = vector.shape_cast %345 : vector<16x128xbf16> to vector<1x16x128xbf16>
    tpu.vector_store %arg6[%c0_332, %c160_333, %c0_334], %348 {strides = array<i32>} : memref<1x256x128xbf16, #tpu.memory_space<vmem>>, vector<1x16x128xbf16>,
    %349 = vector.extract_strided_slice %249 {offsets = [198, 0], sizes = [16, 128], strides = [1, 1]} : vector<288x128xf32> to vector<16x128xf32>
    %c0_335 = arith.constant 0 : index
    %c176_336 = arith.constant 176 : index
    %c0_337 = arith.constant 0 : index
    %350 = vector.load %arg1[%c0_335, %c176_336, %c0_337] : memref<1x256x128xbf16, #tpu.memory_space<vmem>>, vector<1x16x128xbf16>
    %351 = vector.shape_cast %350 : vector<1x16x128xbf16> to vector<16x128xbf16>
    %352 = arith.extf %351 : vector<16x128xbf16> to vector<16x128xf32>
    %353 = arith.addf %349, %352 : vector<16x128xf32>
    %354 = arith.truncf %353 : vector<16x128xf32> to vector<16x128xbf16>
    %c0_338 = arith.constant 0 : index
    %c176_339 = arith.constant 176 : index
    %c0_340 = arith.constant 0 : index
    %355 = vector.load %arg6[%c0_338, %c176_339, %c0_340] : memref<1x256x128xbf16, #tpu.memory_space<vmem>>, vector<1x16x128xbf16>
    %356 = vector.shape_cast %355 : vector<1x16x128xbf16> to vector<16x128xbf16>
    %357 = vector.shape_cast %354 : vector<16x128xbf16> to vector<1x16x128xbf16>
    tpu.vector_store %arg6[%c0_338, %c176_339, %c0_340], %357 {strides = array<i32>} : memref<1x256x128xbf16, #tpu.memory_space<vmem>>, vector<1x16x128xbf16>,
    %358 = vector.extract_strided_slice %249 {offsets = [216, 0], sizes = [16, 128], strides = [1, 1]} : vector<288x128xf32> to vector<16x128xf32>
    %c0_341 = arith.constant 0 : index
    %c192_342 = arith.constant 192 : index
    %c0_343 = arith.constant 0 : index
    %359 = vector.load %arg1[%c0_341, %c192_342, %c0_343] : memref<1x256x128xbf16, #tpu.memory_space<vmem>>, vector<1x16x128xbf16>
    %360 = vector.shape_cast %359 : vector<1x16x128xbf16> to vector<16x128xbf16>
    %361 = arith.extf %360 : vector<16x128xbf16> to vector<16x128xf32>
    %362 = arith.addf %358, %361 : vector<16x128xf32>
    %363 = arith.truncf %362 : vector<16x128xf32> to vector<16x128xbf16>
    %c0_344 = arith.constant 0 : index
    %c192_345 = arith.constant 192 : index
    %c0_346 = arith.constant 0 : index
    %364 = vector.load %arg6[%c0_344, %c192_345, %c0_346] : memref<1x256x128xbf16, #tpu.memory_space<vmem>>, vector<1x16x128xbf16>
    %365 = vector.shape_cast %364 : vector<1x16x128xbf16> to vector<16x128xbf16>
    %366 = vector.shape_cast %363 : vector<16x128xbf16> to vector<1x16x128xbf16>
    tpu.vector_store %arg6[%c0_344, %c192_345, %c0_346], %366 {strides = array<i32>} : memref<1x256x128xbf16, #tpu.memory_space<vmem>>, vector<1x16x128xbf16>,
    %367 = vector.extract_strided_slice %249 {offsets = [234, 0], sizes = [16, 128], strides = [1, 1]} : vector<288x128xf32> to vector<16x128xf32>
    %c0_347 = arith.constant 0 : index
    %c208_348 = arith.constant 208 : index
    %c0_349 = arith.constant 0 : index
    %368 = vector.load %arg1[%c0_347, %c208_348, %c0_349] : memref<1x256x128xbf16, #tpu.memory_space<vmem>>, vector<1x16x128xbf16>
    %369 = vector.shape_cast %368 : vector<1x16x128xbf16> to vector<16x128xbf16>
    %370 = arith.extf %369 : vector<16x128xbf16> to vector<16x128xf32>
    %371 = arith.addf %367, %370 : vector<16x128xf32>
    %372 = arith.truncf %371 : vector<16x128xf32> to vector<16x128xbf16>
    %c0_350 = arith.constant 0 : index
    %c208_351 = arith.constant 208 : index
    %c0_352 = arith.constant 0 : index
    %373 = vector.load %arg6[%c0_350, %c208_351, %c0_352] : memref<1x256x128xbf16, #tpu.memory_space<vmem>>, vector<1x16x128xbf16>
    %374 = vector.shape_cast %373 : vector<1x16x128xbf16> to vector<16x128xbf16>
    %375 = vector.shape_cast %372 : vector<16x128xbf16> to vector<1x16x128xbf16>
    tpu.vector_store %arg6[%c0_350, %c208_351, %c0_352], %375 {strides = array<i32>} : memref<1x256x128xbf16, #tpu.memory_space<vmem>>, vector<1x16x128xbf16>,
    %376 = vector.extract_strided_slice %249 {offsets = [252, 0], sizes = [16, 128], strides = [1, 1]} : vector<288x128xf32> to vector<16x128xf32>
    %c0_353 = arith.constant 0 : index
    %c224_354 = arith.constant 224 : index
    %c0_355 = arith.constant 0 : index
    %377 = vector.load %arg1[%c0_353, %c224_354, %c0_355] : memref<1x256x128xbf16, #tpu.memory_space<vmem>>, vector<1x16x128xbf16>
    %378 = vector.shape_cast %377 : vector<1x16x128xbf16> to vector<16x128xbf16>
    %379 = arith.extf %378 : vector<16x128xbf16> to vector<16x128xf32>
    %380 = arith.addf %376, %379 : vector<16x128xf32>
    %381 = arith.truncf %380 : vector<16x128xf32> to vector<16x128xbf16>
    %c0_356 = arith.constant 0 : index
    %c224_357 = arith.constant 224 : index
    %c0_358 = arith.constant 0 : index
    %382 = vector.load %arg6[%c0_356, %c224_357, %c0_358] : memref<1x256x128xbf16, #tpu.memory_space<vmem>>, vector<1x16x128xbf16>
    %383 = vector.shape_cast %382 : vector<1x16x128xbf16> to vector<16x128xbf16>
    %384 = vector.shape_cast %381 : vector<16x128xbf16> to vector<1x16x128xbf16>
    tpu.vector_store %arg6[%c0_356, %c224_357, %c0_358], %384 {strides = array<i32>} : memref<1x256x128xbf16, #tpu.memory_space<vmem>>, vector<1x16x128xbf16>,
    %385 = vector.extract_strided_slice %249 {offsets = [270, 0], sizes = [16, 128], strides = [1, 1]} : vector<288x128xf32> to vector<16x128xf32>
    %c0_359 = arith.constant 0 : index
    %c240_360 = arith.constant 240 : index
    %c0_361 = arith.constant 0 : index
    %386 = vector.load %arg1[%c0_359, %c240_360, %c0_361] : memref<1x256x128xbf16, #tpu.memory_space<vmem>>, vector<1x16x128xbf16>
    %387 = vector.shape_cast %386 : vector<1x16x128xbf16> to vector<16x128xbf16>
    %388 = arith.extf %387 : vector<16x128xbf16> to vector<16x128xf32>
    %389 = arith.addf %385, %388 : vector<16x128xf32>
    %390 = arith.truncf %389 : vector<16x128xf32> to vector<16x128xbf16>
    %c0_362 = arith.constant 0 : index
    %c240_363 = arith.constant 240 : index
    %c0_364 = arith.constant 0 : index
    %391 = vector.load %arg6[%c0_362, %c240_363, %c0_364] : memref<1x256x128xbf16, #tpu.memory_space<vmem>>, vector<1x16x128xbf16>
    %392 = vector.shape_cast %391 : vector<1x16x128xbf16> to vector<16x128xbf16>
    %393 = vector.shape_cast %390 : vector<16x128xbf16> to vector<1x16x128xbf16>
    tpu.vector_store %arg6[%c0_362, %c240_363, %c0_364], %393 {strides = array<i32>} : memref<1x256x128xbf16, #tpu.memory_space<vmem>>, vector<1x16x128xbf16>,
    return
  }
  func.func @transform_0(%arg0: i32) -> (i32, i32, i32) {
    %c0_i32 = arith.constant 0 : i32
    %c0_i32_0 = arith.constant 0 : i32
    %c0_i32_1 = arith.constant 0 : i32
    return %arg0, %c0_i32, %c0_i32_0 : i32, i32, i32
  }
  func.func @transform_1(%arg0: i32) -> (i32, i32, i32) {
    %c0_i32 = arith.constant 0 : i32
    %c0_i32_0 = arith.constant 0 : i32
    %c0_i32_1 = arith.constant 0 : i32
    %c0_i32_2 = arith.constant 0 : i32
    return %c0_i32, %c0_i32_0, %c0_i32_1 : i32, i32, i32
  }
  func.func @transform_2(%arg0: i32) -> (i32, i32) {
    %c0_i32 = arith.constant 0 : i32
    %c0_i32_0 = arith.constant 0 : i32
    %c0_i32_1 = arith.constant 0 : i32
    return %c0_i32, %c0_i32_0 : i32, i32
  }
  func.func @transform_3(%arg0: i32) -> (i32, i32, i32) {
    %c0_i32 = arith.constant 0 : i32
    %c0_i32_0 = arith.constant 0 : i32
    %c0_i32_1 = arith.constant 0 : i32
    %c0_i32_2 = arith.constant 0 : i32
    return %c0_i32, %c0_i32_0, %c0_i32_1 : i32, i32, i32
  }
  func.func @transform_4(%arg0: i32) -> (i32, i32) {
    %c0_i32 = arith.constant 0 : i32
    %c0_i32_0 = arith.constant 0 : i32
    %c0_i32_1 = arith.constant 0 : i32
    return %c0_i32, %c0_i32_0 : i32, i32
  }
  func.func @transform_5(%arg0: i32) -> (i32, i32, i32) {
    %c0_i32 = arith.constant 0 : i32
    %c0_i32_0 = arith.constant 0 : i32
    %c0_i32_1 = arith.constant 0 : i32
    return %arg0, %c0_i32, %c0_i32_0 : i32, i32, i32
  }
}

</mosaic_0001>

<bundles_post_ra>
// kernel: c2f_forward.4
= control target key start
LH: loop header
LB: loop body
LE: loop exit
PB: predicated region body
PF: predicated region fallthrough
CT: control target
= control target key end

     0   :  { %s2285_s15 = smov 0   ;;  %s2887_s0 = inlined_call_operand.vmem [shape: bf16[512,128], index: 0, kind: input, shape index: {}]   ;;  %s2888_s1 = inlined_call_operand.vmem [shape: bf16[128,256], index: 1, kind: input, shape index: {}]   ;;  %s2889_s2 = inlined_call_operand.vmem [shape: f32[1,256], index: 2, kind: input, shape index: {}]   ;;  %s2890_s3 = inlined_call_operand.vmem [shape: bf16[512,128], index: 3, kind: output, shape index: {0}]   ;;  %s2891_s4 = inlined_call_operand.vmem [shape: bf16[512,128], index: 4, kind: output, shape index: {1}]  }
   0x1 LB: > { %s1503_s16 = sadd.s32 4294967295, %s2257_s15   ;;  %p1507_p0 = scmp.ge.s32.totalorder %s2257_s15, 1  ;;  %s2257_s15 = sphi %s2285_s15, %s15_s15  }
   0x2   : > { %p166_p1 = scmp.lt.s32.totalorder %s2257_s15, 3 }
   0x4   : > { %p167_p2 = pnand %p1507_p0, %p166_p1 }
   0x6   : > { %170 = sbr.rel (%p167_p2) target bundleno = 409 (0x199), region = 32 }
   0xd   : > { %v1955_v0 = vld [vmem:[%s2888_s1 + $0x4] ss:$8 sps:$4 sm:$0xff]   ;;  %s1508_s19 = sshll.u32 %s1503_s16, 5  ;;  %v1957_v1 = vld [vmem:[%s2888_s1] ss:$8 sps:$4 sm:$0xff]   ;;  %v2259_v2 = vmov 0   ;;  %v266_v33 = vlaneseq }
   0xe   : > { %484 = vmatprep.mubr.bf16.mxu0 %v2259_v2  ;;  %564 = vmatprep.mubr.bf16.mxu1 %v2259_v2  ;;  %p198_p3 = scmp.lt.s32.totalorder %s1508_s19, 63  ;;  %v1958_v3 = vld [vmem:[%s2888_s1 + $0x14] ss:$8 sps:$4 sm:$0xff]   ;;  %v1960_v4 = vld [vmem:[%s2888_s1 + $0x10] ss:$8 sps:$4 sm:$0xff]  }
   0xf   : > { %452 = vmatprep.subr.bf16.mxu0 %v1955_v0  ;;  %1930 = vmatprep.subr.bf16.mxu1 %v1955_v0  ;;  %v1961_v5 = vld [vmem:[%s2888_s1 + $0x24] ss:$8 sps:$4 sm:$0xff]   ;;  %v1963_v6 = vld [vmem:[%s2888_s1 + $0x20] ss:$8 sps:$4 sm:$0xff]   ;;  %v1964_v7 = vld [vmem:[%s2888_s1 + $0x34] ss:$8 sps:$4 sm:$0xff]  }
  0x10   : > { %453 = vmatpush1.bf16.msra.mxu0 %v1957_v1  ;;  %1938 = vmatpush1.bf16.msra.mxu1 %v1957_v1  ;;  %s2909_s19 = smov (!%p198_p3, %s1508_s19), 63  ;;  %v1966_v8 = vld [vmem:[%s2888_s1 + $0x30] ss:$8 sps:$4 sm:$0xff]   ;;  %v1967_v9 = vld [vmem:[%s2888_s1 + $0x44] ss:$8 sps:$4 sm:$0xff]   ;;  %v267_v34 = vshrl.u32 %v266_v33, 7 }
  0x11   : > { %454 = vmatprep.subr.bf16.mxu0 %v1958_v3  ;;  %1931 = vmatprep.subr.bf16.mxu1 %v1958_v3  ;;  %s2310_s28 = sshll.u32 %s2909_s19, 2  ;;  %v1969_v10 = vld [vmem:[%s2888_s1 + $0x40] ss:$8 sps:$4 sm:$0xff]   ;;  %v1970_v11 = vld [vmem:[%s2888_s1 + $0x54] ss:$8 sps:$4 sm:$0xff]  }
  0x12   : > { %s2322_s9 = scalar_lea.vmem %s2887_s0, %s2310_s28  ;;  %v1972_v12 = vld [vmem:[%s2888_s1 + $0x50] ss:$8 sps:$4 sm:$0xff]   ;;  %v1973_v13 = vld [vmem:[%s2888_s1 + $0x64] ss:$8 sps:$4 sm:$0xff]   ;;  %v1975_v14 = vld [vmem:[%s2888_s1 + $0x60] ss:$8 sps:$4 sm:$0xff]   ;;  %s2513_s8 = scalar_lea.vmem %s2890_s3, %s2310_s28 }
  0x13   : > { %v1976_v15 = vld [vmem:[%s2888_s1 + $0x74] ss:$8 sps:$4 sm:$0xff]   ;;  %v1978_v16 = vld [vmem:[%s2888_s1 + $0x70] ss:$8 sps:$4 sm:$0xff]   ;;  %v1979_v17 = vld [vmem:[%s2322_s9] sm:$0xff]   ;;  %v268_v35 = vsub.s32 0, %v267_v34  ;;  %s2534_s11 = scalar_lea.vmem %s2891_s4, %s2310_s28 }
  0x14   : > { %455 = vmatpush1.bf16.msra.mxu0 %v1960_v4  ;;  %1939 = vmatpush1.bf16.msra.mxu1 %v1960_v4  ;;  %v1980_v18 = vld [vmem:[%s2322_s9 + $0x40] sm:$0xff]   ;;  %v1981_v19 = vld [vmem:[%s2322_s9 + $0x8] sm:$0xff]   ;;  %v1983_v21 = vld [vmem:[%s2322_s9 + $0x10] sm:$0xff]   ;;  %v272_v37 = vsub.s32 1, %v267_v34 }
  0x15   : > { %456 = vmatprep.subr.bf16.mxu0 %v1961_v5  ;;  %1932 = vmatprep.subr.bf16.mxu1 %v1961_v5  ;;  %v1982_v20 = vld [vmem:[%s2322_s9 + $0x48] sm:$0xff]   ;;  %v1984_v22 = vld [vmem:[%s2322_s9 + $0x50] sm:$0xff]   ;;  %v1985_v23 = vld [vmem:[%s2322_s9 + $0x18] sm:$0xff]  }
  0x16   : > { %v1986_v24 = vld [vmem:[%s2322_s9 + $0x58] sm:$0xff]   ;;  %v1987_v25 = vld [vmem:[%s2322_s9 + $0x20] sm:$0xff]   ;;  %v1989_v27 = vld [vmem:[%s2322_s9 + $0x28] sm:$0xff]  }
  0x17   : > { %v1988_v26 = vld [vmem:[%s2322_s9 + $0x60] sm:$0xff]   ;;  %v1990_v28 = vld [vmem:[%s2322_s9 + $0x68] sm:$0xff]   ;;  %v1991_v29 = vld [vmem:[%s2322_s9 + $0x30] sm:$0xff]  }
  0x18   : > { %457 = vmatpush1.bf16.msra.mxu0 %v1963_v6  ;;  %1940 = vmatpush1.bf16.msra.mxu1 %v1963_v6  ;;  %v1992_v30 = vld [vmem:[%s2322_s9 + $0x70] sm:$0xff]   ;;  %v1993_v31 = vld [vmem:[%s2322_s9 + $0x38] sm:$0xff]   ;;  %v264_v36 = vld [vmem:[%s2889_s2] sm:$0x3] }
  0x19   : > { %458 = vmatprep.subr.bf16.mxu0 %v1964_v7  ;;  %1933 = vmatprep.subr.bf16.mxu1 %v1964_v7  ;;  %v1994_v32 = vld [vmem:[%s2322_s9 + $0x78] sm:$0xff]   ;;  %v2384_v38 = vrot.slane %v264_v36, %v268_v35  ;;  %v2386_v39 = vrot.slane %v264_v36, %v272_v37 }
  0x1c   : > { %459 = vmatpush1.bf16.msra.mxu0 %v1966_v8  ;;  %1941 = vmatpush1.bf16.msra.mxu1 %v1966_v8 }
  0x1d   : > { %460 = vmatprep.subr.bf16.mxu0 %v1967_v9  ;;  %1934 = vmatprep.subr.bf16.mxu1 %v1967_v9 }
  0x20   : > { %461 = vmatpush1.bf16.msra.mxu0 %v1969_v10  ;;  %1942 = vmatpush1.bf16.msra.mxu1 %v1969_v10 }
  0x21   : > { %462 = vmatprep.subr.bf16.mxu0 %v1970_v11  ;;  %1935 = vmatprep.subr.bf16.mxu1 %v1970_v11 }
  0x24   : > { %463 = vmatpush1.bf16.msra.mxu0 %v1972_v12  ;;  %1943 = vmatpush1.bf16.msra.mxu1 %v1972_v12 }
  0x25   : > { %464 = vmatprep.subr.bf16.mxu0 %v1973_v13  ;;  %1936 = vmatprep.subr.bf16.mxu1 %v1973_v13 }
  0x28   : > { %465 = vmatpush1.bf16.msra.mxu0 %v1975_v14  ;;  %1944 = vmatpush1.bf16.msra.mxu1 %v1975_v14 }
  0x29   : > { %466 = vmatprep.subr.bf16.mxu0 %v1976_v15  ;;  %1937 = vmatprep.subr.bf16.mxu1 %v1976_v15 }
  0x2c   : > { %467 = vmatpush1.bf16.msra.mxu0 %v1978_v16  ;;  %1945 = vmatpush1.bf16.msra.mxu1 %v1978_v16 }
  0x2f   : > { %485 = vmatmul.mubr.bf16.vlgmr.msra.gmra.mrb[0].mxu0 %v1979_v17  ;;  %565 = vmatmul.mubr.bf16.vlgmr.msra.gmra.mrb[0].mxu1 %v1980_v18 }
  0x30   : > { %494 = vmatprep.mubr.bf16.mxu0 %v2259_v2  ;;  %574 = vmatprep.mubr.bf16.mxu1 %v2259_v2 }
  0x37   : > { %495 = vmatmul.mubr.bf16.gmra.mrb[4].mxu0 %v1981_v19  ;;  %575 = vmatmul.mubr.bf16.gmra.mrb[4].mxu1 %v1982_v20 }
  0x38   : > { %504 = vmatprep.mubr.bf16.mxu0 %v2259_v2  ;;  %584 = vmatprep.mubr.bf16.mxu1 %v2259_v2 }
  0x3f   : > { %505 = vmatmul.mubr.bf16.gmra.mrb[8].mxu0 %v1983_v21  ;;  %585 = vmatmul.mubr.bf16.gmra.mrb[8].mxu1 %v1984_v22 }
  0x40   : > { %514 = vmatprep.mubr.bf16.mxu0 %v2259_v2  ;;  %594 = vmatprep.mubr.bf16.mxu1 %v2259_v2 }
  0x47   : > { %515 = vmatmul.mubr.bf16.gmra.mrb[12].mxu0 %v1985_v23  ;;  %595 = vmatmul.mubr.bf16.gmra.mrb[12].mxu1 %v1986_v24 }
  0x48   : > { %524 = vmatprep.mubr.bf16.mxu0 %v2259_v2  ;;  %604 = vmatprep.mubr.bf16.mxu1 %v2259_v2 }
  0x4f   : > { %525 = vmatmul.mubr.bf16.gmra.mrb[16].mxu0 %v1987_v25  ;;  %605 = vmatmul.mubr.bf16.gmra.mrb[16].mxu1 %v1988_v26 }
  0x50   : > { %534 = vmatprep.mubr.bf16.mxu0 %v2259_v2  ;;  %614 = vmatprep.mubr.bf16.mxu1 %v2259_v2 }
  0x57   : > { %535 = vmatmul.mubr.bf16.gmra.mrb[20].mxu0 %v1989_v27  ;;  %615 = vmatmul.mubr.bf16.gmra.mrb[20].mxu1 %v1990_v28 }
  0x58   : > { %544 = vmatprep.mubr.bf16.mxu0 %v2259_v2  ;;  %624 = vmatprep.mubr.bf16.mxu1 %v2259_v2 }
  0x5f   : > { %545 = vmatmul.mubr.bf16.gmra.mrb[24].mxu0 %v1991_v29  ;;  %625 = vmatmul.mubr.bf16.gmra.mrb[24].mxu1 %v1992_v30 }
  0x60   : > { %554 = vmatprep.mubr.bf16.mxu0 %v2259_v2  ;;  %634 = vmatprep.mubr.bf16.mxu1 %v2259_v2 }
  0x67   : > { %555 = vmatmul.mubr.bf16.gmra.mrb[28].mxu0 %v1993_v31  ;;  %635 = vmatmul.mubr.bf16.gmra.mrb[28].mxu1 %v1994_v32 }
 0x102   : > { %v486_v40 = vpop.f32.mrb[0].mxu0  ;;  %v566_v41 = vpop.f32.mrb[0].mxu1 }
 0x103   : > { %v2389_v42 = vadd.f32 %v486_v40, %v2384_v38  ;;  %v2392_v43 = vadd.f32 %v566_v41, %v2384_v38  ;;  %v488_v44 = vpop.f32.mrb[1].mxu0  ;;  %v568_v45 = vpop.f32.mrb[1].mxu1 }
 0x104   : > { %v2395_v46 = vadd.f32 %v488_v44, %v2386_v39  ;;  %v2398_v47 = vadd.f32 %v568_v45, %v2386_v39  ;;  %v490_v48 = vpop.f32.mrb[2].mxu0  ;;  %v570_v49 = vpop.f32.mrb[2].mxu1 }
 0x105   : > { %v1546_v50 = vmul.f32 -1.442695, %v2389_v42  ;;  %v1578_v51 = vmul.f32 -1.442695, %v2392_v43  ;;  %v2403_v52 = vadd.f32 %v490_v48, %v2384_v38  ;;  %v2406_v53 = vadd.f32 %v570_v49, %v2384_v38  ;;  %v492_v54 = vpop.f32.mrb[3].mxu0  ;;  %v572_v55 = vpop.f32.mrb[3].mxu1 }
 0x106   : > { %v1547_v56 = vmul.f32 -1.442695, %v2395_v46  ;;  %v1579_v57 = vmul.f32 -1.442695, %v2398_v47  ;;  %v2411_v58 = vadd.f32 %v492_v54, %v2386_v39  ;;  %v2414_v59 = vadd.f32 %v572_v55, %v2386_v39 }
 0x107   : > { %1995 = vpow2.f32 %v1546_v50  ;;  %v1548_v60 = vmul.f32 -1.442695, %v2403_v52  ;;  %v1580_v61 = vmul.f32 -1.442695, %v2406_v53 }
 0x108   : > { %1997 = vpow2.f32 %v1578_v51  ;;  %v1549_v62 = vmul.f32 -1.442695, %v2411_v58  ;;  %v1581_v63 = vmul.f32 -1.442695, %v2414_v59 }
 0x109   : > { %1999 = vpow2.f32 %v1547_v56 }
 0x10a   : > { %2001 = vpow2.f32 %v1579_v57  ;;  %v496_v0 = vpop.f32.mrb[4].mxu0  ;;  %v576_v1 = vpop.f32.mrb[4].mxu1 }
 0x10b   : > { %2003 = vpow2.f32 %v1548_v60  ;;  %v2421_v2 = vadd.f32 %v496_v0, %v2384_v38  ;;  %v2424_v3 = vadd.f32 %v576_v1, %v2384_v38  ;;  %v498_v4 = vpop.f32.mrb[5].mxu0  ;;  %v578_v5 = vpop.f32.mrb[5].mxu1 }
 0x10c   : > { %2005 = vpow2.f32 %v1580_v61  ;;  %v2427_v6 = vadd.f32 %v498_v4, %v2386_v39  ;;  %v2430_v7 = vadd.f32 %v578_v5, %v2386_v39  ;;  %v500_v8 = vpop.f32.mrb[6].mxu0  ;;  %v580_v9 = vpop.f32.mrb[6].mxu1 }
 0x10d   : > { %2007 = vpow2.f32 %v1549_v62  ;;  %v1550_v10 = vmul.f32 -1.442695, %v2421_v2  ;;  %v1582_v11 = vmul.f32 -1.442695, %v2424_v3  ;;  %v2435_v12 = vadd.f32 %v500_v8, %v2384_v38  ;;  %v502_v13 = vpop.f32.mrb[7].mxu0  ;;  %v582_v14 = vpop.f32.mrb[7].mxu1 }
 0x10e   : > { %2009 = vpow2.f32 %v1581_v63  ;;  %v1551_v15 = vmul.f32 -1.442695, %v2427_v6  ;;  %v1583_v16 = vmul.f32 -1.442695, %v2430_v7  ;;  %v2441_v36 = vadd.f32 %v580_v9, %v2384_v38 }
 0x10f   : > { %2011 = vpow2.f32 %v1550_v10  ;;  %v1552_v17 = vmul.f32 -1.442695, %v2435_v12  ;;  %v2444_v44 = vadd.f32 %v502_v13, %v2386_v39  ;;  %v2448_v56 = vadd.f32 %v582_v14, %v2386_v39 }
 0x110   : > { %2013 = vpow2.f32 %v1582_v11  ;;  %v1584_v55 = vmul.f32 -1.442695, %v2441_v36 }
 0x111   : > { %v1996_v18 = vpop.eup %1995  ;;  %2015 = vpow2.f32 %v1551_v15  ;;  %v1553_v62 = vmul.f32 -1.442695, %v2444_v44 }
 0x112   : > { %v1998_v19 = vpop.eup %1997  ;;  %v837_v20 = vadd.f32 1.0, %v1996_v18  ;;  %2017 = vpow2.f32 %v1583_v16  ;;  %v506_v21 = vpop.f32.mrb[8].mxu0 }
 0x113   : > { %v586_v22 = vpop.f32.mrb[8].mxu1  ;;  %v2000_v23 = vpop.eup %1999  ;;  %v869_v24 = vadd.f32 1.0, %v1998_v19  ;;  %2019 = vpow2.f32 %v1552_v17  ;;  %v2452_v63 = vadd.f32 %v506_v21, %v2384_v38 }
 0x114   : > { %v508_v25 = vpop.f32.mrb[9].mxu0  ;;  %v588_v26 = vpop.f32.mrb[9].mxu1  ;;  %2021 = vrcp.f32 %v837_v20  ;;  %v838_v28 = vadd.f32 1.0, %v2000_v23  ;;  %v2457_v8 = vadd.f32 %v586_v22, %v2384_v38 }
 0x115   : > { %v2002_v27 = vpop.eup %2001  ;;  %v510_v29 = vpop.f32.mrb[10].mxu0  ;;  %2023 = vrcp.f32 %v869_v24  ;;  %v2460_v9 = vadd.f32 %v508_v25, %v2386_v39  ;;  %v2467_v15 = vadd.f32 %v588_v26, %v2386_v39  ;;  %v1585_v25 = vmul.f32 -1.442695, %v2448_v56 }
 0x116   : > { %v590_v30 = vpop.f32.mrb[10].mxu1  ;;  %v2004_v31 = vpop.eup %2003  ;;  %v870_v32 = vadd.f32 1.0, %v2002_v27  ;;  %2025 = vrcp.f32 %v838_v28  ;;  %v2470_v16 = vadd.f32 %v510_v29, %v2384_v38  ;;  %v1554_v27 = vmul.f32 -1.442695, %v2452_v63 }
 0x117   : > { %v512_v33 = vpop.f32.mrb[11].mxu0  ;;  %v2006_v34 = vpop.eup %2005  ;;  %v839_v35 = vadd.f32 1.0, %v2004_v31  ;;  %v2477_v21 = vadd.f32 %v590_v30, %v2384_v38  ;;  %v1586_v28 = vmul.f32 -1.442695, %v2457_v8  ;;  %v1555_v30 = vmul.f32 -1.442695, %v2460_v9 }
 0x118   : > { %v592_v37 = vpop.f32.mrb[11].mxu1  ;;  %v2008_v40 = vpop.eup %2007  ;;  %2027 = vrcp.f32 %v870_v32  ;;  %v871_v41 = vadd.f32 1.0, %v2006_v34  ;;  %v2480_v22 = vadd.f32 %v512_v33, %v2386_v39  ;;  %v1587_v31 = vmul.f32 -1.442695, %v2467_v15 }
 0x119   : > { %v2010_v45 = vpop.eup %2009  ;;  %2029 = vrcp.f32 %v839_v35  ;;  %v840_v48 = vadd.f32 1.0, %v2008_v40  ;;  %v1556_v32 = vmul.f32 -1.442695, %v2470_v16  ;;  %v1588_v34 = vmul.f32 -1.442695, %v2477_v21 }
 0x11a   : > { %v2012_v49 = vpop.eup %2011  ;;  %2031 = vrcp.f32 %v871_v41  ;;  %v872_v50 = vadd.f32 1.0, %v2010_v45  ;;  %v516_v57 = vpop.f32.mrb[12].mxu0  ;;  %v1557_v35 = vmul.f32 -1.442695, %v2480_v22  ;;  %v2493_v40 = vadd.f32 %v592_v37, %v2386_v39 }
 0x11b   : > { %v2014_v51 = vpop.eup %2013  ;;  %2033 = vrcp.f32 %v840_v48  ;;  %v841_v54 = vadd.f32 1.0, %v2012_v49  ;;  %v596_v0 = vpop.f32.mrb[12].mxu1 }
 0x11c   : > { %v2016_v60 = vpop.eup %2015  ;;  %2035 = vrcp.f32 %v872_v50  ;;  %v873_v61 = vadd.f32 1.0, %v2014_v51  ;;  %v2454_v1 = vpop.f32.mrb[13].mxu0  ;;  %v2502_v51 = vadd.f32 %v516_v57, %v2384_v38 }
 0x11d   : > { %v2018_v4 = vpop.eup %2017  ;;  %2037 = vrcp.f32 %v841_v54  ;;  %v842_v5 = vadd.f32 1.0, %v2016_v60  ;;  %v2462_v10 = vpop.f32.mrb[13].mxu1 }
 0x11e   : > { %v2464_v11 = vpop.f32.mrb[14].mxu0  ;;  %v2020_v13 = vpop.eup %2019  ;;  %2039 = vrcp.f32 %v873_v61  ;;  %v874_v14 = vadd.f32 1.0, %v2018_v4 }
 0x11f   : > { %v2472_v17 = vpop.f32.mrb[14].mxu1  ;;  %v2474_v18 = vpop.f32.mrb[15].mxu0  ;;  %2041 = vrcp.f32 %v842_v5  ;;  %v843_v20 = vadd.f32 1.0, %v2020_v13 }
 0x120   : > { %v2022_v19 = vpop.eup %2021  ;;  %v2482_v23 = vpop.f32.mrb[15].mxu1  ;;  %2043 = vrcp.f32 %v874_v14 }
 0x121   : > { %v2024_v24 = vpop.eup %2023  ;;  %2045 = vrcp.f32 %v843_v20  ;;  %v1029_v49 = vmul.f32 %v2022_v19, %v2389_v42 }
 0x122   : > { %v2026_v26 = vpop.eup %2025  ;;  %2047 = vpow2.f32 %v1584_v55  ;;  %v2495_v41 = vpop.f32.mrb[16].mxu0  ;;  %v1061_v37 = vmul.f32 %v2024_v24, %v2392_v43  ;;  %v1589_v24 = vmul.f32 -1.442695, %v2493_v40 }
 0x123   : > { %v2028_v29 = vpop.eup %2027  ;;  %2049 = vpow2.f32 %v1553_v62  ;;  %v2497_v45 = vpop.f32.mrb[16].mxu1  ;;  %v1030_v43 = vmul.f32 %v2026_v26, %v2395_v46  ;;  %v1558_v26 = vmul.f32 -1.442695, %v2502_v51 }
 0x124   : > { %v2030_v33 = vpop.eup %2029  ;;  %2051 = vpow2.f32 %v1585_v25  ;;  %v2504_v54 = vpop.f32.mrb[17].mxu0 }
 0x125   : > { %v2032_v48 = vpop.eup %2031  ;;  %v1031_v50 = vmul.f32 %v2030_v33, %v2403_v52  ;;  %v2506_v55 = vpop.f32.mrb[17].mxu1  ;;  %2053 = vpow2.f32 %v1554_v27  ;;  %v2517_v52 = vadd.f32 %v596_v0, %v2384_v38  ;;  %v1062_v0 = vmul.f32 %v2028_v29, %v2398_v47 }
 0x126   : > { %v2034_v60 = vpop.eup %2033  ;;  %v1063_v42 = vmul.f32 %v2032_v48, %v2406_v53  ;;  %v2519_v57 = vpop.f32.mrb[18].mxu0  ;;  %2055 = vpow2.f32 %v1586_v28 }
 0x127   : > { %v2521_v61 = vpop.f32.mrb[18].mxu1  ;;  %v2036_v62 = vpop.eup %2035  ;;  %v1743_v4 = vpack.c.bf16 %v1031_v50, %v1029_v49  ;;  %v1032_v5 = vmul.f32 %v2034_v60, %v2411_v58  ;;  %2057 = vpow2.f32 %v1555_v30 }
 0x128   : > { %v2525_v13 = vpop.f32.mrb[19].mxu0  ;;  %v2527_v53 = vpop.f32.mrb[19].mxu1  ;;  %v1783_v19 = vpack.c.bf16 %v1063_v42, %v1061_v37  ;;  %v1064_v46 = vmul.f32 %v2036_v62, %v2414_v59  ;;  %2059 = vpow2.f32 %v1587_v31  ;;  %v1590_v59 = vmul.f32 -1.442695, %v2517_v52 }
 0x129   : > { %v2038_v14 = vpop.eup %2037  ;;  %1744 = vst [vmem:[%s2513_s8] sm:$0xff] %v1743_v4   ;;  %v1823_v20 = vpack.c.bf16 %v1032_v5, %v1030_v43  ;;  %2061 = vpow2.f32 %v1556_v32 }
 0x12a   : > { %v2537_v58 = vpop.eup %2039  ;;  %1907 = vst [vmem:[%s2513_s8 + $0x40] sm:$0xff] %v1783_v19   ;;  %v1863_v47 = vpack.c.bf16 %v1064_v46, %v1062_v0  ;;  %2063 = vpow2.f32 %v1588_v34  ;;  %v2550_v29 = vpop.f32.mrb[20].mxu0  ;;  %v1033_v33 = vmul.f32 %v2038_v14, %v2421_v2  ;;  %v2571_v0 = vadd.f32 %v2454_v1, %v2386_v39 }
 0x12b   : > { %v2541_v25 = vpop.eup %2041  ;;  %1824 = vst [vmem:[%s2534_s11] sm:$0xff] %v1823_v20   ;;  %2065 = vpow2.f32 %v1557_v35  ;;  %v2552_v30 = vpop.f32.mrb[20].mxu1  ;;  %v2575_v20 = vadd.f32 %v2462_v10, %v2386_v39  ;;  %v2583_v1 = vadd.f32 %v2472_v17, %v2384_v38 }
 0x12c   : > { %v2545_v27 = vpop.eup %2043  ;;  %1922 = vst [vmem:[%s2534_s11 + $0x40] sm:$0xff] %v1863_v47   ;;  %2067 = vpow2.f32 %v1589_v24  ;;  %v2556_v48 = vpop.f32.mrb[21].mxu0 }
 0x12d   : > { %v2046_v28 = vpop.eup %2045  ;;  %v2558_v49 = vpop.f32.mrb[21].mxu1  ;;  %2069 = vpow2.f32 %v1558_v26  ;;  %v2579_v26 = vadd.f32 %v2464_v11, %v2384_v38  ;;  %v2592_v11 = vadd.f32 %v2474_v18, %v2386_v39 }
 0x12e   : > { %v2048_v31 = vpop.eup %2047  ;;  %v1035_v32 = vmul.f32 %v2046_v28, %v2435_v12  ;;  %v2560_v60 = vpop.f32.mrb[22].mxu0  ;;  %2071 = vpow2.f32 %v1590_v59 }
 0x12f   : > { %v2050_v34 = vpop.eup %2049  ;;  %v875_v50 = vadd.f32 1.0, %v2048_v31  ;;  %v2562_v35 = vpop.f32.mrb[22].mxu1 }
 0x130   : > { %v2052_v37 = vpop.eup %2051  ;;  %v1748_v42 = vpack.c.bf16 %v1035_v32, %v1033_v33  ;;  %v844_v62 = vadd.f32 1.0, %v2050_v34  ;;  %v2564_v2 = vpop.f32.mrb[23].mxu0  ;;  %v1559_v34 = vmul.f32 -1.442695, %v2571_v0 }
 0x131   : > { %v2566_v12 = vpop.f32.mrb[23].mxu1  ;;  %v2054_v43 = vpop.eup %2053  ;;  %2073 = vrcp.f32 %v875_v50  ;;  %v876_v4 = vadd.f32 1.0, %v2052_v37 }
 0x132   : > { %v2056_v5 = vpop.eup %2055  ;;  %1900 = vst [vmem:[%s2513_s8 + $0x8] sm:$0xff] %v1748_v42   ;;  %2075 = vrcp.f32 %v844_v62  ;;  %v845_v14 = vadd.f32 1.0, %v2054_v43  ;;  %v2585_v31 = vpop.f32.mrb[24].mxu0  ;;  %v1591_v62 = vmul.f32 -1.442695, %v2575_v20 }
 0x133   : > { %v2058_v19 = vpop.eup %2057  ;;  %2077 = vrcp.f32 %v876_v4  ;;  %v877_v46 = vadd.f32 1.0, %v2056_v5  ;;  %v2587_v33 = vpop.f32.mrb[24].mxu1 }
 0x134   : > { %v2060_v24 = vpop.eup %2059  ;;  %2079 = vrcp.f32 %v845_v14  ;;  %v846_v47 = vadd.f32 1.0, %v2058_v19  ;;  %v2594_v50 = vpop.f32.mrb[25].mxu0  ;;  %v1560_v19 = vmul.f32 -1.442695, %v2579_v26 }
 0x135   : > { %v2062_v59 = vpop.eup %2061  ;;  %2081 = vrcp.f32 %v877_v46  ;;  %v878_v28 = vadd.f32 1.0, %v2060_v24  ;;  %v2596_v37 = vpop.f32.mrb[25].mxu1 }
 0x136   : > { %v2064_v10 = vpop.eup %2063  ;;  %2083 = vrcp.f32 %v846_v47  ;;  %v847_v32 = vadd.f32 1.0, %v2062_v59  ;;  %v2599_v43 = vpop.f32.mrb[26].mxu0  ;;  %v1592_v59 = vmul.f32 -1.442695, %v2583_v1 }
 0x137   : > { %v2066_v42 = vpop.eup %2065  ;;  %2085 = vrcp.f32 %v878_v28  ;;  %v879_v17 = vadd.f32 1.0, %v2064_v10  ;;  %2892 = vst [vmem:[#allocation2_spill] sm:$0xff] %v2599_v43  ;;  %v2601_v4 = vpop.f32.mrb[26].mxu1  ;;  %v2611_v28 = vadd.f32 %v2482_v23, %v2386_v39  ;;  %v2624_v23 = vadd.f32 %v2504_v54, %v2386_v39 }
 0x138   : > { %2893 = vst [vmem:[#allocation3_spill] sm:$0xff] %v2601_v4  ;;  %v2068_v5 = vpop.eup %2067  ;;  %2087 = vrcp.f32 %v847_v32  ;;  %v848_v14 = vadd.f32 1.0, %v2066_v42  ;;  %v2604_v18 = vpop.f32.mrb[27].mxu0  ;;  %v1561_v32 = vmul.f32 -1.442695, %v2592_v11  ;;  %v2616_v42 = vadd.f32 %v2495_v41, %v2384_v38 }
 0x139   : > { %2894 = vst [vmem:[#allocation4_spill] sm:$0xff] %v2604_v18  ;;  %v2606_v46 = vpop.f32.mrb[27].mxu1  ;;  %v2070_v24 = vpop.eup %2069  ;;  %2089 = vrcp.f32 %v879_v17  ;;  %v880_v47 = vadd.f32 1.0, %v2068_v5  ;;  %v2620_v17 = vadd.f32 %v2497_v45, %v2384_v38  ;;  %v2631_v41 = vadd.f32 %v2506_v55, %v2386_v39 }
 0x13a   : > { %2895 = vst [vmem:[#allocation5_spill] sm:$0xff] %v2606_v46  ;;  %v2072_v10 = vpop.eup %2071  ;;  %2091 = vrcp.f32 %v848_v14  ;;  %v849_v4 = vadd.f32 1.0, %v2070_v24  ;;  %v1065_v14 = vmul.f32 %v2537_v58, %v2424_v3  ;;  %v1034_v45 = vmul.f32 %v2541_v25, %v2427_v6  ;;  %v2640_v43 = vpop.f32.mrb[28].mxu0 }
 0x13b   : > { %v2074_v18 = vpop.eup %2073  ;;  %2093 = vrcp.f32 %v880_v47  ;;  %v881_v46 = vadd.f32 1.0, %v2072_v10  ;;  %v2638_v54 = vadd.f32 %v2519_v57, %v2384_v38  ;;  %v2642_v3 = vpop.f32.mrb[28].mxu1  ;;  %v1066_v55 = vmul.f32 %v2545_v27, %v2430_v7 }
 0x13c   : > { %v2076_v5 = vpop.eup %2075  ;;  %v1067_v24 = vmul.f32 %v2074_v18, %v2441_v36  ;;  %2095 = vrcp.f32 %v849_v4  ;;  %v2647_v6 = vpop.f32.mrb[29].mxu0  ;;  %v1593_v18 = vmul.f32 -1.442695, %v2611_v28 }
 0x13d   : > { %v2078_v47 = vpop.eup %2077  ;;  %v1036_v10 = vmul.f32 %v2076_v5, %v2444_v44  ;;  %2097 = vrcp.f32 %v881_v46  ;;  %v2649_v44 = vpop.f32.mrb[29].mxu1  ;;  %v2654_v46 = vadd.f32 %v2521_v61, %v2384_v38  ;;  %v1562_v5 = vmul.f32 -1.442695, %v2616_v42 }
 0x13e   : > { %v2080_v36 = vpop.eup %2079  ;;  %v1788_v58 = vpack.c.bf16 %v1067_v24, %v1065_v14  ;;  %v1068_v4 = vmul.f32 %v2078_v47, %v2448_v56  ;;  %2099 = vpow2.f32 %v1559_v34  ;;  %v2656_v7 = vpop.f32.mrb[30].mxu0  ;;  %v1594_v47 = vmul.f32 -1.442695, %v2620_v17 }
 0x13f   : > { %v2082_v25 = vpop.eup %2081  ;;  %v1828_v57 = vpack.c.bf16 %v1036_v10, %v1034_v45  ;;  %2101 = vpow2.f32 %v1591_v62  ;;  %2896 = vst [vmem:[#allocation6_spill] sm:$0xff] %v2656_v7  ;;  %v2658_v27 = vpop.f32.mrb[30].mxu1  ;;  %v2664_v62 = vadd.f32 %v2525_v13, %v2386_v39  ;;  %v1595_v10 = vmul.f32 -1.442695, %v2631_v41 }
 0x140   : > { %2897 = vst [vmem:[#allocation7_spill] sm:$0xff] %v2658_v27  ;;  %v2084_v56 = vpop.eup %2083  ;;  %1908 = vst [vmem:[%s2513_s8 + $0x48] sm:$0xff] %v1788_v58   ;;  %v1868_v34 = vpack.c.bf16 %v1068_v4, %v1066_v55  ;;  %2103 = vpow2.f32 %v1560_v19  ;;  %v2666_v14 = vpop.f32.mrb[31].mxu0  ;;  %v1563_v19 = vmul.f32 -1.442695, %v2624_v23  ;;  %v1037_v58 = vmul.f32 %v2080_v36, %v2452_v63 }
 0x141   : > { %2898 = vst [vmem:[#allocation8_spill] sm:$0xff] %v2666_v14  ;;  %v2668_v24 = vpop.f32.mrb[31].mxu1  ;;  %v2086_v61 = vpop.eup %2085  ;;  %1915 = vst [vmem:[%s2534_s11 + $0x8] sm:$0xff] %v1828_v57   ;;  %2105 = vpow2.f32 %v1592_v59  ;;  %v1564_v55 = vmul.f32 -1.442695, %v2638_v54  ;;  %v1038_v27 = vmul.f32 %v2084_v56, %v2460_v9 }
 0x142   : > { %2899 = vst [vmem:[#allocation9_spill] sm:$0xff] %v2668_v24  ;;  %v2088_v45 = vpop.eup %2087  ;;  %1923 = vst [vmem:[%s2534_s11 + $0x48] sm:$0xff] %v1868_v34   ;;  %2107 = vpow2.f32 %v1561_v32  ;;  %v1596_v57 = vmul.f32 -1.442695, %v2654_v46  ;;  %v1069_v24 = vmul.f32 %v2082_v25, %v2457_v8  ;;  %v1565_v34 = vmul.f32 -1.442695, %v2664_v62 }
 0x143   : > { %v2090_v13 = vpop.eup %2089  ;;  %v1039_v4 = vmul.f32 %v2088_v45, %v2470_v16  ;;  %2109 = vpow2.f32 %v1593_v18  ;;  %v1070_v36 = vmul.f32 %v2086_v61, %v2467_v15 }
 0x144   : > { %v2092_v59 = vpop.eup %2091  ;;  %v1071_v32 = vmul.f32 %v2090_v13, %v2477_v21  ;;  %2111 = vpow2.f32 %v1562_v5  ;;  %v2696_v13 = vadd.f32 %v2527_v53, %v2386_v39  ;;  %v2712_v53 = vadd.f32 %v2558_v49, %v2386_v39 }
 0x145   : > { %v2094_v14 = vpop.eup %2093  ;;  %v1753_v7 = vpack.c.bf16 %v1039_v4, %v1037_v58  ;;  %v1040_v63 = vmul.f32 %v2092_v59, %v2480_v22  ;;  %2113 = vpow2.f32 %v1594_v47  ;;  %v2704_v59 = vadd.f32 %v2552_v30, %v2384_v38 }
 0x146   : > { %v2684_v16 = vpop.eup %2095  ;;  %v1793_v18 = vpack.c.bf16 %v1071_v32, %v1069_v24  ;;  %v1072_v8 = vmul.f32 %v2094_v14, %v2493_v40  ;;  %2115 = vpow2.f32 %v1563_v19  ;;  %v2720_v30 = vadd.f32 %v2562_v35, %v2384_v38 }
 0x147   : > { %v2688_v21 = vpop.eup %2097  ;;  %1901 = vst [vmem:[%s2513_s8 + $0x10] sm:$0xff] %v1753_v7   ;;  %v1833_v25 = vpack.c.bf16 %v1040_v63, %v1038_v27  ;;  %2117 = vpow2.f32 %v1595_v10  ;;  %v2708_v63 = vadd.f32 %v2556_v48, %v2386_v39  ;;  %v2724_v48 = vadd.f32 %v2564_v2, %v2386_v39 }
 0x148   : > { %v2100_v9 = vpop.eup %2099  ;;  %1909 = vst [vmem:[%s2513_s8 + $0x50] sm:$0xff] %v1793_v18   ;;  %v1873_v56 = vpack.c.bf16 %v1072_v8, %v1070_v36  ;;  %2119 = vpow2.f32 %v1564_v55  ;;  %v1598_v35 = vmul.f32 -1.442695, %v2704_v59 }
 0x149   : > { %v2102_v22 = vpop.eup %2101  ;;  %1916 = vst [vmem:[%s2534_s11 + $0x10] sm:$0xff] %v1833_v25   ;;  %v850_v5 = vadd.f32 1.0, %v2100_v9  ;;  %2121 = vpow2.f32 %v1596_v57  ;;  %v2700_v57 = vadd.f32 %v2550_v29, %v2384_v38  ;;  %v2716_v29 = vadd.f32 %v2560_v60, %v2384_v38 }
 0x14a   : > { %v2104_v47 = vpop.eup %2103  ;;  %1924 = vst [vmem:[%s2534_s11 + $0x50] sm:$0xff] %v1873_v56   ;;  %v882_v15 = vadd.f32 1.0, %v2102_v22  ;;  %2123 = vpow2.f32 %v1565_v34  ;;  %v1597_v56 = vmul.f32 -1.442695, %v2696_v13 }
 0x14b   : > { %v2106_v24 = vpop.eup %2105  ;;  %2125 = vrcp.f32 %v850_v5  ;;  %v851_v40 = vadd.f32 1.0, %v2104_v47  ;;  %v1566_v22 = vmul.f32 -1.442695, %v2700_v57  ;;  %v1567_v47 = vmul.f32 -1.442695, %v2708_v63 }
 0x14c   : > { %v2108_v14 = vpop.eup %2107  ;;  %2127 = vrcp.f32 %v882_v15  ;;  %v883_v7 = vadd.f32 1.0, %v2106_v24  ;;  %v1599_v24 = vmul.f32 -1.442695, %v2712_v53  ;;  %v1568_v2 = vmul.f32 -1.442695, %v2716_v29 }
 0x14d   : > { %v2110_v27 = vpop.eup %2109  ;;  %2129 = vrcp.f32 %v851_v40  ;;  %v852_v61 = vadd.f32 1.0, %v2108_v14  ;;  %v1600_v40 = vmul.f32 -1.442695, %v2720_v30 }
 0x14e   : > { %v2112_v45 = vpop.eup %2111  ;;  %2131 = vrcp.f32 %v883_v7  ;;  %v884_v19 = vadd.f32 1.0, %v2110_v27  ;;  %v1569_v7 = vmul.f32 -1.442695, %v2724_v48  ;;  %v2736_v27 = vadd.f32 %v2566_v12, %v2386_v39 }
 0x14f   : > { %v2114_v10 = vpop.eup %2113  ;;  %2133 = vrcp.f32 %v852_v61  ;;  %v853_v55 = vadd.f32 1.0, %v2112_v45  ;;  %v2740_v61 = vadd.f32 %v2585_v31, %v2384_v38  ;;  %v1073_v12 = vmul.f32 %v2688_v21, %v2517_v52 }
 0x150   : > { %v2116_v58 = vpop.eup %2115  ;;  %2135 = vrcp.f32 %v884_v19  ;;  %v885_v4 = vadd.f32 1.0, %v2114_v10  ;;  %v1041_v19 = vmul.f32 %v2684_v16, %v2502_v51  ;;  %v2754_v31 = vadd.f32 %v2594_v50, %v2386_v39 }
 0x151   : > { %v2118_v32 = vpop.eup %2117  ;;  %2137 = vrcp.f32 %v853_v55  ;;  %v854_v34 = vadd.f32 1.0, %v2116_v58  ;;  %v2747_v55 = vadd.f32 %v2587_v33, %v2384_v38 }
 0x152   : > { %v2120_v36 = vpop.eup %2119  ;;  %2139 = vrcp.f32 %v885_v4  ;;  %v886_v18 = vadd.f32 1.0, %v2118_v32 }
 0x153   : > { %v2122_v8 = vpop.eup %2121  ;;  %2141 = vrcp.f32 %v854_v34  ;;  %v855_v25 = vadd.f32 1.0, %v2120_v36  ;;  %v2764_v36 = vadd.f32 %v2596_v37, %v2386_v39 }
 0x154   : > { %v2124_v49 = vpop.eup %2123  ;;  %2143 = vrcp.f32 %v886_v18  ;;  %v887_v9 = vadd.f32 1.0, %v2122_v8 }
 0x155   : > { %v2126_v60 = vpop.eup %2125  ;;  %2145 = vrcp.f32 %v855_v25  ;;  %v856_v5 = vadd.f32 1.0, %v2124_v49  ;;  %v1571_v49 = vmul.f32 -1.442695, %v2754_v31 }
 0x156   : > { %v2128_v15 = vpop.eup %2127  ;;  %2147 = vrcp.f32 %v887_v9 }
 0x157   : > { %v2130_v14 = vpop.eup %2129  ;;  %2149 = vrcp.f32 %v856_v5  ;;  %v1074_v34 = vmul.f32 %v2128_v15, %v2575_v20  ;;  %v1570_v20 = vmul.f32 -1.442695, %v2740_v61 }
 0x158   : > { %v2132_v45 = vpop.eup %2131  ;;  %v1043_v10 = vmul.f32 %v2130_v14, %v2579_v26  ;;  %2151 = vpow2.f32 %v1597_v56  ;;  %v1042_v26 = vmul.f32 %v2126_v60, %v2571_v0  ;;  %v1601_v0 = vmul.f32 -1.442695, %v2736_v27 }
 0x159   : > { %v2134_v58 = vpop.eup %2133  ;;  %v1075_v4 = vmul.f32 %v2132_v45, %v2583_v1  ;;  %2153 = vpow2.f32 %v1566_v22  ;;  %v1603_v22 = vmul.f32 -1.442695, %v2764_v36 }
 0x15a   : > { %v2136_v51 = vpop.eup %2135  ;;  %v1758_v16 = vpack.c.bf16 %v1043_v10, %v1041_v19  ;;  %v1044_v33 = vmul.f32 %v2134_v58, %v2592_v11  ;;  %2155 = vpow2.f32 %v1598_v35 }
 0x15b   : > { %v2138_v32 = vpop.eup %2137  ;;  %v1798_v52 = vpack.c.bf16 %v1075_v4, %v1073_v12  ;;  %v1076_v1 = vmul.f32 %v2136_v51, %v2611_v28  ;;  %2157 = vpow2.f32 %v1567_v47  ;;  %v1602_v28 = vmul.f32 -1.442695, %v2747_v55 }
 0x15c   : > { %v2140_v21 = vpop.eup %2139  ;;  %1902 = vst [vmem:[%s2513_s8 + $0x18] sm:$0xff] %v1758_v16   ;;  %v1838_v50 = vpack.c.bf16 %v1044_v33, %v1042_v26  ;;  %2159 = vpow2.f32 %v1599_v24  ;;  %v1045_v37 = vmul.f32 %v2138_v32, %v2616_v42  ;;  %v2900_v26 = vld [vmem:[#allocation2_spill] sm:$0xff] }
 0x15d   : > { %v2142_v11 = vpop.eup %2141  ;;  %1910 = vst [vmem:[%s2513_s8 + $0x58] sm:$0xff] %v1798_v52   ;;  %v1878_v18 = vpack.c.bf16 %v1076_v1, %v1074_v34  ;;  %2161 = vpow2.f32 %v1568_v2  ;;  %v1077_v5 = vmul.f32 %v2140_v21, %v2620_v17  ;;  %v2786_v16 = vadd.f32 %v2900_v26, %v2384_v38  ;;  %v2901_v34 = vld [vmem:[#allocation3_spill] sm:$0xff]  ;;  %v2902_v1 = vld [vmem:[#allocation4_spill] sm:$0xff] }
 0x15e   : > { %v2768_v8 = vpop.eup %2143  ;;  %1917 = vst [vmem:[%s2534_s11 + $0x18] sm:$0xff] %v1838_v50   ;;  %2163 = vpow2.f32 %v1600_v40  ;;  %v1046_v15 = vmul.f32 %v2142_v11, %v2624_v23  ;;  %v2790_v52 = vadd.f32 %v2901_v34, %v2384_v38  ;;  %v2794_v21 = vadd.f32 %v2902_v1, %v2386_v39 }
 0x15f   : > { %v2146_v25 = vpop.eup %2145  ;;  %1925 = vst [vmem:[%s2534_s11 + $0x58] sm:$0xff] %v1878_v18   ;;  %2165 = vpow2.f32 %v1569_v7 }
 0x160   : > { %v2148_v9 = vpop.eup %2147  ;;  %v1047_v56 = vmul.f32 %v2146_v25, %v2638_v54  ;;  %2167 = vpow2.f32 %v1601_v0  ;;  %v1572_v25 = vmul.f32 -1.442695, %v2786_v16 }
 0x161   : > { %v2150_v60 = vpop.eup %2149  ;;  %v1079_v35 = vmul.f32 %v2148_v9, %v2654_v46  ;;  %2169 = vpow2.f32 %v1570_v20 }
 0x162   : > { %v2152_v47 = vpop.eup %2151  ;;  %v1763_v24 = vpack.c.bf16 %v1047_v56, %v1045_v37  ;;  %v1048_v2 = vmul.f32 %v2150_v60, %v2664_v62  ;;  %2171 = vpow2.f32 %v1602_v28  ;;  %v1573_v60 = vmul.f32 -1.442695, %v2794_v21 }
 0x163   : > { %v2154_v42 = vpop.eup %2153  ;;  %v1803_v54 = vpack.c.bf16 %v1079_v35, %v1077_v5  ;;  %v888_v40 = vadd.f32 1.0, %v2152_v47  ;;  %2173 = vpow2.f32 %v1571_v49  ;;  %v2903_v49 = vld [vmem:[#allocation5_spill] sm:$0xff]  ;;  %v2805_v5 = vadd.f32 %v2640_v43, %v2384_v38 }
 0x164   : > { %v2156_v14 = vpop.eup %2155  ;;  %1903 = vst [vmem:[%s2513_s8 + $0x20] sm:$0xff] %v1763_v24   ;;  %v1843_v7 = vpack.c.bf16 %v1048_v2, %v1046_v15  ;;  %v857_v17 = vadd.f32 1.0, %v2154_v42  ;;  %2175 = vpow2.f32 %v1603_v22  ;;  %v2799_v9 = vadd.f32 %v2903_v49, %v2386_v39 }
 0x165   : > { %v2158_v46 = vpop.eup %2157  ;;  %1911 = vst [vmem:[%s2513_s8 + $0x60] sm:$0xff] %v1803_v54   ;;  %2177 = vrcp.f32 %v888_v40  ;;  %v889_v45 = vadd.f32 1.0, %v2156_v14  ;;  %v1604_v22 = vmul.f32 -1.442695, %v2790_v52  ;;  %v2809_v47 = vadd.f32 %v2642_v3, %v2384_v38  ;;  %v2904_v54 = vld [vmem:[#allocation6_spill] sm:$0xff]  ;;  %v2905_v14 = vld [vmem:[#allocation7_spill] sm:$0xff] }
 0x166   : > { %v2160_v19 = vpop.eup %2159  ;;  %1918 = vst [vmem:[%s2534_s11 + $0x20] sm:$0xff] %v1843_v7   ;;  %2179 = vrcp.f32 %v857_v17  ;;  %v858_v23 = vadd.f32 1.0, %v2158_v46  ;;  %v2813_v15 = vadd.f32 %v2647_v6, %v2386_v39  ;;  %v2817_v24 = vadd.f32 %v2649_v44, %v2386_v39 }
 0x167   : > { %v2162_v62 = vpop.eup %2161  ;;  %2181 = vrcp.f32 %v889_v45  ;;  %v890_v10 = vadd.f32 1.0, %v2160_v19  ;;  %v1078_v42 = vmul.f32 %v2768_v8, %v2631_v41  ;;  %v2824_v3 = vadd.f32 %v2904_v54, %v2384_v38 }
 0x168   : > { %v2164_v58 = vpop.eup %2163  ;;  %2183 = vrcp.f32 %v858_v23  ;;  %v859_v12 = vadd.f32 1.0, %v2162_v62  ;;  %v1605_v6 = vmul.f32 -1.442695, %v2799_v9  ;;  %v2829_v44 = vadd.f32 %v2905_v14, %v2384_v38 }
 0x169   : > { %v2166_v4 = vpop.eup %2165  ;;  %2185 = vrcp.f32 %v890_v10  ;;  %v891_v51 = vadd.f32 1.0, %v2164_v58  ;;  %v1574_v41 = vmul.f32 -1.442695, %v2805_v5  ;;  %v1606_v45 = vmul.f32 -1.442695, %v2809_v47  ;;  %v2907_v10 = vld [vmem:[#allocation9_spill] sm:$0xff] }
 0x16a   : > { %v2168_v33 = vpop.eup %2167  ;;  %2187 = vrcp.f32 %v859_v12  ;;  %v860_v32 = vadd.f32 1.0, %v2166_v4  ;;  %v1575_v19 = vmul.f32 -1.442695, %v2813_v15  ;;  %v1607_v38 = vmul.f32 -1.442695, %v2817_v24 }
 0x16b   : > { %v2170_v50 = vpop.eup %2169  ;;  %2189 = vrcp.f32 %v891_v51  ;;  %v892_v0 = vadd.f32 1.0, %v2168_v33  ;;  %v1576_v62 = vmul.f32 -1.442695, %v2824_v3  ;;  %v2843_v58 = vadd.f32 %v2907_v10, %v2386_v39 }
 0x16c   : > { %v2172_v11 = vpop.eup %2171  ;;  %2191 = vrcp.f32 %v860_v32  ;;  %v861_v18 = vadd.f32 1.0, %v2170_v50  ;;  %v1608_v26 = vmul.f32 -1.442695, %v2829_v44 }
 0x16d   : > { %v2174_v20 = vpop.eup %2173  ;;  %2193 = vrcp.f32 %v892_v0  ;;  %v893_v28 = vadd.f32 1.0, %v2172_v11 }
 0x16e   : > { %v2176_v37 = vpop.eup %2175  ;;  %v862_v56 = vadd.f32 1.0, %v2174_v20  ;;  %2195 = vrcp.f32 %v861_v18  ;;  %v1609_v20 = vmul.f32 -1.442695, %v2843_v58 }
 0x16f   : > { %v2178_v35 = vpop.eup %2177  ;;  %2197 = vrcp.f32 %v893_v28 }
 0x170   : > { %v2180_v2 = vpop.eup %2179  ;;  %v1080_v43 = vmul.f32 %v2178_v35, %v2696_v13  ;;  %2199 = vrcp.f32 %v862_v56  ;;  %v2906_v13 = vld [vmem:[#allocation8_spill] sm:$0xff] }
 0x171   : > { %v2182_v40 = vpop.eup %2181  ;;  %2201 = vpow2.f32 %v1572_v25  ;;  %v2834_v8 = vadd.f32 %v2906_v13, %v2386_v39  ;;  %v1049_v4 = vmul.f32 %v2180_v2, %v2700_v57  ;;  %v894_v25 = vadd.f32 1.0, %v2176_v37 }
 0x172   : > { %v2184_v7 = vpop.eup %2183  ;;  %v1883_v17 = vpack.c.bf16 %v1080_v43, %v1078_v42  ;;  %2203 = vpow2.f32 %v1604_v22  ;;  %v1081_v32 = vmul.f32 %v2182_v40, %v2704_v59 }
 0x173   : > { %v2186_v46 = vpop.eup %2185  ;;  %2205 = vpow2.f32 %v1573_v60  ;;  %v1577_v1 = vmul.f32 -1.442695, %v2834_v8  ;;  %v1050_v50 = vmul.f32 %v2184_v7, %v2708_v63 }
 0x174   : > { %v2188_v23 = vpop.eup %2187  ;;  %1926 = vst [vmem:[%s2534_s11 + $0x60] sm:$0xff] %v1883_v17   ;;  %2207 = vpow2.f32 %v1605_v6 }
 0x175   : > { %v2190_v12 = vpop.eup %2189  ;;  %v1051_v51 = vmul.f32 %v2188_v23, %v2716_v29  ;;  %2209 = vpow2.f32 %v1574_v41  ;;  %v1082_v29 = vmul.f32 %v2186_v46, %v2712_v53 }
 0x176   : > { %v2192_v33 = vpop.eup %2191  ;;  %v1083_v34 = vmul.f32 %v2190_v12, %v2720_v30  ;;  %2211 = vpow2.f32 %v1606_v45 }
 0x177   : > { %v2194_v39 = vpop.eup %2193  ;;  %v1768_v0 = vpack.c.bf16 %v1051_v51, %v1049_v4  ;;  %v1052_v57 = vmul.f32 %v2192_v33, %v2724_v48  ;;  %2213 = vpow2.f32 %v1575_v19 }
 0x178   : > { %v1808_v11 = vpack.c.bf16 %v1083_v34, %v1081_v32  ;;  %v1084_v18 = vmul.f32 %v2194_v39, %v2736_v27  ;;  %v2196_v59 = vpop.eup %2195  ;;  %2215 = vpow2.f32 %v1607_v38 }
 0x179   : > { %1904 = vst [vmem:[%s2513_s8 + $0x28] sm:$0xff] %v1768_v0   ;;  %v1848_v30 = vpack.c.bf16 %v1052_v57, %v1050_v50  ;;  %v2198_v28 = vpop.eup %2197  ;;  %2217 = vpow2.f32 %v1576_v62  ;;  %v1053_v4 = vmul.f32 %v2196_v59, %v2740_v61 }
 0x17a   : > { %1912 = vst [vmem:[%s2513_s8 + $0x68] sm:$0xff] %v1808_v11   ;;  %v1888_v63 = vpack.c.bf16 %v1084_v18, %v1082_v29  ;;  %v2200_v48 = vpop.eup %2199  ;;  %2219 = vpow2.f32 %v1608_v26  ;;  %v1085_v33 = vmul.f32 %v2198_v28, %v2747_v55 }
 0x17b   : > { %1919 = vst [vmem:[%s2534_s11 + $0x28] sm:$0xff] %v1848_v30   ;;  %v2202_v53 = vpop.eup %2201  ;;  %2221 = vpow2.f32 %v1577_v1  ;;  %v1054_v1 = vmul.f32 %v2200_v48, %v2754_v31 }
 0x17c   : > { %1927 = vst [vmem:[%s2534_s11 + $0x68] sm:$0xff] %v1888_v63   ;;  %v2204_v27 = vpop.eup %2203  ;;  %v863_v49 = vadd.f32 1.0, %v2202_v53  ;;  %2223 = vpow2.f32 %v1609_v20 }
 0x17d   : > { %v2206_v56 = vpop.eup %2205  ;;  %2225 = vrcp.f32 %v894_v25  ;;  %v895_v22 = vadd.f32 1.0, %v2204_v27 }
 0x17e   : > { %v2208_v60 = vpop.eup %2207  ;;  %2227 = vrcp.f32 %v863_v49  ;;  %v864_v35 = vadd.f32 1.0, %v2206_v56 }
 0x17f   : > { %v2210_v2 = vpop.eup %2209  ;;  %2229 = vrcp.f32 %v895_v22  ;;  %v896_v42 = vadd.f32 1.0, %v2208_v60 }
 0x180   : > { %v2212_v37 = vpop.eup %2211  ;;  %2231 = vrcp.f32 %v864_v35  ;;  %v865_v43 = vadd.f32 1.0, %v2210_v2 }
 0x181   : > { %v2214_v54 = vpop.eup %2213  ;;  %2233 = vrcp.f32 %v896_v42  ;;  %v897_v40 = vadd.f32 1.0, %v2212_v37 }
 0x182   : > { %v2216_v6 = vpop.eup %2215  ;;  %2235 = vrcp.f32 %v865_v43  ;;  %v866_v14 = vadd.f32 1.0, %v2214_v54 }
 0x183   : > { %v2218_v7 = vpop.eup %2217  ;;  %2237 = vrcp.f32 %v897_v40  ;;  %v898_v17 = vadd.f32 1.0, %v2216_v6 }
 0x184   : > { %v2220_v41 = vpop.eup %2219  ;;  %2239 = vrcp.f32 %v866_v14  ;;  %v867_v13 = vadd.f32 1.0, %v2218_v7 }
 0x185   : > { %v2222_v46 = vpop.eup %2221  ;;  %2241 = vrcp.f32 %v898_v17  ;;  %v899_v45 = vadd.f32 1.0, %v2220_v41 }
 0x186   : > { %v2224_v19 = vpop.eup %2223  ;;  %2243 = vrcp.f32 %v867_v13  ;;  %v868_v23 = vadd.f32 1.0, %v2222_v46 }
 0x187   : > { %v2226_v38 = vpop.eup %2225  ;;  %2245 = vrcp.f32 %v899_v45  ;;  %v900_v62 = vadd.f32 1.0, %v2224_v19 }
 0x188   : > { %v2228_v10 = vpop.eup %2227  ;;  %2247 = vrcp.f32 %v868_v23  ;;  %v1086_v61 = vmul.f32 %v2226_v38, %v2764_v36 }
 0x189   : > { %v2230_v12 = vpop.eup %2229  ;;  %v1055_v51 = vmul.f32 %v2228_v10, %v2786_v16  ;;  %2249 = vrcp.f32 %v900_v62 }
 0x18a   : > { %v2232_v26 = vpop.eup %2231  ;;  %v1087_v32 = vmul.f32 %v2230_v12, %v2790_v52 }
 0x18b   : > { %v2234_v34 = vpop.eup %2233  ;;  %v1773_v39 = vpack.c.bf16 %v1055_v51, %v1053_v4  ;;  %v1056_v50 = vmul.f32 %v2232_v26, %v2794_v21 }
 0x18c   : > { %v2236_v0 = vpop.eup %2235  ;;  %v1813_v57 = vpack.c.bf16 %v1087_v32, %v1085_v33  ;;  %v1088_v16 = vmul.f32 %v2234_v34, %v2799_v9 }
 0x18d   : > { %v2238_v29 = vpop.eup %2237  ;;  %1905 = vst [vmem:[%s2513_s8 + $0x30] sm:$0xff] %v1773_v39   ;;  %v1853_v11 = vpack.c.bf16 %v1056_v50, %v1054_v1  ;;  %v1057_v21 = vmul.f32 %v2236_v0, %v2805_v5 }
 0x18e   : > { %v2240_v55 = vpop.eup %2239  ;;  %1913 = vst [vmem:[%s2513_s8 + $0x70] sm:$0xff] %v1813_v57   ;;  %v1893_v52 = vpack.c.bf16 %v1088_v16, %v1086_v61  ;;  %v1089_v30 = vmul.f32 %v2238_v29, %v2809_v47 }
 0x18f   : > { %v2242_v18 = vpop.eup %2241  ;;  %1920 = vst [vmem:[%s2534_s11 + $0x30] sm:$0xff] %v1853_v11   ;;  %v1058_v63 = vmul.f32 %v2240_v55, %v2813_v15 }
 0x190   : > { %v2244_v31 = vpop.eup %2243  ;;  %1928 = vst [vmem:[%s2534_s11 + $0x70] sm:$0xff] %v1893_v52   ;;  %v1090_v53 = vmul.f32 %v2242_v18, %v2817_v24 }
 0x191   : > { %v2246_v59 = vpop.eup %2245  ;;  %v1059_v36 = vmul.f32 %v2244_v31, %v2824_v3 }
 0x192   : > { %v2248_v9 = vpop.eup %2247  ;;  %v1091_v20 = vmul.f32 %v2246_v59, %v2829_v44 }
 0x193   : > { %v2250_v28 = vpop.eup %2249  ;;  %v1778_v25 = vpack.c.bf16 %v1059_v36, %v1057_v21  ;;  %v1060_v48 = vmul.f32 %v2248_v9, %v2834_v8 }
 0x194   : > { %v1818_v27 = vpack.c.bf16 %v1091_v20, %v1089_v30  ;;  %v1092_v5 = vmul.f32 %v2250_v28, %v2843_v58 }
 0x195   : > { %1906 = vst [vmem:[%s2513_s8 + $0x38] sm:$0xff] %v1778_v25   ;;  %v1858_v49 = vpack.c.bf16 %v1060_v48, %v1058_v63 }
 0x196   : > { %1914 = vst [vmem:[%s2513_s8 + $0x78] sm:$0xff] %v1818_v27   ;;  %v1898_v3 = vpack.c.bf16 %v1092_v5, %v1090_v53 }
 0x197   : > { %1921 = vst [vmem:[%s2534_s11 + $0x38] sm:$0xff] %v1858_v49  }
 0x198   : > { %1929 = vst [vmem:[%s2534_s11 + $0x78] sm:$0xff] %v1898_v3  }
 0x199 PF: > { %s15_s15 = sadd.s32 1, %s2257_s15  }
 0x19a   : > { %p12_p4 = scmp.ge.s32.totalorder %s15_s15, 4  }
 0x19c   :  { %14 = sbr.rel (!%p12_p4) target bundleno = 1 (0x1), region = 74 }

// kernel: c2f_forward.7
= control target key start
LH: loop header
LB: loop body
LE: loop exit
PB: predicated region body
PF: predicated region fallthrough
CT: control target
= control target key end

     0   :  { %s3041_s21 = smov 0   ;;  %s3444_s0 = inlined_call_operand.vmem [shape: bf16[512,128], index: 0, kind: input, shape index: {}]   ;;  %s3445_s1 = inlined_call_operand.vmem [shape: bf16[512,128], index: 1, kind: input, shape index: {}]   ;;  %s3446_s2 = inlined_call_operand.vmem [shape: bf16[512,128], index: 2, kind: input, shape index: {}]   ;;  %s3447_s3 = inlined_call_operand.vmem [shape: bf16[512,128], index: 3, kind: input, shape index: {}]   ;;  %s3448_s4 = inlined_call_operand.vmem [shape: bf16[4,128,128], index: 4, kind: input, shape index: {}]   ;;  %s3449_s5 = inlined_call_operand.vmem [shape: f32[1,128], index: 5, kind: input, shape index: {}]   ;;  %s3450_s6 = inlined_call_operand.vmem [shape: f32[512,128], index: 6, kind: output, shape index: {}]  }
   0x1 LB: > { %s2188_s22 = sadd.s32 4294967295, %s3004_s21   ;;  %p2192_p0 = scmp.ge.s32.totalorder %s3004_s21, 1  ;;  %s3004_s21 = sphi %s3041_s21, %s16_s21  }
   0x2   : > { %p246_p1 = scmp.lt.s32.totalorder %s3004_s21, 3 }
   0x4   : > { %p247_p2 = pnand %p2192_p0, %p246_p1 }
   0x5   : > { %v2774_v0 = vld [vmem:[%s3448_s4 + $0x40] sm:$0xff] (!%p247_p2)   ;;  %s2193_s25 = sshll.u32 (!%p247_p2), %s2188_s22, 5  ;;  %v2776_v2 = vld [vmem:[%s3448_s4 + $0x48] sm:$0xff] (!%p247_p2)   ;;  %v2778_v4 = vld [vmem:[%s3448_s4 + $0x50] sm:$0xff] (!%p247_p2)  }
   0x6   : > { %250 = sbr.rel (%p247_p2) target bundleno = 412 (0x19c), region = 44  ;;  %v2775_v1 = vld [vmem:[%s3448_s4 + $0x80] sm:$0xff] (!%p247_p2)   ;;  %2478 = vmatprep.subr.bf16.mxu1 (!%p247_p2), %v2774_v0  ;;  %p292_p3 = scmp.lt.s32.totalorder (!%p247_p2), %s2193_s25, 63  ;;  %v2777_v3 = vld [vmem:[%s3448_s4 + $0x88] sm:$0xff] (!%p247_p2)   ;;  %v2779_v5 = vld [vmem:[%s3448_s4 + $0x90] sm:$0xff] (!%p247_p2)  }
   0x7   : > { %2574 = vmatprep.subr.bf16.mxu0 (!%p247_p2), %v2775_v1  ;;  %2479 = vmatpush3.bf16.msra.mxu1 (!%p247_p2), %v2774_v0  ;;  %v2780_v6 = vld [vmem:[%s3448_s4 + $0x58] sm:$0xff] (!%p247_p2)   ;;  %v2782_v8 = vld [vmem:[%s3448_s4 + $0x60] sm:$0xff] (!%p247_p2)   ;;  %v2784_v10 = vld [vmem:[%s3448_s4 + $0x68] sm:$0xff] (!%p247_p2)  }
   0x8   : > { %2575 = vmatpush3.bf16.msra.mxu0 (!%p247_p2), %v2775_v1  ;;  %2480 = vmatprep.subr.bf16.mxu1 (!%p247_p2), %v2776_v2  ;;  %v2781_v7 = vld [vmem:[%s3448_s4 + $0x98] sm:$0xff] (!%p247_p2)   ;;  %v2783_v9 = vld [vmem:[%s3448_s4 + $0xa0] sm:$0xff] (!%p247_p2)   ;;  %v2785_v11 = vld [vmem:[%s3448_s4 + $0xa8] sm:$0xff] (!%p247_p2)  }
   0x9   : > { %2576 = vmatprep.subr.bf16.mxu0 (!%p247_p2), %v2777_v3  ;;  %v2786_v14 = vld [vmem:[%s3448_s4 + $0x70] sm:$0xff] (!%p247_p2)   ;;  %v2788_v16 = vld [vmem:[%s3448_s4 + $0x78] sm:$0xff] (!%p247_p2)   ;;  %v2793_v19 = vld [vmem:[%s3448_s4] sm:$0xff] (!%p247_p2)  }
   0xa   : > { %v2787_v15 = vld [vmem:[%s3448_s4 + $0xb0] sm:$0xff] (!%p247_p2)   ;;  %v2789_v17 = vld [vmem:[%s3448_s4 + $0xb8] sm:$0xff] (!%p247_p2)   ;;  %v2795_v20 = vld [vmem:[%s3448_s4 + $0xc0] sm:$0xff] (!%p247_p2)  }
   0xb   : > { %2481 = vmatpush3.bf16.msra.mxu1 (!%p247_p2), %v2776_v2  ;;  %v2799_v24 = vld [vmem:[%s3448_s4 + $0x8] sm:$0xff] (!%p247_p2)   ;;  %v2805_v27 = vld [vmem:[%s3448_s4 + $0x10] sm:$0xff] (!%p247_p2)   ;;  %v2811_v32 = vld [vmem:[%s3448_s4 + $0x18] sm:$0xff] (!%p247_p2)  }
   0xc   : > { %2577 = vmatpush3.bf16.msra.mxu0 (!%p247_p2), %v2777_v3  ;;  %2482 = vmatprep.subr.bf16.mxu1 (!%p247_p2), %v2778_v4  ;;  %v2801_v25 = vld [vmem:[%s3448_s4 + $0xc8] sm:$0xff] (!%p247_p2)   ;;  %v2807_v28 = vld [vmem:[%s3448_s4 + $0xd0] sm:$0xff] (!%p247_p2)   ;;  %v2813_v33 = vld [vmem:[%s3448_s4 + $0xd8] sm:$0xff] (!%p247_p2)  }
   0xd   : > { %s3452_s25 = smov (!%p292_p3, %s2193_s25), 63  ;;  %2578 = vmatprep.subr.bf16.mxu0 %v2779_v5  ;;  %v2817_v36 = vld [vmem:[%s3448_s4 + $0x20] sm:$0xff]   ;;  %v2823_v40 = vld [vmem:[%s3448_s4 + $0x28] sm:$0xff]   ;;  %v2829_v45 = vld [vmem:[%s3448_s4 + $0x30] sm:$0xff]  }
   0xe   : > { %s3076_s16 = sshll.u32 %s3452_s25, 2  ;;  %v2819_v37 = vld [vmem:[%s3448_s4 + $0xe0] sm:$0xff]   ;;  %v2825_v41 = vld [vmem:[%s3448_s4 + $0xe8] sm:$0xff]   ;;  %v2831_v47 = vld [vmem:[%s3448_s4 + $0xf0] sm:$0xff]  }
   0xf   : > { %2483 = vmatpush3.bf16.msra.mxu1 %v2778_v4  ;;  %s3088_s24 = scalar_lea.vmem %s3445_s1, %s3076_s16  ;;  %s3097_s30 = scalar_lea.vmem %s3446_s2, %s3076_s16  ;;  %v2835_v50 = vld [vmem:[%s3448_s4 + $0x38] sm:$0xff]  }
  0x10   : > { %2579 = vmatpush3.bf16.msra.mxu0 %v2779_v5  ;;  %2484 = vmatprep.subr.bf16.mxu1 %v2780_v6  ;;  %v2790_v12 = vld [vmem:[%s3088_s24] sm:$0xff]   ;;  %v2792_v18 = vld [vmem:[%s3088_s24 + $0x8] sm:$0xff]   ;;  %v2796_v22 = vld [vmem:[%s3088_s24 + $0x10] sm:$0xff]   ;;  %s3187_s13 = scalar_lea.vmem %s3444_s0, %s3076_s16  ;;  %s3194_s17 = scalar_lea.vmem %s3447_s3, %s3076_s16 }
  0x11   : > { %2580 = vmatprep.subr.bf16.mxu0 %v2781_v7  ;;  %v2791_v13 = vld [vmem:[%s3097_s30] sm:$0xff]   ;;  %2494 = vmatprep.mubr.bf16.mxu1 %v2790_v12  ;;  %v2794_v21 = vld [vmem:[%s3097_s30 + $0x8] sm:$0xff]   ;;  %v2797_v23 = vld [vmem:[%s3097_s30 + $0x10] sm:$0xff]  }
  0x12   : > { %2590 = vmatprep.mubr.bf16.mxu0 %v2791_v13  ;;  %v2798_v26 = vld [vmem:[%s3088_s24 + $0x18] sm:$0xff]   ;;  %v2802_v30 = vld [vmem:[%s3088_s24 + $0x20] sm:$0xff]   ;;  %v2804_v34 = vld [vmem:[%s3088_s24 + $0x28] sm:$0xff]  }
  0x13   : > { %2485 = vmatpush3.bf16.msra.mxu1 %v2780_v6  ;;  %v2800_v29 = vld [vmem:[%s3097_s30 + $0x18] sm:$0xff]   ;;  %v2803_v31 = vld [vmem:[%s3097_s30 + $0x20] sm:$0xff]   ;;  %v2806_v35 = vld [vmem:[%s3097_s30 + $0x28] sm:$0xff]  }
  0x14   : > { %2581 = vmatpush3.bf16.msra.mxu0 %v2781_v7  ;;  %2486 = vmatprep.subr.bf16.mxu1 %v2782_v8  ;;  %v2808_v38 = vld [vmem:[%s3088_s24 + $0x30] sm:$0xff]   ;;  %v2810_v42 = vld [vmem:[%s3088_s24 + $0x38] sm:$0xff]   ;;  %v2814_v44 = vld [vmem:[%s3088_s24 + $0x40] sm:$0xff]  }
  0x15   : > { %2582 = vmatprep.subr.bf16.mxu0 %v2783_v9  ;;  %v2809_v39 = vld [vmem:[%s3097_s30 + $0x30] sm:$0xff]   ;;  %v2812_v43 = vld [vmem:[%s3097_s30 + $0x38] sm:$0xff]   ;;  %v2815_v46 = vld [vmem:[%s3097_s30 + $0x40] sm:$0xff]  }
  0x16   : > { %v2816_v48 = vld [vmem:[%s3088_s24 + $0x48] sm:$0xff]   ;;  %v2820_v51 = vld [vmem:[%s3088_s24 + $0x50] sm:$0xff]   ;;  %v2837_v52 = vld [vmem:[%s3448_s4 + $0xf8] sm:$0xff]  }
  0x17   : > { %2487 = vmatpush3.bf16.msra.mxu1 %v2782_v8  ;;  %v2818_v49 = vld [vmem:[%s3097_s30 + $0x48] sm:$0xff]   ;;  %v2821_v53 = vld [vmem:[%s3097_s30 + $0x50] sm:$0xff]   ;;  %v2822_v54 = vld [vmem:[%s3088_s24 + $0x58] sm:$0xff]  }
  0x18   : > { %2583 = vmatpush3.bf16.msra.mxu0 %v2783_v9  ;;  %2488 = vmatprep.subr.bf16.mxu1 %v2784_v10  ;;  %v2824_v55 = vld [vmem:[%s3097_s30 + $0x58] sm:$0xff]   ;;  %v2826_v56 = vld [vmem:[%s3088_s24 + $0x60] sm:$0xff]   ;;  %v2828_v58 = vld [vmem:[%s3088_s24 + $0x68] sm:$0xff]  }
  0x19   : > { %2584 = vmatprep.subr.bf16.mxu0 %v2785_v11  ;;  %v2827_v57 = vld [vmem:[%s3097_s30 + $0x60] sm:$0xff]   ;;  %v2830_v59 = vld [vmem:[%s3097_s30 + $0x68] sm:$0xff]   ;;  %v2832_v60 = vld [vmem:[%s3088_s24 + $0x70] sm:$0xff]  }
  0x1a   : > { %v2833_v61 = vld [vmem:[%s3097_s30 + $0x70] sm:$0xff]   ;;  %v2834_v62 = vld [vmem:[%s3088_s24 + $0x78] sm:$0xff]   ;;  %v2838_v0 = vld [vmem:[%s3187_s13] sm:$0xff]  }
  0x1b   : > { %2489 = vmatpush3.bf16.msra.mxu1 %v2784_v10  ;;  %v2836_v63 = vld [vmem:[%s3097_s30 + $0x78] sm:$0xff]   ;;  %v2839_v1 = vld [vmem:[%s3194_s17] sm:$0xff]   ;;  %v2840_v2 = vld [vmem:[%s3187_s13 + $0x8] sm:$0xff]   ;;  %s2202_s30 = sshll.u32 %s3452_s25, 3 }
  0x1c   : > { %2585 = vmatpush3.bf16.msra.mxu0 %v2785_v11  ;;  %2490 = vmatprep.subr.bf16.mxu1 %v2786_v14  ;;  %v2841_v3 = vld [vmem:[%s3194_s17 + $0x8] sm:$0xff]   ;;  %v2842_v4 = vld [vmem:[%s3187_s13 + $0x10] sm:$0xff]   ;;  %v2844_v6 = vld [vmem:[%s3187_s13 + $0x18] sm:$0xff]   ;;  %s3305_s19 = scalar_lea.vmem %s3450_s6, %s2202_s30 }
  0x1d   : > { %2586 = vmatprep.subr.bf16.mxu0 %v2787_v15  ;;  %v2843_v5 = vld [vmem:[%s3194_s17 + $0x10] sm:$0xff]   ;;  %v2845_v7 = vld [vmem:[%s3194_s17 + $0x18] sm:$0xff]   ;;  %v2846_v8 = vld [vmem:[%s3187_s13 + $0x20] sm:$0xff]  }
  0x1e   : > { %v2847_v9 = vld [vmem:[%s3194_s17 + $0x20] sm:$0xff]   ;;  %v2848_v10 = vld [vmem:[%s3187_s13 + $0x28] sm:$0xff]   ;;  %v2850_v12 = vld [vmem:[%s3187_s13 + $0x30] sm:$0xff]  }
  0x1f   : > { %2491 = vmatpush3.bf16.msra.mxu1 %v2786_v14  ;;  %v2849_v11 = vld [vmem:[%s3194_s17 + $0x28] sm:$0xff]   ;;  %v2851_v13 = vld [vmem:[%s3194_s17 + $0x30] sm:$0xff]   ;;  %v2852_v14 = vld [vmem:[%s3187_s13 + $0x38] sm:$0xff]  }
  0x20   : > { %2587 = vmatpush3.bf16.msra.mxu0 %v2787_v15  ;;  %2492 = vmatprep.subr.bf16.mxu1 %v2788_v16  ;;  %v2853_v15 = vld [vmem:[%s3194_s17 + $0x38] sm:$0xff]  }
  0x21   : > { %2588 = vmatprep.subr.bf16.mxu0 %v2789_v17 }
  0x23   : > { %2493 = vmatpush3.bf16.msra.mxu1 %v2788_v16  ;;  %v2854_v16 = vld [vmem:[%s3187_s13 + $0x40] sm:$0xff]  }
  0x24   : > { %2589 = vmatpush3.bf16.msra.mxu0 %v2789_v17  ;;  %2526 = vmatprep.subr.bf16.mxu1 %v2793_v19  ;;  %v2855_v17 = vld [vmem:[%s3194_s17 + $0x40] sm:$0xff]  }
  0x25   : > { %2622 = vmatprep.subr.bf16.mxu0 %v2795_v20 }
  0x26   : > { %2495 = vmatmul.mubr.bf16.vlgmr.msra.gmra.mrb[0].mxu1 %v2792_v18  ;;  %v2856_v18 = vld [vmem:[%s3187_s13 + $0x48] sm:$0xff]  }
  0x27   : > { %2591 = vmatmul.mubr.bf16.vlgmr.msra.gmra.mrb[0].mxu0 %v2794_v21  ;;  %2527 = vmatpush3.bf16.msra.mxu1 %v2793_v19  ;;  %v2857_v19 = vld [vmem:[%s3194_s17 + $0x48] sm:$0xff]   ;;  %v2859_v21 = vld [vmem:[%s3194_s17 + $0x50] sm:$0xff]  }
  0x28   : > { %2623 = vmatpush3.bf16.msra.mxu0 %v2795_v20  ;;  %2498 = vmatprep.mubr.bf16.mxu1 %v2796_v22  ;;  %v2858_v20 = vld [vmem:[%s3187_s13 + $0x50] sm:$0xff]   ;;  %v2860_v22 = vld [vmem:[%s3187_s13 + $0x58] sm:$0xff]  }
  0x29   : > { %2594 = vmatprep.mubr.bf16.mxu0 %v2797_v23  ;;  %2528 = vmatprep.subr.bf16.mxu1 %v2799_v24  ;;  %v2861_v23 = vld [vmem:[%s3194_s17 + $0x58] sm:$0xff]  }
  0x2a   : > { %2624 = vmatprep.subr.bf16.mxu0 %v2801_v25 }
  0x2b   : > { %2529 = vmatpush3.bf16.msra.mxu1 %v2799_v24  ;;  %v2862_v24 = vld [vmem:[%s3187_s13 + $0x60] sm:$0xff]  }
  0x2c   : > { %2625 = vmatpush3.bf16.msra.mxu0 %v2801_v25  ;;  %2530 = vmatprep.subr.bf16.mxu1 %v2805_v27  ;;  %v2863_v25 = vld [vmem:[%s3194_s17 + $0x60] sm:$0xff]  }
  0x2d   : > { %2626 = vmatprep.subr.bf16.mxu0 %v2807_v28 }
  0x2e   : > { %2499 = vmatmul.mubr.bf16.gmra.mrb[4].mxu1 %v2798_v26  ;;  %v2864_v26 = vld [vmem:[%s3187_s13 + $0x68] sm:$0xff]  }
  0x2f   : > { %2595 = vmatmul.mubr.bf16.gmra.mrb[4].mxu0 %v2800_v29  ;;  %2502 = vmatprep.mubr.bf16.mxu1 %v2802_v30  ;;  %v2867_v29 = vld [vmem:[%s3194_s17 + $0x70] sm:$0xff]   ;;  %v2868_v30 = vld [vmem:[%s3187_s13 + $0x78] sm:$0xff]  }
  0x30   : > { %2598 = vmatprep.mubr.bf16.mxu0 %v2803_v31  ;;  %2531 = vmatpush3.bf16.msra.mxu1 %v2805_v27  ;;  %v2865_v27 = vld [vmem:[%s3194_s17 + $0x68] sm:$0xff]   ;;  %v2869_v31 = vld [vmem:[%s3194_s17 + $0x78] sm:$0xff]  }
  0x31   : > { %2627 = vmatpush3.bf16.msra.mxu0 %v2807_v28  ;;  %2532 = vmatprep.subr.bf16.mxu1 %v2811_v32  ;;  %v2866_v28 = vld [vmem:[%s3187_s13 + $0x70] sm:$0xff]  }
  0x32   : > { %2628 = vmatprep.subr.bf16.mxu0 %v2813_v33 }
  0x34   : > { %2533 = vmatpush3.bf16.msra.mxu1 %v2811_v32 }
  0x35   : > { %2629 = vmatpush3.bf16.msra.mxu0 %v2813_v33  ;;  %2534 = vmatprep.subr.bf16.mxu1 %v2817_v36 }
  0x36   : > { %2503 = vmatmul.mubr.bf16.gmra.mrb[8].mxu1 %v2804_v34  ;;  %2630 = vmatprep.subr.bf16.mxu0 %v2819_v37  ;;  %v3241_v34 = vld [vmem:[%s3449_s5] ss:$0 sm:$0xff] }
  0x37   : > { %2599 = vmatmul.mubr.bf16.gmra.mrb[8].mxu0 %v2806_v35  ;;  %2506 = vmatprep.mubr.bf16.mxu1 %v2808_v38 }
  0x38   : > { %2602 = vmatprep.mubr.bf16.mxu0 %v2809_v39  ;;  %2535 = vmatpush3.bf16.msra.mxu1 %v2817_v36 }
  0x39   : > { %2631 = vmatpush3.bf16.msra.mxu0 %v2819_v37  ;;  %2536 = vmatprep.subr.bf16.mxu1 %v2823_v40 }
  0x3a   : > { %2632 = vmatprep.subr.bf16.mxu0 %v2825_v41 }
  0x3c   : > { %2537 = vmatpush3.bf16.msra.mxu1 %v2823_v40 }
  0x3d   : > { %2633 = vmatpush3.bf16.msra.mxu0 %v2825_v41  ;;  %2538 = vmatprep.subr.bf16.mxu1 %v2829_v45 }
  0x3e   : > { %2507 = vmatmul.mubr.bf16.gmra.mrb[12].mxu1 %v2810_v42  ;;  %2634 = vmatprep.subr.bf16.mxu0 %v2831_v47 }
  0x3f   : > { %2603 = vmatmul.mubr.bf16.gmra.mrb[12].mxu0 %v2812_v43  ;;  %2510 = vmatprep.mubr.bf16.mxu1 %v2814_v44 }
  0x40   : > { %2606 = vmatprep.mubr.bf16.mxu0 %v2815_v46  ;;  %2539 = vmatpush3.bf16.msra.mxu1 %v2829_v45 }
  0x41   : > { %2635 = vmatpush3.bf16.msra.mxu0 %v2831_v47  ;;  %2540 = vmatprep.subr.bf16.mxu1 %v2835_v50 }
  0x42   : > { %2636 = vmatprep.subr.bf16.mxu0 %v2837_v52 }
  0x44   : > { %2541 = vmatpush3.bf16.msra.mxu1 %v2835_v50 }
  0x45   : > { %2637 = vmatpush3.bf16.msra.mxu0 %v2837_v52 }
  0x46   : > { %2511 = vmatmul.mubr.bf16.gmra.mrb[16].mxu1 %v2816_v48 }
  0x47   : > { %2607 = vmatmul.mubr.bf16.gmra.mrb[16].mxu0 %v2818_v49  ;;  %2514 = vmatprep.mubr.bf16.mxu1 %v2820_v51 }
  0x48   : > { %2610 = vmatprep.mubr.bf16.mxu0 %v2821_v53 }
  0x4e   : > { %2515 = vmatmul.mubr.bf16.gmra.mrb[20].mxu1 %v2822_v54 }
  0x4f   : > { %2611 = vmatmul.mubr.bf16.gmra.mrb[20].mxu0 %v2824_v55  ;;  %2518 = vmatprep.mubr.bf16.mxu1 %v2826_v56 }
  0x50   : > { %2614 = vmatprep.mubr.bf16.mxu0 %v2827_v57 }
  0x56   : > { %2519 = vmatmul.mubr.bf16.gmra.mrb[24].mxu1 %v2828_v58 }
  0x57   : > { %2615 = vmatmul.mubr.bf16.gmra.mrb[24].mxu0 %v2830_v59  ;;  %2522 = vmatprep.mubr.bf16.mxu1 %v2832_v60 }
  0x58   : > { %2618 = vmatprep.mubr.bf16.mxu0 %v2833_v61 }
  0x5e   : > { %2523 = vmatmul.mubr.bf16.gmra.mrb[28].mxu1 %v2834_v62 }
  0x5f   : > { %2619 = vmatmul.mubr.bf16.gmra.mrb[28].mxu0 %v2836_v63  ;;  %2542 = vmatprep.mubr.bf16.mxu1 %v2838_v0 }
  0x60   : > { %2638 = vmatprep.mubr.bf16.mxu0 %v2839_v1 }
  0x66   : > { %2543 = vmatmul.mubr.bf16.vlgmr.msra.gmra.mrb[0].mxu1 %v2840_v2 }
  0x67   : > { %2639 = vmatmul.mubr.bf16.vlgmr.msra.gmra.mrb[0].mxu0 %v2841_v3  ;;  %2546 = vmatprep.mubr.bf16.mxu1 %v2842_v4 }
  0x68   : > { %2642 = vmatprep.mubr.bf16.mxu0 %v2843_v5 }
  0x6e   : > { %2547 = vmatmul.mubr.bf16.gmra.mrb[4].mxu1 %v2844_v6 }
  0x6f   : > { %2643 = vmatmul.mubr.bf16.gmra.mrb[4].mxu0 %v2845_v7  ;;  %2550 = vmatprep.mubr.bf16.mxu1 %v2846_v8 }
  0x70   : > { %2646 = vmatprep.mubr.bf16.mxu0 %v2847_v9 }
  0x76   : > { %2551 = vmatmul.mubr.bf16.gmra.mrb[8].mxu1 %v2848_v10 }
  0x77   : > { %2647 = vmatmul.mubr.bf16.gmra.mrb[8].mxu0 %v2849_v11  ;;  %2554 = vmatprep.mubr.bf16.mxu1 %v2850_v12 }
  0x78   : > { %2650 = vmatprep.mubr.bf16.mxu0 %v2851_v13 }
  0x7e   : > { %2555 = vmatmul.mubr.bf16.gmra.mrb[12].mxu1 %v2852_v14 }
  0x7f   : > { %2651 = vmatmul.mubr.bf16.gmra.mrb[12].mxu0 %v2853_v15  ;;  %2558 = vmatprep.mubr.bf16.mxu1 %v2854_v16 }
  0x80   : > { %2654 = vmatprep.mubr.bf16.mxu0 %v2855_v17 }
  0x86   : > { %2559 = vmatmul.mubr.bf16.gmra.mrb[16].mxu1 %v2856_v18 }
  0x87   : > { %2655 = vmatmul.mubr.bf16.gmra.mrb[16].mxu0 %v2857_v19  ;;  %2562 = vmatprep.mubr.bf16.mxu1 %v2858_v20 }
  0x88   : > { %2658 = vmatprep.mubr.bf16.mxu0 %v2859_v21 }
  0x8e   : > { %2563 = vmatmul.mubr.bf16.gmra.mrb[20].mxu1 %v2860_v22 }
  0x8f   : > { %2659 = vmatmul.mubr.bf16.gmra.mrb[20].mxu0 %v2861_v23  ;;  %2566 = vmatprep.mubr.bf16.mxu1 %v2862_v24 }
  0x90   : > { %2662 = vmatprep.mubr.bf16.mxu0 %v2863_v25 }
  0x96   : > { %2567 = vmatmul.mubr.bf16.gmra.mrb[24].mxu1 %v2864_v26 }
  0x97   : > { %2663 = vmatmul.mubr.bf16.gmra.mrb[24].mxu0 %v2865_v27  ;;  %2570 = vmatprep.mubr.bf16.mxu1 %v2866_v28 }
  0x98   : > { %2666 = vmatprep.mubr.bf16.mxu0 %v2867_v29 }
  0x9e   : > { %2571 = vmatmul.mubr.bf16.gmra.mrb[28].mxu1 %v2868_v30 }
  0x9f   : > { %2667 = vmatmul.mubr.bf16.gmra.mrb[28].mxu0 %v2869_v31 }
 0x139   : > { %v2544_v32 = vpop.f32.mrb[0].mxu1 }
 0x13a   : > { %v2640_v33 = vpop.f32.mrb[0].mxu0  ;;  %v902_v35 = vpop.f32.mrb[1].mxu1 }
 0x13b   : > { %v2670_v36 = vadd.f32 %v2640_v33, %v2544_v32  ;;  %v1642_v37 = vpop.f32.mrb[1].mxu0  ;;  %v2545_v38 = vpop.f32.mrb[2].mxu1 }
 0x13c   : > { %v2671_v39 = vadd.f32 %v1642_v37, %v902_v35  ;;  %v2641_v40 = vpop.f32.mrb[2].mxu0  ;;  %v905_v41 = vpop.f32.mrb[3].mxu1 }
 0x13d   : > { %v3244_v42 = vadd.f32 %v2670_v36, %v3241_v34  ;;  %v2672_v43 = vadd.f32 %v2641_v40, %v2545_v38  ;;  %v1645_v44 = vpop.f32.mrb[3].mxu0 }
 0x13e   : > { %v3247_v45 = vadd.f32 %v2671_v39, %v3241_v34  ;;  %v2673_v46 = vadd.f32 %v1645_v44, %v905_v41 }
 0x13f   : > { %v2350_v47 = vmul.f32 -1.442695, %v3244_v42  ;;  %v3251_v48 = vadd.f32 %v2672_v43, %v3241_v34 }
 0x140   : > { %v2348_v49 = vmul.f32 -1.442695, %v3247_v45  ;;  %v3255_v50 = vadd.f32 %v2673_v46, %v3241_v34 }
 0x141   : > { %2870 = vpow2.f32 %v2350_v47  ;;  %v2351_v51 = vmul.f32 -1.442695, %v3251_v48  ;;  %v2548_v52 = vpop.f32.mrb[4].mxu1 }
 0x142   : > { %2872 = vpow2.f32 %v2348_v49  ;;  %v2349_v53 = vmul.f32 -1.442695, %v3255_v50  ;;  %v2644_v54 = vpop.f32.mrb[4].mxu0  ;;  %v918_v55 = vpop.f32.mrb[5].mxu1 }
 0x143   : > { %2874 = vpow2.f32 %v2351_v51  ;;  %v2674_v56 = vadd.f32 %v2644_v54, %v2548_v52  ;;  %v1658_v57 = vpop.f32.mrb[5].mxu0  ;;  %v2549_v58 = vpop.f32.mrb[6].mxu1 }
 0x144   : > { %2876 = vpow2.f32 %v2349_v53  ;;  %v2675_v59 = vadd.f32 %v1658_v57, %v918_v55  ;;  %v2645_v60 = vpop.f32.mrb[6].mxu0  ;;  %v921_v61 = vpop.f32.mrb[7].mxu1 }
 0x145   : > { %v3260_v62 = vadd.f32 %v2674_v56, %v3241_v34  ;;  %v2676_v63 = vadd.f32 %v2645_v60, %v2549_v58  ;;  %v1661_v0 = vpop.f32.mrb[7].mxu0 }
 0x146   : > { %v3263_v1 = vadd.f32 %v2675_v59, %v3241_v34  ;;  %v2677_v2 = vadd.f32 %v1661_v0, %v921_v61 }
 0x147   : > { %v2354_v3 = vmul.f32 -1.442695, %v3260_v62  ;;  %v3267_v4 = vadd.f32 %v2676_v63, %v3241_v34 }
 0x148   : > { %v2352_v5 = vmul.f32 -1.442695, %v3263_v1  ;;  %v3271_v6 = vadd.f32 %v2677_v2, %v3241_v34 }
 0x149   : > { %2878 = vpow2.f32 %v2354_v3  ;;  %v2355_v7 = vmul.f32 -1.442695, %v3267_v4  ;;  %v2552_v8 = vpop.f32.mrb[8].mxu1 }
 0x14a   : > { %2880 = vpow2.f32 %v2352_v5  ;;  %v2353_v9 = vmul.f32 -1.442695, %v3271_v6  ;;  %v2648_v10 = vpop.f32.mrb[8].mxu0  ;;  %v934_v11 = vpop.f32.mrb[9].mxu1 }
 0x14b   : > { %v2871_v12 = vpop.eup %2870  ;;  %2882 = vpow2.f32 %v2355_v7  ;;  %v2678_v13 = vadd.f32 %v2648_v10, %v2552_v8  ;;  %v1674_v14 = vpop.f32.mrb[9].mxu0 }
 0x14c   : > { %v2553_v15 = vpop.f32.mrb[10].mxu1  ;;  %v2873_v16 = vpop.eup %2872  ;;  %v1938_v17 = vadd.f32 1.0, %v2871_v12  ;;  %2884 = vpow2.f32 %v2353_v9  ;;  %v2679_v18 = vadd.f32 %v1674_v14, %v934_v11 }
 0x14d   : > { %v2649_v19 = vpop.f32.mrb[10].mxu0  ;;  %v937_v20 = vpop.f32.mrb[11].mxu1  ;;  %v1936_v22 = vadd.f32 1.0, %v2873_v16  ;;  %v3276_v23 = vadd.f32 %v2678_v13, %v3241_v34 }
 0x14e   : > { %v2875_v21 = vpop.eup %2874  ;;  %v2680_v24 = vadd.f32 %v2649_v19, %v2553_v15  ;;  %v1677_v25 = vpop.f32.mrb[11].mxu0  ;;  %2886 = vrcp.f32 %v1938_v17  ;;  %v3279_v28 = vadd.f32 %v2679_v18, %v3241_v34 }
 0x14f   : > { %v2877_v26 = vpop.eup %2876  ;;  %v1939_v27 = vadd.f32 1.0, %v2875_v21  ;;  %v2681_v29 = vadd.f32 %v1677_v25, %v937_v20  ;;  %2888 = vrcp.f32 %v1936_v22  ;;  %v2358_v31 = vmul.f32 -1.442695, %v3276_v23 }
 0x150   : > { %v1937_v30 = vadd.f32 1.0, %v2877_v26  ;;  %v3283_v32 = vadd.f32 %v2680_v24, %v3241_v34  ;;  %v2356_v33 = vmul.f32 -1.442695, %v3279_v28 }
 0x151   : > { %2890 = vrcp.f32 %v1939_v27  ;;  %v3287_v35 = vadd.f32 %v2681_v29, %v3241_v34  ;;  %v2556_v37 = vpop.f32.mrb[12].mxu1 }
 0x152   : > { %2892 = vrcp.f32 %v1937_v30  ;;  %v2359_v36 = vmul.f32 -1.442695, %v3283_v32  ;;  %v2652_v39 = vpop.f32.mrb[12].mxu0  ;;  %v950_v40 = vpop.f32.mrb[13].mxu1 }
 0x153   : > { %2894 = vpow2.f32 %v2358_v31  ;;  %v2357_v38 = vmul.f32 -1.442695, %v3287_v35  ;;  %v2879_v41 = vpop.eup %2878  ;;  %v2682_v43 = vadd.f32 %v2652_v39, %v2556_v37  ;;  %v1690_v44 = vpop.f32.mrb[13].mxu0 }
 0x154   : > { %2896 = vpow2.f32 %v2356_v33  ;;  %v2557_v46 = vpop.f32.mrb[14].mxu1  ;;  %v2881_v47 = vpop.eup %2880  ;;  %v1942_v49 = vadd.f32 1.0, %v2879_v41  ;;  %v2683_v51 = vadd.f32 %v1690_v44, %v950_v40 }
 0x155   : > { %2898 = vpow2.f32 %v2359_v36  ;;  %v2653_v52 = vpop.f32.mrb[14].mxu0  ;;  %v953_v53 = vpop.f32.mrb[15].mxu1  ;;  %v1940_v55 = vadd.f32 1.0, %v2881_v47  ;;  %v3293_v56 = vadd.f32 %v2682_v43, %v3241_v34 }
 0x156   : > { %v2883_v54 = vpop.eup %2882  ;;  %2900 = vpow2.f32 %v2357_v38  ;;  %v2684_v57 = vadd.f32 %v2653_v52, %v2557_v46  ;;  %v1693_v58 = vpop.f32.mrb[15].mxu0  ;;  %v3296_v61 = vadd.f32 %v2683_v51, %v3241_v34 }
 0x157   : > { %v2885_v59 = vpop.eup %2884  ;;  %2902 = vrcp.f32 %v1942_v49  ;;  %v1943_v60 = vadd.f32 1.0, %v2883_v54  ;;  %v2685_v63 = vadd.f32 %v1693_v58, %v953_v53  ;;  %v2362_v2 = vmul.f32 -1.442695, %v3293_v56 }
 0x158   : > { %2904 = vrcp.f32 %v1940_v55  ;;  %v1941_v0 = vadd.f32 1.0, %v2885_v59  ;;  %v3300_v3 = vadd.f32 %v2684_v57, %v3241_v34  ;;  %v2887_v5 = vpop.eup %2886  ;;  %v2360_v7 = vmul.f32 -1.442695, %v3296_v61 }
 0x159   : > { %2906 = vrcp.f32 %v1943_v60  ;;  %v3309_v8 = vadd.f32 %v2685_v63, %v3241_v34  ;;  %v2889_v9 = vpop.eup %2888  ;;  %v2034_v10 = vmul.f32 %v2887_v5, %v3244_v42  ;;  %v2560_v12 = vpop.f32.mrb[16].mxu1 }
 0x15a   : > { %2908 = vrcp.f32 %v1941_v0  ;;  %v2363_v11 = vmul.f32 -1.442695, %v3300_v3  ;;  %v2032_v14 = vmul.f32 %v2889_v9, %v3247_v45  ;;  %v2656_v16 = vpop.f32.mrb[16].mxu0  ;;  %v966_v17 = vpop.f32.mrb[17].mxu1 }
 0x15b   : > { %v2891_v13 = vpop.eup %2890  ;;  %2910 = vpow2.f32 %v2362_v2  ;;  %v2361_v15 = vmul.f32 -1.442695, %v3309_v8  ;;  %2066 = vst [vmem:[%s3305_s19 + $0x10] sm:$0xff] %v2034_v10  ;;  %v2686_v42 = vadd.f32 %v2656_v16, %v2560_v12  ;;  %v1706_v20 = vpop.f32.mrb[17].mxu0 }
 0x15c   : > { %v2893_v18 = vpop.eup %2892  ;;  %v2035_v19 = vmul.f32 %v2891_v13, %v3251_v48  ;;  %2912 = vpow2.f32 %v2360_v7  ;;  %v2561_v21 = vpop.f32.mrb[18].mxu1  ;;  %2064 = vst [vmem:[%s3305_s19] sm:$0xff] %v2032_v14  ;;  %v2687_v45 = vadd.f32 %v1706_v20, %v966_v17 }
 0x15d   : > { %v2895_v22 = vpop.eup %2894  ;;  %v2033_v24 = vmul.f32 %v2893_v18, %v3255_v50  ;;  %2914 = vpow2.f32 %v2363_v11  ;;  %v2657_v25 = vpop.f32.mrb[18].mxu0  ;;  %v3321_v30 = vadd.f32 %v2686_v42, %v3241_v34 }
 0x15e   : > { %v969_v26 = vpop.f32.mrb[19].mxu1  ;;  %v2897_v27 = vpop.eup %2896  ;;  %2067 = vst [vmem:[%s3305_s19 + $0x18] sm:$0xff] %v2035_v19  ;;  %v1946_v29 = vadd.f32 1.0, %v2895_v22  ;;  %2916 = vpow2.f32 %v2361_v15  ;;  %v2688_v48 = vadd.f32 %v2657_v25, %v2561_v21  ;;  %v3325_v37 = vadd.f32 %v2687_v45, %v3241_v34 }
 0x15f   : > { %v1709_v31 = vpop.f32.mrb[19].mxu0  ;;  %v2899_v33 = vpop.eup %2898  ;;  %2065 = vst [vmem:[%s3305_s19 + $0x8] sm:$0xff] %v2033_v24  ;;  %v1944_v36 = vadd.f32 1.0, %v2897_v27  ;;  %v2366_v40 = vmul.f32 -1.442695, %v3321_v30 }
 0x160   : > { %v2689_v50 = vadd.f32 %v1709_v31, %v969_v26  ;;  %v2901_v38 = vpop.eup %2900  ;;  %2918 = vrcp.f32 %v1946_v29  ;;  %v1947_v39 = vadd.f32 1.0, %v2899_v33  ;;  %v3329_v41 = vadd.f32 %v2688_v48, %v3241_v34 }
 0x161   : > { %v2903_v43 = vpop.eup %2902  ;;  %2920 = vrcp.f32 %v1944_v36  ;;  %v1945_v44 = vadd.f32 1.0, %v2901_v38  ;;  %v2364_v46 = vmul.f32 -1.442695, %v3325_v37  ;;  %v2564_v53 = vpop.f32.mrb[20].mxu1 }
 0x162   : > { %v3333_v47 = vadd.f32 %v2689_v50, %v3241_v34  ;;  %v2905_v49 = vpop.eup %2904  ;;  %v2038_v51 = vmul.f32 %v2903_v43, %v3260_v62  ;;  %2922 = vrcp.f32 %v1947_v39  ;;  %v2367_v52 = vmul.f32 -1.442695, %v3329_v41  ;;  %v2660_v58 = vpop.f32.mrb[20].mxu0 }
 0x163   : > { %v2907_v54 = vpop.eup %2906  ;;  %v2036_v55 = vmul.f32 %v2905_v49, %v3263_v1  ;;  %2924 = vrcp.f32 %v1945_v44  ;;  %v982_v59 = vpop.f32.mrb[21].mxu1  ;;  %v2690_v62 = vadd.f32 %v2660_v58, %v2564_v53 }
 0x164   : > { %v2365_v57 = vmul.f32 -1.442695, %v3333_v47  ;;  %v2909_v60 = vpop.eup %2908  ;;  %2070 = vst [vmem:[%s3305_s19 + $0x30] sm:$0xff] %v2038_v51  ;;  %v2039_v63 = vmul.f32 %v2907_v54, %v3267_v4  ;;  %2926 = vpow2.f32 %v2366_v40  ;;  %v1722_v0 = vpop.f32.mrb[21].mxu0 }
 0x165   : > { %v2565_v2 = vpop.f32.mrb[22].mxu1  ;;  %v2911_v5 = vpop.eup %2910  ;;  %2068 = vst [vmem:[%s3305_s19 + $0x20] sm:$0xff] %v2036_v55  ;;  %v2037_v7 = vmul.f32 %v2909_v60, %v3271_v6  ;;  %2928 = vpow2.f32 %v2364_v46  ;;  %v2691_v1 = vadd.f32 %v1722_v0, %v982_v59  ;;  %v3345_v13 = vadd.f32 %v2690_v62, %v3241_v34 }
 0x166   : > { %v2661_v9 = vpop.f32.mrb[22].mxu0  ;;  %v985_v10 = vpop.f32.mrb[23].mxu1  ;;  %2071 = vst [vmem:[%s3305_s19 + $0x38] sm:$0xff] %v2039_v63  ;;  %v1950_v12 = vadd.f32 1.0, %v2911_v5  ;;  %2930 = vpow2.f32 %v2367_v52 }
 0x167   : > { %v2913_v11 = vpop.eup %2912  ;;  %v2692_v4 = vadd.f32 %v2661_v9, %v2565_v2  ;;  %v1725_v14 = vpop.f32.mrb[23].mxu0  ;;  %2069 = vst [vmem:[%s3305_s19 + $0x28] sm:$0xff] %v2037_v7  ;;  %2932 = vpow2.f32 %v2365_v57  ;;  %v3349_v17 = vadd.f32 %v2691_v1, %v3241_v34  ;;  %v2370_v42 = vmul.f32 -1.442695, %v3345_v13 }
 0x168   : > { %v2915_v15 = vpop.eup %2914  ;;  %v1948_v16 = vadd.f32 1.0, %v2913_v11  ;;  %v2693_v6 = vadd.f32 %v1725_v14, %v985_v10  ;;  %2934 = vrcp.f32 %v1950_v12 }
 0x169   : > { %v2917_v18 = vpop.eup %2916  ;;  %v1951_v19 = vadd.f32 1.0, %v2915_v15  ;;  %v3353_v20 = vadd.f32 %v2692_v4, %v3241_v34  ;;  %v2368_v22 = vmul.f32 -1.442695, %v3349_v17  ;;  %v2568_v26 = vpop.f32.mrb[24].mxu1 }
 0x16a   : > { %2936 = vrcp.f32 %v1948_v16  ;;  %v1949_v21 = vadd.f32 1.0, %v2917_v18  ;;  %v3357_v24 = vadd.f32 %v2693_v6, %v3241_v34  ;;  %v2919_v45 = vpop.eup %2918  ;;  %v2664_v31 = vpop.f32.mrb[24].mxu0 }
 0x16b   : > { %2938 = vrcp.f32 %v1951_v19  ;;  %v2371_v25 = vmul.f32 -1.442695, %v3353_v20  ;;  %v2921_v27 = vpop.eup %2920  ;;  %v2042_v29 = vmul.f32 %v2919_v45, %v3276_v23  ;;  %v998_v33 = vpop.f32.mrb[25].mxu1  ;;  %v2694_v38 = vadd.f32 %v2664_v31, %v2568_v26 }
 0x16c   : > { %2940 = vrcp.f32 %v1949_v21  ;;  %v2369_v48 = vmul.f32 -1.442695, %v3357_v24  ;;  %v2923_v36 = vpop.eup %2922  ;;  %v2040_v50 = vmul.f32 %v2921_v27, %v3279_v28  ;;  %v1738_v39 = vpop.f32.mrb[25].mxu0 }
 0x16d   : > { %2942 = vpow2.f32 %v2370_v42  ;;  %v2569_v40 = vpop.f32.mrb[26].mxu1  ;;  %v2925_v43 = vpop.eup %2924  ;;  %2074 = vst [vmem:[%s3305_s19 + $0x50] sm:$0xff] %v2042_v29  ;;  %v2043_v44 = vmul.f32 %v2923_v36, %v3283_v32  ;;  %v2695_v23 = vadd.f32 %v1738_v39, %v998_v33  ;;  %v3368_v28 = vadd.f32 %v2694_v38, %v3241_v34 }
 0x16e   : > { %2944 = vpow2.f32 %v2368_v22  ;;  %v2665_v46 = vpop.f32.mrb[26].mxu0  ;;  %v1001_v49 = vpop.f32.mrb[27].mxu1  ;;  %2072 = vst [vmem:[%s3305_s19 + $0x40] sm:$0xff] %v2040_v50  ;;  %v2041_v52 = vmul.f32 %v2925_v43, %v3287_v35 }
 0x16f   : > { %v2927_v51 = vpop.eup %2926  ;;  %2946 = vpow2.f32 %v2371_v25  ;;  %v2696_v53 = vadd.f32 %v2665_v46, %v2569_v40  ;;  %v1741_v54 = vpop.f32.mrb[27].mxu0  ;;  %2075 = vst [vmem:[%s3305_s19 + $0x58] sm:$0xff] %v2043_v44  ;;  %v3372_v32 = vadd.f32 %v2695_v23, %v3241_v34  ;;  %v2374_v0 = vmul.f32 -1.442695, %v3368_v28 }
 0x170   : > { %v2929_v55 = vpop.eup %2928  ;;  %v1954_v57 = vadd.f32 1.0, %v2927_v51  ;;  %2948 = vpow2.f32 %v2369_v48  ;;  %v2697_v58 = vadd.f32 %v1741_v54, %v1001_v49  ;;  %2073 = vst [vmem:[%s3305_s19 + $0x48] sm:$0xff] %v2041_v52 }
 0x171   : > { %v2931_v59 = vpop.eup %2930  ;;  %v1952_v60 = vadd.f32 1.0, %v2929_v55  ;;  %v3376_v63 = vadd.f32 %v2696_v53, %v3241_v34  ;;  %v2372_v1 = vmul.f32 -1.442695, %v3372_v32  ;;  %v2572_v9 = vpop.f32.mrb[28].mxu1 }
 0x172   : > { %v2933_v35 = vpop.eup %2932  ;;  %2950 = vrcp.f32 %v1954_v57  ;;  %v1955_v62 = vadd.f32 1.0, %v2931_v59  ;;  %v3380_v2 = vadd.f32 %v2697_v58, %v3241_v34  ;;  %v2668_v4 = vpop.f32.mrb[28].mxu0 }
 0x173   : > { %v2935_v5 = vpop.eup %2934  ;;  %2952 = vrcp.f32 %v1952_v60  ;;  %v1953_v7 = vadd.f32 1.0, %v2933_v35  ;;  %v2375_v12 = vmul.f32 -1.442695, %v3376_v63  ;;  %v1014_v14 = vpop.f32.mrb[29].mxu1  ;;  %v2698_v18 = vadd.f32 %v2668_v4, %v2572_v9 }
 0x174   : > { %v2937_v10 = vpop.eup %2936  ;;  %v2046_v11 = vmul.f32 %v2935_v5, %v3293_v56  ;;  %2954 = vrcp.f32 %v1955_v62  ;;  %v2373_v6 = vmul.f32 -1.442695, %v3380_v2  ;;  %v1754_v19 = vpop.f32.mrb[29].mxu0 }
 0x175   : > { %v2939_v15 = vpop.eup %2938  ;;  %v2044_v16 = vmul.f32 %v2937_v10, %v3296_v61  ;;  %2956 = vrcp.f32 %v1953_v7  ;;  %v2573_v42 = vpop.f32.mrb[30].mxu1  ;;  %v2699_v22 = vadd.f32 %v1754_v19, %v1014_v14  ;;  %v3392_v27 = vadd.f32 %v2698_v18, %v3241_v34 }
 0x176   : > { %v2941_v21 = vpop.eup %2940  ;;  %2078 = vst [vmem:[%s3305_s19 + $0x70] sm:$0xff] %v2046_v11  ;;  %v2047_v56 = vmul.f32 %v2939_v15, %v3300_v3  ;;  %2958 = vpow2.f32 %v2374_v0  ;;  %v2669_v45 = vpop.f32.mrb[30].mxu0 }
 0x177   : > { %v1017_v25 = vpop.f32.mrb[31].mxu1  ;;  %v2943_v26 = vpop.eup %2942  ;;  %2076 = vst [vmem:[%s3305_s19 + $0x60] sm:$0xff] %v2044_v16  ;;  %v2045_v61 = vmul.f32 %v2941_v21, %v3309_v8  ;;  %2960 = vpow2.f32 %v2372_v1  ;;  %v2700_v29 = vadd.f32 %v2669_v45, %v2573_v42  ;;  %v3396_v3 = vadd.f32 %v2699_v22, %v3241_v34 }
 0x178   : > { %v1757_v48 = vpop.f32.mrb[31].mxu0  ;;  %v2945_v31 = vpop.eup %2944  ;;  %2079 = vst [vmem:[%s3305_s19 + $0x78] sm:$0xff] %v2047_v56  ;;  %v1958_v33 = vadd.f32 1.0, %v2943_v26  ;;  %2962 = vpow2.f32 %v2375_v12  ;;  %v2378_v43 = vmul.f32 -1.442695, %v3392_v27 }
 0x179   : > { %v2701_v36 = vadd.f32 %v1757_v48, %v1017_v25  ;;  %v2947_v50 = vpop.eup %2946  ;;  %2077 = vst [vmem:[%s3305_s19 + $0x68] sm:$0xff] %v2045_v61  ;;  %v1956_v38 = vadd.f32 1.0, %v2945_v31  ;;  %2964 = vpow2.f32 %v2373_v6  ;;  %v3400_v8 = vadd.f32 %v2700_v29, %v3241_v34 }
 0x17a   : > { %v2949_v39 = vpop.eup %2948  ;;  %2966 = vrcp.f32 %v1958_v33  ;;  %v1959_v40 = vadd.f32 1.0, %v2947_v50  ;;  %v2376_v46 = vmul.f32 -1.442695, %v3396_v3 }
 0x17b   : > { %v3404_v44 = vadd.f32 %v2701_v36, %v3241_v34  ;;  %2968 = vrcp.f32 %v1956_v38  ;;  %v1957_v23 = vadd.f32 1.0, %v2949_v39  ;;  %v2379_v51 = vmul.f32 -1.442695, %v3400_v8 }
 0x17c   : > { %v2951_v49 = vpop.eup %2950  ;;  %2970 = vrcp.f32 %v1959_v40 }
 0x17d   : > { %v2953_v52 = vpop.eup %2952  ;;  %v2050_v53 = vmul.f32 %v2951_v49, %v3321_v30  ;;  %2972 = vrcp.f32 %v1957_v23  ;;  %v2377_v54 = vmul.f32 -1.442695, %v3404_v44 }
 0x17e   : > { %v2955_v55 = vpop.eup %2954  ;;  %v2048_v34 = vmul.f32 %v2953_v52, %v3325_v37  ;;  %2974 = vpow2.f32 %v2378_v43 }
 0x17f   : > { %v2957_v57 = vpop.eup %2956  ;;  %2082 = vst [vmem:[%s3305_s19 + $0x90] sm:$0xff] %v2050_v53  ;;  %v2051_v58 = vmul.f32 %v2955_v55, %v3329_v41  ;;  %2976 = vpow2.f32 %v2376_v46 }
 0x180   : > { %v2959_v59 = vpop.eup %2958  ;;  %2080 = vst [vmem:[%s3305_s19 + $0x80] sm:$0xff] %v2048_v34  ;;  %v2049_v60 = vmul.f32 %v2957_v57, %v3333_v47  ;;  %2978 = vpow2.f32 %v2379_v51 }
 0x181   : > { %v2961_v35 = vpop.eup %2960  ;;  %2083 = vst [vmem:[%s3305_s19 + $0x98] sm:$0xff] %v2051_v58  ;;  %v1962_v30 = vadd.f32 1.0, %v2959_v59  ;;  %2980 = vpow2.f32 %v2377_v54 }
 0x182   : > { %v2963_v62 = vpop.eup %2962  ;;  %2081 = vst [vmem:[%s3305_s19 + $0x88] sm:$0xff] %v2049_v60  ;;  %v1960_v0 = vadd.f32 1.0, %v2961_v35 }
 0x183   : > { %v2965_v37 = vpop.eup %2964  ;;  %2982 = vrcp.f32 %v1962_v30  ;;  %v1963_v5 = vadd.f32 1.0, %v2963_v62 }
 0x184   : > { %v2967_v7 = vpop.eup %2966  ;;  %2984 = vrcp.f32 %v1960_v0  ;;  %v1961_v41 = vadd.f32 1.0, %v2965_v37 }
 0x185   : > { %v2969_v1 = vpop.eup %2968  ;;  %v2054_v47 = vmul.f32 %v2967_v7, %v3345_v13  ;;  %2986 = vrcp.f32 %v1963_v5 }
 0x186   : > { %v2971_v9 = vpop.eup %2970  ;;  %v2052_v10 = vmul.f32 %v2969_v1, %v3349_v17  ;;  %2988 = vrcp.f32 %v1961_v41 }
 0x187   : > { %v2973_v11 = vpop.eup %2972  ;;  %2086 = vst [vmem:[%s3305_s19 + $0xb0] sm:$0xff] %v2054_v47  ;;  %v2055_v12 = vmul.f32 %v2971_v9, %v3353_v20 }
 0x188   : > { %v2975_v4 = vpop.eup %2974  ;;  %2084 = vst [vmem:[%s3305_s19 + $0xa0] sm:$0xff] %v2052_v10  ;;  %v2053_v14 = vmul.f32 %v2973_v11, %v3357_v24 }
 0x189   : > { %v2977_v15 = vpop.eup %2976  ;;  %2087 = vst [vmem:[%s3305_s19 + $0xb8] sm:$0xff] %v2055_v12  ;;  %v1966_v16 = vadd.f32 1.0, %v2975_v4 }
 0x18a   : > { %v2979_v6 = vpop.eup %2978  ;;  %2085 = vst [vmem:[%s3305_s19 + $0xa8] sm:$0xff] %v2053_v14  ;;  %v1964_v13 = vadd.f32 1.0, %v2977_v15 }
 0x18b   : > { %v2981_v18 = vpop.eup %2980  ;;  %2990 = vrcp.f32 %v1966_v16  ;;  %v1967_v17 = vadd.f32 1.0, %v2979_v6 }
 0x18c   : > { %2992 = vrcp.f32 %v1964_v13  ;;  %v1965_v19 = vadd.f32 1.0, %v2981_v18 }
 0x18d   : > { %v2983_v20 = vpop.eup %2982  ;;  %2994 = vrcp.f32 %v1967_v17 }
 0x18e   : > { %v2985_v42 = vpop.eup %2984  ;;  %v2058_v24 = vmul.f32 %v2983_v20, %v3368_v28  ;;  %2996 = vrcp.f32 %v1965_v19 }
 0x18f   : > { %v2987_v21 = vpop.eup %2986  ;;  %v2056_v56 = vmul.f32 %v2985_v42, %v3372_v32 }
 0x190   : > { %v2989_v22 = vpop.eup %2988  ;;  %2090 = vst [vmem:[%s3305_s19 + $0xd0] sm:$0xff] %v2058_v24  ;;  %v2059_v45 = vmul.f32 %v2987_v21, %v3376_v63 }
 0x191   : > { %2088 = vst [vmem:[%s3305_s19 + $0xc0] sm:$0xff] %v2056_v56  ;;  %v2057_v25 = vmul.f32 %v2989_v22, %v3380_v2 }
 0x192   : > { %2091 = vst [vmem:[%s3305_s19 + $0xd8] sm:$0xff] %v2059_v45 }
 0x193   : > { %2089 = vst [vmem:[%s3305_s19 + $0xc8] sm:$0xff] %v2057_v25 }
 0x195   : > { %v2991_v26 = vpop.eup %2990 }
 0x196   : > { %v2993_v61 = vpop.eup %2992  ;;  %v2062_v28 = vmul.f32 %v2991_v26, %v3392_v27 }
 0x197   : > { %v2995_v29 = vpop.eup %2994  ;;  %v2060_v48 = vmul.f32 %v2993_v61, %v3396_v3 }
 0x198   : > { %v2997_v32 = vpop.eup %2996  ;;  %2094 = vst [vmem:[%s3305_s19 + $0xf0] sm:$0xff] %v2062_v28  ;;  %v2063_v31 = vmul.f32 %v2995_v29, %v3400_v8 }
 0x199   : > { %2092 = vst [vmem:[%s3305_s19 + $0xe0] sm:$0xff] %v2060_v48  ;;  %v2061_v63 = vmul.f32 %v2997_v32, %v3404_v44 }
 0x19a   : > { %2095 = vst [vmem:[%s3305_s19 + $0xf8] sm:$0xff] %v2063_v31 }
 0x19b   : > { %2093 = vst [vmem:[%s3305_s19 + $0xe8] sm:$0xff] %v2061_v63 }
 0x19c PF: > { %s16_s21 = sadd.s32 1, %s3004_s21  }
 0x19d   : > { %p13_p4 = scmp.ge.s32.totalorder %s16_s21, 4  }
 0x19f   :  { %15 = sbr.rel (!%p13_p4) target bundleno = 1 (0x1), region = 86 }

// kernel: c2f_forward.5
= control target key start
LH: loop header
LB: loop body
LE: loop exit
PB: predicated region body
PF: predicated region fallthrough
CT: control target
= control target key end

     0   :  { %s17070_s18 = smov 0   ;;  %s19042_s0 = inlined_call_operand.vmem [shape: bf16[2,256,128], index: 0, kind: input, shape index: {}]   ;;  %s19043_s1 = inlined_call_operand.vmem [shape: bf16[9,128,128], index: 1, kind: input, shape index: {}]   ;;  %s19044_s2 = inlined_call_operand.vmem [shape: f32[1,128], index: 2, kind: input, shape index: {}]   ;;  %s19045_s3 = inlined_call_operand.vmem [shape: bf16[9,128,128], index: 3, kind: input, shape index: {}]   ;;  %s19046_s4 = inlined_call_operand.vmem [shape: f32[1,128], index: 4, kind: input, shape index: {}]   ;;  %s19047_s5 = inlined_call_operand.vmem [shape: bf16[2,256,128], index: 5, kind: output, shape index: {}]  }
   0x1 LB: > { %s13151_s19 = sadd.s32 4294967295, %s17037_s18   ;;  %p13155_p0 = scmp.ge.s32.totalorder %s17037_s18, 1  ;;  %s17037_s18 = sphi %s17070_s18, %s15_s18  }
   0x2   : > { %p187_p1 = scmp.lt.s32.totalorder %s17037_s18, 3 }
   0x4   : > { %p188_p2 = pnand %p13155_p0, %p187_p1 }
   0x5   : > { %v17081_v0 = vld [vmem:[%s19043_s1] sm:$0xff] (!%p188_p2)   ;;  %v17086_v1 = vld [vmem:[%s19043_s1 + $0x8] sm:$0xff] (!%p188_p2)   ;;  %v17039_v2 = vmov (!%p188_p2), 0   ;;  %p215_p3 = scmp.lt.s32.totalorder (!%p188_p2), %s13151_s19, 1  ;;  %v16259_v3 = vld [vmem:[%s19043_s1 + $0x10] sm:$0xff] (!%p188_p2)   ;;  %vm296_vm0 = vcmask (!%p188_p2), 1043457  }
   0x6   : > { %191 = sbr.rel (%p188_p2) target bundleno = 1875 (0x753), region = 40  ;;  %226 = vst [vmem:[#allocation2] sm:$0xf] (!%p188_p2), %v17039_v2  ;;  %227 = vst [vmem:[#allocation2 + $0x4] sm:$0xf] (!%p188_p2), %v17039_v2  ;;  %14736 = vmatprep.subr.bf16.mxu0 (!%p188_p2), %v17081_v0  ;;  %v16260_v4 = vld [vmem:[%s19043_s1 + $0x18] sm:$0xff] (!%p188_p2)  }
   0x7   : > { %228 = vst [vmem:[#allocation2 + $0x8] sm:$0xf] (!%p188_p2), %v17039_v2  ;;  %229 = vst [vmem:[#allocation2 + $0xc] sm:$0xf] (!%p188_p2), %v17039_v2  ;;  %14737 = vmatpush3.bf16.msra.mxu0 (!%p188_p2), %v17081_v0  ;;  %vm19049_vm1 = vcmask (!%p188_p2), 1041408   ;;  %v16261_v8 = vld [vmem:[%s19043_s1 + $0x20] sm:$0xff] (!%p188_p2)  }
   0x8   : > { %230 = vst [vmem:[#allocation2 + $0x10] sm:$0xf] (!%p188_p2), %v17039_v2  ;;  %231 = vst [vmem:[#allocation2 + $0x14] sm:$0xf] (!%p188_p2), %v17039_v2  ;;  %14738 = vmatprep.subr.bf16.mxu0 (!%p188_p2), %v17086_v1  ;;  %vm271_vm2 = vsmask.f32 (!%p188_p2), 1280 }
   0x9   : > { %232 = vst [vmem:[#allocation2 + $0x18] sm:$0xf] (!%p188_p2), %v17039_v2  ;;  %233 = vst [vmem:[#allocation2 + $0x1c] sm:$0xf] (!%p188_p2), %v17039_v2  ;;  %vm272_vm3 = vsmask.f32 (!%p188_p2), 5392 }
   0xa   : > { %234 = vst [vmem:[#allocation2 + $0x20] sm:$0xf] (!%p188_p2), %v17039_v2  ;;  %235 = vst [vmem:[#allocation2 + $0x24] sm:$0xf] (!%p188_p2), %v17039_v2  ;;  %vm297_vm4 = vsmask.f32 (!%p188_p2), 7942 }
   0xb   : > { %236 = vst [vmem:[#allocation2 + $0x28] sm:$0xf] (!%p188_p2), %v17039_v2  ;;  %237 = vst [vmem:[#allocation2 + $0x2c] sm:$0xf] (!%p188_p2), %v17039_v2  ;;  %14739 = vmatpush3.bf16.msra.mxu0 (!%p188_p2), %v17086_v1  ;;  %vm335_vm5 = vcmask (!%p188_p2), 1043458   ;;  %vm19048_vm6 = vcmask (!%p188_p2), 1042432  }
   0xc   : > { %238 = vst [vmem:[#allocation2 + $0x30] sm:$0xf] (!%p188_p2), %v17039_v2  ;;  %239 = vst [vmem:[#allocation2 + $0x34] sm:$0xf] (!%p188_p2), %v17039_v2  ;;  %14740 = vmatprep.subr.bf16.mxu0 (!%p188_p2), %v16259_v3  ;;  %vm374_vm8 = vcmask (!%p188_p2), 1043459   ;;  %vm381_vm12 = vcmask (!%p188_p2), 1043456  }
   0xd   : > { %240 = vst [vmem:[#allocation2 + $0x38] sm:$0xf] %v17039_v2  ;;  %241 = vst [vmem:[#allocation2 + $0x3c] sm:$0xf] %v17039_v2  ;;  %s19089_s19 = smov (!%p215_p3, %s13151_s19), 1  ;;  %v16265_v5 = vld [vmem:[#allocation2] sm:$0xff]  }
   0xe   : > { %242 = vst [vmem:[#allocation2 + $0x40] sm:$0xf] %v17039_v2  ;;  %243 = vst [vmem:[#allocation2 + $0x44] sm:$0xf] %v17039_v2  ;;  %s14076_s26 = sshll.u32 %s19089_s19, 7  ;;  %14752 = vmatprep.mubr.bf16.mxu0 %v16265_v5  ;;  %v16262_v27 = vld [vmem:[%s19043_s1 + $0x28] sm:$0xff]  }
   0xf   : > { %244 = vst [vmem:[#allocation2 + $0x48] sm:$0xf] %v17039_v2  ;;  %245 = vst [vmem:[#allocation2 + $0x4c] sm:$0xf] %v17039_v2  ;;  %s17188_s29 = scalar_lea.vmem %s19042_s0, %s14076_s26  ;;  %14741 = vmatpush3.bf16.msra.mxu0 %v16259_v3  ;;  %v299_v18 = vld [vmem:[#allocation2 + $0x8] sm:$0xe]  ;;  %s18728_s27 = scalar_lea.vmem %s19047_s5, %s14076_s26 }
  0x10   : > { %246 = vst [vmem:[#allocation2 + $0x50] sm:$0xf] %v17039_v2  ;;  %247 = vst [vmem:[#allocation2 + $0x54] sm:$0xf] %v17039_v2  ;;  %v269_v6 = vld [vmem:[%s17188_s29] sm:$0xf]  ;;  %14742 = vmatprep.subr.bf16.mxu0 %v16260_v4 }
  0x11   : > { %248 = vst [vmem:[#allocation2 + $0x58] sm:$0xf] %v17039_v2  ;;  %249 = vst [vmem:[#allocation2 + $0x5c] sm:$0xf] %v17039_v2  ;;  %v270_v7 = vld [vmem:[%s17188_s29 + $0x4] sm:$0xf] }
  0x12   : > { %250 = vst [vmem:[#allocation2 + $0x60] sm:$0xf] %v17039_v2  ;;  %251 = vst [vmem:[#allocation2 + $0x64] sm:$0xf] %v17039_v2  ;;  %v275_v9 = vshrl.u32 %v269_v6, 16  ;;  %v278_v10 = vshll.u32 %v269_v6, 16 }
  0x13   : > { %252 = vst [vmem:[#allocation2 + $0x68] sm:$0xf] %v17039_v2  ;;  %253 = vst [vmem:[#allocation2 + $0x6c] sm:$0xf] %v17039_v2  ;;  %v284_v11 = vshrl.u32 %v270_v7, 16  ;;  %v287_v12 = vshll.u32 %v270_v7, 16  ;;  %14743 = vmatpush3.bf16.msra.mxu0 %v16260_v4 }
  0x14   : > { %254 = vst [vmem:[#allocation2 + $0x70] sm:$0xf] %v17039_v2  ;;  %255 = vst [vmem:[#allocation2 + $0x74] sm:$0xf] %v17039_v2  ;;  %v277_v13 = vrot.slane %v275_v9, 6  ;;  %v280_v14 = vrot.slane %v278_v10, 7  ;;  %14744 = vmatprep.subr.bf16.mxu0 %v16261_v8 }
  0x15   : > { %256 = vst [vmem:[#allocation2 + $0x78] sm:$0xf] %v17039_v2  ;;  %257 = vst [vmem:[#allocation2 + $0x7c] sm:$0xf] %v17039_v2  ;;  %v286_v15 = vrot.slane %v284_v11, 6  ;;  %v289_v16 = vrot.slane %v287_v12, 7 }
  0x16   : > { %258 = vst [vmem:[#allocation2 + $0x80] sm:$0xf] %v17039_v2  ;;  %259 = vst [vmem:[#allocation2 + $0x84] sm:$0xf] %v17039_v2  ;;  %v281_v19 = vor.u32 %v280_v14, %v277_v13  ;;  %v308_v20 = vld [vmem:[%s17188_s29 + $0x8] sm:$0xf] }
  0x17   : > { %260 = vst [vmem:[#allocation2 + $0x88] sm:$0xf] %v17039_v2  ;;  %261 = vst [vmem:[#allocation2 + $0x8c] sm:$0xf] %v17039_v2  ;;  %v309_v21 = vld [vmem:[%s17188_s29 + $0xc] sm:$0xf]  ;;  %v290_v23 = vor.u32 %v289_v16, %v286_v15  ;;  %14745 = vmatpush3.bf16.msra.mxu0 %v16261_v8 }
  0x18   : > { %262 = vst [vmem:[#allocation2 + $0x90] sm:$0xf] %v17039_v2  ;;  %263 = vst [vmem:[#allocation2 + $0x94] sm:$0xf] %v17039_v2  ;;  %vm310_vm9 = vsmask.f32 2304  ;;  %14746 = vmatprep.subr.bf16.mxu0 %v16262_v27 }
  0x19   : > { %264 = vst [vmem:[#allocation2 + $0x98] sm:$0xf] %v17039_v2  ;;  %265 = vst [vmem:[#allocation2 + $0x9c] sm:$0xf] %v17039_v2  ;;  %v305_v24 = vld [vmem:[#allocation2 + $0x10] sm:$0x3] }
  0x1a   : > { %266 = vst [vmem:[#allocation2 + $0xa0] sm:$0xf] %v17039_v2  ;;  %6311 = vst [vmem:[#allocation3] sm:$0xf] %v17039_v2  ;;  %vm311_vm11 = vsmask.f32 6416 }
  0x1b   : > { %6312 = vst [vmem:[#allocation3 + $0x4] sm:$0xf] %v17039_v2  ;;  %6313 = vst [vmem:[#allocation3 + $0x8] sm:$0xf] %v17039_v2  ;;  %v314_v25 = vshrl.u32 %v308_v20, 16  ;;  %v317_v26 = vshll.u32 %v308_v20, 16  ;;  %14747 = vmatpush3.bf16.msra.mxu0 %v16262_v27 }
  0x1c   : > { %6314 = vst [vmem:[#allocation3 + $0xc] sm:$0xf] %v17039_v2  ;;  %6315 = vst [vmem:[#allocation3 + $0x10] sm:$0xf] %v17039_v2  ;;  %v282_v28 = vrot.slane %v281_v19, 4  ;;  %v323_v31 = vshrl.u32 %v309_v21, 16 }
  0x1d   : > { %6316 = vst [vmem:[#allocation3 + $0x14] sm:$0xf] %v17039_v2  ;;  %6317 = vst [vmem:[#allocation3 + $0x18] sm:$0xf] %v17039_v2  ;;  %v326_v32 = vshll.u32 %v309_v21, 16  ;;  %v292_v34 = vrot.slane %v290_v23, 4 }
  0x1e   : > { %6318 = vst [vmem:[#allocation3 + $0x1c] sm:$0xf] %v17039_v2  ;;  %6319 = vst [vmem:[#allocation3 + $0x20] sm:$0xf] %v17039_v2  ;;  %v338_v33 = vld [vmem:[#allocation2 + $0x10] sm:$0xc] }
  0x1f   : > { %6320 = vst [vmem:[#allocation3 + $0x24] sm:$0xf] %v17039_v2  ;;  %6321 = vst [vmem:[#allocation3 + $0x28] sm:$0xf] %v17039_v2  ;;  %v316_v35 = vrot.slane %v314_v25, 5  ;;  %v319_v36 = vrot.slane %v317_v26, 6 }
  0x20   : > { %6322 = vst [vmem:[#allocation3 + $0x2c] sm:$0xf] %v17039_v2  ;;  %6323 = vst [vmem:[#allocation3 + $0x30] sm:$0xf] %v17039_v2  ;;  %vm336_vm14 = vsmask.f32 7946 }
  0x21   : > { %6324 = vst [vmem:[#allocation3 + $0x34] sm:$0xf] %v17039_v2  ;;  %6325 = vst [vmem:[#allocation3 + $0x38] sm:$0xf] %v17039_v2  ;;  %v325_v38 = vrot.slane %v323_v31, 5  ;;  %v328_v39 = vrot.slane %v326_v32, 6  ;;  %v320_v44 = vor.u32 %v319_v36, %v316_v35 }
  0x22   : > { %6326 = vst [vmem:[#allocation3 + $0x3c] sm:$0xf] %v17039_v2  ;;  %6327 = vst [vmem:[#allocation3 + $0x40] sm:$0xf] %v17039_v2  ;;  %v347_v41 = vld [vmem:[%s17188_s29 + $0x10] sm:$0xf] }
  0x23   : > { %6328 = vst [vmem:[#allocation3 + $0x44] sm:$0xf] %v17039_v2  ;;  %6329 = vst [vmem:[#allocation3 + $0x48] sm:$0xf] %v17039_v2  ;;  %v348_v42 = vld [vmem:[%s17188_s29 + $0x14] sm:$0xf]  ;;  %v329_v49 = vor.u32 %v328_v39, %v325_v38 }
  0x24   : > { %6330 = vst [vmem:[#allocation3 + $0x4c] sm:$0xf] %v17039_v2  ;;  %6331 = vst [vmem:[#allocation3 + $0x50] sm:$0xf] %v17039_v2  ;;  %v344_v45 = vld [vmem:[#allocation2 + $0x18] sm:$0x7] }
  0x25   : > { %6332 = vst [vmem:[#allocation3 + $0x54] sm:$0xf] %v17039_v2  ;;  %6333 = vst [vmem:[#allocation3 + $0x58] sm:$0xf] %v17039_v2  ;;  %v377_v46 = vld [vmem:[#allocation2 + $0x18] sm:$0x8] }
  0x26   : > { %6334 = vst [vmem:[#allocation3 + $0x5c] sm:$0xf] %v17039_v2  ;;  %6335 = vst [vmem:[#allocation3 + $0x60] sm:$0xf] %v17039_v2  ;;  %v16263_v47 = vld [vmem:[%s19043_s1 + $0x30] sm:$0xff]   ;;  %v353_v50 = vshll.u32 %v347_v41, 16 }
  0x27   : > { %6336 = vst [vmem:[#allocation3 + $0x64] sm:$0xf] %v17039_v2  ;;  %6337 = vst [vmem:[#allocation3 + $0x68] sm:$0xf] %v17039_v2  ;;  %v356_v51 = vshrl.u32 %v347_v41, 16  ;;  %v362_v52 = vshll.u32 %v348_v42, 16  ;;  %14748 = vmatprep.subr.bf16.mxu0 %v16263_v47 }
  0x28   : > { %6338 = vst [vmem:[#allocation3 + $0x6c] sm:$0xf] %v17039_v2  ;;  %6339 = vst [vmem:[#allocation3 + $0x70] sm:$0xf] %v17039_v2  ;;  %v321_v53 = vrot.slane %v320_v44, 4  ;;  %v366_v56 = vshrl.u32 %v348_v42, 16  ;;  %14749 = vmatpush3.bf16.msra.mxu0 %v16263_v47 }
  0x29   : > { %6340 = vst [vmem:[#allocation3 + $0x74] sm:$0xf] %v17039_v2  ;;  %6341 = vst [vmem:[#allocation3 + $0x78] sm:$0xf] %v17039_v2  ;;  %v331_v57 = vrot.slane %v329_v49, 4  ;;  %v355_v58 = vrot.slane %v353_v50, 5 }
  0x2a   : > { %6342 = vst [vmem:[#allocation3 + $0x7c] sm:$0xf] %v17039_v2  ;;  %6343 = vst [vmem:[#allocation3 + $0x80] sm:$0xf] %v17039_v2  ;;  %v358_v59 = vrot.slane %v356_v51, 4  ;;  %v364_v62 = vrot.slane %v362_v52, 5 }
  0x2b   : > { %6344 = vst [vmem:[#allocation3 + $0x84] sm:$0xf] %v17039_v2  ;;  %6345 = vst [vmem:[#allocation3 + $0x88] sm:$0xf] %v17039_v2  ;;  %v368_v63 = vrot.slane %v366_v56, 4  ;;  %v16264_v1 = vld [vmem:[%s19043_s1 + $0x38] sm:$0xff]  }
  0x2c   : > { %6346 = vst [vmem:[#allocation3 + $0x8c] sm:$0xf] %v17039_v2  ;;  %6347 = vst [vmem:[#allocation3 + $0x90] sm:$0xf] %v17039_v2  ;;  %v386_v0 = vld [vmem:[%s17188_s29 + $0x18] sm:$0xf]  ;;  %v359_v3 = vor.u32 %v358_v59, %v355_v58  ;;  %14750 = vmatprep.subr.bf16.mxu0 %v16264_v1 }
  0x2d   : > { %6348 = vst [vmem:[#allocation3 + $0x94] sm:$0xf] %v17039_v2  ;;  %6349 = vst [vmem:[#allocation3 + $0x98] sm:$0xf] %v17039_v2  ;;  %v383_v5 = vld [vmem:[#allocation2 + $0x20] sm:$0xf]  ;;  %v369_v8 = vor.u32 %v368_v63, %v364_v62  ;;  %14751 = vmatpush3.bf16.msra.mxu0 %v16264_v1 }
  0x2e   : > { %6350 = vst [vmem:[#allocation3 + $0x9c] sm:$0xf] %v17039_v2  ;;  %6351 = vst [vmem:[#allocation3 + $0xa0] sm:$0xf] %v17039_v2  ;;  %v392_v6 = vshrl.u32 %v386_v0, 16  ;;  %v395_v9 = vshll.u32 %v386_v0, 16 }
  0x2f   : > { %vm17200_vm7 = vmand %vm296_vm0, %vm297_vm4  ;;  %vm349_vm0 = vsmask.f32 3328  ;;  %vm375_vm4 = vsmask.f32 7950  ;;  %v387_v10 = vld [vmem:[%s17188_s29 + $0x1c] sm:$0xf] }
  0x30   : > { %vm17208_vm10 = vmor %vm271_vm2, %vm272_vm3  ;;  %v300_v29 = vsel %vm17200_vm7, %v281_v19, %v299_v18  ;;  %v16267_v11 = vld [vmem:[%s19043_s1 + $0x40] sm:$0xff]   ;;  %v360_v12 = vrot.slane %v359_v3, 4  ;;  %v394_v14 = vrot.slane %v392_v6, 7  ;;  %v400_v15 = vshrl.u32 %v387_v10, 16  ;;  %v419_v27 = vld [vmem:[#allocation2 + $0x2c] sm:$0x1] }
  0x31   : > { %vm17219_vm13 = vmand %vm19049_vm1, %vm271_vm2  ;;  %301 = vst [vmem:[#allocation2 + $0x8] sm:$0xe] %v300_v29  ;;  %v291_v37 = vsel %vm17208_vm10, %v282_v28, %v290_v23  ;;  %v370_v16 = vrot.slane %v369_v8, 4  ;;  %v413_v19 = vld [vmem:[#allocation2 + $0x24] sm:$0xf]  ;;  %v403_v20 = vshll.u32 %v387_v10, 16  ;;  %14788 = vmatprep.subr.bf16.mxu0 %v16267_v11 }
  0x32   : > { %vm17226_vm15 = vmand %vm335_vm5, %vm336_vm14  ;;  %302 = vst [vmem:[#allocation2 + $0xc] sm:$0xf] %v291_v37  ;;  %v306_v43 = vsel %vm17219_vm13, %v292_v34, %v305_v24  ;;  %vm350_vm5 = vsmask.f32 7440  ;;  %vm388_vm14 = vsmask.f32 256  ;;  %v397_v23 = vor.u32 %v395_v9, %v394_v14 }
  0x33   : > { %307 = vst [vmem:[#allocation2 + $0x10] sm:$0x3] %v306_v43  ;;  %vm17239_vm2 = vmor %vm310_vm9, %vm311_vm11  ;;  %v339_v54 = vsel %vm17226_vm15, %v320_v44, %v338_v33  ;;  %vm389_vm1 = vsmask.f32 4368  ;;  %v398_v24 = vrot.slane %v394_v14, 4  ;;  %v402_v25 = vrot.slane %v400_v15, 7 }
  0x34   : > { %vm17247_vm3 = vmand %vm19048_vm6, %vm310_vm9  ;;  %340 = vst [vmem:[#allocation2 + $0x10] sm:$0xc] %v339_v54  ;;  %v330_v61 = vsel %vm17239_vm2, %v321_v53, %v329_v49  ;;  %vm411_vm9 = vsmask.f32 7938  ;;  %v422_v28 = vld [vmem:[%s17188_s29 + $0x20] sm:$0xf] }
  0x35   : > { %vm17252_vm11 = vmand %vm374_vm8, %vm375_vm4  ;;  %341 = vst [vmem:[#allocation2 + $0x14] sm:$0xf] %v330_v61  ;;  %v345_v2 = vsel %vm17247_vm3, %v331_v57, %v344_v45  ;;  %vm19050_vm4 = vcmask 1040384   ;;  %v425_v32 = vshrl.u32 %v422_v28, 16  ;;  %v428_v33 = vshll.u32 %v422_v28, 16  ;;  %v16270_v44 = vld [vmem:[%s19043_s1 + $0x48] sm:$0xff]  }
  0x36   : > { %v378_v4 = vsel %vm17252_vm11, %v355_v58, %v377_v46  ;;  %346 = vst [vmem:[#allocation2 + $0x18] sm:$0x7] %v345_v2  ;;  %vm17268_vm8 = vmor %vm349_vm0, %vm350_vm5  ;;  %v405_v36 = vor.u32 %v403_v20, %v402_v25  ;;  %v407_v37 = vrot.slane %v402_v25, 4  ;;  %v423_v38 = vld [vmem:[%s17188_s29 + $0x24] sm:$0xf]  ;;  %v16273_v59 = vld [vmem:[%s19043_s1 + $0x50] sm:$0xff]  }
  0x37   : > { %379 = vst [vmem:[#allocation2 + $0x18] sm:$0x8] %v378_v4  ;;  %vm17278_vm6 = vmand %vm381_vm12, %vm349_vm0  ;;  %v365_v21 = vsel %vm17268_vm8, %v360_v12, %v364_v62  ;;  %v427_v41 = vrot.slane %v425_v32, 6  ;;  %v430_v42 = vrot.slane %v428_v33, 7  ;;  %v434_v43 = vshrl.u32 %v423_v38, 16 }
  0x38   : > { %vm17284_vm5 = vmand %vm381_vm12, %vm411_vm9  ;;  %380 = vst [vmem:[#allocation2 + $0x1c] sm:$0xf] %v365_v21  ;;  %v384_v29 = vsel %vm17278_vm6, %v370_v16, %v383_v5  ;;  %v446_v47 = vld [vmem:[#allocation2 + $0x2c] sm:$0xe]  ;;  %v437_v49 = vshll.u32 %v423_v38, 16 }
  0x39   : > { %vm17292_vm0 = vmand %vm19050_vm4, %vm388_vm14  ;;  %v16266_v34 = vld [vmem:[#allocation2 + $0x8] sm:$0xff]   ;;  %385 = vst [vmem:[#allocation2 + $0x20] sm:$0xf] %v384_v29  ;;  %v414_v35 = vsel %vm17284_vm5, %v397_v23, %v413_v19  ;;  %v431_v50 = vor.u32 %v430_v42, %v427_v41  ;;  %v436_v51 = vrot.slane %v434_v43, 6  ;;  %v450_v62 = vld [vmem:[#allocation2 + $0x34] sm:$0x3] }
  0x3a   : > { %vm17300_vm9 = vmor %vm388_vm14, %vm389_vm1  ;;  %415 = vst [vmem:[#allocation2 + $0x24] sm:$0xf] %v414_v35  ;;  %v420_v46 = vsel %vm17292_vm0, %v407_v37, %v419_v27  ;;  %v453_v52 = vld [vmem:[%s17188_s29 + $0x28] sm:$0xf]  ;;  %14753 = vmatmul.mubr.bf16.vlgmr.msra.gmra.mrb[0].mxu0 %v16266_v34  ;;  %v439_v53 = vrot.slane %v437_v49, 7  ;;  %v16276_v19 = vld [vmem:[%s19043_s1 + $0x58] sm:$0xff]  }
  0x3b   : > { %v406_v45 = vsel %vm17300_vm9, %v398_v24, %v405_v36  ;;  %421 = vst [vmem:[#allocation2 + $0x2c] sm:$0x1] %v420_v46  ;;  %v456_v54 = vshrl.u32 %v453_v52, 16  ;;  %v459_v56 = vshll.u32 %v453_v52, 16  ;;  %v454_v57 = vld [vmem:[%s17188_s29 + $0x2c] sm:$0xf]  ;;  %14789 = vmatpush3.bf16.msra.mxu0 %v16267_v11  ;;  %v447_v58 = vsel %vm17200_vm7, %v431_v50, %v446_v47 }
  0x3c   : > { %v16268_v39 = vld [vmem:[#allocation2 + $0x10] sm:$0xff]   ;;  %416 = vst [vmem:[#allocation2 + $0x28] sm:$0xf] %v406_v45  ;;  %v432_v61 = vrot.slane %v431_v50, 4  ;;  %v465_v63 = vshrl.u32 %v454_v57, 16  ;;  %v468_v0 = vshll.u32 %v454_v57, 16  ;;  %14790 = vmatprep.subr.bf16.mxu0 %v16270_v44  ;;  %v440_v1 = vor.u32 %v439_v53, %v436_v51 }
  0x3d   : > { %14756 = vmatprep.mubr.bf16.mxu0 %v16268_v39  ;;  %448 = vst [vmem:[#allocation2 + $0x2c] sm:$0xe] %v447_v58  ;;  %v458_v2 = vrot.slane %v456_v54, 5  ;;  %v461_v3 = vrot.slane %v459_v56, 6  ;;  %v477_v4 = vld [vmem:[#allocation2 + $0x34] sm:$0xc] }
  0x3e   : > { %v467_v5 = vrot.slane %v465_v63, 5  ;;  %v470_v6 = vrot.slane %v468_v0, 6  ;;  %v484_v8 = vld [vmem:[%s17188_s29 + $0x30] sm:$0xf]  ;;  %v441_v11 = vsel %vm17208_vm10, %v432_v61, %v440_v1  ;;  %v442_v12 = vrot.slane %v440_v1, 4 }
  0x3f   : > { %v16269_v9 = vld [vmem:[#allocation2 + $0x18] sm:$0xff]   ;;  %v462_v14 = vor.u32 %v461_v3, %v458_v2  ;;  %v487_v16 = vshll.u32 %v484_v8, 16  ;;  %14791 = vmatpush3.bf16.msra.mxu0 %v16270_v44  ;;  %449 = vst [vmem:[#allocation2 + $0x30] sm:$0xf] %v441_v11  ;;  %v485_v28 = vld [vmem:[%s17188_s29 + $0x34] sm:$0xf] }
  0x40   : > { %v481_v15 = vld [vmem:[#allocation2 + $0x3c] sm:$0x7]  ;;  %v471_v20 = vor.u32 %v470_v6, %v467_v5  ;;  %v508_v21 = vld [vmem:[#allocation2 + $0x3c] sm:$0x8]  ;;  %14792 = vmatprep.subr.bf16.mxu0 %v16273_v59  ;;  %v451_v23 = vsel %vm17219_vm13, %v442_v12, %v450_v62  ;;  %v490_v32 = vshrl.u32 %v484_v8, 16  ;;  %v496_v33 = vshll.u32 %v485_v28, 16 }
  0x41   : > { %v16271_v10 = vld [vmem:[#allocation2 + $0x20] sm:$0xff]   ;;  %v478_v24 = vsel %vm17226_vm15, %v462_v14, %v477_v4  ;;  %v463_v25 = vrot.slane %v462_v14, 4  ;;  %v489_v27 = vrot.slane %v487_v16, 5  ;;  %452 = vst [vmem:[#allocation2 + $0x34] sm:$0x3] %v451_v23  ;;  %v500_v34 = vshrl.u32 %v485_v28, 16 }
  0x42   : > { %479 = vst [vmem:[#allocation2 + $0x34] sm:$0xc] %v478_v24  ;;  %v473_v29 = vrot.slane %v471_v20, 4  ;;  %14757 = vmatmul.mubr.bf16.gmra.mrb[4].mxu0 %v16269_v9  ;;  %v515_v37 = vld [vmem:[%s17188_s29 + $0x38] sm:$0xf]  ;;  %v492_v41 = vrot.slane %v490_v32, 4 }
  0x43   : > { %v472_v35 = vsel %vm17239_vm2, %v463_v25, %v471_v20  ;;  %v509_v36 = vsel %vm17252_vm11, %v489_v27, %v508_v21  ;;  %v516_v38 = vld [vmem:[%s17188_s29 + $0x3c] sm:$0xf]  ;;  %14760 = vmatprep.mubr.bf16.mxu0 %v16271_v10  ;;  %14793 = vmatpush3.bf16.msra.mxu0 %v16273_v59  ;;  %v498_v42 = vrot.slane %v496_v33, 5  ;;  %v502_v43 = vrot.slane %v500_v34, 4  ;;  %v16279_v44 = vld [vmem:[%s19043_s1 + $0x60] sm:$0xff]   ;;  %v16282_v8 = vld [vmem:[%s19043_s1 + $0x68] sm:$0xff]  }
  0x44   : > { %480 = vst [vmem:[#allocation2 + $0x38] sm:$0xf] %v472_v35  ;;  %v482_v39 = vsel %vm17247_vm3, %v473_v29, %v481_v15  ;;  %510 = vst [vmem:[#allocation2 + $0x3c] sm:$0x8] %v509_v36  ;;  %14794 = vmatprep.subr.bf16.mxu0 %v16276_v19  ;;  %v512_v45 = vld [vmem:[#allocation2 + $0x44] sm:$0xf]  ;;  %v493_v52 = vor.u32 %v492_v41, %v489_v27 }
  0x45   : > { %483 = vst [vmem:[#allocation2 + $0x3c] sm:$0x7] %v482_v39  ;;  %v518_v46 = vshrl.u32 %v515_v37, 16  ;;  %v521_v47 = vshll.u32 %v515_v37, 16  ;;  %v526_v49 = vshrl.u32 %v516_v38, 16  ;;  %v529_v50 = vshll.u32 %v516_v38, 16 }
  0x46   : > { %v16272_v51 = vld [vmem:[#allocation2 + $0x28] sm:$0xff]   ;;  %v503_v53 = vor.u32 %v502_v43, %v498_v42  ;;  %v544_v56 = vld [vmem:[%s17188_s29 + $0x40] sm:$0xf]  ;;  %v541_v59 = vld [vmem:[#allocation2 + $0x50] sm:$0x1]  ;;  %v494_v61 = vrot.slane %v493_v52, 4 }
  0x47   : > { %v537_v54 = vld [vmem:[#allocation2 + $0x48] sm:$0xf]  ;;  %v520_v57 = vrot.slane %v518_v46, 7  ;;  %v528_v58 = vrot.slane %v526_v49, 7  ;;  %14795 = vmatpush3.bf16.msra.mxu0 %v16276_v19  ;;  %v545_v63 = vld [vmem:[%s17188_s29 + $0x44] sm:$0xf] }
  0x48   : > { %v504_v62 = vrot.slane %v503_v53, 4  ;;  %v547_v0 = vshrl.u32 %v544_v56, 16  ;;  %v550_v1 = vshll.u32 %v544_v56, 16  ;;  %14796 = vmatprep.subr.bf16.mxu0 %v16279_v44  ;;  %v499_v9 = vsel %vm17268_vm8, %v494_v61, %v498_v42  ;;  %v568_v14 = vld [vmem:[#allocation2 + $0x50] sm:$0xe]  ;;  %v16295_v7 = vld [vmem:[#allocation2 + $0x18] sm:$0xff]  }
  0x49   : > { %v16274_v2 = vld [vmem:[#allocation2 + $0x30] sm:$0xff]   ;;  %v523_v3 = vor.u32 %v521_v47, %v520_v57  ;;  %v524_v4 = vrot.slane %v520_v57, 4  ;;  %v531_v5 = vor.u32 %v529_v50, %v528_v58  ;;  %v533_v6 = vrot.slane %v528_v58, 4  ;;  %v575_v15 = vld [vmem:[%s17188_s29 + $0x48] sm:$0xf] }
  0x4a   : > { %v513_v10 = vsel %vm17278_vm6, %v504_v62, %v512_v45  ;;  %v549_v11 = vrot.slane %v547_v0, 6  ;;  %v552_v12 = vrot.slane %v550_v1, 7  ;;  %14761 = vmatmul.mubr.bf16.gmra.mrb[8].mxu0 %v16272_v51  ;;  %511 = vst [vmem:[#allocation2 + $0x40] sm:$0xf] %v499_v9  ;;  %v556_v21 = vshrl.u32 %v545_v63, 16  ;;  %v16285_v34 = vld [vmem:[%s19043_s1 + $0x70] sm:$0xff]  }
  0x4b   : > { %514 = vst [vmem:[#allocation2 + $0x44] sm:$0xf] %v513_v10  ;;  %v532_v16 = vsel %vm17300_vm9, %v524_v4, %v531_v5  ;;  %v538_v19 = vsel %vm17284_vm5, %v523_v3, %v537_v54  ;;  %v542_v20 = vsel %vm17292_vm0, %v533_v6, %v541_v59  ;;  %v576_v23 = vld [vmem:[%s17188_s29 + $0x4c] sm:$0xf]  ;;  %14764 = vmatprep.mubr.bf16.mxu0 %v16274_v2  ;;  %v559_v25 = vshll.u32 %v545_v63, 16  ;;  %v17382_v10 = vld [vmem:[%s19043_s1 + $0x80] sm:$0xff]  }
  0x4c   : > { %539 = vst [vmem:[#allocation2 + $0x48] sm:$0xf] %v538_v19  ;;  %540 = vst [vmem:[#allocation2 + $0x4c] sm:$0xf] %v532_v16  ;;  %14797 = vmatpush3.bf16.msra.mxu0 %v16279_v44  ;;  %v553_v24 = vor.u32 %v552_v12, %v549_v11  ;;  %v578_v27 = vshrl.u32 %v575_v15, 16  ;;  %v581_v28 = vshll.u32 %v575_v15, 16 }
  0x4d   : > { %543 = vst [vmem:[#allocation2 + $0x50] sm:$0x1] %v542_v20  ;;  %v558_v29 = vrot.slane %v556_v21, 6  ;;  %v587_v32 = vshrl.u32 %v576_v23, 16  ;;  %v590_v33 = vshll.u32 %v576_v23, 16  ;;  %14798 = vmatprep.subr.bf16.mxu0 %v16282_v8  ;;  %v561_v36 = vrot.slane %v559_v25, 7 }
  0x4e   : > { %v554_v35 = vrot.slane %v553_v24, 4  ;;  %v569_v37 = vsel %vm17200_vm7, %v553_v24, %v568_v14  ;;  %v580_v38 = vrot.slane %v578_v27, 5  ;;  %v16275_v39 = vld [vmem:[#allocation2 + $0x38] sm:$0xff]   ;;  %v583_v41 = vrot.slane %v581_v28, 6  ;;  %v606_v49 = vld [vmem:[%s17188_s29 + $0x50] sm:$0xf] }
  0x4f   : > { %570 = vst [vmem:[#allocation2 + $0x50] sm:$0xe] %v569_v37  ;;  %v589_v42 = vrot.slane %v587_v32, 5  ;;  %v592_v43 = vrot.slane %v590_v33, 6  ;;  %v16289_v44 = vld [vmem:[%s19043_s1 + $0x78] sm:$0xff]   ;;  %v562_v45 = vor.u32 %v561_v36, %v558_v29  ;;  %v609_v54 = vshll.u32 %v606_v49, 16 }
  0x50   : > { %v572_v46 = vld [vmem:[#allocation2 + $0x58] sm:$0x3]  ;;  %v599_v47 = vld [vmem:[#allocation2 + $0x58] sm:$0xc]  ;;  %14799 = vmatpush3.bf16.msra.mxu0 %v16282_v8  ;;  %v584_v50 = vor.u32 %v583_v41, %v580_v38  ;;  %v603_v52 = vld [vmem:[#allocation2 + $0x60] sm:$0x7] }
  0x51   : > { %v593_v51 = vor.u32 %v592_v43, %v589_v42  ;;  %v607_v53 = vld [vmem:[%s17188_s29 + $0x54] sm:$0xf]  ;;  %v612_v56 = vshrl.u32 %v606_v49, 16  ;;  %v630_v57 = vld [vmem:[#allocation2 + $0x60] sm:$0x8]  ;;  %14800 = vmatprep.subr.bf16.mxu0 %v16285_v34  ;;  %v563_v59 = vsel %vm17208_vm10, %v554_v35, %v562_v45  ;;  %v564_v61 = vrot.slane %v562_v45, 4 }
  0x52   : > { %v16277_v58 = vld [vmem:[#allocation2 + $0x40] sm:$0xff]   ;;  %14765 = vmatmul.mubr.bf16.gmra.mrb[12].mxu0 %v16275_v39  ;;  %571 = vst [vmem:[#allocation2 + $0x54] sm:$0xf] %v563_v59  ;;  %v585_v62 = vrot.slane %v584_v50, 4  ;;  %v600_v63 = vsel %vm17226_vm15, %v584_v50, %v599_v47  ;;  %v611_v2 = vrot.slane %v609_v54, 5  ;;  %v618_v6 = vshll.u32 %v607_v53, 16 }
  0x53   : > { %14768 = vmatprep.mubr.bf16.mxu0 %v16277_v58  ;;  %v573_v0 = vsel %vm17219_vm13, %v564_v61, %v572_v46  ;;  %601 = vst [vmem:[#allocation2 + $0x58] sm:$0xc] %v600_v63  ;;  %v595_v1 = vrot.slane %v593_v51, 4  ;;  %v614_v3 = vrot.slane %v612_v56, 4  ;;  %v637_v4 = vld [vmem:[%s17188_s29 + $0x58] sm:$0xf] }
  0x54   : > { %14801 = vmatpush3.bf16.msra.mxu0 %v16285_v34  ;;  %574 = vst [vmem:[#allocation2 + $0x58] sm:$0x3] %v573_v0  ;;  %v594_v5 = vsel %vm17239_vm2, %v585_v62, %v593_v51  ;;  %v622_v8 = vshrl.u32 %v607_v53, 16  ;;  %v640_v9 = vshrl.u32 %v637_v4, 16  ;;  %v631_v14 = vsel %vm17252_vm11, %v611_v2, %v630_v57  ;;  %v16278_v16 = vld [vmem:[#allocation2 + $0x48] sm:$0xff]  }
  0x55   : > { %14802 = vmatprep.subr.bf16.mxu0 %v16289_v44  ;;  %602 = vst [vmem:[#allocation2 + $0x5c] sm:$0xf] %v594_v5  ;;  %v604_v11 = vsel %vm17247_vm3, %v595_v1, %v603_v52  ;;  %v615_v12 = vor.u32 %v614_v3, %v611_v2  ;;  %v643_v15 = vshll.u32 %v637_v4, 16  ;;  %v620_v19 = vrot.slane %v618_v6, 5  ;;  %632 = vst [vmem:[#allocation2 + $0x60] sm:$0x8] %v631_v14 }
  0x56   : > { %605 = vst [vmem:[#allocation2 + $0x60] sm:$0x7] %v604_v11  ;;  %v624_v20 = vrot.slane %v622_v8, 4  ;;  %v642_v21 = vrot.slane %v640_v9, 7  ;;  %v659_v24 = vld [vmem:[#allocation2 + $0x6c] sm:$0xf] }
  0x57   : > { %v616_v23 = vrot.slane %v615_v12, 4  ;;  %v638_v25 = vld [vmem:[%s17188_s29 + $0x5c] sm:$0xf]  ;;  %v634_v28 = vld [vmem:[#allocation2 + $0x68] sm:$0xf]  ;;  %vm3887_vm14 = vcmask 1045504  }
  0x58   : > { %14803 = vmatpush3.bf16.msra.mxu0 %v16289_v44  ;;  %v625_v27 = vor.u32 %v624_v20, %v620_v19  ;;  %v645_v29 = vor.u32 %v643_v15, %v642_v21  ;;  %v646_v32 = vrot.slane %v642_v21, 4  ;;  %v648_v33 = vshrl.u32 %v638_v25, 16  ;;  %v666_v34 = vld [vmem:[%s17188_s29 + $0x60] sm:$0xf]  ;;  %v663_v38 = vld [vmem:[#allocation2 + $0x74] sm:$0x1] }
  0x59   : > { %14840 = vmatprep.subr.bf16.mxu0 %v17382_v10  ;;  %v16280_v35 = vld [vmem:[#allocation2 + $0x50] sm:$0xff]   ;;  %v621_v36 = vsel %vm17268_vm8, %v616_v23, %v620_v19  ;;  %v651_v37 = vshll.u32 %v638_v25, 16  ;;  %v669_v39 = vshrl.u32 %v666_v34, 16  ;;  %v672_v41 = vshll.u32 %v666_v34, 16  ;;  %v667_v46 = vld [vmem:[%s17188_s29 + $0x64] sm:$0xf] }
  0x5a   : > { %14769 = vmatmul.mubr.bf16.gmra.mrb[16].mxu0 %v16278_v16  ;;  %633 = vst [vmem:[#allocation2 + $0x64] sm:$0xf] %v621_v36  ;;  %v626_v42 = vrot.slane %v625_v27, 4  ;;  %v660_v43 = vsel %vm17284_vm5, %v645_v29, %v659_v24  ;;  %v650_v44 = vrot.slane %v648_v33, 7  ;;  %v690_v45 = vld [vmem:[#allocation2 + $0x74] sm:$0xe] }
  0x5b   : > { %14772 = vmatprep.mubr.bf16.mxu0 %v16280_v35  ;;  %661 = vst [vmem:[#allocation2 + $0x6c] sm:$0xf] %v660_v43  ;;  %v671_v47 = vrot.slane %v669_v39, 6  ;;  %v674_v49 = vrot.slane %v672_v41, 7  ;;  %v678_v50 = vshrl.u32 %v667_v46, 16  ;;  %v681_v51 = vshll.u32 %v667_v46, 16 }
  0x5c   : > { %v635_v52 = vsel %vm17278_vm6, %v626_v42, %v634_v28  ;;  %v653_v53 = vor.u32 %v651_v37, %v650_v44  ;;  %v655_v54 = vrot.slane %v650_v44, 4  ;;  %v697_v56 = vld [vmem:[%s17188_s29 + $0x68] sm:$0xf]  ;;  %v16281_v62 = vld [vmem:[#allocation2 + $0x58] sm:$0xff]   ;;  %v698_v3 = vld [vmem:[%s17188_s29 + $0x6c] sm:$0xf] }
  0x5d   : > { %636 = vst [vmem:[#allocation2 + $0x68] sm:$0xf] %v635_v52  ;;  %v675_v57 = vor.u32 %v674_v49, %v671_v47  ;;  %v680_v58 = vrot.slane %v678_v50, 6  ;;  %v683_v59 = vrot.slane %v681_v51, 7  ;;  %v700_v61 = vshrl.u32 %v697_v56, 16  ;;  %v16291_v51 = vld [vmem:[#allocation2] sm:$0xff]  }
  0x5e   : > { %v654_v63 = vsel %vm17300_vm9, %v646_v32, %v653_v53  ;;  %v664_v0 = vsel %vm17292_vm0, %v655_v54, %v663_v38  ;;  %v694_v1 = vld [vmem:[#allocation2 + $0x7c] sm:$0x3]  ;;  %v703_v2 = vshll.u32 %v697_v56, 16  ;;  %v721_v9 = vld [vmem:[#allocation2 + $0x7c] sm:$0xc]  ;;  %v709_v14 = vshrl.u32 %v698_v3, 16 }
  0x5f   : > { %662 = vst [vmem:[#allocation2 + $0x70] sm:$0xf] %v654_v63  ;;  %665 = vst [vmem:[#allocation2 + $0x74] sm:$0x1] %v664_v0  ;;  %v691_v4 = vsel %vm17200_vm7, %v675_v57, %v690_v45  ;;  %v676_v5 = vrot.slane %v675_v57, 4  ;;  %v684_v6 = vor.u32 %v683_v59, %v680_v58  ;;  %v702_v8 = vrot.slane %v700_v61, 5 }
  0x60   : > { %v728_v11 = vld [vmem:[%s17188_s29 + $0x70] sm:$0xf]  ;;  %692 = vst [vmem:[#allocation2 + $0x74] sm:$0xe] %v691_v4  ;;  %v705_v12 = vrot.slane %v703_v2, 6  ;;  %v712_v15 = vshll.u32 %v698_v3, 16 }
  0x61   : > { %v731_v16 = vshll.u32 %v728_v11, 16  ;;  %v752_v19 = vld [vmem:[#allocation2 + $0x84] sm:$0x8]  ;;  %v685_v21 = vsel %vm17208_vm10, %v676_v5, %v684_v6  ;;  %v686_v23 = vrot.slane %v684_v6, 4  ;;  %v711_v25 = vrot.slane %v709_v14, 5  ;;  %v16292_v59 = vld [vmem:[#allocation2 + $0x8] sm:$0xff]  }
  0x62   : > { %v16283_v20 = vld [vmem:[#allocation2 + $0x60] sm:$0xff]   ;;  %14773 = vmatmul.mubr.bf16.gmra.mrb[20].mxu0 %v16281_v62  ;;  %693 = vst [vmem:[#allocation2 + $0x78] sm:$0xf] %v685_v21  ;;  %v706_v24 = vor.u32 %v705_v12, %v702_v8  ;;  %v714_v27 = vrot.slane %v712_v15, 6  ;;  %v729_v32 = vld [vmem:[%s17188_s29 + $0x74] sm:$0xf] }
  0x63   : > { %v733_v28 = vrot.slane %v731_v16, 5  ;;  %14776 = vmatprep.mubr.bf16.mxu0 %v16283_v20  ;;  %v695_v29 = vsel %vm17219_vm13, %v686_v23, %v694_v1  ;;  %v734_v33 = vshrl.u32 %v728_v11, 16  ;;  %v725_v37 = vld [vmem:[#allocation2 + $0x84] sm:$0x7]  ;;  %v740_v41 = vshll.u32 %v729_v32, 16  ;;  %v16293_v3 = vld [vmem:[#allocation2 + $0x10] sm:$0xff]  }
  0x64   : > { %696 = vst [vmem:[#allocation2 + $0x7c] sm:$0x3] %v695_v29  ;;  %v722_v34 = vsel %vm17226_vm15, %v706_v24, %v721_v9  ;;  %v707_v35 = vrot.slane %v706_v24, 4  ;;  %v715_v36 = vor.u32 %v714_v27, %v711_v25  ;;  %v744_v42 = vshrl.u32 %v729_v32, 16  ;;  %v16284_v43 = vld [vmem:[#allocation2 + $0x68] sm:$0xff]   ;;  %v16296_v16 = vld [vmem:[#allocation2 + $0x20] sm:$0xff]  }
  0x65   : > { %v753_v38 = vsel %vm17252_vm11, %v733_v28, %v752_v19  ;;  %723 = vst [vmem:[#allocation2 + $0x7c] sm:$0xc] %v722_v34  ;;  %v736_v39 = vrot.slane %v734_v33, 4  ;;  %v742_v49 = vrot.slane %v740_v41, 5  ;;  %v756_v53 = vld [vmem:[#allocation2 + $0x8c] sm:$0xf] }
  0x66   : > { %754 = vst [vmem:[#allocation2 + $0x84] sm:$0x8] %v753_v38  ;;  %v716_v44 = vsel %vm17239_vm2, %v707_v35, %v715_v36  ;;  %v717_v45 = vrot.slane %v715_v36, 4  ;;  %v746_v50 = vrot.slane %v744_v42, 4  ;;  %v1504_v58 = vshll.u32 %v16291_v51, 16  ;;  %v16298_v23 = vld [vmem:[#allocation2 + $0x28] sm:$0xff]  }
  0x67   : > { %v16286_v46 = vld [vmem:[#allocation2 + $0x70] sm:$0xff]   ;;  %724 = vst [vmem:[#allocation2 + $0x80] sm:$0xf] %v716_v44  ;;  %v737_v47 = vor.u32 %v736_v39, %v733_v28  ;;  %v1502_v63 = vshrl.u32 %v16291_v51, 16  ;;  %v1509_v2 = vshll.u32 %v16292_v59, 16  ;;  %v1517_v8 = vshll.u32 %v16293_v3, 16 }
  0x68   : > { %v726_v52 = vsel %vm17247_vm3, %v717_v45, %v725_v37  ;;  %v747_v56 = vor.u32 %v746_v50, %v742_v49  ;;  %v1506_v0 = vrot.slane %v1504_v58, 1  ;;  %vm1500_vm1 = vsmask.f32 7424  ;;  %v16297_v28 = vld [vmem:[%s19043_s1 + $0x88] sm:$0xff]   ;;  %v16299_v35 = vld [vmem:[#allocation2 + $0x30] sm:$0xff]   ;;  %v16301_v41 = vld [vmem:[#allocation2 + $0x38] sm:$0xff]  }
  0x69   : > { %727 = vst [vmem:[#allocation2 + $0x84] sm:$0x7] %v726_v52  ;;  %v738_v54 = vrot.slane %v737_v47, 4  ;;  %v1511_v5 = vrot.slane %v1509_v2, 1  ;;  %v1513_v9 = vshrl.u32 %v16292_v59, 16  ;;  %v1521_v12 = vshrl.u32 %v16293_v3, 16 }
  0x6a   : > { %14777 = vmatmul.mubr.bf16.gmra.mrb[24].mxu0 %v16284_v43  ;;  %v748_v57 = vrot.slane %v747_v56, 4  ;;  %v1507_v4 = vor.u32 %v1506_v0, %v1502_v63  ;;  %v1525_v14 = vshll.u32 %v16295_v7, 16  ;;  %v1519_v15 = vrot.slane %v1517_v8, 1  ;;  %v16300_v37 = vld [vmem:[%s19043_s1 + $0x90] sm:$0xff]   ;;  %v759_v42 = vld [vmem:[%s17188_s29 + $0x78] sm:$0xf] }
  0x6b   : > { %14780 = vmatprep.mubr.bf16.mxu0 %v16286_v46  ;;  %v743_v48 = vsel %vm17268_vm8, %v738_v54, %v742_v49  ;;  %v1515_v19 = vor.u32 %v1513_v9, %v1511_v5  ;;  %v1533_v24 = vshll.u32 %v16296_v16, 16  ;;  %v1529_v27 = vshrl.u32 %v16295_v7, 16  ;;  %v16303_v46 = vld [vmem:[%s19043_s1 + $0x98] sm:$0xff]   ;;  %v16302_v54 = vld [vmem:[#allocation2 + $0x40] sm:$0xff]   ;;  %v16304_v58 = vld [vmem:[#allocation2 + $0x48] sm:$0xff]  }
  0x6c   : > { %755 = vst [vmem:[#allocation2 + $0x88] sm:$0xf] %v743_v48  ;;  %v16287_v61 = vld [vmem:[#allocation2 + $0x78] sm:$0xff]   ;;  %v757_v62 = vsel %vm17278_vm6, %v748_v57, %v756_v53  ;;  %v1512_v11 = vsel %vm1500_vm1, %v1507_v4, %v1511_v5  ;;  %v1523_v20 = vor.u32 %v1521_v12, %v1519_v15  ;;  %v1527_v21 = vrot.slane %v1525_v14, 1  ;;  %v781_v53 = vld [vmem:[#allocation2 + $0x90] sm:$0xf] }
  0x6d   : > { %758 = vst [vmem:[#allocation2 + $0x8c] sm:$0xf] %v757_v62  ;;  %v1520_v25 = vsel %vm1500_vm1, %v1515_v19, %v1519_v15  ;;  %v1537_v32 = vshrl.u32 %v16296_v16, 16  ;;  %v1541_v33 = vshll.u32 %v16298_v23, 16  ;;  %v1535_v34 = vrot.slane %v1533_v24, 1  ;;  %v16306_v63 = vld [vmem:[%s19043_s1 + $0xa0] sm:$0xff]  }
  0x6e   : > { %v1528_v29 = vsel %vm1500_vm1, %v1523_v20, %v1527_v21  ;;  %v1531_v36 = vor.u32 %v1529_v27, %v1527_v21  ;;  %v762_v43 = vshrl.u32 %v759_v42, 16  ;;  %v765_v44 = vshll.u32 %v759_v42, 16  ;;  %v16309_v7 = vld [vmem:[%s19043_s1 + $0xa8] sm:$0xff]   ;;  %v16305_v8 = vld [vmem:[#allocation2 + $0x50] sm:$0xff]   ;;  %v16308_v27 = vld [vmem:[#allocation2 + $0x60] sm:$0xff]  }
  0x6f   : > { %v1539_v38 = vor.u32 %v1537_v32, %v1535_v34  ;;  %v1543_v39 = vrot.slane %v1541_v33, 1  ;;  %v1549_v45 = vshll.u32 %v16299_v35, 16  ;;  %v1545_v47 = vshrl.u32 %v16298_v23, 16  ;;  %v16312_v15 = vld [vmem:[%s19043_s1 + $0xb0] sm:$0xff]  }
  0x70   : > { %v16288_v1 = vld [vmem:[#allocation2 + $0x80] sm:$0xff]   ;;  %v17439_v49 = vrot.slane %v762_v43, 7  ;;  %v1553_v51 = vshrl.u32 %v16299_v35, 16  ;;  %v1557_v52 = vshll.u32 %v16301_v41, 16  ;;  %v1565_v0 = vshll.u32 %v16302_v54, 16  ;;  %v16311_v43 = vld [vmem:[#allocation2 + $0x70] sm:$0xff]  }
  0x71   : > { %v1544_v50 = vsel %vm1500_vm1, %v1539_v38, %v1543_v39  ;;  %v1551_v48 = vrot.slane %v1549_v45, 1  ;;  %v1547_v57 = vor.u32 %v1545_v47, %v1543_v39  ;;  %v1561_v2 = vshrl.u32 %v16301_v41, 16  ;;  %v17464_v35 = vld [vmem:[%s19043_s1 + $0xc0] sm:$0xff]   ;;  %v16313_v47 = vld [vmem:[#allocation2 + $0x78] sm:$0xff]  }
  0x72   : > { %14781 = vmatmul.mubr.bf16.gmra.mrb[28].mxu0 %v16287_v61  ;;  %v767_v56 = vor.u32 %v765_v44, %v17439_v49  ;;  %v1559_v62 = vrot.slane %v1557_v52, 1  ;;  %v1569_v3 = vshrl.u32 %v16302_v54, 16  ;;  %v1573_v5 = vshll.u32 %v16304_v58, 16 }
  0x73   : > { %14784 = vmatprep.mubr.bf16.mxu0 %v16288_v1  ;;  %v1555_v61 = vor.u32 %v1553_v51, %v1551_v48  ;;  %v1552_v1 = vsel %vm1500_vm1, %v1547_v57, %v1551_v48  ;;  %v1581_v16 = vshll.u32 %v16305_v8, 16  ;;  %v1577_v20 = vshrl.u32 %v16304_v58, 16  ;;  %v16314_v57 = vld [vmem:[#allocation2 + $0x80] sm:$0xff]  }
  0x74   : > { %v16290_v6 = vld [vmem:[#allocation2 + $0x88] sm:$0xff]   ;;  %v782_v59 = vsel %vm17284_vm5, %v767_v56, %v781_v53  ;;  %v1563_v9 = vor.u32 %v1561_v2, %v1559_v62  ;;  %v1575_v14 = vrot.slane %v1573_v5, 1  ;;  %v1585_v21 = vshrl.u32 %v16305_v8, 16 }
  0x75   : > { %783 = vst [vmem:[#allocation2 + $0x90] sm:$0xf] %v782_v59  ;;  %v1560_v4 = vsel %vm1500_vm1, %v1555_v61, %v1559_v62  ;;  %v1601_v41 = vshrl.u32 %v16308_v27, 16  ;;  %v1617_v54 = vshrl.u32 %v16311_v43, 16  ;;  %v1621_v56 = vshll.u32 %v16313_v47, 16  ;;  %v16315_v62 = vld [vmem:[#allocation2 + $0x88] sm:$0xff]  }
  0x76   : > { %v1579_v32 = vor.u32 %v1577_v20, %v1575_v14  ;;  %vm2147_vm2 = vcmask 1046528   ;;  %vm3218_vm8 = vsmask.f32 6400  ;;  %vm5627_vm4 = vcmask 1044480  }
  0x77   : > { %v1623_v61 = vrot.slane %v1621_v56, 1 }
  0x7a   : > { %14785 = vmatmul.mubr.bf16.gmra.mrb[32].mxu0 %v16290_v6  ;;  %v1567_v6 = vrot.slane %v1565_v0, 1 }
  0x7b   : > { %14804 = vmatprep.mubr.bf16.mxu0 %v1512_v11  ;;  %v16307_v11 = vld [vmem:[#allocation2 + $0x58] sm:$0xff]  }
  0x7c   : > { %v1571_v12 = vor.u32 %v1569_v3, %v1567_v6  ;;  %v1568_v19 = vsel %vm1500_vm1, %v1563_v9, %v1567_v6  ;;  %v1589_v24 = vshll.u32 %v16307_v11, 16  ;;  %v1593_v38 = vshrl.u32 %v16307_v11, 16  ;;  %v16317_v5 = vld [vmem:[#allocation2 + $0x90] ss:$0 sps:$4 sm:$0x11]  }
  0x7d   : > { %v1633_v3 = vshrl.u32 %v16314_v57, 16  ;;  %v1641_v11 = vshrl.u32 %v16315_v62, 16 }
  0x7e   : > { %v1576_v23 = vsel %vm1500_vm1, %v1571_v12, %v1575_v14  ;;  %v1645_v12 = vshll.u32 %v16317_v5, 16  ;;  %v16318_v14 = vld [vmem:[#allocation2] sm:$0xfe]   ;;  %v16332_v5 = vld [vmem:[#allocation2 + $0x50] sm:$0xff]  }
  0x82   : > { %14805 = vmatmul.mubr.bf16.vlgmr.msra.gmra.mrb[0].mxu0 %v1520_v25  ;;  %v16316_v25 = vld [vmem:[%s19043_s1 + $0xb8] sm:$0xff]  }
  0x83   : > { %14841 = vmatpush3.bf16.msra.mxu0 %v17382_v10  ;;  %14808 = vmatprep.mubr.bf16.mxu0 %v1528_v29  ;;  %v1536_v10 = vsel %vm1500_vm1, %v1531_v36, %v1535_v34  ;;  %v16310_v29 = vld [vmem:[#allocation2 + $0x68] sm:$0xff]   ;;  %v1591_v34 = vrot.slane %v1589_v24, 1  ;;  %v1597_v36 = vshll.u32 %v16308_v27, 16  ;;  %v760_v27 = vld [vmem:[%s17188_s29 + $0x7c] sm:$0xf] }
  0x84   : > { %14842 = vmatprep.subr.bf16.mxu0 %v16297_v28  ;;  %v1605_v42 = vshll.u32 %v16310_v29, 16  ;;  %v1609_v52 = vshrl.u32 %v16310_v29, 16  ;;  %v770_v29 = vshrl.u32 %v760_v27, 16 }
  0x85   : > { %v1599_v44 = vrot.slane %v1597_v36, 1  ;;  %v1595_v45 = vor.u32 %v1593_v38, %v1591_v34  ;;  %v773_v36 = vshll.u32 %v760_v27, 16 }
  0x87   : > { %14843 = vmatpush3.bf16.msra.mxu0 %v16297_v28  ;;  %v1583_v28 = vrot.slane %v1581_v16, 1  ;;  %v1600_v51 = vsel %vm1500_vm1, %v1595_v45, %v1599_v44  ;;  %v16323_v45 = vld [vmem:[#allocation2 + $0x20] sm:$0xff]  }
  0x88   : > { %14844 = vmatprep.subr.bf16.mxu0 %v16300_v37  ;;  %v2155_v31 = vrot.slane %v16323_v45, 1  ;;  %v16346_v45 = vld [vmem:[#allocation2 + $0x10] sm:$0xff]  }
  0x89   : > { %v1587_v33 = vor.u32 %v1585_v21, %v1583_v28  ;;  %v1647_v21 = vrot.slane %v1645_v12, 1 }
  0x8a   : > { %14809 = vmatmul.mubr.bf16.gmra.mrb[4].mxu0 %v1536_v10  ;;  %v1607_v10 = vrot.slane %v1605_v42, 1 }
  0x8b   : > { %14812 = vmatprep.mubr.bf16.mxu0 %v1544_v50  ;;  %14845 = vmatpush3.bf16.msra.mxu0 %v16300_v37  ;;  %v1584_v37 = vsel %vm1500_vm1, %v1579_v32, %v1583_v28  ;;  %v1592_v39 = vsel %vm1500_vm1, %v1587_v33, %v1591_v34  ;;  %v1613_v50 = vshll.u32 %v16311_v43, 16  ;;  %v16322_v28 = vld [vmem:[#allocation2 + $0x18] sm:$0xff]   ;;  %v772_v34 = vrot.slane %v770_v29, 7 }
  0x8c   : > { %14846 = vmatprep.subr.bf16.mxu0 %v16303_v46  ;;  %v1611_v58 = vor.u32 %v1609_v52, %v1607_v10  ;;  %v2153_v42 = vrot.slane %v16322_v28, 1  ;;  %v16327_v52 = vld [vmem:[%s19043_s1 + $0xd0] sm:$0xff]   ;;  %v16340_v28 = vld [vmem:[#allocation2 + $0x78] sm:$0xff]  }
  0x8d   : > { %v1615_v48 = vrot.slane %v1613_v50, 1  ;;  %v775_v38 = vor.u32 %v773_v36, %v772_v34 }
  0x8f   : > { %14847 = vmatpush3.bf16.msra.mxu0 %v16303_v46  ;;  %v1603_v46 = vor.u32 %v1601_v41, %v1599_v44  ;;  %v1619_v59 = vor.u32 %v1617_v54, %v1615_v48  ;;  %v1616_v0 = vsel %vm1500_vm1, %v1611_v58, %v1615_v48  ;;  %v777_v41 = vrot.slane %v772_v34, 4  ;;  %v785_v44 = vld [vmem:[#allocation2 + $0x98] sm:$0x1]  ;;  %v16326_v54 = vld [vmem:[#allocation2 + $0x30] sm:$0xff]  }
  0x90   : > { %14848 = vmatprep.subr.bf16.mxu0 %v16306_v63  ;;  %v16328_v48 = vld [vmem:[#allocation2 + $0x38] sm:$0xff]  }
  0x91   : > { %v1608_v53 = vsel %vm1500_vm1, %v1603_v46, %v1607_v10  ;;  %v1624_v2 = vsel %vm1500_vm1, %v1619_v59, %v1623_v61  ;;  %v786_v46 = vsel %vm17292_vm0, %v777_v41, %v785_v44  ;;  %v16324_v10 = vld [vmem:[%s19043_s1 + $0xc8] sm:$0xff]   ;;  %v2161_v58 = vrot.slane %v16328_v48, 1  ;;  %v16333_v59 = vld [vmem:[%s19043_s1 + $0xe0] sm:$0xff]   ;;  %v16344_v41 = vld [vmem:[#allocation2 + $0x90] ss:$0 sps:$4 sm:$0x11]  }
  0x92   : > { %14813 = vmatmul.mubr.bf16.gmra.mrb[8].mxu0 %v1552_v1  ;;  %v1625_v1 = vshrl.u32 %v16313_v47, 16  ;;  %v16325_v47 = vld [vmem:[#allocation2 + $0x28] sm:$0xff]   ;;  %787 = vst [vmem:[#allocation2 + $0x98] sm:$0x1] %v786_v46  ;;  %v2183_v46 = vrot.slane %v16344_v41, 1 }
  0x93   : > { %14816 = vmatprep.mubr.bf16.mxu0 %v1560_v4  ;;  %14849 = vmatpush3.bf16.msra.mxu0 %v16306_v63  ;;  %v1629_v63 = vshll.u32 %v16314_v57, 16  ;;  %v1637_v4 = vshll.u32 %v16315_v62, 16  ;;  %v2159_v57 = vrot.slane %v16326_v54, 1  ;;  %v16331_v62 = vld [vmem:[#allocation2 + $0x48] sm:$0xff]  }
  0x94   : > { %14850 = vmatprep.subr.bf16.mxu0 %v16309_v7  ;;  %v1627_v6 = vor.u32 %v1625_v1, %v1623_v61  ;;  %v16329_v61 = vld [vmem:[#allocation2 + $0x40] sm:$0xff]   ;;  %v16336_v1 = vld [vmem:[%s19043_s1 + $0xe8] sm:$0xff]  }
  0x95   : > { %v1639_v9 = vrot.slane %v1637_v4, 1  ;;  %v16339_v4 = vld [vmem:[%s19043_s1 + $0xf0] sm:$0xff]   ;;  %v16350_v54 = vld [vmem:[#allocation2 + $0x28] sm:$0xff]  }
  0x96   : > { %v16372_v41 = vld [vmem:[#allocation2 + $0x8] sm:$0xfe]  }
  0x97   : > { %14851 = vmatpush3.bf16.msra.mxu0 %v16309_v7  ;;  %v1631_v7 = vrot.slane %v1629_v63, 1  ;;  %v1643_v20 = vor.u32 %v1641_v11, %v1639_v9  ;;  %v2167_v11 = vrot.slane %v16332_v5, 1  ;;  %v16360_v5 = vld [vmem:[%s19043_s1 + $0x120] sm:$0xff]  }
  0x98   : > { %14852 = vmatprep.subr.bf16.mxu0 %v16312_v15 }
  0x99   : > { %v1635_v8 = vor.u32 %v1633_v3, %v1631_v7  ;;  %v1632_v16 = vsel %vm1500_vm1, %v1627_v6, %v1631_v7  ;;  %v1648_v32 = vsel %vm1500_vm1, %v1643_v20, %v1647_v21  ;;  %v2165_v3 = vrot.slane %v16331_v62, 1  ;;  %v16334_v7 = vld [vmem:[#allocation2 + $0x58] sm:$0xff]   ;;  %v16337_v20 = vld [vmem:[#allocation2 + $0x68] sm:$0xff]  }
  0x9a   : > { %14817 = vmatmul.mubr.bf16.gmra.mrb[12].mxu0 %v1568_v19  ;;  %v2169_v12 = vrot.slane %v16334_v7, 1  ;;  %v16353_v62 = vld [vmem:[#allocation2 + $0x38] sm:$0xff]   ;;  %v16356_v7 = vld [vmem:[#allocation2 + $0x48] sm:$0xff]  }
  0x9b   : > { %14820 = vmatprep.mubr.bf16.mxu0 %v1576_v23  ;;  %14853 = vmatpush3.bf16.msra.mxu0 %v16312_v15  ;;  %v16319_v15 = vld [vmem:[#allocation2 + $0x8] sm:$0xff]   ;;  %v1640_v19 = vsel %vm1500_vm1, %v1635_v8, %v1639_v9  ;;  %v2148_v23 = vrot.slane %v16318_v14, 1  ;;  %v16343_v9 = vld [vmem:[%s19043_s1 + $0xf8] sm:$0xff]   ;;  %v16348_v14 = vld [vmem:[%s19043_s1 + $0x100] sm:$0xff]  }
  0x9c   : > { %14854 = vmatprep.subr.bf16.mxu0 %v16316_v25  ;;  %v2149_v24 = vrot.slane %v16319_v15, 1  ;;  %v16335_v15 = vld [vmem:[#allocation2 + $0x60] sm:$0xff]  }
  0x9d   : > { %v2171_v21 = vrot.slane %v16335_v15, 1  ;;  %v16366_v15 = vld [vmem:[%s19043_s1 + $0x130] sm:$0xff]  }
  0x9e   : > { %v2150_v33 = vsel %vm2147_vm2, %v2148_v23, %v2149_v24  ;;  %v2173_v23 = vrot.slane %v16337_v20, 1  ;;  %v16370_v20 = vld [vmem:[%s19043_s1 + $0x138] sm:$0xff]  }
  0x9f   : > { %14855 = vmatpush3.bf16.msra.mxu0 %v16316_v25  ;;  %v16320_v25 = vld [vmem:[#allocation2 + $0x10] sm:$0xff]  }
  0xa0   : > { %14892 = vmatprep.subr.bf16.mxu0 %v17464_v35  ;;  %v2174_v27 = vsel %vm2147_vm2, %v2171_v21, %v2173_v23 }
  0xa2   : > { %14821 = vmatmul.mubr.bf16.gmra.mrb[16].mxu0 %v1584_v37  ;;  %v768_v37 = vrot.slane %v17439_v49, 4 }
  0xa3   : > { %14824 = vmatprep.mubr.bf16.mxu0 %v1592_v39  ;;  %v2151_v39 = vrot.slane %v16320_v25, 1  ;;  %v2172_v25 = vsel %vm2147_vm2, %v2169_v12, %v2171_v21 }
  0xa4   : > { %v776_v43 = vsel %vm17300_vm9, %v768_v37, %v775_v38  ;;  %v16342_v37 = vld [vmem:[#allocation2 + $0x88] sm:$0xff]   ;;  %vm4958_vm9 = vsmask.f32 5376 }
  0xa5   : > { %784 = vst [vmem:[#allocation2 + $0x94] sm:$0xf] %v776_v43  ;;  %v2152_v49 = vsel %vm2147_vm2, %v2149_v24, %v2151_v39  ;;  %v2154_v50 = vsel %vm2147_vm2, %v2151_v39, %v2153_v42  ;;  %v16338_v24 = vld [vmem:[#allocation2 + $0x70] sm:$0xff]   ;;  %v2181_v39 = vrot.slane %v16342_v37, 1  ;;  %v16365_v37 = vld [vmem:[#allocation2 + $0x78] sm:$0xff]  }
  0xa6   : > { %v2175_v29 = vrot.slane %v16338_v24, 1 }
  0xa8   : > { %v2176_v34 = vsel %vm2147_vm2, %v2173_v23, %v2175_v29 }
  0xaa   : > { %14825 = vmatmul.mubr.bf16.gmra.mrb[20].mxu0 %v1600_v51  ;;  %v2157_v51 = vrot.slane %v16325_v47, 1  ;;  %v2684_v47 = vrot.slane %v16346_v45, 1  ;;  %v2710_v45 = vrot.slane %v16365_v37, 1 }
  0xab   : > { %14828 = vmatprep.mubr.bf16.mxu0 %v1608_v53  ;;  %v2156_v53 = vsel %vm2147_vm2, %v2153_v42, %v2155_v31  ;;  %v16345_v42 = vld [vmem:[#allocation2 + $0x8] sm:$0xfe]  }
  0xac   : > { %v2158_v56 = vsel %vm2147_vm2, %v2155_v31, %v2157_v51  ;;  %v2160_v63 = vsel %vm2147_vm2, %v2157_v51, %v2159_v57  ;;  %v16349_v51 = vld [vmem:[#allocation2 + $0x20] sm:$0xff]  }
  0xb2   : > { %14829 = vmatmul.mubr.bf16.gmra.mrb[24].mxu0 %v1616_v0  ;;  %v2162_v0 = vsel %vm2147_vm2, %v2159_v57, %v2161_v58  ;;  %v16352_v57 = vld [vmem:[#allocation2 + $0x30] sm:$0xff]  }
  0xb3   : > { %14832 = vmatprep.mubr.bf16.mxu0 %v1624_v2  ;;  %v2163_v2 = vrot.slane %v16329_v61, 1  ;;  %v16354_v61 = vld [vmem:[%s19043_s1 + $0x110] sm:$0xff]  }
  0xb5   : > { %v2164_v6 = vsel %vm2147_vm2, %v2161_v58, %v2163_v2  ;;  %v2166_v8 = vsel %vm2147_vm2, %v2163_v2, %v2165_v3  ;;  %v2690_v58 = vrot.slane %v16350_v54, 1 }
  0xba   : > { %14833 = vmatmul.mubr.bf16.gmra.mrb[28].mxu0 %v1632_v16  ;;  %v2168_v16 = vsel %vm2147_vm2, %v2165_v3, %v2167_v11  ;;  %v2694_v3 = vrot.slane %v16353_v62, 1 }
  0xbb   : > { %14836 = vmatprep.mubr.bf16.mxu0 %v1640_v19  ;;  %v2170_v19 = vsel %vm2147_vm2, %v2167_v11, %v2169_v12  ;;  %v2698_v12 = vrot.slane %v16356_v7, 1 }
  0xc2   : > { %14837 = vmatmul.mubr.bf16.gmra.mrb[32].mxu0 %v1648_v32  ;;  %v2177_v32 = vrot.slane %v16340_v28, 1  ;;  %v16362_v28 = vld [vmem:[#allocation2 + $0x68] sm:$0xff]  }
  0xc3   : > { %14856 = vmatprep.mubr.bf16.mxu0 %v2150_v33  ;;  %v16341_v33 = vld [vmem:[#allocation2 + $0x80] sm:$0xff]  }
  0xc4   : > { %v2178_v36 = vsel %vm2147_vm2, %v2175_v29, %v2177_v32  ;;  %v2179_v38 = vrot.slane %v16341_v33, 1  ;;  %v16364_v29 = vld [vmem:[#allocation2 + $0x70] sm:$0xff]  }
  0xc6   : > { %v2180_v43 = vsel %vm2147_vm2, %v2177_v32, %v2179_v38  ;;  %v2182_v44 = vsel %vm2147_vm2, %v2179_v38, %v2181_v39  ;;  %v16367_v38 = vld [vmem:[#allocation2 + $0x80] sm:$0xff]  }
  0xca   : > { %14857 = vmatmul.mubr.bf16.vlgmr.msra.gmra.mrb[0].mxu0 %v2152_v49  ;;  %v16347_v49 = vld [vmem:[#allocation2 + $0x18] sm:$0xff]  }
  0xcb   : > { %14893 = vmatpush3.bf16.msra.mxu0 %v17464_v35  ;;  %14860 = vmatprep.mubr.bf16.mxu0 %v2154_v50  ;;  %v16330_v35 = vld [vmem:[%s19043_s1 + $0xd8] sm:$0xff]   ;;  %v2184_v50 = vsel %vm2147_vm2, %v2181_v39, %v2183_v46  ;;  %v16368_v39 = vld [vmem:[#allocation2 + $0x88] sm:$0xff]   ;;  %v2712_v46 = vrot.slane %v16367_v38, 1 }
  0xcc   : > { %14894 = vmatprep.subr.bf16.mxu0 %v16324_v10 }
  0xcf   : > { %14895 = vmatpush3.bf16.msra.mxu0 %v16324_v10  ;;  %v2683_v10 = vrot.slane %v16345_v42, 1 }
  0xd0   : > { %14896 = vmatprep.subr.bf16.mxu0 %v16327_v52 }
  0xd1   : > { %v2685_v31 = vsel %vm2147_vm2, %v2683_v10, %v2684_v47  ;;  %v2714_v10 = vrot.slane %v16368_v39, 1 }
  0xd2   : > { %14861 = vmatmul.mubr.bf16.gmra.mrb[4].mxu0 %v2156_v53  ;;  %v2688_v53 = vrot.slane %v16349_v51, 1  ;;  %v16374_v51 = vld [vmem:[#allocation2 + $0x18] sm:$0xff]  }
  0xd3   : > { %14864 = vmatprep.mubr.bf16.mxu0 %v2158_v56  ;;  %14897 = vmatpush3.bf16.msra.mxu0 %v16327_v52  ;;  %v2686_v52 = vrot.slane %v16347_v49, 1  ;;  %v16351_v56 = vld [vmem:[%s19043_s1 + $0x108] sm:$0xff]   ;;  %v16371_v49 = vld [vmem:[#allocation2 + $0x98] ss:$0 sps:$4 sm:$0x11]  }
  0xd4   : > { %14898 = vmatprep.subr.bf16.mxu0 %v16330_v35 }
  0xd5   : > { %v2687_v48 = vsel %vm2147_vm2, %v2684_v47, %v2686_v52  ;;  %v16369_v47 = vld [vmem:[#allocation2 + $0x90] sm:$0xff]  }
  0xd7   : > { %14899 = vmatpush3.bf16.msra.mxu0 %v16330_v35  ;;  %v2689_v35 = vsel %vm2147_vm2, %v2686_v52, %v2688_v53 }
  0xd8   : > { %14900 = vmatprep.subr.bf16.mxu0 %v16333_v59 }
  0xda   : > { %14865 = vmatmul.mubr.bf16.gmra.mrb[8].mxu0 %v2160_v63  ;;  %v16355_v63 = vld [vmem:[#allocation2 + $0x40] sm:$0xff]  }
  0xdb   : > { %14868 = vmatprep.mubr.bf16.mxu0 %v2162_v0  ;;  %14901 = vmatpush3.bf16.msra.mxu0 %v16333_v59  ;;  %v2692_v59 = vrot.slane %v16352_v57, 1  ;;  %v16357_v0 = vld [vmem:[%s19043_s1 + $0x118] sm:$0xff]   ;;  %v2718_v57 = vrot.slane %v16371_v49, 1 }
  0xdc   : > { %14902 = vmatprep.subr.bf16.mxu0 %v16336_v1 }
  0xdd   : > { %v2693_v2 = vsel %vm2147_vm2, %v2690_v58, %v2692_v59 }
  0xdf   : > { %14903 = vmatpush3.bf16.msra.mxu0 %v16336_v1  ;;  %v2691_v1 = vsel %vm2147_vm2, %v2688_v53, %v2690_v58  ;;  %v3237_v58 = vshrl.u32 %v16374_v51, 16 }
  0xe0   : > { %14904 = vmatprep.subr.bf16.mxu0 %v16339_v4 }
  0xe2   : > { %14869 = vmatmul.mubr.bf16.gmra.mrb[12].mxu0 %v2164_v6  ;;  %v16358_v6 = vld [vmem:[#allocation2 + $0x50] sm:$0xff]  }
  0xe3   : > { %14872 = vmatprep.mubr.bf16.mxu0 %v2166_v8  ;;  %14905 = vmatpush3.bf16.msra.mxu0 %v16339_v4  ;;  %v2696_v4 = vrot.slane %v16355_v63, 1  ;;  %v16363_v8 = vld [vmem:[%s19043_s1 + $0x128] sm:$0xff]  }
  0xe4   : > { %14906 = vmatprep.subr.bf16.mxu0 %v16343_v9 }
  0xe5   : > { %v2697_v11 = vsel %vm2147_vm2, %v2694_v3, %v2696_v4  ;;  %v2699_v21 = vsel %vm2147_vm2, %v2696_v4, %v2698_v12  ;;  %v2715_v4 = vsel %vm2147_vm2, %v2712_v46, %v2714_v10 }
  0xe7   : > { %14907 = vmatpush3.bf16.msra.mxu0 %v16343_v9  ;;  %v2695_v9 = vsel %vm2147_vm2, %v2692_v59, %v2694_v3  ;;  %v3240_v59 = vshll.u32 %v16374_v51, 16  ;;  %v16377_v3 = vld [vmem:[#allocation2 + $0x28] sm:$0xff]  }
  0xe8   : > { %14944 = vmatprep.subr.bf16.mxu0 %v16348_v14 }
  0xea   : > { %14873 = vmatmul.mubr.bf16.gmra.mrb[16].mxu0 %v2168_v16  ;;  %v16359_v16 = vld [vmem:[#allocation2 + $0x58] sm:$0xff]  }
  0xeb   : > { %14876 = vmatprep.mubr.bf16.mxu0 %v2170_v19  ;;  %v16361_v19 = vld [vmem:[#allocation2 + $0x60] sm:$0xff]   ;;  %v2702_v24 = vrot.slane %v16359_v16, 1 }
  0xf2   : > { %14877 = vmatmul.mubr.bf16.gmra.mrb[20].mxu0 %v2172_v25  ;;  %v2704_v25 = vrot.slane %v16361_v19, 1 }
  0xf3   : > { %14880 = vmatprep.mubr.bf16.mxu0 %v2174_v27  ;;  %v17558_v27 = vld [vmem:[%s19043_s1 + $0x140] sm:$0xff]  }
  0xf4   : > { %v2705_v33 = vsel %vm2147_vm2, %v2702_v24, %v2704_v25 }
  0xfa   : > { %14881 = vmatmul.mubr.bf16.gmra.mrb[24].mxu0 %v2176_v34  ;;  %v2706_v34 = vrot.slane %v16362_v28, 1 }
  0xfb   : > { %14884 = vmatprep.mubr.bf16.mxu0 %v2178_v36  ;;  %v2708_v36 = vrot.slane %v16364_v29, 1 }
  0xfc   : > { %v2707_v42 = vsel %vm2147_vm2, %v2704_v25, %v2706_v34 }
  0xfd   : > { %v2711_v54 = vsel %vm2147_vm2, %v2708_v36, %v2710_v45 }
 0x102   : > { %14885 = vmatmul.mubr.bf16.gmra.mrb[28].mxu0 %v2180_v43  ;;  %v16373_v43 = vld [vmem:[#allocation2 + $0x10] sm:$0xff]  }
 0x103   : > { %14888 = vmatprep.mubr.bf16.mxu0 %v2182_v44  ;;  %v2709_v44 = vsel %vm2147_vm2, %v2706_v34, %v2708_v36  ;;  %v3228_v52 = vshrl.u32 %v16373_v43, 16  ;;  %v3231_v53 = vshll.u32 %v16373_v43, 16  ;;  %v16378_v43 = vld [vmem:[%s19043_s1 + $0x148] sm:$0xff]  }
 0x105   : > { %v3230_v63 = vrot.slane %v3228_v52, 1 }
 0x10a   : > { %14889 = vmatmul.mubr.bf16.gmra.mrb[32].mxu0 %v2184_v50  ;;  %v3220_v50 = vshrl.u32 %v16372_v41, 16 }
 0x10b   : > { %14908 = vmatprep.mubr.bf16.mxu0 %v2685_v31  ;;  %v3223_v31 = vshll.u32 %v16372_v41, 16 }
 0x10d   : > { %v3225_v62 = vrot.slane %v3223_v31, 2 }
 0x112   : > { %14909 = vmatmul.mubr.bf16.vlgmr.msra.gmra.mrb[0].mxu0 %v2687_v48  ;;  %v2713_v48 = vsel %vm2147_vm2, %v2710_v45, %v2712_v46  ;;  %v16385_v45 = vld [vmem:[#allocation2 + $0x50] sm:$0xff]  }
 0x113   : > { %14945 = vmatpush3.bf16.msra.mxu0 %v16348_v14  ;;  %14912 = vmatprep.mubr.bf16.mxu0 %v2689_v35  ;;  %v2700_v14 = vrot.slane %v16358_v6, 1  ;;  %v2716_v35 = vrot.slane %v16369_v47, 1  ;;  %v3239_v6 = vrot.slane %v3237_v58, 1  ;;  %v16388_v58 = vld [vmem:[#allocation2 + $0x60] sm:$0xff]  }
 0x114   : > { %14946 = vmatprep.subr.bf16.mxu0 %v16351_v56 }
 0x115   : > { %v2701_v23 = vsel %vm2147_vm2, %v2698_v12, %v2700_v14  ;;  %v2703_v32 = vsel %vm2147_vm2, %v2700_v14, %v2702_v24  ;;  %v2717_v7 = vsel %vm2147_vm2, %v2714_v10, %v2716_v35  ;;  %v16382_v24 = vld [vmem:[#allocation2 + $0x40] sm:$0xff]  }
 0x116   : > { %v3282_v39 = vshrl.u32 %v16382_v24, 16  ;;  %v3285_v41 = vshll.u32 %v16382_v24, 16  ;;  %v16391_v24 = vld [vmem:[#allocation2 + $0x70] sm:$0xff]  }
 0x117   : > { %14947 = vmatpush3.bf16.msra.mxu0 %v16351_v56  ;;  %v16376_v56 = vld [vmem:[#allocation2 + $0x20] sm:$0xff]  }
 0x118   : > { %14948 = vmatprep.subr.bf16.mxu0 %v16354_v61  ;;  %v3284_v31 = vrot.slane %v3282_v39, 1  ;;  %v17604_v39 = vld [vmem:[%s19043_s1 + $0x180] sm:$0xff]  }
 0x11a   : > { %14913 = vmatmul.mubr.bf16.gmra.mrb[4].mxu0 %v2691_v1  ;;  %v3246_v1 = vshrl.u32 %v16376_v56, 16 }
 0x11b   : > { %14916 = vmatprep.mubr.bf16.mxu0 %v2693_v2  ;;  %14949 = vmatpush3.bf16.msra.mxu0 %v16354_v61  ;;  %v3222_v61 = vrot.slane %v3220_v50, 1  ;;  %v3249_v2 = vshll.u32 %v16376_v56, 16  ;;  %v16381_v50 = vld [vmem:[%s19043_s1 + $0x150] sm:$0xff]   ;;  %v16386_v56 = vld [vmem:[#allocation2 + $0x58] sm:$0xff]  }
 0x11c   : > { %14950 = vmatprep.subr.bf16.mxu0 %v16357_v0 }
 0x11d   : > { %v3226_v12 = vor.u32 %v3225_v62, %v3222_v61  ;;  %v3251_v16 = vrot.slane %v3249_v2, 2  ;;  %v3312_v2 = vshll.u32 %v16386_v56, 16 }
 0x11f   : > { %14951 = vmatpush3.bf16.msra.mxu0 %v16357_v0  ;;  %v3233_v0 = vrot.slane %v3231_v53, 2 }
 0x120   : > { %14952 = vmatprep.subr.bf16.mxu0 %v16360_v5 }
 0x121   : > { %v3234_v14 = vor.u32 %v3233_v0, %v3230_v63  ;;  %v3309_v63 = vshrl.u32 %v16386_v56, 16 }
 0x122   : > { %14917 = vmatmul.mubr.bf16.gmra.mrb[8].mxu0 %v2695_v9  ;;  %v3255_v9 = vshrl.u32 %v16377_v3, 16 }
 0x123   : > { %14920 = vmatprep.mubr.bf16.mxu0 %v2697_v11  ;;  %14953 = vmatpush3.bf16.msra.mxu0 %v16360_v5  ;;  %v16379_v5 = vld [vmem:[#allocation2 + $0x30] sm:$0xff]   ;;  %v3258_v11 = vshll.u32 %v16377_v3, 16  ;;  %v3235_v25 = vsel %vm3218_vm8, %v3226_v12, %v3234_v14 }
 0x124   : > { %14954 = vmatprep.subr.bf16.mxu0 %v16363_v8  ;;  %v3264_v19 = vshrl.u32 %v16379_v5, 16  ;;  %v3257_v28 = vrot.slane %v3255_v9, 1 }
 0x125   : > { %v3260_v29 = vrot.slane %v3258_v11, 2 }
 0x126   : > { %v3266_v37 = vrot.slane %v3264_v19, 1 }
 0x127   : > { %14955 = vmatpush3.bf16.msra.mxu0 %v16363_v8  ;;  %v3242_v8 = vrot.slane %v3240_v59, 2  ;;  %v3261_v49 = vor.u32 %v3260_v29, %v3257_v28 }
 0x128   : > { %14956 = vmatprep.subr.bf16.mxu0 %v16366_v15 }
 0x12a   : > { %14921 = vmatmul.mubr.bf16.gmra.mrb[12].mxu0 %v2699_v21  ;;  %v16380_v21 = vld [vmem:[#allocation2 + $0x38] sm:$0xff]  }
 0x12b   : > { %14924 = vmatprep.mubr.bf16.mxu0 %v2701_v23  ;;  %14957 = vmatpush3.bf16.msra.mxu0 %v16366_v15  ;;  %v3248_v15 = vrot.slane %v3246_v1, 1  ;;  %v2719_v23 = vsel %vm2147_vm2, %v2716_v35, %v2718_v57  ;;  %v3276_v34 = vshll.u32 %v16380_v21, 16  ;;  %v3303_v35 = vshll.u32 %v16385_v45, 16  ;;  %v16384_v57 = vld [vmem:[%s19043_s1 + $0x158] sm:$0xff]  }
 0x12c   : > { %14958 = vmatprep.subr.bf16.mxu0 %v16370_v20 }
 0x12d   : > { %v3252_v36 = vor.u32 %v3251_v16, %v3248_v15  ;;  %v3278_v47 = vrot.slane %v3276_v34, 2  ;;  %v3314_v15 = vrot.slane %v3312_v2, 2  ;;  %v16393_v16 = vld [vmem:[%s19043_s1 + $0x170] sm:$0xff]  }
 0x12f   : > { %14959 = vmatpush3.bf16.msra.mxu0 %v16370_v20  ;;  %v3267_v20 = vshll.u32 %v16379_v5, 16  ;;  %v16387_v5 = vld [vmem:[%s19043_s1 + $0x160] sm:$0xff]  }
 0x130   : > { %14996 = vmatprep.subr.bf16.mxu0 %v17558_v27 }
 0x131   : > { %v3269_v38 = vrot.slane %v3267_v20, 2 }
 0x132   : > { %14925 = vmatmul.mubr.bf16.gmra.mrb[16].mxu0 %v2703_v32  ;;  %v3243_v32 = vor.u32 %v3242_v8, %v3239_v6  ;;  %v3321_v6 = vshll.u32 %v16388_v58, 16  ;;  %v16390_v8 = vld [vmem:[%s19043_s1 + $0x168] sm:$0xff]  }
 0x133   : > { %14928 = vmatprep.mubr.bf16.mxu0 %v2705_v33  ;;  %v3273_v33 = vshrl.u32 %v16380_v21, 16  ;;  %v3270_v53 = vor.u32 %v3269_v38, %v3266_v37  ;;  %v3336_v37 = vshrl.u32 %v16391_v24, 16  ;;  %v3339_v38 = vshll.u32 %v16391_v24, 16  ;;  %v16400_v24 = vld [vmem:[#allocation2 + $0x10] sm:$0xff]  }
 0x134   : > { %v3253_v46 = vsel %vm3218_vm8, %v3243_v32, %v3252_v36  ;;  %v3323_v21 = vrot.slane %v3321_v6, 2 }
 0x135   : > { %v3275_v10 = vrot.slane %v3273_v33, 1  ;;  %v3271_v59 = vsel %vm3218_vm8, %v3261_v49, %v3270_v53 }
 0x137   : > { %v3279_v0 = vor.u32 %v3278_v47, %v3275_v10  ;;  %v3341_v10 = vrot.slane %v3339_v38, 2  ;;  %v16394_v47 = vld [vmem:[#allocation2 + $0x80] sm:$0xff]  }
 0x139   : > { %v3280_v9 = vsel %vm3218_vm8, %v3270_v53, %v3279_v0  ;;  %v3357_v53 = vshll.u32 %v16394_v47, 16 }
 0x13a   : > { %14929 = vmatmul.mubr.bf16.gmra.mrb[20].mxu0 %v2707_v42  ;;  %v16383_v42 = vld [vmem:[#allocation2 + $0x48] sm:$0xff]  }
 0x13b   : > { %14932 = vmatprep.mubr.bf16.mxu0 %v2709_v44  ;;  %v3244_v44 = vsel %vm3218_vm8, %v3234_v14, %v3243_v32  ;;  %v3291_v51 = vshrl.u32 %v16383_v42, 16  ;;  %v3294_v52 = vshll.u32 %v16383_v42, 16  ;;  %v3311_v14 = vrot.slane %v3309_v63, 1 }
 0x13d   : > { %v3293_v61 = vrot.slane %v3291_v51, 1  ;;  %v3296_v62 = vrot.slane %v3294_v52, 2  ;;  %v3315_v32 = vor.u32 %v3314_v15, %v3311_v14  ;;  %v3354_v52 = vshrl.u32 %v16394_v47, 16  ;;  %v16408_v47 = vld [vmem:[%s19043_s1 + $0x190] sm:$0xff]  }
 0x13f   : > { %v3297_v12 = vor.u32 %v3296_v62, %v3293_v61 }
 0x142   : > { %14933 = vmatmul.mubr.bf16.gmra.mrb[24].mxu0 %v2711_v54  ;;  %v3287_v54 = vrot.slane %v3285_v41, 2 }
 0x143   : > { %14936 = vmatprep.mubr.bf16.mxu0 %v2713_v48  ;;  %v3300_v48 = vshrl.u32 %v16385_v45, 16 }
 0x144   : > { %v3288_v3 = vor.u32 %v3287_v54, %v3284_v31 }
 0x145   : > { %v3302_v1 = vrot.slane %v3300_v48, 1 }
 0x146   : > { %v3289_v11 = vsel %vm3218_vm8, %v3279_v0, %v3288_v3  ;;  %v3298_v28 = vsel %vm3218_vm8, %v3288_v3, %v3297_v12 }
 0x14a   : > { %14937 = vmatmul.mubr.bf16.gmra.mrb[28].mxu0 %v2715_v4  ;;  %v3305_v4 = vrot.slane %v3303_v35, 2  ;;  %v16395_v35 = vld [vmem:[#allocation2 + $0x88] sm:$0xff]  }
 0x14b   : > { %14940 = vmatprep.mubr.bf16.mxu0 %v2717_v7  ;;  %v3318_v7 = vshrl.u32 %v16388_v58, 16  ;;  %v3359_v58 = vrot.slane %v3357_v53, 2  ;;  %v3363_v62 = vshrl.u32 %v16395_v35, 16  ;;  %v3366_v63 = vshll.u32 %v16395_v35, 16 }
 0x14c   : > { %v3306_v19 = vor.u32 %v3305_v4, %v3302_v1 }
 0x14d   : > { %v3320_v20 = vrot.slane %v3318_v7, 1  ;;  %v3365_v4 = vrot.slane %v3363_v62, 1  ;;  %v16398_v7 = vld [vmem:[#allocation2 + $0x98] ss:$0 sps:$4 sm:$0x33]  }
 0x14e   : > { %v3307_v29 = vsel %vm3218_vm8, %v3297_v12, %v3306_v19  ;;  %v3316_v41 = vsel %vm3218_vm8, %v3306_v19, %v3315_v32  ;;  %v3381_v12 = vshrl.u32 %v16398_v7, 16  ;;  %v3384_v14 = vshll.u32 %v16398_v7, 16 }
 0x150   : > { %v3383_v19 = vrot.slane %v3381_v12, 1 }
 0x152   : > { %14941 = vmatmul.mubr.bf16.gmra.mrb[32].mxu0 %v2719_v23  ;;  %v16389_v23 = vld [vmem:[#allocation2 + $0x68] sm:$0xff]  }
 0x153   : > { %14960 = vmatprep.mubr.bf16.mxu0 %v3235_v25  ;;  %v16397_v25 = vld [vmem:[%s19043_s1 + $0x178] sm:$0xff]   ;;  %v3327_v33 = vshrl.u32 %v16389_v23, 16  ;;  %v3330_v34 = vshll.u32 %v16389_v23, 16  ;;  %v16399_v23 = vld [vmem:[#allocation2 + $0x8] sm:$0xfc]  }
 0x155   : > { %v3329_v42 = vrot.slane %v3327_v33, 1  ;;  %v16401_v33 = vld [vmem:[#allocation2 + $0x18] sm:$0xff]  }
 0x15a   : > { %14961 = vmatmul.mubr.bf16.vlgmr.msra.gmra.mrb[0].mxu0 %v3244_v44  ;;  %v16392_v44 = vld [vmem:[#allocation2 + $0x78] sm:$0xff]  }
 0x15b   : > { %14997 = vmatpush3.bf16.msra.mxu0 %v17558_v27  ;;  %14964 = vmatprep.mubr.bf16.mxu0 %v3253_v46  ;;  %v3262_v27 = vsel %vm3218_vm8, %v3252_v36, %v3261_v49  ;;  %v3324_v36 = vor.u32 %v3323_v21, %v3320_v20  ;;  %v3338_v46 = vrot.slane %v3336_v37, 1  ;;  %v3348_v31 = vshll.u32 %v16392_v44, 16 }
 0x15c   : > { %14998 = vmatprep.subr.bf16.mxu0 %v16378_v43  ;;  %v3386_v20 = vrot.slane %v3384_v14, 2  ;;  %v3891_v37 = vrot.slane %v16401_v33, 2 }
 0x15d   : > { %v3325_v45 = vsel %vm3218_vm8, %v3315_v32, %v3324_v36  ;;  %v3342_v51 = vor.u32 %v3341_v10, %v3338_v46  ;;  %v3350_v48 = vrot.slane %v3348_v31, 2 }
 0x15f   : > { %14999 = vmatpush3.bf16.msra.mxu0 %v16378_v43  ;;  %v3332_v43 = vrot.slane %v3330_v34, 2 }
 0x160   : > { %15000 = vmatprep.subr.bf16.mxu0 %v16381_v50 }
 0x161   : > { %v3333_v49 = vor.u32 %v3332_v43, %v3329_v42  ;;  %v16404_v42 = vld [vmem:[#allocation2 + $0x28] sm:$0xff]  }
 0x162   : > { %14965 = vmatmul.mubr.bf16.gmra.mrb[4].mxu0 %v3262_v27  ;;  %v3356_v27 = vrot.slane %v3354_v52, 1  ;;  %v3895_v46 = vrot.slane %v16404_v42, 2 }
 0x163   : > { %14968 = vmatprep.mubr.bf16.mxu0 %v3271_v59  ;;  %15001 = vmatpush3.bf16.msra.mxu0 %v16381_v50  ;;  %v3345_v50 = vshrl.u32 %v16392_v44, 16  ;;  %v3334_v54 = vsel %vm3218_vm8, %v3324_v36, %v3333_v49  ;;  %v16396_v59 = vld [vmem:[#allocation2 + $0x90] sm:$0xff]   ;;  %v16403_v36 = vld [vmem:[#allocation2 + $0x20] sm:$0xff]   ;;  %v16405_v44 = vld [vmem:[%s19043_s1 + $0x188] sm:$0xff]  }
 0x164   : > { %15002 = vmatprep.subr.bf16.mxu0 %v16384_v57  ;;  %v3360_v0 = vor.u32 %v3359_v58, %v3356_v27  ;;  %v3372_v1 = vshrl.u32 %v16396_v59, 16  ;;  %v3375_v2 = vshll.u32 %v16396_v59, 16  ;;  %v3893_v38 = vrot.slane %v16403_v36, 2  ;;  %v16417_v27 = vld [vmem:[%s19043_s1 + $0x1a8] sm:$0xff]  }
 0x165   : > { %v3347_v56 = vrot.slane %v3345_v50, 1  ;;  %v16407_v50 = vld [vmem:[#allocation2 + $0x38] sm:$0xff]  }
 0x166   : > { %v3894_v43 = vsel %vm3887_vm14, %v3891_v37, %v3893_v38  ;;  %v3899_v52 = vrot.slane %v16407_v50, 2 }
 0x167   : > { %15003 = vmatpush3.bf16.msra.mxu0 %v16384_v57  ;;  %v3343_v57 = vsel %vm3218_vm8, %v3333_v49, %v3342_v51  ;;  %v3351_v61 = vor.u32 %v3350_v48, %v3347_v56  ;;  %v3896_v49 = vsel %vm3887_vm14, %v3893_v38, %v3895_v46  ;;  %v16410_v48 = vld [vmem:[#allocation2 + $0x48] sm:$0xff]   ;;  %v16427_v38 = vld [vmem:[#allocation2 + $0x18] sm:$0xff]  }
 0x168   : > { %15004 = vmatprep.subr.bf16.mxu0 %v16387_v5  ;;  %v3903_v58 = vrot.slane %v16410_v48, 2 }
 0x169   : > { %v3352_v3 = vsel %vm3218_vm8, %v3342_v51, %v3351_v61  ;;  %v3361_v6 = vsel %vm3218_vm8, %v3351_v61, %v3360_v0  ;;  %v16409_v51 = vld [vmem:[#allocation2 + $0x40] sm:$0xff]   ;;  %v16420_v61 = vld [vmem:[%s19043_s1 + $0x1b0] sm:$0xff]  }
 0x16a   : > { %14969 = vmatmul.mubr.bf16.gmra.mrb[8].mxu0 %v3280_v9  ;;  %v3377_v9 = vrot.slane %v3375_v2, 2  ;;  %v3901_v53 = vrot.slane %v16409_v51, 2  ;;  %v16424_v2 = vld [vmem:[%s19043_s1 + $0x1b8] sm:$0xff]  }
 0x16b   : > { %14972 = vmatprep.mubr.bf16.mxu0 %v3289_v11  ;;  %15005 = vmatpush3.bf16.msra.mxu0 %v16387_v5  ;;  %v3368_v5 = vrot.slane %v3366_v63, 2  ;;  %v16413_v63 = vld [vmem:[#allocation2 + $0x58] sm:$0xff]  }
 0x16c   : > { %15006 = vmatprep.subr.bf16.mxu0 %v16390_v8  ;;  %v3902_v35 = vsel %vm3887_vm14, %v3899_v52, %v3901_v53  ;;  %v3904_v62 = vsel %vm3887_vm14, %v3901_v53, %v3903_v58 }
 0x16d   : > { %v3369_v11 = vor.u32 %v3368_v5, %v3365_v4  ;;  %v16429_v5 = vld [vmem:[%s19043_s1 + $0x1c0] sm:$0xff]  }
 0x16f   : > { %15007 = vmatpush3.bf16.msra.mxu0 %v16390_v8  ;;  %v3374_v8 = vrot.slane %v3372_v1, 1  ;;  %v16415_v1 = vld [vmem:[#allocation2 + $0x60] sm:$0xff]  }
 0x170   : > { %15008 = vmatprep.subr.bf16.mxu0 %v16393_v16  ;;  %v3909_v4 = vrot.slane %v16415_v1, 2 }
 0x171   : > { %v3378_v15 = vor.u32 %v3377_v9, %v3374_v8  ;;  %v16418_v9 = vld [vmem:[#allocation2 + $0x70] sm:$0xff]  }
 0x172   : > { %14973 = vmatmul.mubr.bf16.gmra.mrb[12].mxu0 %v3298_v28  ;;  %v3888_v28 = vrot.slane %v16399_v23, 2  ;;  %v3913_v12 = vrot.slane %v16418_v9, 2 }
 0x173   : > { %14976 = vmatprep.mubr.bf16.mxu0 %v3307_v29  ;;  %15009 = vmatpush3.bf16.msra.mxu0 %v16393_v16  ;;  %v3370_v16 = vsel %vm3218_vm8, %v3360_v0, %v3369_v11  ;;  %v3379_v21 = vsel %vm3218_vm8, %v3369_v11, %v3378_v15  ;;  %v3889_v29 = vrot.slane %v16400_v24, 2  ;;  %v16422_v24 = vld [vmem:[#allocation2 + $0x88] sm:$0xff]  }
 0x174   : > { %15010 = vmatprep.subr.bf16.mxu0 %v16397_v25 }
 0x175   : > { %v3890_v34 = vsel %vm3887_vm14, %v3888_v28, %v3889_v29  ;;  %v16423_v28 = vld [vmem:[#allocation2 + $0x90] sm:$0xff]  }
 0x177   : > { %15011 = vmatpush3.bf16.msra.mxu0 %v16397_v25  ;;  %v3387_v25 = vor.u32 %v3386_v20, %v3383_v19  ;;  %v16421_v19 = vld [vmem:[#allocation2 + $0x80] sm:$0xff]  }
 0x178   : > { %15048 = vmatprep.subr.bf16.mxu0 %v17604_v39 }
 0x179   : > { %v3388_v32 = vsel %vm3218_vm8, %v3378_v15, %v3387_v25  ;;  %v16419_v15 = vld [vmem:[#allocation2 + $0x78] sm:$0xff]  }
 0x17a   : > { %14977 = vmatmul.mubr.bf16.gmra.mrb[16].mxu0 %v3316_v41  ;;  %v3892_v41 = vsel %vm3887_vm14, %v3889_v29, %v3891_v37  ;;  %v3915_v20 = vrot.slane %v16419_v15, 2  ;;  %v3919_v29 = vrot.slane %v16422_v24, 2  ;;  %v16426_v37 = vld [vmem:[#allocation2 + $0x10] sm:$0xfc]  }
 0x17b   : > { %14980 = vmatprep.mubr.bf16.mxu0 %v3325_v45  ;;  %v16406_v45 = vld [vmem:[#allocation2 + $0x30] sm:$0xff]   ;;  %v4423_v42 = vrot.slane %v16426_v37, 2 }
 0x17c   : > { %v3897_v10 = vrot.slane %v16406_v45, 2  ;;  %v3916_v23 = vsel %vm3887_vm14, %v3913_v12, %v3915_v20  ;;  %v16428_v45 = vld [vmem:[#allocation2 + $0x20] sm:$0xff]  }
 0x17e   : > { %v3898_v31 = vsel %vm3887_vm14, %v3895_v46, %v3897_v10  ;;  %v3900_v56 = vsel %vm3887_vm14, %v3897_v10, %v3899_v52  ;;  %v16430_v10 = vld [vmem:[#allocation2 + $0x28] sm:$0xff]   ;;  %v16433_v52 = vld [vmem:[#allocation2 + $0x38] sm:$0xff]  }
 0x182   : > { %14981 = vmatmul.mubr.bf16.gmra.mrb[20].mxu0 %v3334_v54  ;;  %v16414_v54 = vld [vmem:[%s19043_s1 + $0x1a0] sm:$0xff]  }
 0x183   : > { %14984 = vmatprep.mubr.bf16.mxu0 %v3343_v57  ;;  %v16412_v57 = vld [vmem:[#allocation2 + $0x50] sm:$0xff]  }
 0x184   : > { %v3905_v59 = vrot.slane %v16412_v57, 2 }
 0x186   : > { %v3906_v0 = vsel %vm3887_vm14, %v3903_v58, %v3905_v59  ;;  %v16438_v58 = vld [vmem:[%s19043_s1 + $0x1d8] sm:$0xff]  }
 0x18a   : > { %14985 = vmatmul.mubr.bf16.gmra.mrb[24].mxu0 %v3352_v3  ;;  %v3907_v3 = vrot.slane %v16413_v63, 2 }
 0x18b   : > { %14988 = vmatprep.mubr.bf16.mxu0 %v3361_v6  ;;  %v16416_v6 = vld [vmem:[#allocation2 + $0x68] sm:$0xff]  }
 0x18c   : > { %v3908_v7 = vsel %vm3887_vm14, %v3905_v59, %v3907_v3  ;;  %v3910_v8 = vsel %vm3887_vm14, %v3907_v3, %v3909_v4  ;;  %v3911_v11 = vrot.slane %v16416_v6, 2  ;;  %v16444_v3 = vld [vmem:[%s19043_s1 + $0x1e8] sm:$0xff]  }
 0x18e   : > { %v3912_v14 = vsel %vm3887_vm14, %v3909_v4, %v3911_v11 }
 0x192   : > { %14989 = vmatmul.mubr.bf16.gmra.mrb[28].mxu0 %v3370_v16  ;;  %v3914_v16 = vsel %vm3887_vm14, %v3911_v11, %v3913_v12  ;;  %v16442_v11 = vld [vmem:[#allocation2 + $0x68] sm:$0xff]   ;;  %v16451_v12 = vld [vmem:[%s19043_s1 + $0x1f8] sm:$0xff]  }
 0x193   : > { %14992 = vmatprep.mubr.bf16.mxu0 %v3379_v21  ;;  %v3917_v21 = vrot.slane %v16421_v19, 2  ;;  %v4444_v15 = vrot.slane %v16442_v11, 2 }
 0x195   : > { %v3918_v25 = vsel %vm3887_vm14, %v3915_v20, %v3917_v21  ;;  %v3920_v33 = vsel %vm3887_vm14, %v3917_v21, %v3919_v29  ;;  %v16443_v20 = vld [vmem:[#allocation2 + $0x70] sm:$0xff]  }
 0x196   : > { %v4446_v24 = vrot.slane %v16443_v20, 2 }
 0x19a   : > { %14993 = vmatmul.mubr.bf16.gmra.mrb[32].mxu0 %v3388_v32  ;;  %v3921_v32 = vrot.slane %v16423_v28, 2  ;;  %v4447_v28 = vsel %vm3887_vm14, %v4444_v15, %v4446_v24 }
 0x19b   : > { %15012 = vmatprep.mubr.bf16.mxu0 %v3890_v34  ;;  %v16425_v34 = vld [vmem:[#allocation2 + $0x98] ss:$0 sps:$4 sm:$0x33]  }
 0x19c   : > { %v3922_v36 = vsel %vm3887_vm14, %v3919_v29, %v3921_v32  ;;  %v16446_v29 = vld [vmem:[#allocation2 + $0x80] sm:$0xff]  }
 0x1a2   : > { %15013 = vmatmul.mubr.bf16.vlgmr.msra.gmra.mrb[0].mxu0 %v3892_v41  ;;  %v3923_v41 = vrot.slane %v16425_v34, 2  ;;  %v4450_v34 = vrot.slane %v16446_v29, 2 }
 0x1a3   : > { %15049 = vmatpush3.bf16.msra.mxu0 %v17604_v39  ;;  %15016 = vmatprep.mubr.bf16.mxu0 %v3894_v43  ;;  %v16411_v39 = vld [vmem:[%s19043_s1 + $0x198] sm:$0xff]   ;;  %v4424_v43 = vrot.slane %v16427_v38, 2  ;;  %v16449_v38 = vld [vmem:[#allocation2 + $0x90] sm:$0xff]  }
 0x1a4   : > { %15050 = vmatprep.subr.bf16.mxu0 %v16405_v44 }
 0x1a5   : > { %v4425_v46 = vsel %vm3887_vm14, %v4423_v42, %v4424_v43 }
 0x1a7   : > { %15051 = vmatpush3.bf16.msra.mxu0 %v16405_v44  ;;  %v3924_v44 = vsel %vm3887_vm14, %v3921_v32, %v3923_v41  ;;  %v16450_v41 = vld [vmem:[#allocation2 + $0x98] sm:$0xff]  }
 0x1a8   : > { %15052 = vmatprep.subr.bf16.mxu0 %v16408_v47 }
 0x1aa   : > { %15017 = vmatmul.mubr.bf16.gmra.mrb[4].mxu0 %v3896_v49  ;;  %v4428_v49 = vrot.slane %v16430_v10, 2 }
 0x1ab   : > { %15020 = vmatprep.mubr.bf16.mxu0 %v3898_v31  ;;  %15053 = vmatpush3.bf16.msra.mxu0 %v16408_v47  ;;  %v4426_v47 = vrot.slane %v16428_v45, 2  ;;  %v16431_v31 = vld [vmem:[#allocation2 + $0x30] sm:$0xff]   ;;  %v4454_v45 = vrot.slane %v16449_v38, 2 }
 0x1ac   : > { %15054 = vmatprep.subr.bf16.mxu0 %v16411_v39  ;;  %v4430_v53 = vrot.slane %v16431_v31, 2  ;;  %v16462_v38 = vld [vmem:[%s19043_s1 + $0x210] sm:$0xff]  }
 0x1ad   : > { %v4427_v50 = vsel %vm3887_vm14, %v4424_v43, %v4426_v47  ;;  %v4429_v51 = vsel %vm3887_vm14, %v4426_v47, %v4428_v49  ;;  %v16453_v43 = vld [vmem:[#allocation2 + $0x10] sm:$0xfc]  }
 0x1ae   : > { %v4431_v48 = vsel %vm3887_vm14, %v4428_v49, %v4430_v53  ;;  %v4960_v10 = vshrl.u32 %v16453_v43, 16  ;;  %v4963_v47 = vshll.u32 %v16453_v43, 16 }
 0x1af   : > { %15055 = vmatpush3.bf16.msra.mxu0 %v16411_v39  ;;  %v16432_v39 = vld [vmem:[%s19043_s1 + $0x1c8] sm:$0xff]  }
 0x1b0   : > { %15056 = vmatprep.subr.bf16.mxu0 %v16414_v54 }
 0x1b2   : > { %15021 = vmatmul.mubr.bf16.gmra.mrb[8].mxu0 %v3900_v56  ;;  %v16435_v56 = vld [vmem:[%s19043_s1 + $0x1d0] sm:$0xff]  }
 0x1b3   : > { %15024 = vmatprep.mubr.bf16.mxu0 %v3902_v35  ;;  %15057 = vmatpush3.bf16.msra.mxu0 %v16414_v54  ;;  %v4432_v54 = vrot.slane %v16433_v52, 2  ;;  %v16434_v35 = vld [vmem:[#allocation2 + $0x40] sm:$0xff]  }
 0x1b4   : > { %15058 = vmatprep.subr.bf16.mxu0 %v16417_v27  ;;  %v4434_v59 = vrot.slane %v16434_v35, 2  ;;  %v16455_v52 = vld [vmem:[#allocation2 + $0x20] sm:$0xff]   ;;  %v16457_v35 = vld [vmem:[#allocation2 + $0x28] sm:$0xff]  }
 0x1b5   : > { %v4433_v57 = vsel %vm3887_vm14, %v4430_v53, %v4432_v54  ;;  %v4962_v53 = vrot.slane %v4960_v10, 2 }
 0x1b6   : > { %v4435_v63 = vsel %vm3887_vm14, %v4432_v54, %v4434_v59  ;;  %v4965_v54 = vrot.slane %v4963_v47, 3 }
 0x1b7   : > { %15059 = vmatpush3.bf16.msra.mxu0 %v16417_v27  ;;  %v16436_v27 = vld [vmem:[#allocation2 + $0x48] sm:$0xff]  }
 0x1b8   : > { %15060 = vmatprep.subr.bf16.mxu0 %v16420_v61 }
 0x1ba   : > { %15025 = vmatmul.mubr.bf16.gmra.mrb[12].mxu0 %v3904_v62  ;;  %v16441_v62 = vld [vmem:[%s19043_s1 + $0x1e0] sm:$0xff]  }
 0x1bb   : > { %15028 = vmatprep.mubr.bf16.mxu0 %v3906_v0  ;;  %15061 = vmatpush3.bf16.msra.mxu0 %v16420_v61  ;;  %v4436_v61 = vrot.slane %v16436_v27, 2  ;;  %v16437_v0 = vld [vmem:[#allocation2 + $0x50] sm:$0xff]   ;;  %v4977_v27 = vshrl.u32 %v16455_v52, 16 }
 0x1bc   : > { %15062 = vmatprep.subr.bf16.mxu0 %v16424_v2  ;;  %v4438_v4 = vrot.slane %v16437_v0, 2 }
 0x1bd   : > { %v4437_v1 = vsel %vm3887_vm14, %v4434_v59, %v4436_v61  ;;  %v4966_v59 = vor.u32 %v4965_v54, %v4962_v53 }
 0x1be   : > { %v4439_v6 = vsel %vm3887_vm14, %v4436_v61, %v4438_v4 }
 0x1bf   : > { %15063 = vmatpush3.bf16.msra.mxu0 %v16424_v2  ;;  %v16439_v2 = vld [vmem:[#allocation2 + $0x58] sm:$0xff]  }
 0x1c0   : > { %15100 = vmatprep.subr.bf16.mxu0 %v16429_v5 }
 0x1c2   : > { %15029 = vmatmul.mubr.bf16.gmra.mrb[16].mxu0 %v3908_v7  ;;  %v16447_v7 = vld [vmem:[%s19043_s1 + $0x1f0] sm:$0xff]  }
 0x1c3   : > { %15032 = vmatprep.mubr.bf16.mxu0 %v3910_v8  ;;  %v16440_v8 = vld [vmem:[#allocation2 + $0x60] sm:$0xff]  }
 0x1ca   : > { %15033 = vmatmul.mubr.bf16.gmra.mrb[20].mxu0 %v3912_v14  ;;  %v4442_v14 = vrot.slane %v16440_v8, 2 }
 0x1cb   : > { %15036 = vmatprep.mubr.bf16.mxu0 %v3914_v16  ;;  %v17692_v16 = vld [vmem:[%s19043_s1 + $0x200] sm:$0xff]  }
 0x1cc   : > { %v4445_v21 = vsel %vm3887_vm14, %v4442_v14, %v4444_v15 }
 0x1d2   : > { %15037 = vmatmul.mubr.bf16.gmra.mrb[24].mxu0 %v3916_v23  ;;  %v16445_v23 = vld [vmem:[#allocation2 + $0x78] sm:$0xff]  }
 0x1d3   : > { %15040 = vmatprep.mubr.bf16.mxu0 %v3918_v25  ;;  %v4448_v25 = vrot.slane %v16445_v23, 2  ;;  %v16461_v23 = vld [vmem:[#allocation2 + $0x40] sm:$0xff]  }
 0x1d5   : > { %v4449_v32 = vsel %vm3887_vm14, %v4446_v24, %v4448_v25  ;;  %v4451_v37 = vsel %vm3887_vm14, %v4448_v25, %v4450_v34  ;;  %v16459_v25 = vld [vmem:[%s19043_s1 + $0x208] sm:$0xff]  }
 0x1da   : > { %15041 = vmatmul.mubr.bf16.gmra.mrb[28].mxu0 %v3920_v33  ;;  %v16448_v33 = vld [vmem:[#allocation2 + $0x88] sm:$0xff]  }
 0x1db   : > { %15044 = vmatprep.mubr.bf16.mxu0 %v3922_v36  ;;  %v4452_v36 = vrot.slane %v16448_v33, 2 }
 0x1dd   : > { %v4453_v42 = vsel %vm3887_vm14, %v4450_v34, %v4452_v36  ;;  %v4455_v31 = vsel %vm3887_vm14, %v4452_v36, %v4454_v45  ;;  %v5013_v34 = vshrl.u32 %v16461_v23, 16  ;;  %v5016_v36 = vshll.u32 %v16461_v23, 16 }
 0x1e2   : > { %15045 = vmatmul.mubr.bf16.gmra.mrb[32].mxu0 %v3924_v44  ;;  %v16454_v44 = vld [vmem:[#allocation2 + $0x18] sm:$0xff]  }
 0x1e3   : > { %15064 = vmatprep.mubr.bf16.mxu0 %v4425_v46  ;;  %v4456_v46 = vrot.slane %v16450_v41, 2  ;;  %v4968_v49 = vshrl.u32 %v16454_v44, 16 }
 0x1ea   : > { %15065 = vmatmul.mubr.bf16.vlgmr.msra.gmra.mrb[0].mxu0 %v4427_v50  ;;  %v4971_v50 = vshll.u32 %v16454_v44, 16  ;;  %v5015_v44 = vrot.slane %v5013_v34, 2 }
 0x1eb   : > { %15101 = vmatpush3.bf16.msra.mxu0 %v16429_v5  ;;  %15068 = vmatprep.mubr.bf16.mxu0 %v4429_v51  ;;  %v4440_v5 = vrot.slane %v16439_v2, 2  ;;  %v4457_v51 = vsel %vm3887_vm14, %v4454_v45, %v4456_v46  ;;  %v5018_v45 = vrot.slane %v5016_v36, 3  ;;  %v16473_v36 = vld [vmem:[#allocation2 + $0x80] sm:$0xff]  }
 0x1ec   : > { %15102 = vmatprep.subr.bf16.mxu0 %v16432_v39 }
 0x1ed   : > { %v4441_v9 = vsel %vm3887_vm14, %v4438_v4, %v4440_v5  ;;  %v4443_v19 = vsel %vm3887_vm14, %v4440_v5, %v4442_v14 }
 0x1ef   : > { %15103 = vmatpush3.bf16.msra.mxu0 %v16432_v39  ;;  %v16452_v39 = vld [vmem:[#allocation2 + $0xa0] ss:$0 sps:$4 sm:$0x33]  }
 0x1f0   : > { %15104 = vmatprep.subr.bf16.mxu0 %v16435_v56 }
 0x1f2   : > { %15069 = vmatmul.mubr.bf16.gmra.mrb[4].mxu0 %v4431_v48  ;;  %v4973_v48 = vrot.slane %v4971_v50, 3  ;;  %v16466_v50 = vld [vmem:[#allocation2 + $0x58] sm:$0xff]  }
 0x1f3   : > { %15072 = vmatprep.mubr.bf16.mxu0 %v4433_v57  ;;  %15105 = vmatpush3.bf16.msra.mxu0 %v16435_v56  ;;  %v4970_v56 = vrot.slane %v4968_v49, 2  ;;  %v4458_v57 = vrot.slane %v16452_v39, 2  ;;  %v16465_v49 = vld [vmem:[%s19043_s1 + $0x218] sm:$0xff]   ;;  %v5040_v53 = vshrl.u32 %v16466_v50, 16  ;;  %v5043_v54 = vshll.u32 %v16466_v50, 16 }
 0x1f4   : > { %15106 = vmatprep.subr.bf16.mxu0 %v16438_v58 }
 0x1f5   : > { %v4974_v61 = vor.u32 %v4973_v48, %v4970_v56  ;;  %v4459_v0 = vsel %vm3887_vm14, %v4456_v46, %v4458_v57  ;;  %v16464_v46 = vld [vmem:[#allocation2 + $0x50] sm:$0xff]   ;;  %v16468_v56 = vld [vmem:[%s19043_s1 + $0x220] sm:$0xff]  }
 0x1f6   : > { %v5034_v39 = vshll.u32 %v16464_v46, 16 }
 0x1f7   : > { %15107 = vmatpush3.bf16.msra.mxu0 %v16438_v58  ;;  %v4980_v58 = vshll.u32 %v16455_v52, 16  ;;  %v4975_v4 = vsel %vm4958_vm9, %v4966_v59, %v4974_v61  ;;  %v5042_v59 = vrot.slane %v5040_v53, 2  ;;  %v16477_v53 = vld [vmem:[#allocation2 + $0x98] sm:$0xff]  }
 0x1f8   : > { %15108 = vmatprep.subr.bf16.mxu0 %v16441_v62  ;;  %v5036_v57 = vrot.slane %v5034_v39, 3 }
 0x1f9   : > { %v4982_v2 = vrot.slane %v4980_v58, 3 }
 0x1fa   : > { %15073 = vmatmul.mubr.bf16.gmra.mrb[8].mxu0 %v4435_v63  ;;  %v4989_v63 = vshll.u32 %v16457_v35, 16 }
 0x1fb   : > { %15076 = vmatprep.mubr.bf16.mxu0 %v4437_v1  ;;  %15109 = vmatpush3.bf16.msra.mxu0 %v16441_v62  ;;  %v4986_v62 = vshrl.u32 %v16457_v35, 16  ;;  %v4979_v1 = vrot.slane %v4977_v27, 2  ;;  %v16467_v27 = vld [vmem:[#allocation2 + $0x60] sm:$0xff]  }
 0x1fc   : > { %15110 = vmatprep.subr.bf16.mxu0 %v16444_v3 }
 0x1fd   : > { %v4988_v5 = vrot.slane %v4986_v62, 2  ;;  %v4983_v8 = vor.u32 %v4982_v2, %v4979_v1  ;;  %v16469_v62 = vld [vmem:[#allocation2 + $0x68] sm:$0xff]   ;;  %v5049_v1 = vshrl.u32 %v16467_v27, 16  ;;  %v5052_v2 = vshll.u32 %v16467_v27, 16 }
 0x1fe   : > { %v5115_v27 = vshll.u32 %v16477_v53, 16 }
 0x1ff   : > { %15111 = vmatpush3.bf16.msra.mxu0 %v16444_v3  ;;  %v16458_v3 = vld [vmem:[#allocation2 + $0x30] sm:$0xff]  }
 0x200   : > { %15112 = vmatprep.subr.bf16.mxu0 %v16447_v7  ;;  %v4998_v11 = vshll.u32 %v16458_v3, 16 }
 0x202   : > { %15077 = vmatmul.mubr.bf16.gmra.mrb[12].mxu0 %v4439_v6  ;;  %v16460_v6 = vld [vmem:[#allocation2 + $0x38] sm:$0xff]  }
 0x203   : > { %15080 = vmatprep.mubr.bf16.mxu0 %v4441_v9  ;;  %15113 = vmatpush3.bf16.msra.mxu0 %v16447_v7  ;;  %v4991_v7 = vrot.slane %v4989_v63, 3  ;;  %v4995_v9 = vshrl.u32 %v16458_v3, 16  ;;  %v5004_v14 = vshrl.u32 %v16460_v6, 16  ;;  %v5007_v15 = vshll.u32 %v16460_v6, 16  ;;  %v16471_v63 = vld [vmem:[%s19043_s1 + $0x228] sm:$0xff]  }
 0x204   : > { %15114 = vmatprep.subr.bf16.mxu0 %v16451_v12 }
 0x205   : > { %v4997_v20 = vrot.slane %v4995_v9, 2  ;;  %v5009_v29 = vrot.slane %v5007_v15, 3  ;;  %v5054_v9 = vrot.slane %v5052_v2, 3 }
 0x207   : > { %15115 = vmatpush3.bf16.msra.mxu0 %v16451_v12  ;;  %v4992_v12 = vor.u32 %v4991_v7, %v4988_v5  ;;  %v5061_v5 = vshll.u32 %v16469_v62, 16  ;;  %v16474_v7 = vld [vmem:[%s19043_s1 + $0x230] sm:$0xff]  }
 0x208   : > { %15152 = vmatprep.subr.bf16.mxu0 %v17692_v16 }
 0x209   : > { %v4993_v24 = vsel %vm4958_vm9, %v4983_v8, %v4992_v12  ;;  %v5063_v15 = vrot.slane %v5061_v5, 3 }
 0x20a   : > { %15081 = vmatmul.mubr.bf16.gmra.mrb[16].mxu0 %v4443_v19  ;;  %v4984_v19 = vsel %vm4958_vm9, %v4974_v61, %v4983_v8  ;;  %v5045_v61 = vrot.slane %v5043_v54, 3  ;;  %v5051_v8 = vrot.slane %v5049_v1, 2  ;;  %v5117_v1 = vrot.slane %v5115_v27, 3 }
 0x20b   : > { %15084 = vmatprep.mubr.bf16.mxu0 %v4445_v21  ;;  %v5000_v21 = vrot.slane %v4998_v11, 3  ;;  %v16470_v11 = vld [vmem:[#allocation2 + $0x70] sm:$0xff]  }
 0x20c   : > { %v5046_v3 = vor.u32 %v5045_v61, %v5042_v59  ;;  %v5067_v23 = vshrl.u32 %v16470_v11, 16 }
 0x20d   : > { %v5001_v33 = vor.u32 %v5000_v21, %v4997_v20  ;;  %v16478_v20 = vld [vmem:[%s19043_s1 + $0x238] sm:$0xff]   ;;  %v5055_v21 = vor.u32 %v5054_v9, %v5051_v8 }
 0x20f   : > { %v5002_v43 = vsel %vm4958_vm9, %v4992_v12, %v5001_v33 }
 0x212   : > { %15085 = vmatmul.mubr.bf16.gmra.mrb[20].mxu0 %v4447_v28  ;;  %v5006_v28 = vrot.slane %v5004_v14, 2 }
 0x213   : > { %15088 = vmatprep.mubr.bf16.mxu0 %v4449_v32  ;;  %v16463_v32 = vld [vmem:[#allocation2 + $0x48] sm:$0xff]  }
 0x214   : > { %v5022_v41 = vshrl.u32 %v16463_v32, 16 }
 0x216   : > { %v5024_v10 = vrot.slane %v5022_v41, 2 }
 0x21a   : > { %15089 = vmatmul.mubr.bf16.gmra.mrb[24].mxu0 %v4451_v37  ;;  %v5010_v37 = vor.u32 %v5009_v29, %v5006_v28 }
 0x21b   : > { %15092 = vmatprep.mubr.bf16.mxu0 %v4453_v42  ;;  %v5025_v42 = vshll.u32 %v16463_v32, 16  ;;  %v5056_v32 = vsel %vm4958_vm9, %v5046_v3, %v5055_v21 }
 0x21d   : > { %v5027_v47 = vrot.slane %v5025_v42, 3  ;;  %v16475_v42 = vld [vmem:[#allocation2 + $0x88] sm:$0xff]  }
 0x21f   : > { %v5028_v52 = vor.u32 %v5027_v47, %v5024_v10  ;;  %v5097_v10 = vshll.u32 %v16475_v42, 16 }
 0x222   : > { %15093 = vmatmul.mubr.bf16.gmra.mrb[28].mxu0 %v4455_v31  ;;  %v5019_v31 = vor.u32 %v5018_v45, %v5015_v44  ;;  %v5085_v44 = vshrl.u32 %v16473_v36, 16  ;;  %v5088_v45 = vshll.u32 %v16473_v36, 16 }
 0x223   : > { %15096 = vmatprep.mubr.bf16.mxu0 %v4457_v51  ;;  %v5031_v51 = vshrl.u32 %v16464_v46, 16 }
 0x224   : > { %v5020_v48 = vsel %vm4958_vm9, %v5010_v37, %v5019_v31  ;;  %v5029_v58 = vsel %vm4958_vm9, %v5019_v31, %v5028_v52  ;;  %v5090_v50 = vrot.slane %v5088_v45, 3  ;;  %v16476_v31 = vld [vmem:[#allocation2 + $0x90] sm:$0xff]  }
 0x225   : > { %v5033_v35 = vrot.slane %v5031_v51, 2 }
 0x22a   : > { %15097 = vmatmul.mubr.bf16.gmra.mrb[32].mxu0 %v4459_v0  ;;  %v5037_v0 = vor.u32 %v5036_v57, %v5033_v35  ;;  %v5112_v57 = vshrl.u32 %v16477_v53, 16 }
 0x22b   : > { %15116 = vmatprep.mubr.bf16.mxu0 %v4975_v4  ;;  %v5058_v4 = vshrl.u32 %v16469_v62, 16  ;;  %v16479_v62 = vld [vmem:[#allocation2 + $0xa0] ss:$0 sps:$4 sm:$0x77]  }
 0x22c   : > { %v5038_v6 = vsel %vm4958_vm9, %v5028_v52, %v5037_v0  ;;  %v5047_v12 = vsel %vm4958_vm9, %v5037_v0, %v5046_v3  ;;  %v5099_v52 = vrot.slane %v5097_v10, 3  ;;  %v5114_v0 = vrot.slane %v5112_v57, 2  ;;  %v16493_v57 = vld [vmem:[#allocation2 + $0x78] sm:$0xff]  }
 0x22d   : > { %v5060_v14 = vrot.slane %v5058_v4, 2  ;;  %v5121_v3 = vshrl.u32 %v16479_v62, 16  ;;  %v5124_v4 = vshll.u32 %v16479_v62, 16 }
 0x22e   : > { %v5118_v5 = vor.u32 %v5117_v1, %v5114_v0 }
 0x22f   : > { %v5126_v8 = vrot.slane %v5124_v4, 3 }
 0x232   : > { %15117 = vmatmul.mubr.bf16.vlgmr.msra.gmra.mrb[0].mxu0 %v4984_v19  ;;  %v16472_v19 = vld [vmem:[#allocation2 + $0x78] sm:$0xff]  }
 0x233   : > { %15153 = vmatpush3.bf16.msra.mxu0 %v17692_v16  ;;  %15120 = vmatprep.mubr.bf16.mxu0 %v4993_v24  ;;  %v5011_v16 = vsel %vm4958_vm9, %v5001_v33, %v5010_v37  ;;  %v5070_v24 = vshll.u32 %v16470_v11, 16  ;;  %v5076_v28 = vshrl.u32 %v16472_v19, 16  ;;  %v5079_v29 = vshll.u32 %v16472_v19, 16  ;;  %v16480_v11 = vld [vmem:[#allocation2 + $0x10] sm:$0xf8]  }
 0x234   : > { %15154 = vmatprep.subr.bf16.mxu0 %v16459_v25  ;;  %v5069_v33 = vrot.slane %v5067_v23, 2 }
 0x235   : > { %v5072_v34 = vrot.slane %v5070_v24, 3  ;;  %v5081_v41 = vrot.slane %v5079_v29, 3  ;;  %v16483_v24 = vld [vmem:[#allocation2 + $0x28] sm:$0xff]  }
 0x237   : > { %15155 = vmatpush3.bf16.msra.mxu0 %v16459_v25  ;;  %v5064_v25 = vor.u32 %v5063_v15, %v5060_v14  ;;  %v5628_v15 = vrot.slane %v16480_v11, 3 }
 0x238   : > { %15156 = vmatprep.subr.bf16.mxu0 %v16462_v38 }
 0x239   : > { %v5065_v37 = vsel %vm4958_vm9, %v5055_v21, %v5064_v25  ;;  %v16482_v21 = vld [vmem:[#allocation2 + $0x20] sm:$0xff]  }
 0x23a   : > { %15121 = vmatmul.mubr.bf16.gmra.mrb[4].mxu0 %v5002_v43  ;;  %v5073_v43 = vor.u32 %v5072_v34, %v5069_v33  ;;  %v16485_v34 = vld [vmem:[#allocation2 + $0x38] sm:$0xff]  }
 0x23b   : > { %15124 = vmatprep.mubr.bf16.mxu0 %v5011_v16  ;;  %15157 = vmatpush3.bf16.msra.mxu0 %v16462_v38  ;;  %v5078_v38 = vrot.slane %v5076_v28, 2  ;;  %v5094_v16 = vshrl.u32 %v16475_v42, 16  ;;  %v5633_v28 = vrot.slane %v16483_v24, 3  ;;  %v16504_v24 = vld [vmem:[%s19045_s3 + $0x28] sm:$0xff]  }
 0x23c   : > { %15158 = vmatprep.subr.bf16.mxu0 %v16465_v49  ;;  %v5074_v47 = vsel %vm4958_vm9, %v5064_v25, %v5073_v43  ;;  %v5631_v25 = vrot.slane %v16482_v21, 3  ;;  %v16502_v21 = vld [vmem:[%s19045_s3 + $0x18] sm:$0xff]  }
 0x23d   : > { %v5082_v46 = vor.u32 %v5081_v41, %v5078_v38  ;;  %v5096_v39 = vrot.slane %v5094_v16, 2  ;;  %v16486_v41 = vld [vmem:[#allocation2 + $0x40] sm:$0xff]   ;;  %v16488_v16 = vld [vmem:[#allocation2 + $0x50] sm:$0xff]  }
 0x23e   : > { %v5634_v33 = vsel %vm5627_vm4, %v5631_v25, %v5633_v28 }
 0x23f   : > { %15159 = vmatpush3.bf16.msra.mxu0 %v16465_v49  ;;  %v5087_v49 = vrot.slane %v5085_v44, 2  ;;  %v5083_v51 = vsel %vm4958_vm9, %v5073_v43, %v5082_v46  ;;  %v5100_v35 = vor.u32 %v5099_v52, %v5096_v39  ;;  %v16487_v43 = vld [vmem:[#allocation2 + $0x48] sm:$0xff]   ;;  %v5639_v44 = vrot.slane %v16486_v41, 3 }
 0x240   : > { %15160 = vmatprep.subr.bf16.mxu0 %v16468_v56  ;;  %v5641_v45 = vrot.slane %v16487_v43, 3  ;;  %v16491_v52 = vld [vmem:[#allocation2 + $0x68] sm:$0xff]  }
 0x241   : > { %v5091_v54 = vor.u32 %v5090_v50, %v5087_v49  ;;  %v5643_v49 = vrot.slane %v16488_v16, 3 }
 0x242   : > { %15125 = vmatmul.mubr.bf16.gmra.mrb[8].mxu0 %v5020_v48  ;;  %v5106_v48 = vshll.u32 %v16476_v31, 16  ;;  %v5642_v10 = vsel %vm5627_vm4, %v5639_v44, %v5641_v45 }
 0x243   : > { %15128 = vmatprep.mubr.bf16.mxu0 %v5029_v58  ;;  %15161 = vmatpush3.bf16.msra.mxu0 %v16468_v56  ;;  %v5103_v56 = vshrl.u32 %v16476_v31, 16  ;;  %v5092_v58 = vsel %vm4958_vm9, %v5082_v46, %v5091_v54  ;;  %v5644_v31 = vsel %vm5627_vm4, %v5641_v45, %v5643_v49 }
 0x244   : > { %15162 = vmatprep.subr.bf16.mxu0 %v16471_v63  ;;  %v5108_v61 = vrot.slane %v5106_v48, 3  ;;  %v16492_v48 = vld [vmem:[#allocation2 + $0x70] sm:$0xff]  }
 0x245   : > { %v5105_v59 = vrot.slane %v5103_v56, 2  ;;  %v5651_v27 = vrot.slane %v16492_v48, 3 }
 0x247   : > { %15163 = vmatpush3.bf16.msra.mxu0 %v16471_v63  ;;  %v5101_v63 = vsel %vm4958_vm9, %v5091_v54, %v5100_v35  ;;  %v5109_v2 = vor.u32 %v5108_v61, %v5105_v59  ;;  %v5649_v54 = vrot.slane %v16491_v52, 3  ;;  %v16494_v61 = vld [vmem:[#allocation2 + $0x80] sm:$0xff]  }
 0x248   : > { %15164 = vmatprep.subr.bf16.mxu0 %v16474_v7  ;;  %v5655_v0 = vrot.slane %v16494_v61, 3 }
 0x249   : > { %v5119_v9 = vsel %vm4958_vm9, %v5109_v2, %v5118_v5  ;;  %v5652_v59 = vsel %vm5627_vm4, %v5649_v54, %v5651_v27 }
 0x24a   : > { %15129 = vmatmul.mubr.bf16.gmra.mrb[12].mxu0 %v5038_v6  ;;  %v5123_v6 = vrot.slane %v5121_v3, 2  ;;  %v16496_v3 = vld [vmem:[#allocation2 + $0x90] sm:$0xff]  }
 0x24b   : > { %15132 = vmatprep.mubr.bf16.mxu0 %v5047_v12  ;;  %15165 = vmatpush3.bf16.msra.mxu0 %v16474_v7  ;;  %v5110_v7 = vsel %vm4958_vm9, %v5100_v35, %v5109_v2  ;;  %v16481_v12 = vld [vmem:[#allocation2 + $0x18] sm:$0xff]  }
 0x24c   : > { %15166 = vmatprep.subr.bf16.mxu0 %v16478_v20  ;;  %v5127_v14 = vor.u32 %v5126_v8, %v5123_v6  ;;  %v5629_v19 = vrot.slane %v16481_v12, 3 }
 0x24e   : > { %v5630_v23 = vsel %vm5627_vm4, %v5628_v15, %v5629_v19  ;;  %v5632_v29 = vsel %vm5627_vm4, %v5629_v19, %v5631_v25  ;;  %v16499_v15 = vld [vmem:[%s19045_s3] sm:$0xff]   ;;  %v16500_v19 = vld [vmem:[%s19045_s3 + $0x8] sm:$0xff]   ;;  %v16505_v25 = vld [vmem:[%s19045_s3 + $0x30] sm:$0xff]  }
 0x24f   : > { %15167 = vmatpush3.bf16.msra.mxu0 %v16478_v20  ;;  %v5128_v20 = vsel %vm4958_vm9, %v5118_v5, %v5127_v14  ;;  %v16497_v5 = vld [vmem:[#allocation2 + $0x98] sm:$0xff]   ;;  %15204 = vmatprep.subr.bf16.mxu1 %v16499_v15 }
 0x250   : > { %v5661_v6 = vrot.slane %v16497_v5, 3  ;;  %15205 = vmatpush3.bf16.msra.mxu1 %v16499_v15 }
 0x251   : > { %15206 = vmatprep.subr.bf16.mxu1 %v16500_v19 }
 0x252   : > { %15133 = vmatmul.mubr.bf16.gmra.mrb[16].mxu0 %v5056_v32  ;;  %v16484_v32 = vld [vmem:[#allocation2 + $0x30] sm:$0xff]  }
 0x253   : > { %15136 = vmatprep.mubr.bf16.mxu0 %v5065_v37  ;;  %v5635_v36 = vrot.slane %v16484_v32, 3  ;;  %v5637_v37 = vrot.slane %v16485_v34, 3  ;;  %v17789_v32 = vld [vmem:[%s19044_s2] ss:$0 sm:$0xff] }
 0x254   : > { %15207 = vmatpush3.bf16.msra.mxu1 %v16500_v19 }
 0x255   : > { %v5636_v38 = vsel %vm5627_vm4, %v5633_v28, %v5635_v36  ;;  %v5638_v42 = vsel %vm5627_vm4, %v5635_v36, %v5637_v37  ;;  %v5640_v46 = vsel %vm5627_vm4, %v5637_v37, %v5639_v44  ;;  %v16506_v28 = vld [vmem:[%s19045_s3 + $0x38] sm:$0xff]  }
 0x25a   : > { %15137 = vmatmul.mubr.bf16.gmra.mrb[20].mxu0 %v5074_v47  ;;  %v16489_v47 = vld [vmem:[#allocation2 + $0x58] sm:$0xff]  }
 0x25b   : > { %15140 = vmatprep.mubr.bf16.mxu0 %v5083_v51  ;;  %v5645_v50 = vrot.slane %v16489_v47, 3  ;;  %v16490_v51 = vld [vmem:[#allocation2 + $0x60] sm:$0xff]  }
 0x25c   : > { %v5647_v53 = vrot.slane %v16490_v51, 3 }
 0x25d   : > { %v5646_v39 = vsel %vm5627_vm4, %v5643_v49, %v5645_v50 }
 0x25e   : > { %v5648_v56 = vsel %vm5627_vm4, %v5645_v50, %v5647_v53  ;;  %v5650_v35 = vsel %vm5627_vm4, %v5647_v53, %v5649_v54 }
 0x262   : > { %15141 = vmatmul.mubr.bf16.gmra.mrb[24].mxu0 %v5092_v58  ;;  %v5653_v58 = vrot.slane %v16493_v57, 3 }
 0x263   : > { %15144 = vmatprep.mubr.bf16.mxu0 %v5101_v63  ;;  %v16495_v63 = vld [vmem:[#allocation2 + $0x88] sm:$0xff]  }
 0x264   : > { %v5654_v62 = vsel %vm5627_vm4, %v5651_v27, %v5653_v58  ;;  %v5657_v1 = vrot.slane %v16495_v63, 3  ;;  %v5656_v2 = vsel %vm5627_vm4, %v5653_v58, %v5655_v0 }
 0x266   : > { %v5658_v4 = vsel %vm5627_vm4, %v5655_v0, %v5657_v1 }
 0x26a   : > { %15145 = vmatmul.mubr.bf16.gmra.mrb[28].mxu0 %v5110_v7  ;;  %v5659_v7 = vrot.slane %v16496_v3, 3 }
 0x26b   : > { %15148 = vmatprep.mubr.bf16.mxu0 %v5119_v9  ;;  %v16498_v9 = vld [vmem:[#allocation2 + $0xa0] ss:$0 sps:$4 sm:$0x77]  }
 0x26c   : > { %v5660_v8 = vsel %vm5627_vm4, %v5657_v1, %v5659_v7  ;;  %v5662_v11 = vsel %vm5627_vm4, %v5659_v7, %v5661_v6  ;;  %v5663_v12 = vrot.slane %v16498_v9, 3 }
 0x26e   : > { %v5664_v14 = vsel %vm5627_vm4, %v5661_v6, %v5663_v12 }
 0x272   : > { %15149 = vmatmul.mubr.bf16.gmra.mrb[32].mxu0 %v5128_v20  ;;  %v16501_v20 = vld [vmem:[%s19045_s3 + $0x10] sm:$0xff]  }
 0x273   : > { %15168 = vmatprep.mubr.bf16.mxu0 %v5630_v23  ;;  %15208 = vmatprep.subr.bf16.mxu1 %v16501_v20  ;;  %v16503_v23 = vld [vmem:[%s19045_s3 + $0x20] sm:$0xff]  }
 0x274   : > { %15209 = vmatpush3.bf16.msra.mxu1 %v16501_v20 }
 0x275   : > { %15210 = vmatprep.subr.bf16.mxu1 %v16502_v21 }
 0x278   : > { %15211 = vmatpush3.bf16.msra.mxu1 %v16502_v21 }
 0x279   : > { %15212 = vmatprep.subr.bf16.mxu1 %v16503_v23 }
 0x27a   : > { %15169 = vmatmul.mubr.bf16.vlgmr.msra.gmra.mrb[0].mxu0 %v5632_v29  ;;  %v16507_v29 = vld [vmem:[#allocation3] sm:$0xff]  }
 0x27b   : > { %15172 = vmatprep.mubr.bf16.mxu0 %v5634_v33  ;;  %15220 = vmatprep.mubr.bf16.mxu1 %v16507_v29 }
 0x27c   : > { %15213 = vmatpush3.bf16.msra.mxu1 %v16503_v23 }
 0x27d   : > { %15214 = vmatprep.subr.bf16.mxu1 %v16504_v24 }
 0x280   : > { %15215 = vmatpush3.bf16.msra.mxu1 %v16504_v24 }
 0x281   : > { %15216 = vmatprep.subr.bf16.mxu1 %v16505_v25 }
 0x282   : > { %15173 = vmatmul.mubr.bf16.gmra.mrb[4].mxu0 %v5636_v38 }
 0x283   : > { %15176 = vmatprep.mubr.bf16.mxu0 %v5638_v42 }
 0x284   : > { %15217 = vmatpush3.bf16.msra.mxu1 %v16505_v25 }
 0x285   : > { %15218 = vmatprep.subr.bf16.mxu1 %v16506_v28 }
 0x288   : > { %15219 = vmatpush3.bf16.msra.mxu1 %v16506_v28 }
 0x28a   : > { %15177 = vmatmul.mubr.bf16.gmra.mrb[8].mxu0 %v5640_v46  ;;  %v17808_v46 = vld [vmem:[%s19045_s3 + $0x40] sm:$0xff]  }
 0x28b   : > { %15180 = vmatprep.mubr.bf16.mxu0 %v5642_v10  ;;  %15256 = vmatprep.subr.bf16.mxu1 %v17808_v46 }
 0x292   : > { %15181 = vmatmul.mubr.bf16.gmra.mrb[12].mxu0 %v5644_v31 }
 0x293   : > { %15184 = vmatprep.mubr.bf16.mxu0 %v5646_v39 }
 0x29a   : > { %15185 = vmatmul.mubr.bf16.gmra.mrb[16].mxu0 %v5648_v56 }
 0x29b   : > { %15188 = vmatprep.mubr.bf16.mxu0 %v5650_v35 }
 0x2a2   : > { %15189 = vmatmul.mubr.bf16.gmra.mrb[20].mxu0 %v5652_v59 }
 0x2a3   : > { %15192 = vmatprep.mubr.bf16.mxu0 %v5654_v62 }
 0x2aa   : > { %15193 = vmatmul.mubr.bf16.gmra.mrb[24].mxu0 %v5656_v2 }
 0x2ab   : > { %15196 = vmatprep.mubr.bf16.mxu0 %v5658_v4 }
 0x2b2   : > { %15197 = vmatmul.mubr.bf16.gmra.mrb[28].mxu0 %v5660_v8 }
 0x2b3   : > { %15200 = vmatprep.mubr.bf16.mxu0 %v5662_v11 }
 0x2ba   : > { %15201 = vmatmul.mubr.bf16.gmra.mrb[32].mxu0 %v5664_v14 }
 0x34d   : > { %v15170_v33 = vpop.f32.mrb[0].mxu0 }
 0x34e   : > { %v17792_v34 = vadd.f32 %v15170_v33, %v17789_v32  ;;  %v5765_v36 = vpop.f32.mrb[1].mxu0 }
 0x34f   : > { %v17795_v37 = vadd.f32 %v17789_v32, %v5765_v36  ;;  %v15171_v38 = vpop.f32.mrb[2].mxu0 }
 0x350   : > { %v13533_v41 = vmul.f32 -1.442695, %v17792_v34  ;;  %v17799_v42 = vadd.f32 %v15171_v38, %v17789_v32  ;;  %v5768_v43 = vpop.f32.mrb[3].mxu0 }
 0x351   : > { %v13531_v44 = vmul.f32 -1.442695, %v17795_v37  ;;  %v17803_v45 = vadd.f32 %v17789_v32, %v5768_v43 }
 0x352   : > { %16741 = vpow2.f32 %v13533_v41  ;;  %v13534_v16 = vmul.f32 -1.442695, %v17799_v42 }
 0x353   : > { %16743 = vpow2.f32 %v13531_v44  ;;  %v13532_v10 = vmul.f32 -1.442695, %v17803_v45 }
 0x354   : > { %16745 = vpow2.f32 %v13534_v16 }
 0x355   : > { %16747 = vpow2.f32 %v13532_v10  ;;  %v15174_v47 = vpop.f32.mrb[4].mxu0 }
 0x356   : > { %v17814_v49 = vadd.f32 %v15174_v47, %v17789_v32  ;;  %v5781_v50 = vpop.f32.mrb[5].mxu0 }
 0x357   : > { %v17817_v31 = vadd.f32 %v17789_v32, %v5781_v50  ;;  %v15175_v51 = vpop.f32.mrb[6].mxu0 }
 0x358   : > { %v13537_v39 = vmul.f32 -1.442695, %v17814_v49  ;;  %v17821_v52 = vadd.f32 %v15175_v51, %v17789_v32  ;;  %v5784_v53 = vpop.f32.mrb[7].mxu0 }
 0x359   : > { %v13535_v54 = vmul.f32 -1.442695, %v17817_v31  ;;  %v17825_v56 = vadd.f32 %v17789_v32, %v5784_v53 }
 0x35a   : > { %16749 = vpow2.f32 %v13537_v39  ;;  %v13538_v48 = vmul.f32 -1.442695, %v17821_v52 }
 0x35b   : > { %16751 = vpow2.f32 %v13535_v54  ;;  %v13536_v35 = vmul.f32 -1.442695, %v17825_v56 }
 0x35c   : > { %v16742_v57 = vpop.eup %16741  ;;  %16753 = vpow2.f32 %v13538_v48 }
 0x35d   : > { %v16744_v27 = vpop.eup %16743  ;;  %v6169_v58 = vadd.f32 1.0, %v16742_v57  ;;  %16755 = vpow2.f32 %v13536_v35  ;;  %v15178_v59 = vpop.f32.mrb[8].mxu0 }
 0x35e   : > { %v16746_v61 = vpop.eup %16745  ;;  %v6167_v62 = vadd.f32 1.0, %v16744_v27  ;;  %v17830_v63 = vadd.f32 %v15178_v59, %v17789_v32  ;;  %v5797_v0 = vpop.f32.mrb[9].mxu0 }
 0x35f   : > { %v16748_v1 = vpop.eup %16747  ;;  %16757 = vrcp.f32 %v6169_v58  ;;  %v6170_v2 = vadd.f32 1.0, %v16746_v61  ;;  %v17833_v3 = vadd.f32 %v17789_v32, %v5797_v0  ;;  %v15179_v4 = vpop.f32.mrb[10].mxu0 }
 0x360   : > { %16759 = vrcp.f32 %v6167_v62  ;;  %v6168_v5 = vadd.f32 1.0, %v16748_v1  ;;  %v13541_v7 = vmul.f32 -1.442695, %v17830_v63  ;;  %v17837_v6 = vadd.f32 %v15179_v4, %v17789_v32  ;;  %v5800_v8 = vpop.f32.mrb[11].mxu0 }
 0x361   : > { %16761 = vrcp.f32 %v6170_v2  ;;  %v13539_v9 = vmul.f32 -1.442695, %v17833_v3  ;;  %v17841_v11 = vadd.f32 %v17789_v32, %v5800_v8 }
 0x362   : > { %16763 = vrcp.f32 %v6168_v5  ;;  %v13542_v12 = vmul.f32 -1.442695, %v17837_v6 }
 0x363   : > { %16765 = vpow2.f32 %v13541_v7  ;;  %v13540_v14 = vmul.f32 -1.442695, %v17841_v11 }
 0x364   : > { %v16750_v15 = vpop.eup %16749  ;;  %16767 = vpow2.f32 %v13539_v9 }
 0x365   : > { %v16752_v19 = vpop.eup %16751  ;;  %v6173_v20 = vadd.f32 1.0, %v16750_v15  ;;  %16769 = vpow2.f32 %v13542_v12  ;;  %v15182_v21 = vpop.f32.mrb[12].mxu0 }
 0x366   : > { %v16754_v23 = vpop.eup %16753  ;;  %v6171_v24 = vadd.f32 1.0, %v16752_v19  ;;  %16771 = vpow2.f32 %v13540_v14  ;;  %v17846_v25 = vadd.f32 %v15182_v21, %v17789_v32  ;;  %v5813_v28 = vpop.f32.mrb[13].mxu0 }
 0x367   : > { %v16756_v29 = vpop.eup %16755  ;;  %16773 = vrcp.f32 %v6173_v20  ;;  %v6174_v33 = vadd.f32 1.0, %v16754_v23  ;;  %v17849_v36 = vadd.f32 %v17789_v32, %v5813_v28  ;;  %v15183_v38 = vpop.f32.mrb[14].mxu0  ;;  %v6430_v28 = vld [vmem:[#allocation3 + $0x10] sm:$0xc] }
 0x368   : > { %16775 = vrcp.f32 %v6171_v24  ;;  %v6172_v41 = vadd.f32 1.0, %v16756_v29  ;;  %v13545_v43 = vmul.f32 -1.442695, %v17846_v25  ;;  %v17853_v44 = vadd.f32 %v15183_v38, %v17789_v32  ;;  %v5816_v16 = vpop.f32.mrb[15].mxu0 }
 0x369   : > { %v16758_v10 = vpop.eup %16757  ;;  %16777 = vrcp.f32 %v6174_v33  ;;  %v13543_v47 = vmul.f32 -1.442695, %v17849_v36  ;;  %v17857_v50 = vadd.f32 %v17789_v32, %v5816_v16 }
 0x36a   : > { %v16760_v51 = vpop.eup %16759  ;;  %v6277_v39 = vmul.f32 %v16758_v10, %v17792_v34  ;;  %16779 = vrcp.f32 %v6172_v41  ;;  %v13546_v53 = vmul.f32 -1.442695, %v17853_v44  ;;  %v6382_v10 = vld [vmem:[#allocation3 + $0x8] sm:$0xe] }
 0x36b   : > { %v16762_v54 = vpop.eup %16761  ;;  %v6275_v48 = vmul.f32 %v16760_v51, %v17795_v37  ;;  %16781 = vpow2.f32 %v13545_v43  ;;  %v17865_v62 = vmul.f32 -1.442695, %v17857_v50 }
 0x36c   : > { %v16764_v35 = vpop.eup %16763  ;;  %v14080_v57 = vpack.c.bf16 %v6277_v39, %v6277_v39  ;;  %v6278_v27 = vmul.f32 %v16762_v54, %v17799_v42  ;;  %16783 = vpow2.f32 %v13543_v47 }
 0x36d   : > { %v16766_v58 = vpop.eup %16765  ;;  %v14078_v59 = vpack.c.bf16 %v6275_v48, %v6275_v48  ;;  %v6276_v61 = vmul.f32 %v16764_v35, %v17803_v45  ;;  %16785 = vpow2.f32 %v13546_v53  ;;  %v17867_v34 = vpop.f32.mrb[16].mxu0 }
 0x36e   : > { %v16768_v0 = vpop.eup %16767  ;;  %v6400_v1 = vshrl.u32 %v14080_v57, 16  ;;  %v6403_v2 = vshll.u32 %v14080_v57, 16  ;;  %v14081_v37 = vpack.c.bf16 %v6278_v27, %v6278_v27  ;;  %v17869_v4 = vadd.f32 1.0, %v16766_v58  ;;  %v17871_v5 = vpop.f32.mrb[17].mxu0 }
 0x36f   : > { %v17873_v42 = vpop.eup %16769  ;;  %v6361_v7 = vshrl.u32 %v14078_v59, 16  ;;  %v6364_v8 = vshll.u32 %v14078_v59, 16  ;;  %v14079_v9 = vpack.c.bf16 %v6276_v61, %v6276_v61  ;;  %v17875_v45 = vadd.f32 1.0, %v16768_v0  ;;  %v17877_v12 = vpop.f32.mrb[18].mxu0 }
 0x370   : > { %v17879_v14 = vpop.eup %16771  ;;  %v6402_v15 = vrot.slane %v6400_v1, 6  ;;  %v6405_v19 = vrot.slane %v6403_v2, 7  ;;  %v6409_v20 = vshrl.u32 %v14081_v37, 16  ;;  %v6412_v21 = vshll.u32 %v14081_v37, 16  ;;  %v17881_v23 = vpop.f32.mrb[19].mxu0 }
 0x371   : > { %v16774_v24 = vpop.eup %16773  ;;  %v6363_v29 = vrot.slane %v6361_v7, 6  ;;  %v6366_v33 = vrot.slane %v6364_v8, 7  ;;  %v6370_v38 = vshrl.u32 %v14079_v9, 16  ;;  %v6373_v41 = vshll.u32 %v14079_v9, 16 }
 0x372   : > { %v16776_v43 = vpop.eup %16775  ;;  %v6406_v16 = vor.u32 %v6405_v19, %v6402_v15  ;;  %v6411_v47 = vrot.slane %v6409_v20, 6  ;;  %v6414_v51 = vrot.slane %v6412_v21, 7  ;;  %v6281_v39 = vmul.f32 %v16774_v24, %v17814_v49  ;;  %v6386_v19 = vld [vmem:[#allocation3 + $0x10] sm:$0x3] }
 0x373   : > { %v16778_v53 = vpop.eup %16777  ;;  %v6367_v54 = vor.u32 %v6366_v33, %v6363_v29  ;;  %v6372_v48 = vrot.slane %v6370_v38, 6  ;;  %v6375_v35 = vrot.slane %v6373_v41, 7  ;;  %v6279_v57 = vmul.f32 %v16776_v43, %v17817_v31 }
 0x374   : > { %v16780_v27 = vpop.eup %16779  ;;  %v6407_v58 = vrot.slane %v6406_v16, 4  ;;  %v6431_v59 = vsel %vm17226_vm15, %v6406_v16, %v6430_v28  ;;  %v6415_v61 = vor.u32 %v6414_v51, %v6411_v47  ;;  %v14085_v0 = vpack.c.bf16 %v6281_v39, %v6281_v39  ;;  %v6478_v47 = vld [vmem:[#allocation3 + $0x18] sm:$0x8] }
 0x375   : > { %v16782_v1 = vpop.eup %16781  ;;  %6432 = vst [vmem:[#allocation3 + $0x10] sm:$0xc] %v6431_v59  ;;  %v6368_v2 = vrot.slane %v6367_v54, 4  ;;  %v6383_v37 = vsel %vm17200_vm7, %v6367_v54, %v6382_v10  ;;  %v6376_v49 = vor.u32 %v6375_v35, %v6372_v48  ;;  %v14082_v7 = vpack.c.bf16 %v6279_v57, %v6279_v57  ;;  %v17889_v8 = vpop.f32.mrb[20].mxu0 }
 0x376   : > { %v16784_v9 = vpop.eup %16783  ;;  %6384 = vst [vmem:[#allocation3 + $0x8] sm:$0xe] %v6383_v37  ;;  %v6416_v31 = vsel %vm17208_vm10, %v6407_v58, %v6415_v61  ;;  %v6417_v15 = vrot.slane %v6415_v61, 4  ;;  %v6467_v20 = vshrl.u32 %v14085_v0, 16  ;;  %v6470_v21 = vshll.u32 %v14085_v0, 16  ;;  %v17893_v24 = vpop.f32.mrb[21].mxu0 }
 0x377   : > { %v16786_v28 = vpop.eup %16785  ;;  %6433 = vst [vmem:[#allocation3 + $0x14] sm:$0xf] %v6416_v31  ;;  %v6377_v29 = vsel %vm17208_vm10, %v6368_v2, %v6376_v49  ;;  %v6378_v33 = vrot.slane %v6376_v49, 4  ;;  %v6419_v38 = vshrl.u32 %v14082_v7, 16  ;;  %v6422_v41 = vshll.u32 %v14082_v7, 16  ;;  %v17897_v43 = vpop.f32.mrb[22].mxu0 }
 0x378   : > { %6385 = vst [vmem:[#allocation3 + $0xc] sm:$0xf] %v6377_v29  ;;  %v6469_v16 = vrot.slane %v6467_v20, 6  ;;  %v6472_v10 = vrot.slane %v6470_v21, 7  ;;  %v6282_v51 = vmul.f32 %v16778_v53, %v17821_v52  ;;  %v6280_v39 = vmul.f32 %v16780_v27, %v17825_v56  ;;  %v17901_v54 = vpop.f32.mrb[23].mxu0 }
 0x379   : > { %v6387_v48 = vsel %vm17219_vm13, %v6378_v33, %v6386_v19  ;;  %v6421_v35 = vrot.slane %v6419_v38, 6  ;;  %v6424_v57 = vrot.slane %v6422_v41, 7  ;;  %16787 = vrcp.f32 %v17869_v4  ;;  %v6434_v52 = vld [vmem:[#allocation3 + $0x18] sm:$0x7] }
 0x37a   : > { %6388 = vst [vmem:[#allocation3 + $0x10] sm:$0x3] %v6387_v48  ;;  %v17906_v58 = vor.u32 %v6472_v10, %v6469_v16  ;;  %v14087_v59 = vpack.c.bf16 %v6282_v51, %v6282_v51  ;;  %v14084_v61 = vpack.c.bf16 %v6280_v39, %v6280_v39  ;;  %16789 = vrcp.f32 %v17875_v45 }
 0x37b   : > { %v6425_v0 = vor.u32 %v6424_v57, %v6421_v35  ;;  %v6479_v56 = vsel %vm17252_vm11, %v6424_v57, %v6478_v47  ;;  %v6178_v53 = vadd.f32 1.0, %v17873_v42  ;;  %v6176_v27 = vadd.f32 1.0, %v17879_v14  ;;  %v6527_v14 = vld [vmem:[#allocation3 + $0x24] sm:$0xf]  ;;  %v16512_v35 = vld [vmem:[%s19045_s3 + $0x48] sm:$0xff]  }
 0x37c   : > { %v6503_v2 = vrot.slane %v17906_v58, 4  ;;  %6480 = vst [vmem:[#allocation3 + $0x18] sm:$0x8] %v6479_v56  ;;  %v6505_v4 = vshrl.u32 %v14087_v59, 16  ;;  %v6508_v37 = vshll.u32 %v14087_v59, 16  ;;  %v6457_v49 = vshrl.u32 %v14084_v61, 16 }
 0x37d   : > { %v6426_v7 = vsel %vm17208_vm10, %v6417_v15, %v6425_v0  ;;  %v6455_v31 = vrot.slane %v6425_v0, 4  ;;  %v6460_v45 = vshll.u32 %v14084_v61, 16  ;;  %16791 = vrcp.f32 %v6178_v53  ;;  %v17916_v19 = vpop.f32.mrb[24].mxu0 }
 0x37e   : > { %v6435_v20 = vsel %vm17247_vm3, %v6426_v7, %v6434_v52  ;;  %v6507_v42 = vrot.slane %v6505_v4, 6  ;;  %v6510_v21 = vrot.slane %v6508_v37, 7  ;;  %v6459_v29 = vrot.slane %v6457_v49, 6  ;;  %v17920_v33 = vpop.f32.mrb[25].mxu0  ;;  %v16516_v4 = vld [vmem:[%s19045_s3 + $0x50] sm:$0xff]  }
 0x37f   : > { %6436 = vst [vmem:[#allocation3 + $0x18] sm:$0x7] %v6435_v20  ;;  %v6462_v38 = vrot.slane %v6460_v45, 7  ;;  %16793 = vrcp.f32 %v6176_v27  ;;  %v6181_v41 = vadd.f32 1.0, %v16782_v1  ;;  %v6179_v16 = vadd.f32 1.0, %v16784_v9  ;;  %v17922_v15 = vpop.f32.mrb[26].mxu0 }
 0x380   : > { %v17924_v10 = vor.u32 %v6510_v21, %v6507_v42  ;;  %v6182_v47 = vadd.f32 1.0, %v16786_v28  ;;  %16795 = vpow2.f32 %v17865_v62  ;;  %v17929_v51 = vadd.f32 %v17867_v34, %v17789_v32  ;;  %v17931_v39 = vpop.f32.mrb[27].mxu0  ;;  %v16508_v48 = vld [vmem:[#allocation3 + $0x8] sm:$0xff]   ;;  %v6482_v9 = vld [vmem:[#allocation3 + $0x20] sm:$0xf] }
 0x381   : > { %v6463_v1 = vor.u32 %v6462_v38, %v6459_v29  ;;  %16797 = vrcp.f32 %v6181_v41  ;;  %v17938_v57 = vadd.f32 %v17789_v32, %v17871_v5  ;;  %v17942_v62 = vadd.f32 %v17877_v12, %v17789_v32  ;;  %v16510_v34 = vld [vmem:[#allocation3 + $0x10] sm:$0xff]   ;;  %15221 = vmatmul.mubr.bf16.vlgmr.msra.gmra.mrb[0].mxu1 %v16508_v48 }
 0x382   : > { %v6512_v28 = vsel %vm17208_vm10, %v6503_v2, %v17924_v10  ;;  %v6513_v59 = vrot.slane %v17924_v10, 4  ;;  %16799 = vrcp.f32 %v6179_v16  ;;  %v13549_v61 = vmul.f32 -1.442695, %v17929_v51  ;;  %15224 = vmatprep.mubr.bf16.mxu1 %v16510_v34  ;;  %15257 = vmatpush3.bf16.msra.mxu1 %v17808_v46  ;;  %v16519_v16 = vld [vmem:[%s19045_s3 + $0x58] sm:$0xff]  }
 0x383   : > { %v16788_v0 = vpop.eup %16787  ;;  %v6528_v5 = vsel %vm17284_vm5, %v6512_v28, %v6527_v14  ;;  %v6464_v52 = vsel %vm17208_vm10, %v6455_v31, %v6463_v1  ;;  %v6465_v12 = vrot.slane %v6463_v1, 4  ;;  %16801 = vrcp.f32 %v6182_v47  ;;  %15258 = vmatprep.subr.bf16.mxu1 %v16512_v35  ;;  %v6531_v28 = vld [vmem:[#allocation3 + $0x2c] sm:$0x1] }
 0x384   : > { %v16790_v56 = vpop.eup %16789  ;;  %6529 = vst [vmem:[#allocation3 + $0x24] sm:$0xf] %v6528_v5  ;;  %6481 = vst [vmem:[#allocation3 + $0x1c] sm:$0xf] %v6464_v52  ;;  %v6285_v53 = vmul.f32 %v16788_v0, %v17830_v63  ;;  %16803 = vpow2.f32 %v13549_v61  ;;  %v13547_v27 = vmul.f32 -1.442695, %v17938_v57  ;;  %v17966_v49 = vadd.f32 %v17789_v32, %v17881_v23 }
 0x385   : > { %v13550_v2 = vmul.f32 -1.442695, %v17942_v62  ;;  %v6474_v37 = vsel %vm17208_vm10, %v6465_v12, %v17906_v58  ;;  %v6283_v46 = vmul.f32 %v16790_v56, %v17833_v3  ;;  %v17970_v63 = vadd.f32 %v17889_v8, %v17789_v32  ;;  %v17972_v7 = vpop.f32.mrb[28].mxu0  ;;  %v18003_v5 = vld [vmem:[%s19045_s3 + $0x60] sm:$0xff]  }
 0x386   : > { %v6483_v31 = vsel %vm17278_vm6, %v6474_v37, %v6482_v9  ;;  %v14090_v45 = vpack.c.bf16 %v6285_v53, %v6285_v53  ;;  %16805 = vpow2.f32 %v13547_v27  ;;  %v17978_v58 = vadd.f32 %v17789_v32, %v17893_v24  ;;  %v17980_v3 = vpop.f32.mrb[29].mxu0  ;;  %15259 = vmatpush3.bf16.msra.mxu1 %v16512_v35  ;;  %v6566_v12 = vld [vmem:[#allocation3 + $0x34] sm:$0x3] }
 0x387   : > { %v16792_v20 = vpop.eup %16791  ;;  %6484 = vst [vmem:[#allocation3 + $0x20] sm:$0xf] %v6483_v31  ;;  %v14088_v23 = vpack.c.bf16 %v6283_v46, %v6283_v46  ;;  %16807 = vpow2.f32 %v13550_v2  ;;  %v13548_v8 = vmul.f32 -1.442695, %v17966_v49  ;;  %v13553_v42 = vmul.f32 -1.442695, %v17970_v63  ;;  %15260 = vmatprep.subr.bf16.mxu1 %v16516_v4 }
 0x388   : > { %v17984_v21 = vpop.f32.mrb[30].mxu0  ;;  %v6550_v14 = vshrl.u32 %v14090_v45, 16  ;;  %v6553_v29 = vshll.u32 %v14090_v45, 16  ;;  %v6286_v38 = vmul.f32 %v16792_v20, %v17837_v6  ;;  %v17988_v24 = vmul.f32 -1.442695, %v17978_v58 }
 0x389   : > { %v17990_v41 = vpop.f32.mrb[31].mxu0  ;;  %v16794_v47 = vpop.eup %16793  ;;  %v6515_v48 = vshrl.u32 %v14088_v23, 16  ;;  %v6518_v1 = vshll.u32 %v14088_v23, 16  ;;  %16809 = vpow2.f32 %v13548_v8  ;;  %v17997_v35 = vadd.f32 %v17897_v43, %v17789_v32  ;;  %v6610_v8 = vld [vmem:[#allocation3 + $0x34] sm:$0xc] }
 0x38a   : > { %v16796_v9 = vpop.eup %16795  ;;  %v6552_v6 = vrot.slane %v6550_v14, 6  ;;  %v6555_v34 = vrot.slane %v6553_v29, 7  ;;  %v14091_v61 = vpack.c.bf16 %v6286_v38, %v6286_v38  ;;  %v6284_v0 = vmul.f32 %v16794_v47, %v17841_v11  ;;  %15261 = vmatpush3.bf16.msra.mxu1 %v16516_v4 }
 0x38b   : > { %v16798_v52 = vpop.eup %16797  ;;  %v6517_v56 = vrot.slane %v6515_v48, 6  ;;  %v6520_v53 = vrot.slane %v6518_v1, 7  ;;  %v6180_v27 = vadd.f32 1.0, %v16796_v9  ;;  %16811 = vpow2.f32 %v13553_v42  ;;  %v16511_v43 = vld [vmem:[#allocation3 + $0x18] sm:$0xff]   ;;  %15262 = vmatprep.subr.bf16.mxu1 %v16519_v16 }
 0x38c   : > { %v16800_v2 = vpop.eup %16799  ;;  %v18005_v37 = vor.u32 %v6555_v34, %v6552_v6  ;;  %v6580_v46 = vshrl.u32 %v14091_v61, 16  ;;  %v6583_v31 = vshll.u32 %v14091_v61, 16  ;;  %v14089_v45 = vpack.c.bf16 %v6284_v0, %v6284_v0  ;;  %15225 = vmatmul.mubr.bf16.gmra.mrb[4].mxu1 %v16511_v43 }
 0x38d   : > { %v16802_v11 = vpop.eup %16801  ;;  %v6521_v20 = vor.u32 %v6520_v53, %v6517_v56  ;;  %v6523_v23 = vrot.slane %v6517_v56, 4  ;;  %v6289_v14 = vmul.f32 %v16798_v52, %v17846_v25  ;;  %v6287_v29 = vmul.f32 %v16800_v2, %v17849_v36  ;;  %v18009_v38 = vpop.f32.mrb[32].mxu0  ;;  %v6562_v53 = vld [vmem:[#allocation3 + $0x2c] sm:$0xe] }
 0x38e   : > { %v16804_v42 = vpop.eup %16803  ;;  %v6558_v4 = vrot.slane %v18005_v37, 4  ;;  %v6582_v47 = vrot.slane %v6580_v46, 6  ;;  %v6585_v48 = vrot.slane %v6583_v31, 7  ;;  %v6541_v1 = vshrl.u32 %v14089_v45, 16  ;;  %v16513_v36 = vld [vmem:[#allocation3 + $0x20] sm:$0xff]   ;;  %v18018_v61 = vpop.f32.mrb[33].mxu0  ;;  %15263 = vmatpush3.bf16.msra.mxu1 %v16519_v16 }
 0x38f   : > { %v6522_v9 = vsel %vm17208_vm10, %v6513_v59, %v6521_v20  ;;  %v6532_v6 = vsel %vm17292_vm0, %v6523_v23, %v6531_v28  ;;  %v6544_v25 = vshll.u32 %v14089_v45, 16  ;;  %v14095_v34 = vpack.c.bf16 %v6289_v14, %v6289_v14  ;;  %v18022_v59 = vpop.f32.mrb[34].mxu0  ;;  %15264 = vmatprep.subr.bf16.mxu1 %v18003_v5  ;;  %v16525_v28 = vld [vmem:[%s19045_s3 + $0x68] sm:$0xff]   ;;  %15228 = vmatprep.mubr.bf16.mxu1 %v16513_v36 }
 0x390   : > { %v16806_v0 = vpop.eup %16805  ;;  %v6567_v52 = vsel %vm17219_vm13, %v6558_v4, %v6566_v12  ;;  %6530 = vst [vmem:[#allocation3 + $0x28] sm:$0xf] %v6522_v9  ;;  %6533 = vst [vmem:[#allocation3 + $0x2c] sm:$0x1] %v6532_v6  ;;  %v6586_v56 = vor.u32 %v6585_v48, %v6582_v47  ;;  %v6543_v10 = vrot.slane %v6541_v1, 6  ;;  %v14092_v43 = vpack.c.bf16 %v6287_v29, %v6287_v29  ;;  %v18029_v45 = vpop.f32.mrb[35].mxu0 }
 0x391   : > { %v16808_v2 = vpop.eup %16807  ;;  %6568 = vst [vmem:[#allocation3 + $0x34] sm:$0x3] %v6567_v52  ;;  %v6546_v16 = vrot.slane %v6544_v25, 7  ;;  %v6637_v46 = vshrl.u32 %v14095_v34, 16  ;;  %v6640_v31 = vshll.u32 %v14095_v34, 16  ;;  %v6290_v12 = vmul.f32 %v16802_v11, %v17853_v44  ;;  %v16528_v11 = vld [vmem:[%s19045_s3 + $0x70] sm:$0xff]  }
 0x392   : > { %v6587_v20 = vrot.slane %v6586_v56, 4  ;;  %v6611_v23 = vsel %vm17226_vm15, %v6586_v56, %v6610_v8  ;;  %v6589_v14 = vshrl.u32 %v14092_v43, 16  ;;  %v6592_v29 = vshll.u32 %v14092_v43, 16  ;;  %15265 = vmatpush3.bf16.msra.mxu1 %v18003_v5 }
 0x393   : > { %v16810_v4 = vpop.eup %16809  ;;  %6612 = vst [vmem:[#allocation3 + $0x34] sm:$0xc] %v6611_v23  ;;  %v6547_v47 = vor.u32 %v6546_v16, %v6543_v10  ;;  %v6639_v48 = vrot.slane %v6637_v46, 6  ;;  %v6642_v1 = vrot.slane %v6640_v31, 7  ;;  %v14096_v9 = vpack.c.bf16 %v6290_v12, %v6290_v12  ;;  %15266 = vmatprep.subr.bf16.mxu1 %v16525_v28 }
 0x394   : > { %v6591_v6 = vrot.slane %v6589_v14, 6  ;;  %v6594_v25 = vrot.slane %v6592_v29, 7  ;;  %16813 = vrcp.f32 %v6180_v27  ;;  %v6185_v44 = vadd.f32 1.0, %v16804_v42 }
 0x395   : > { %v16812_v8 = vpop.eup %16811  ;;  %v6548_v34 = vrot.slane %v6547_v47, 4  ;;  %v6563_v36 = vsel %vm17200_vm7, %v6547_v47, %v6562_v53  ;;  %v18039_v52 = vor.u32 %v6642_v1, %v6639_v48  ;;  %v6647_v56 = vshrl.u32 %v14096_v9, 16  ;;  %v16531_v53 = vld [vmem:[%s19045_s3 + $0x78] sm:$0xff]  }
 0x396   : > { %6564 = vst [vmem:[#allocation3 + $0x2c] sm:$0xe] %v6563_v36  ;;  %v18041_v10 = vor.u32 %v6594_v25, %v6591_v6  ;;  %v6650_v5 = vshll.u32 %v14096_v9, 16  ;;  %16815 = vrcp.f32 %v6185_v44  ;;  %v6183_v27 = vadd.f32 1.0, %v16806_v0  ;;  %15267 = vmatpush3.bf16.msra.mxu1 %v16525_v28  ;;  %v6662_v0 = vld [vmem:[#allocation3 + $0x44] sm:$0xf] }
 0x397   : > { %v6557_v42 = vsel %vm17208_vm10, %v6548_v34, %v18005_v37  ;;  %v6649_v43 = vrot.slane %v6647_v56, 6  ;;  %v6186_v16 = vadd.f32 1.0, %v16808_v2  ;;  %v6645_v46 = vrot.slane %v18039_v52, 4  ;;  %15268 = vmatprep.subr.bf16.mxu1 %v16528_v11 }
 0x398   : > { %6565 = vst [vmem:[#allocation3 + $0x30] sm:$0xf] %v6557_v42  ;;  %v6596_v31 = vsel %vm17208_vm10, %v6587_v20, %v18041_v10  ;;  %v6652_v12 = vrot.slane %v6650_v5, 7  ;;  %16817 = vrcp.f32 %v6183_v27  ;;  %v6184_v37 = vadd.f32 1.0, %v16810_v4 }
 0x399   : > { %6613 = vst [vmem:[#allocation3 + $0x38] sm:$0xf] %v6596_v31  ;;  %16819 = vrcp.f32 %v6186_v16  ;;  %v6189_v2 = vadd.f32 1.0, %v16812_v8  ;;  %v13554_v28 = vmul.f32 -1.442695, %v17997_v35  ;;  %v18059_v14 = vadd.f32 %v17789_v32, %v17901_v54 }
 0x39a   : > { %v18054_v23 = vor.u32 %v6652_v12, %v6649_v43  ;;  %16821 = vpow2.f32 %v17988_v24  ;;  %v18063_v20 = vadd.f32 %v17916_v19, %v17789_v32  ;;  %v18067_v29 = vadd.f32 %v17789_v32, %v17920_v33  ;;  %15269 = vmatpush3.bf16.msra.mxu1 %v16528_v11  ;;  %v16536_v33 = vld [vmem:[%s19045_s3 + $0x80] sm:$0xff]   ;;  %v6658_v16 = vld [vmem:[#allocation3 + $0x3c] sm:$0x8] }
 0x39b   : > { %16823 = vrcp.f32 %v6184_v37  ;;  %v18071_v4 = vadd.f32 %v17922_v15, %v17789_v32  ;;  %v18075_v24 = vadd.f32 %v17789_v32, %v17931_v39  ;;  %v13552_v19 = vmul.f32 -1.442695, %v18059_v14  ;;  %15270 = vmatprep.subr.bf16.mxu1 %v16531_v53 }
 0x39c   : > { %v6654_v54 = vsel %vm17208_vm10, %v6645_v46, %v18054_v23  ;;  %16825 = vrcp.f32 %v6189_v2  ;;  %v13557_v39 = vmul.f32 -1.442695, %v18063_v20  ;;  %v13555_v47 = vmul.f32 -1.442695, %v18067_v29 }
 0x39d   : > { %v6663_v15 = vsel %vm17278_vm6, %v6654_v54, %v6662_v0  ;;  %16827 = vpow2.f32 %v13554_v28  ;;  %v13558_v1 = vmul.f32 -1.442695, %v18071_v4  ;;  %v13556_v9 = vmul.f32 -1.442695, %v18075_v24  ;;  %v16514_v25 = vld [vmem:[#allocation3 + $0x28] sm:$0xff]  }
 0x39e   : > { %v16814_v48 = vpop.eup %16813  ;;  %6664 = vst [vmem:[#allocation3 + $0x44] sm:$0xf] %v6663_v15  ;;  %16829 = vpow2.f32 %v13552_v19  ;;  %v18092_v6 = vadd.f32 %v17972_v7, %v17789_v32  ;;  %15271 = vmatpush3.bf16.msra.mxu1 %v16531_v53  ;;  %v6597_v7 = vrot.slane %v18041_v10, 4  ;;  %v6683_v27 = vrot.slane %v18054_v23, 4  ;;  %v6614_v28 = vld [vmem:[#allocation3 + $0x3c] sm:$0x7] }
 0x39f   : > { %v6288_v44 = vmul.f32 %v16814_v48, %v17857_v50  ;;  %16831 = vpow2.f32 %v13557_v39  ;;  %v16515_v11 = vld [vmem:[#allocation3 + $0x30] sm:$0xff]   ;;  %15229 = vmatmul.mubr.bf16.gmra.mrb[8].mxu1 %v16514_v25  ;;  %15308 = vmatprep.subr.bf16.mxu1 %v16536_v33  ;;  %v18107_v10 = vadd.f32 %v17984_v21, %v17789_v32 }
 0x3a0   : > { %v16816_v8 = vpop.eup %16815  ;;  %16833 = vpow2.f32 %v13555_v47  ;;  %v13561_v34 = vmul.f32 -1.442695, %v18092_v6  ;;  %15232 = vmatprep.mubr.bf16.mxu1 %v16515_v11  ;;  %v6742_v21 = vld [vmem:[#allocation3 + $0x50] sm:$0xe] }
 0x3a1   : > { %v14093_v36 = vpack.c.bf16 %v6288_v44, %v6288_v44  ;;  %v6293_v56 = vmul.f32 %v16816_v8, %v17929_v51  ;;  %16835 = vpow2.f32 %v13558_v1  ;;  %v18103_v51 = vadd.f32 %v17789_v32, %v17980_v3 }
 0x3a2   : > { %v16818_v5 = vpop.eup %16817  ;;  %16837 = vpow2.f32 %v13556_v9 }
 0x3a3   : > { %v16820_v50 = vpop.eup %16819  ;;  %v6599_v42 = vshrl.u32 %v14093_v36, 16  ;;  %v6602_v43 = vshll.u32 %v14093_v36, 16  ;;  %v14100_v53 = vpack.c.bf16 %v6293_v56, %v6293_v56  ;;  %v6291_v46 = vmul.f32 %v16818_v5, %v17938_v57 }
 0x3a4   : > { %v16822_v31 = vpop.eup %16821  ;;  %v6294_v12 = vmul.f32 %v16820_v50, %v17942_v62  ;;  %16839 = vpow2.f32 %v13561_v34 }
 0x3a5   : > { %v16824_v0 = vpop.eup %16823  ;;  %v6601_v37 = vrot.slane %v6599_v42, 6  ;;  %v6604_v2 = vrot.slane %v6602_v43, 7  ;;  %v6721_v54 = vshrl.u32 %v14100_v53, 16  ;;  %v6724_v19 = vshll.u32 %v14100_v53, 16 }
 0x3a6   : > { %v16826_v33 = vpop.eup %16825  ;;  %v14098_v57 = vpack.c.bf16 %v6291_v46, %v6291_v46  ;;  %v14101_v15 = vpack.c.bf16 %v6294_v12, %v6294_v12  ;;  %v6292_v62 = vmul.f32 %v16824_v0, %v17966_v49  ;;  %v6187_v39 = vadd.f32 1.0, %v16822_v31  ;;  %v6707_v0 = vld [vmem:[#allocation3 + $0x48] sm:$0xf] }
 0x3a7   : > { %v16828_v47 = vpop.eup %16827  ;;  %v6605_v48 = vor.u32 %v6604_v2, %v6601_v37  ;;  %v6659_v3 = vsel %vm17252_vm11, %v6604_v2, %v6658_v16  ;;  %v6723_v1 = vrot.slane %v6721_v54, 6  ;;  %v6726_v32 = vrot.slane %v6724_v19, 7 }
 0x3a8   : > { %v16830_v9 = vpop.eup %16829  ;;  %6660 = vst [vmem:[#allocation3 + $0x3c] sm:$0x8] %v6659_v3  ;;  %v6685_v25 = vshrl.u32 %v14098_v57, 16  ;;  %v6688_v44 = vshll.u32 %v14098_v57, 16  ;;  %v6730_v11 = vshrl.u32 %v14101_v15, 16  ;;  %v6733_v8 = vshll.u32 %v14101_v15, 16 }
 0x3a9   : > { %v16832_v34 = vpop.eup %16831  ;;  %v6606_v36 = vsel %vm17208_vm10, %v6597_v7, %v6605_v48  ;;  %v6635_v49 = vrot.slane %v6605_v48, 4  ;;  %v6727_v56 = vor.u32 %v6726_v32, %v6723_v1  ;;  %v14099_v5 = vpack.c.bf16 %v6292_v62, %v6292_v62  ;;  %v6711_v48 = vld [vmem:[#allocation3 + $0x50] sm:$0x1] }
 0x3aa   : > { %v16834_v50 = vpop.eup %16833  ;;  %v6615_v42 = vsel %vm17247_vm3, %v6606_v36, %v6614_v28  ;;  %v6687_v43 = vrot.slane %v6685_v25, 6  ;;  %v6690_v16 = vrot.slane %v6688_v44, 7  ;;  %v6732_v53 = vrot.slane %v6730_v11, 6  ;;  %v6746_v28 = vld [vmem:[#allocation3 + $0x58] sm:$0x3] }
 0x3ab   : > { %v16836_v46 = vpop.eup %16835  ;;  %6616 = vst [vmem:[#allocation3 + $0x3c] sm:$0x7] %v6615_v42  ;;  %v6644_v31 = vsel %vm17208_vm10, %v6635_v49, %v18039_v52  ;;  %v6728_v12 = vrot.slane %v6727_v56, 4  ;;  %v6743_v7 = vsel %vm17200_vm7, %v6727_v56, %v6742_v21  ;;  %v6735_v37 = vrot.slane %v6733_v8, 7 }
 0x3ac   : > { %v16838_v2 = vpop.eup %16837  ;;  %6661 = vst [vmem:[#allocation3 + $0x40] sm:$0xf] %v6644_v31  ;;  %6744 = vst [vmem:[#allocation3 + $0x50] sm:$0xe] %v6743_v7  ;;  %v6691_v54 = vor.u32 %v6690_v16, %v6687_v43  ;;  %v6695_v19 = vshrl.u32 %v14099_v5, 16  ;;  %v6698_v57 = vshll.u32 %v14099_v5, 16  ;;  %v6297_v15 = vmul.f32 %v16826_v33, %v17970_v63 }
 0x3ad   : > { %v6736_v62 = vor.u32 %v6735_v37, %v6732_v53  ;;  %16841 = vrcp.f32 %v6187_v39  ;;  %v6190_v3 = vadd.f32 1.0, %v16828_v47  ;;  %v6188_v52 = vadd.f32 1.0, %v16830_v9  ;;  %v6838_v9 = vld [vmem:[#allocation3 + $0x60] sm:$0x8]  ;;  %v17029_v7 = vld [vmem:[%s19044_s2] ss:$0 sm:$0xff] }
 0x3ae   : > { %v16840_v1 = vpop.eup %16839  ;;  %v6692_v32 = vsel %vm17208_vm10, %v6683_v27, %v6691_v54  ;;  %v6693_v21 = vrot.slane %v6691_v54, 4  ;;  %v6697_v25 = vrot.slane %v6695_v19, 6  ;;  %v6700_v44 = vrot.slane %v6698_v57, 7 }
 0x3af   : > { %v6708_v11 = vsel %vm17284_vm5, %v6692_v32, %v6707_v0  ;;  %v6737_v63 = vsel %vm17208_vm10, %v6728_v12, %v6736_v62  ;;  %v6738_v33 = vrot.slane %v6736_v62, 4  ;;  %v14104_v8 = vpack.c.bf16 %v6297_v15, %v6297_v15 }
 0x3b0   : > { %6709 = vst [vmem:[#allocation3 + $0x48] sm:$0xf] %v6708_v11  ;;  %6745 = vst [vmem:[#allocation3 + $0x54] sm:$0xf] %v6737_v63  ;;  %v6701_v39 = vor.u32 %v6700_v44, %v6697_v25  ;;  %v6703_v47 = vrot.slane %v6697_v25, 4  ;;  %16843 = vrcp.f32 %v6190_v3  ;;  %v6193_v23 = vadd.f32 1.0, %v16832_v34 }
 0x3b1   : > { %v6747_v27 = vsel %vm17219_vm13, %v6738_v33, %v6746_v28  ;;  %v6779_v36 = vshrl.u32 %v14104_v8, 16  ;;  %v6782_v49 = vshll.u32 %v14104_v8, 16  ;;  %16845 = vrcp.f32 %v6188_v52 }
 0x3b2   : > { %6748 = vst [vmem:[#allocation3 + $0x58] sm:$0x3] %v6747_v27  ;;  %v6702_v56 = vsel %vm17208_vm10, %v6693_v21, %v6701_v39  ;;  %v6712_v5 = vsel %vm17292_vm0, %v6703_v47, %v6711_v48  ;;  %16847 = vrcp.f32 %v6193_v23  ;;  %v6191_v42 = vadd.f32 1.0, %v16834_v50  ;;  %v16517_v43 = vld [vmem:[#allocation3 + $0x38] sm:$0xff]  }
 0x3b3   : > { %6710 = vst [vmem:[#allocation3 + $0x4c] sm:$0xf] %v6702_v56  ;;  %6713 = vst [vmem:[#allocation3 + $0x50] sm:$0x1] %v6712_v5  ;;  %v6781_v16 = vrot.slane %v6779_v36, 6  ;;  %v6784_v34 = vrot.slane %v6782_v49, 7  ;;  %v18140_v0 = vadd.f32 %v17029_v7, %v17990_v41  ;;  %15233 = vmatmul.mubr.bf16.gmra.mrb[12].mxu1 %v16517_v43  ;;  %v18145_v54 = vadd.f32 %v17029_v7, %v18009_v38 }
 0x3b4   : > { %v6194_v53 = vadd.f32 1.0, %v16836_v46  ;;  %v6192_v31 = vadd.f32 1.0, %v16838_v2  ;;  %16849 = vrcp.f32 %v6191_v42  ;;  %v6197_v12 = vadd.f32 1.0, %v16840_v1  ;;  %v16518_v37 = vld [vmem:[#allocation3 + $0x40] sm:$0xff]   ;;  %v6790_v23 = vld [vmem:[#allocation3 + $0x58] sm:$0xc] }
 0x3b5   : > { %v6839_v50 = vsel %vm17252_vm11, %v6784_v34, %v6838_v9  ;;  %v18148_v46 = vadd.f32 %v17029_v7, %v18018_v61  ;;  %v13559_v2 = vmul.f32 -1.442695, %v18103_v51  ;;  %15236 = vmatprep.mubr.bf16.mxu1 %v16518_v37  ;;  %v18151_v41 = vor.u32 %v6784_v34, %v6781_v16 }
 0x3b6   : > { %16851 = vrcp.f32 %v6194_v53  ;;  %6840 = vst [vmem:[#allocation3 + $0x60] sm:$0x8] %v6839_v50  ;;  %v13562_v19 = vmul.f32 -1.442695, %v18107_v10  ;;  %v18155_v57 = vadd.f32 %v17029_v7, %v18022_v59  ;;  %v13560_v15 = vmul.f32 -1.442695, %v18140_v0 }
 0x3b7   : > { %16853 = vrcp.f32 %v6192_v31  ;;  %v16842_v28 = vpop.eup %16841  ;;  %v13565_v61 = vmul.f32 -1.442695, %v18145_v54  ;;  %v13563_v62 = vmul.f32 -1.442695, %v18148_v46  ;;  %v18162_v48 = vadd.f32 %v17029_v7, %v18029_v45 }
 0x3b8   : > { %16855 = vrcp.f32 %v6197_v12  ;;  %v6295_v38 = vmul.f32 %v16842_v28, %v17978_v58  ;;  %v6815_v21 = vrot.slane %v18151_v41, 4  ;;  %v13566_v58 = vmul.f32 -1.442695, %v18155_v57 }
 0x3b9   : > { %16857 = vpow2.f32 %v13559_v2  ;;  %v13564_v39 = vmul.f32 -1.442695, %v18162_v48 }
 0x3ba   : > { %v16844_v3 = vpop.eup %16843  ;;  %v14102_v52 = vpack.c.bf16 %v6295_v38, %v6295_v38  ;;  %v16520_v1 = vld [vmem:[#allocation3 + $0x48] sm:$0xff]   ;;  %16859 = vpow2.f32 %v13562_v19  ;;  %v16521_v25 = vld [vmem:[#allocation3 + $0x50] sm:$0xff]  }
 0x3bb   : > { %v16846_v32 = vpop.eup %16845  ;;  %v6298_v59 = vmul.f32 %v16844_v3, %v17997_v35  ;;  %16861 = vpow2.f32 %v13560_v15  ;;  %15237 = vmatmul.mubr.bf16.gmra.mrb[16].mxu1 %v16520_v1 }
 0x3bc   : > { %v16848_v44 = vpop.eup %16847  ;;  %v6760_v11 = vshrl.u32 %v14102_v52, 16  ;;  %v6763_v63 = vshll.u32 %v14102_v52, 16  ;;  %v6296_v33 = vmul.f32 %v16846_v32, %v18059_v14  ;;  %16863 = vpow2.f32 %v13565_v61  ;;  %15240 = vmatprep.mubr.bf16.mxu1 %v16521_v25 }
 0x3bd   : > { %v14106_v45 = vpack.c.bf16 %v6298_v59, %v6298_v59  ;;  %v6301_v8 = vmul.f32 %v16848_v44, %v18063_v20  ;;  %16865 = vpow2.f32 %v13563_v62  ;;  %v6891_v62 = vld [vmem:[#allocation3 + $0x74] sm:$0x1]  ;;  %v6794_v59 = vld [vmem:[#allocation3 + $0x60] sm:$0x7] }
 0x3be   : > { %v16850_v47 = vpop.eup %16849  ;;  %v6762_v35 = vrot.slane %v6760_v11, 6  ;;  %v6765_v9 = vrot.slane %v6763_v63, 7  ;;  %v14103_v27 = vpack.c.bf16 %v6296_v33, %v6296_v33  ;;  %16867 = vpow2.f32 %v13566_v58 }
 0x3bf   : > { %v6817_v49 = vshrl.u32 %v14106_v45, 16  ;;  %v6820_v56 = vshll.u32 %v14106_v45, 16  ;;  %v14110_v5 = vpack.c.bf16 %v6301_v8, %v6301_v8  ;;  %v6299_v14 = vmul.f32 %v16850_v47, %v18067_v29 }
 0x3c0   : > { %v16852_v36 = vpop.eup %16851  ;;  %v6766_v43 = vor.u32 %v6765_v9, %v6762_v35  ;;  %v6769_v16 = vshrl.u32 %v14103_v27, 16  ;;  %v6772_v20 = vshll.u32 %v14103_v27, 16  ;;  %16869 = vpow2.f32 %v13564_v39  ;;  %v6842_v27 = vld [vmem:[#allocation3 + $0x68] sm:$0xf] }
 0x3c1   : > { %v16854_v42 = vpop.eup %16853  ;;  %v6302_v34 = vmul.f32 %v16852_v36, %v18071_v4  ;;  %v6819_v31 = vrot.slane %v6817_v49, 6  ;;  %v6822_v12 = vrot.slane %v6820_v56, 7  ;;  %v6875_v7 = vshrl.u32 %v14110_v5, 16  ;;  %v6922_v36 = vld [vmem:[#allocation3 + $0x74] sm:$0xe] }
 0x3c2   : > { %v16856_v53 = vpop.eup %16855  ;;  %v6767_v37 = vrot.slane %v6766_v43, 4  ;;  %v6791_v50 = vsel %vm17226_vm15, %v6766_v43, %v6790_v23  ;;  %v6771_v2 = vrot.slane %v6769_v16, 6  ;;  %v6774_v28 = vrot.slane %v6772_v20, 7 }
 0x3c3   : > { %6792 = vst [vmem:[#allocation3 + $0x58] sm:$0xc] %v6791_v50  ;;  %v6823_v19 = vor.u32 %v6822_v12, %v6819_v31  ;;  %v18174_v29 = vrot.slane %v6875_v7, 6  ;;  %v14107_v38 = vpack.c.bf16 %v6299_v14, %v6299_v14  ;;  %v16858_v15 = vpop.eup %16857  ;;  %v14111_v4 = vpack.c.bf16 %v6302_v34, %v6302_v34 }
 0x3c4   : > { %v6775_v61 = vor.u32 %v6774_v28, %v6771_v2  ;;  %v6300_v3 = vmul.f32 %v16854_v42, %v18075_v24  ;;  %v6305_v52 = vmul.f32 %v16856_v53, %v18092_v6  ;;  %v16860_v1 = vpop.eup %16859  ;;  %v6878_v58 = vshll.u32 %v14110_v5, 16  ;;  %v6887_v28 = vld [vmem:[#allocation3 + $0x6c] sm:$0xf] }
 0x3c5   : > { %v6824_v32 = vsel %vm17208_vm10, %v6815_v21, %v6823_v19  ;;  %v6883_v25 = vrot.slane %v18174_v29, 4  ;;  %v16862_v44 = vpop.eup %16861  ;;  %v6827_v33 = vshrl.u32 %v14107_v38, 16  ;;  %v6830_v45 = vshll.u32 %v14107_v38, 16 }
 0x3c6   : > { %6841 = vst [vmem:[#allocation3 + $0x64] sm:$0xf] %v6824_v32  ;;  %v6776_v11 = vsel %vm17208_vm10, %v6767_v37, %v6775_v61  ;;  %v6777_v63 = vrot.slane %v6775_v61, 4  ;;  %v16864_v24 = vpop.eup %16863  ;;  %v6901_v8 = vshrl.u32 %v14111_v4, 16  ;;  %v6904_v21 = vshll.u32 %v14111_v4, 16 }
 0x3c7   : > { %6793 = vst [vmem:[#allocation3 + $0x5c] sm:$0xf] %v6776_v11  ;;  %v6892_v6 = vsel %vm17292_vm0, %v6883_v25, %v6891_v62  ;;  %v14109_v47 = vpack.c.bf16 %v6300_v3, %v6300_v3  ;;  %v16866_v35 = vpop.eup %16865  ;;  %v6829_v9 = vrot.slane %v6827_v33, 6  ;;  %v6832_v23 = vrot.slane %v6830_v45, 7 }
 0x3c8   : > { %v6786_v39 = vsel %vm17208_vm10, %v6777_v63, %v18151_v41  ;;  %6893 = vst [vmem:[#allocation3 + $0x74] sm:$0x1] %v6892_v6  ;;  %v14114_v49 = vpack.c.bf16 %v6305_v52, %v6305_v52  ;;  %v6903_v5 = vrot.slane %v6901_v8, 6  ;;  %v6906_v14 = vrot.slane %v6904_v21, 7  ;;  %v16868_v53 = vpop.eup %16867 }
 0x3c9   : > { %v6795_v56 = vsel %vm17247_vm3, %v6786_v39, %v6794_v59  ;;  %v6865_v42 = vshrl.u32 %v14109_v47, 16  ;;  %v6825_v43 = vrot.slane %v6823_v19, 4  ;;  %v6880_v16 = vrot.slane %v6878_v58, 7 }
 0x3ca   : > { %6796 = vst [vmem:[#allocation3 + $0x60] sm:$0x7] %v6795_v56  ;;  %v6833_v20 = vor.u32 %v6832_v23, %v6829_v9  ;;  %v6868_v34 = vshll.u32 %v14109_v47, 16  ;;  %v18190_v31 = vor.u32 %v6906_v14, %v6903_v5  ;;  %v6195_v12 = vadd.f32 1.0, %v16858_v15  ;;  %v16870_v52 = vpop.eup %16869 }
 0x3cb   : > { %v6867_v41 = vrot.slane %v6865_v42, 6  ;;  %v6198_v7 = vadd.f32 1.0, %v16860_v1  ;;  %v6949_v61 = vshrl.u32 %v14114_v49, 16  ;;  %v6196_v15 = vadd.f32 1.0, %v16862_v44 }
 0x3cc   : > { %v6834_v37 = vsel %vm17208_vm10, %v6825_v43, %v6833_v20  ;;  %v6863_v50 = vrot.slane %v6833_v20, 4  ;;  %v6870_v2 = vrot.slane %v6868_v34, 7  ;;  %v6923_v19 = vsel %vm17200_vm7, %v18190_v31, %v6922_v36 }
 0x3cd   : > { %v6843_v38 = vsel %vm17278_vm6, %v6834_v37, %v6842_v27  ;;  %6924 = vst [vmem:[#allocation3 + $0x74] sm:$0xe] %v6923_v19  ;;  %16871 = vrcp.f32 %v6195_v12  ;;  %v6201_v4 = vadd.f32 1.0, %v16864_v24  ;;  %v6881_v1 = vor.u32 %v6880_v16, %v18174_v29  ;;  %v6970_v19 = vld [vmem:[#allocation3 + $0x7c] sm:$0xc] }
 0x3ce   : > { %6844 = vst [vmem:[#allocation3 + $0x68] sm:$0xf] %v6843_v38  ;;  %v6871_v62 = vor.u32 %v6870_v2, %v6867_v41  ;;  %v16523_v3 = vld [vmem:[#allocation3 + $0x58] sm:$0xff]   ;;  %16873 = vrcp.f32 %v6198_v7  ;;  %v6199_v32 = vadd.f32 1.0, %v16866_v35  ;;  %v6202_v59 = vadd.f32 1.0, %v16868_v53 }
 0x3cf   : > { %v6952_v17 = vshll.u32 %v14114_v49, 16  ;;  %16875 = vrcp.f32 %v6196_v15  ;;  %15241 = vmatmul.mubr.bf16.gmra.mrb[20].mxu1 %v16523_v3  ;;  %v6951_v29 = vrot.slane %v6949_v61, 6  ;;  %v6200_v45 = vadd.f32 1.0, %v16870_v52  ;;  %v6926_v2 = vld [vmem:[#allocation3 + $0x7c] sm:$0x3] }
 0x3d0   : > { %v6872_v58 = vsel %vm17208_vm10, %v6863_v50, %v6871_v62  ;;  %v6873_v25 = vrot.slane %v6871_v62, 4  ;;  %16877 = vrcp.f32 %v6201_v4  ;;  %v6908_v56 = vrot.slane %v18190_v31, 4  ;;  %v7018_v31 = vld [vmem:[#allocation3 + $0x84] sm:$0x8]  ;;  %v6974_v38 = vld [vmem:[#allocation3 + $0x84] sm:$0x7] }
 0x3d1   : > { %v6888_v11 = vsel %vm17284_vm5, %v6872_v58, %v6887_v28  ;;  %v16524_v44 = vld [vmem:[#allocation3 + $0x60] sm:$0xff]   ;;  %16879 = vrcp.f32 %v6199_v32  ;;  %v6954_v33 = vrot.slane %v6952_v17, 7  ;;  %vm12633_vm7 = vcmask 1046532  }
 0x3d2   : > { %v6882_v63 = vsel %vm17208_vm10, %v6873_v25, %v6881_v1  ;;  %6889 = vst [vmem:[#allocation3 + $0x6c] sm:$0xf] %v6888_v11  ;;  %16881 = vrcp.f32 %v6202_v59  ;;  %15244 = vmatprep.mubr.bf16.mxu1 %v16524_v44 }
 0x3d3   : > { %6890 = vst [vmem:[#allocation3 + $0x70] sm:$0xf] %v6882_v63  ;;  %v18206_v6 = vor.u32 %v6954_v33, %v6951_v29  ;;  %16883 = vrcp.f32 %v6200_v45 }
 0x3d5   : > { %v6957_v5 = vrot.slane %v18206_v6, 4 }
 0x3d7   : > { %v16872_v24 = vpop.eup %16871 }
 0x3d8   : > { %v16874_v8 = vpop.eup %16873  ;;  %v6303_v21 = vmul.f32 %v16872_v24, %v18103_v51 }
 0x3d9   : > { %v16526_v47 = vld [vmem:[#allocation3 + $0x68] sm:$0xff]   ;;  %v16876_v35 = vpop.eup %16875  ;;  %v6306_v39 = vmul.f32 %v16874_v8, %v18107_v10 }
 0x3da   : > { %v16527_v9 = vld [vmem:[#allocation3 + $0x70] sm:$0xff]   ;;  %v16878_v23 = vpop.eup %16877  ;;  %v14112_v27 = vpack.c.bf16 %v6303_v21, %v6303_v21  ;;  %v6304_v36 = vmul.f32 %v16876_v35, %v18140_v0  ;;  %15245 = vmatmul.mubr.bf16.gmra.mrb[24].mxu1 %v16526_v47 }
 0x3db   : > { %v16880_v49 = vpop.eup %16879  ;;  %v14115_v14 = vpack.c.bf16 %v6306_v39, %v6306_v39  ;;  %v6309_v42 = vmul.f32 %v16878_v23, %v18145_v54  ;;  %15248 = vmatprep.mubr.bf16.mxu1 %v16527_v9 }
 0x3dc   : > { %v16882_v51 = vpop.eup %16881  ;;  %v6910_v43 = vshrl.u32 %v14112_v27, 16  ;;  %v6913_v16 = vshll.u32 %v14112_v27, 16  ;;  %v14113_v10 = vpack.c.bf16 %v6304_v36, %v6304_v36  ;;  %v6307_v20 = vmul.f32 %v16880_v49, %v18148_v46 }
 0x3dd   : > { %v6959_v34 = vshrl.u32 %v14115_v14, 16  ;;  %v6962_v53 = vshll.u32 %v14115_v14, 16  ;;  %v14120_v41 = vpack.c.bf16 %v6309_v42, %v6309_v42  ;;  %v6310_v0 = vmul.f32 %v16882_v51, %v18155_v57  ;;  %v16884_v11 = vpop.eup %16883 }
 0x3de   : > { %v6912_v12 = vrot.slane %v6910_v43, 6  ;;  %v6915_v7 = vrot.slane %v6913_v16, 7  ;;  %v6940_v37 = vshrl.u32 %v14113_v10, 16  ;;  %v6943_v50 = vshll.u32 %v14113_v10, 16  ;;  %v16533_v43 = vld [vmem:[#allocation3] sm:$0xff]  }
 0x3df   : > { %v6961_v28 = vrot.slane %v6959_v34, 6  ;;  %v6964_v54 = vrot.slane %v6962_v53, 7  ;;  %v7045_v61 = vshrl.u32 %v14120_v41, 16  ;;  %v7048_v62 = vshll.u32 %v14120_v41, 16 }
 0x3e0   : > { %v6916_v15 = vor.u32 %v6915_v7, %v6912_v12  ;;  %v6942_v4 = vrot.slane %v6940_v37, 6  ;;  %v6945_v46 = vrot.slane %v6943_v50, 7  ;;  %v14117_v3 = vpack.c.bf16 %v6307_v20, %v6307_v20  ;;  %v16534_v7 = vld [vmem:[#allocation3 + $0x8] sm:$0xff]  }
 0x3e1   : > { %v6965_v52 = vor.u32 %v6964_v54, %v6961_v28  ;;  %v7019_v57 = vsel %vm17252_vm11, %v6964_v54, %v7018_v31  ;;  %v7047_v1 = vrot.slane %v7045_v61, 6  ;;  %v7050_v32 = vrot.slane %v7048_v62, 7  ;;  %v16535_v62 = vld [vmem:[#allocation3 + $0x10] sm:$0xff]  }
 0x3e2   : > { %v6917_v59 = vsel %vm17208_vm10, %v6908_v56, %v6916_v15  ;;  %v6918_v58 = vrot.slane %v6916_v15, 4  ;;  %7020 = vst [vmem:[#allocation3 + $0x84] sm:$0x8] %v7019_v57  ;;  %v6946_v25 = vor.u32 %v6945_v46, %v6942_v4  ;;  %v6997_v17 = vshrl.u32 %v14117_v3, 16  ;;  %v16537_v46 = vld [vmem:[#allocation3 + $0x18] sm:$0xff]  }
 0x3e3   : > { %6925 = vst [vmem:[#allocation3 + $0x78] sm:$0xf] %v6917_v59  ;;  %v6966_v44 = vsel %vm17208_vm10, %v6957_v5, %v6965_v52  ;;  %v7000_v63 = vshll.u32 %v14117_v3, 16  ;;  %v7051_v24 = vor.u32 %v7050_v32, %v7047_v1  ;;  %v14121_v47 = vpack.c.bf16 %v6310_v0, %v6310_v0  ;;  %v7071_v5 = vld [vmem:[#allocation3 + $0x98] sm:$0x1]  ;;  %v16538_v32 = vld [vmem:[#allocation3 + $0x20] sm:$0xff]  }
 0x3e4   : > { %v6927_v29 = vsel %vm17219_vm13, %v6918_v58, %v6926_v2  ;;  %v6975_v60 = vsel %vm17247_vm3, %v6966_v44, %v6974_v38  ;;  %v6947_v33 = vrot.slane %v6946_v25, 4  ;;  %v6971_v45 = vsel %vm17226_vm15, %v6946_v25, %v6970_v19  ;;  %v7022_v0 = vld [vmem:[#allocation3 + $0x8c] sm:$0xf]  ;;  %v7067_v2 = vld [vmem:[#allocation3 + $0x90] sm:$0xf]  ;;  %v16540_v44 = vld [vmem:[%s19045_s3 + $0x88] sm:$0xff]  }
 0x3e5   : > { %6928 = vst [vmem:[#allocation3 + $0x7c] sm:$0x3] %v6927_v29  ;;  %6976 = vst [vmem:[#allocation3 + $0x84] sm:$0x7] %v6975_v60  ;;  %v6999_v8 = vrot.slane %v6997_v17, 6  ;;  %v7002_v21 = vrot.slane %v7000_v63, 7  ;;  %v6308_v30 = vmul.f32 %v16884_v11, %v18162_v48 }
 0x3e6   : > { %6972 = vst [vmem:[#allocation3 + $0x7c] sm:$0xc] %v6971_v45  ;;  %v6956_v35 = vsel %vm17208_vm10, %v6947_v33, %v18206_v6  ;;  %v6995_v39 = vrot.slane %v6965_v52, 4  ;;  %v7055_v9 = vshrl.u32 %v14121_v47, 16  ;;  %v7058_v23 = vshll.u32 %v14121_v47, 16  ;;  %v16539_v25 = vld [vmem:[#allocation3 + $0x28] sm:$0xff]  }
 0x3e7   : > { %6973 = vst [vmem:[#allocation3 + $0x80] sm:$0xf] %v6956_v35  ;;  %v7003_v55 = vor.u32 %v7002_v21, %v6999_v8  ;;  %v14118_v40 = vpack.c.bf16 %v6308_v30, %v6308_v30  ;;  %v7053_v27 = vrot.slane %v7051_v24, 4  ;;  %v7789_v31 = vshll.u32 %v16533_v43, 16  ;;  %v17030_v33 = vld [vmem:[%s19045_s3 + $0x80] sm:$0xff]   ;;  %v16543_v21 = vld [vmem:[%s19045_s3 + $0x90] sm:$0xff]  }
 0x3e8   : > { %v7057_v49 = vrot.slane %v7055_v9, 6  ;;  %v7060_v56 = vrot.slane %v7058_v23, 7  ;;  %v7787_v54 = vshrl.u32 %v16533_v43, 16  ;;  %v7794_v61 = vshll.u32 %v16534_v7, 16  ;;  %v16541_v8 = vld [vmem:[#allocation3 + $0x30] sm:$0xff]   ;;  %v16545_v43 = vld [vmem:[#allocation3 + $0x48] sm:$0xff]  }
 0x3e9   : > { %v7004_v36 = vsel %vm17208_vm10, %v6995_v39, %v7003_v55  ;;  %v7007_v14 = vshrl.u32 %v14118_v40, 16  ;;  %v7010_v42 = vshll.u32 %v14118_v40, 16  ;;  %v7005_v48 = vrot.slane %v7003_v55, 4  ;;  %v16542_v39 = vld [vmem:[#allocation3 + $0x38] sm:$0xff]   ;;  %v16546_v23 = vld [vmem:[%s19045_s3 + $0x98] sm:$0xff]  }
 0x3ea   : > { %7021 = vst [vmem:[#allocation3 + $0x88] sm:$0xf] %v7004_v36  ;;  %v7061_v51 = vor.u32 %v7060_v56, %v7057_v49  ;;  %v7063_v6 = vrot.slane %v7057_v49, 4  ;;  %v7791_v19 = vrot.slane %v7789_v31, 1  ;;  %v7796_v4 = vrot.slane %v7794_v61, 1 }
 0x3eb   : > { %v7009_v16 = vrot.slane %v7007_v14, 6  ;;  %v7012_v10 = vrot.slane %v7010_v42, 7  ;;  %v7802_v52 = vshll.u32 %v16535_v62, 16  ;;  %v7810_v57 = vshll.u32 %v16537_v46, 16  ;;  %v16549_v14 = vld [vmem:[%s19045_s3 + $0xa0] sm:$0xff]  }
 0x3ec   : > { %v7062_v34 = vsel %vm17208_vm10, %v7053_v27, %v7061_v51  ;;  %v7072_v53 = vsel %vm17292_vm0, %v7063_v6, %v7071_v5  ;;  %v7792_v15 = vor.u32 %v7791_v19, %v7787_v54  ;;  %v7798_v1 = vshrl.u32 %v16534_v7, 16  ;;  %v16544_v5 = vld [vmem:[#allocation3 + $0x40] sm:$0xff]   ;;  %v16558_v54 = vld [vmem:[%s19045_s3 + $0xb8] sm:$0xff]  }
 0x3ed   : > { %v16529_v20 = vld [vmem:[#allocation3 + $0x78] sm:$0xff]   ;;  %7070 = vst [vmem:[#allocation3 + $0x94] sm:$0xf] %v7062_v34  ;;  %7073 = vst [vmem:[#allocation3 + $0x98] sm:$0x1] %v7072_v53  ;;  %v7013_v41 = vor.u32 %v7012_v10, %v7009_v16  ;;  %v7804_v22 = vrot.slane %v7802_v52, 1 }
 0x3ee   : > { %15249 = vmatmul.mubr.bf16.gmra.mrb[28].mxu1 %v16529_v20  ;;  %v16530_v12 = vld [vmem:[#allocation3 + $0x80] sm:$0xff]   ;;  %v7797_v13 = vsel %vm1500_vm1, %v7792_v15, %v7796_v4  ;;  %v7800_v59 = vor.u32 %v7798_v1, %v7796_v4  ;;  %v7806_v18 = vshrl.u32 %v16535_v62, 16  ;;  %v7812_v58 = vrot.slane %v7810_v57, 1  ;;  %v16551_v57 = vld [vmem:[#allocation3 + $0x68] sm:$0xff]  }
 0x3ef   : > { %v7014_v37 = vsel %vm17208_vm10, %v7005_v48, %v7013_v41  ;;  %v7043_v50 = vrot.slane %v7013_v41, 4  ;;  %15252 = vmatprep.mubr.bf16.mxu1 %v16530_v12  ;;  %v7818_v11 = vshll.u32 %v16538_v32, 16  ;;  %v7826_v60 = vshll.u32 %v16539_v25, 16  ;;  %v16552_v10 = vld [vmem:[%s19045_s3 + $0xa8] sm:$0xff]   ;;  %v16547_v12 = vld [vmem:[#allocation3 + $0x50] sm:$0xff]   ;;  %v16555_v7 = vld [vmem:[%s19045_s3 + $0xb0] sm:$0xff]  }
 0x3f0   : > { %v7023_v28 = vsel %vm17278_vm6, %v7014_v37, %v7022_v0  ;;  %v7808_v17 = vor.u32 %v7806_v18, %v7804_v22  ;;  %v7805_v63 = vsel %vm1500_vm1, %v7800_v59, %v7804_v22  ;;  %v7814_v45 = vshrl.u32 %v16537_v46, 16  ;;  %v16550_v15 = vld [vmem:[#allocation3 + $0x60] sm:$0xff]   ;;  %v18282_v46 = vld [vmem:[%s19045_s3 + $0xc0] sm:$0xff]  }
 0x3f1   : > { %7024 = vst [vmem:[#allocation3 + $0x8c] sm:$0xf] %v7023_v28  ;;  %v7052_v26 = vsel %vm17208_vm10, %v7043_v50, %v7051_v24  ;;  %v7820_v24 = vrot.slane %v7818_v11, 1  ;;  %v7822_v35 = vshrl.u32 %v16538_v32, 16  ;;  %v7828_v30 = vrot.slane %v7826_v60, 1 }
 0x3f2   : > { %v7068_v38 = vsel %vm17284_vm5, %v7052_v26, %v7067_v2  ;;  %v7813_v29 = vsel %vm1500_vm1, %v7808_v17, %v7812_v58  ;;  %v7816_v47 = vor.u32 %v7814_v45, %v7812_v58  ;;  %v7834_v9 = vshll.u32 %v16541_v8, 16  ;;  %v16548_v2 = vld [vmem:[#allocation3 + $0x58] sm:$0xff]   ;;  %v16553_v17 = vld [vmem:[#allocation3 + $0x70] sm:$0xff]  }
 0x3f3   : > { %7069 = vst [vmem:[#allocation3 + $0x90] sm:$0xf] %v7068_v38  ;;  %v7824_v55 = vor.u32 %v7822_v35, %v7820_v24  ;;  %v7842_v36 = vshll.u32 %v16542_v39, 16  ;;  %v7830_v49 = vshrl.u32 %v16539_v25, 16  ;;  %v7838_v51 = vshrl.u32 %v16541_v8, 16  ;;  %v16556_v35 = vld [vmem:[#allocation3 + $0x80] sm:$0xff]  }
 0x3f4   : > { %v7821_v40 = vsel %vm1500_vm1, %v7816_v47, %v7820_v24  ;;  %v7836_v56 = vrot.slane %v7834_v9, 1  ;;  %v7850_v16 = vshll.u32 %v16544_v5, 16  ;;  %v7858_v53 = vshll.u32 %v16545_v43, 16 }
 0x3f5   : > { %v7829_v27 = vsel %vm1500_vm1, %v7824_v55, %v7828_v30  ;;  %v7832_v42 = vor.u32 %v7830_v49, %v7828_v30  ;;  %v7844_v6 = vrot.slane %v7842_v36, 1  ;;  %v7846_v41 = vshrl.u32 %v16542_v39, 16 }
 0x3f6   : > { %v7840_v48 = vor.u32 %v7838_v51, %v7836_v56  ;;  %v7852_v0 = vrot.slane %v7850_v16, 1  ;;  %v7854_v37 = vshrl.u32 %v16544_v5, 16  ;;  %v7860_v50 = vrot.slane %v7858_v53, 1 }
 0x3f7   : > { %v7837_v20 = vsel %vm1500_vm1, %v7832_v42, %v7836_v56  ;;  %v7848_v31 = vor.u32 %v7846_v41, %v7844_v6  ;;  %v7866_v26 = vshll.u32 %v16547_v12, 16  ;;  %v7874_v61 = vshll.u32 %v16548_v2, 16 }
 0x3f8   : > { %v16532_v3 = vld [vmem:[#allocation3 + $0x88] sm:$0xff]   ;;  %v7845_v34 = vsel %vm1500_vm1, %v7840_v48, %v7844_v6  ;;  %v7856_v28 = vor.u32 %v7854_v37, %v7852_v0  ;;  %v7862_v62 = vshrl.u32 %v16545_v43, 16  ;;  %v7870_v52 = vshrl.u32 %v16547_v12, 16  ;;  %v16562_v37 = vld [vmem:[#allocation3 + $0x10] sm:$0xff]  }
 0x3f9   : > { %15253 = vmatmul.mubr.bf16.gmra.mrb[32].mxu1 %v16532_v3  ;;  %v7853_v38 = vsel %vm1500_vm1, %v7848_v31, %v7852_v0  ;;  %v7868_v4 = vrot.slane %v7866_v26, 1  ;;  %v7882_v1 = vshll.u32 %v16550_v15, 16  ;;  %v7890_v18 = vshll.u32 %v16551_v57, 16  ;;  %v16557_v9 = vld [vmem:[#allocation3 + $0x88] sm:$0xff]  }
 0x3fa   : > { %15272 = vmatprep.mubr.bf16.mxu1 %v7797_v13  ;;  %v7861_v19 = vsel %vm1500_vm1, %v7856_v28, %v7860_v50  ;;  %v7864_v3 = vor.u32 %v7862_v62, %v7860_v50  ;;  %v7876_v13 = vrot.slane %v7874_v61, 1  ;;  %v7878_v58 = vshrl.u32 %v16548_v2, 16  ;;  %v16559_v5 = vld [vmem:[#allocation3 + $0x90] ss:$0 sps:$4 sm:$0x11]   ;;  %v16564_v2 = vld [vmem:[#allocation3 + $0x18] sm:$0xff]  }
 0x3fb   : > { %v7872_v22 = vor.u32 %v7870_v52, %v7868_v4  ;;  %v7884_v25 = vrot.slane %v7882_v1, 1  ;;  %v7902_v39 = vshrl.u32 %v16553_v17, 16  ;;  %v7922_v49 = vshll.u32 %v16557_v9, 16  ;;  %v16566_v62 = vld [vmem:[#allocation3 + $0x28] sm:$0xff]  }
 0x3fc   : > { %v7869_v32 = vsel %vm1500_vm1, %v7864_v3, %v7868_v4  ;;  %v7880_v11 = vor.u32 %v7878_v58, %v7876_v13  ;;  %v7918_v51 = vshrl.u32 %v16556_v35, 16  ;;  %v7930_v16 = vshll.u32 %v16559_v5, 16  ;;  %v16573_v52 = vld [vmem:[%s19045_s3 + $0xd8] sm:$0xff]  }
 0x3fd   : > { %v7877_v59 = vsel %vm1500_vm1, %v7872_v22, %v7876_v13  ;;  %v7924_v6 = vrot.slane %v7922_v49, 1  ;;  %v7926_v53 = vshrl.u32 %v16557_v9, 16  ;;  %v8435_v28 = vrot.slane %v16562_v37, 1  ;;  %v16576_v22 = vld [vmem:[%s19045_s3 + $0xe0] sm:$0xff]   ;;  %v16578_v9 = vld [vmem:[#allocation3 + $0x68] sm:$0xff]  }
 0x3fe   : > { %v7885_v45 = vsel %vm1500_vm1, %v7880_v11, %v7884_v25  ;;  %v7932_v0 = vrot.slane %v7930_v16, 1  ;;  %v8437_v26 = vrot.slane %v16564_v2, 1  ;;  %v8441_v3 = vrot.slane %v16566_v62, 1  ;;  %v16572_v11 = vld [vmem:[#allocation3 + $0x48] sm:$0xff]   ;;  %v16589_v37 = vld [vmem:[#allocation3 + $0x18] sm:$0xff]   ;;  %v16591_v2 = vld [vmem:[#allocation3 + $0x20] sm:$0xff]  }
 0x3ff   : > { %v7928_v41 = vor.u32 %v7926_v53, %v7924_v6  ;;  %v16588_v53 = vld [vmem:[#allocation3 + $0x10] sm:$0xff]   ;;  %vm19075_vm6 = vcmask 1041408   ;;  %vm12711_vm13 = vcmask 1044484   ;;  %vm12672_vm15 = vcmask 1045508  }
 0x400   : > { %v8438_v61 = vsel %vm2147_vm2, %v8435_v28, %v8437_v26  ;;  %v16593_v62 = vld [vmem:[#allocation3 + $0x30] sm:$0xff]   ;;  %vm19076_vm10 = vmmov %vm19075_vm6  ;;  %vm19077_vm3 = vcmask 1042432  }
 0x401   : > { %15273 = vmatmul.mubr.bf16.vlgmr.msra.gmra.mrb[0].mxu1 %v7805_v63  ;;  %v7892_v63 = vrot.slane %v7890_v18, 1  ;;  %v7933_v31 = vsel %vm1500_vm1, %v7928_v41, %v7932_v0  ;;  %v16579_v18 = vld [vmem:[%s19045_s3 + $0xe8] sm:$0xff]   ;;  %v16587_v41 = vld [vmem:[#allocation3 + $0x8] sm:$0xfe]   ;;  %vm18734_vm11 = vmor %vm19077_vm3, %vm12633_vm7 }
 0x402   : > { %15276 = vmatprep.mubr.bf16.mxu1 %v7813_v29  ;;  %15309 = vmatpush3.bf16.msra.mxu1 %v17030_v33  ;;  %v16554_v29 = vld [vmem:[#allocation3 + $0x78] sm:$0xff]   ;;  %v7898_v33 = vshll.u32 %v16553_v17, 16  ;;  %vm19083_vm0 = vmmov %vm19075_vm6 }
 0x403   : > { %15310 = vmatprep.subr.bf16.mxu1 %v16540_v44  ;;  %v7906_v8 = vshll.u32 %v16554_v29, 16  ;;  %v7910_v56 = vshrl.u32 %v16554_v29, 16  ;;  %v8449_v29 = vrot.slane %v16572_v11, 1  ;;  %v16599_v11 = vld [vmem:[#allocation3 + $0x50] sm:$0xff]  }
 0x404   : > { %v7900_v47 = vrot.slane %v7898_v33, 1 }
 0x405   : > { %v7908_v55 = vrot.slane %v7906_v8, 1  ;;  %v16575_v8 = vld [vmem:[#allocation3 + $0x58] sm:$0xff]  }
 0x406   : > { %15311 = vmatpush3.bf16.msra.mxu1 %v16540_v44  ;;  %v7886_v44 = vshrl.u32 %v16550_v15, 16  ;;  %v16570_v15 = vld [vmem:[%s19045_s3 + $0xd0] sm:$0xff]  }
 0x407   : > { %15312 = vmatprep.subr.bf16.mxu1 %v16543_v21  ;;  %v7912_v42 = vor.u32 %v7910_v56, %v7908_v55  ;;  %v16581_v56 = vld [vmem:[#allocation3 + $0x78] sm:$0xff]  }
 0x408   : > { %v7888_v60 = vor.u32 %v7886_v44, %v7884_v25  ;;  %v16571_v25 = vld [vmem:[#allocation3 + $0x40] sm:$0xff]  }
 0x409   : > { %15277 = vmatmul.mubr.bf16.gmra.mrb[4].mxu1 %v7821_v40  ;;  %v7914_v40 = vshll.u32 %v16556_v35, 16  ;;  %v16582_v44 = vld [vmem:[%s19045_s3 + $0xf0] sm:$0xff]   ;;  %v8453_v35 = vrot.slane %v16575_v8, 1 }
 0x40a   : > { %15280 = vmatprep.mubr.bf16.mxu1 %v7829_v27  ;;  %15313 = vmatpush3.bf16.msra.mxu1 %v16543_v21  ;;  %v7893_v24 = vsel %vm1500_vm1, %v7888_v60, %v7892_v63  ;;  %v7894_v21 = vshrl.u32 %v16551_v57, 16  ;;  %v16568_v57 = vld [vmem:[#allocation3 + $0x30] sm:$0xff]   ;;  %v16602_v8 = vld [vmem:[#allocation3 + $0x60] sm:$0xff]  }
 0x40b   : > { %15314 = vmatprep.subr.bf16.mxu1 %v16546_v23  ;;  %v16585_v60 = vld [vmem:[%s19045_s3 + $0xf8] sm:$0xff]  }
 0x40c   : > { %v7896_v30 = vor.u32 %v7894_v21, %v7892_v63  ;;  %v8447_v63 = vrot.slane %v16571_v25, 1  ;;  %v16590_v21 = vld [vmem:[%s19045_s3 + $0x100] sm:$0xff]   ;;  %v16598_v25 = vld [vmem:[#allocation3 + $0x48] sm:$0xff]  }
 0x40e   : > { %15315 = vmatpush3.bf16.msra.mxu1 %v16546_v23  ;;  %v7904_v23 = vor.u32 %v7902_v39, %v7900_v47  ;;  %v7901_v27 = vsel %vm1500_vm1, %v7896_v30, %v7900_v47  ;;  %v16577_v39 = vld [vmem:[#allocation3 + $0x60] sm:$0xff]  }
 0x40f   : > { %15316 = vmatprep.subr.bf16.mxu1 %v16549_v14 }
 0x410   : > { %v7909_v36 = vsel %vm1500_vm1, %v7904_v23, %v7908_v55  ;;  %v8455_v23 = vrot.slane %v16577_v39, 1  ;;  %v16604_v39 = vld [vmem:[#allocation3 + $0x68] sm:$0xff]  }
 0x411   : > { %15281 = vmatmul.mubr.bf16.gmra.mrb[8].mxu1 %v7837_v20  ;;  %v16560_v20 = vld [vmem:[#allocation3] sm:$0xfe]  }
 0x412   : > { %15284 = vmatprep.mubr.bf16.mxu1 %v7845_v34  ;;  %15317 = vmatpush3.bf16.msra.mxu1 %v16549_v14  ;;  %v7916_v14 = vrot.slane %v7914_v40, 1  ;;  %v16561_v34 = vld [vmem:[#allocation3 + $0x8] sm:$0xff]   ;;  %v8432_v12 = vrot.slane %v16560_v20, 1  ;;  %v8457_v40 = vrot.slane %v16578_v9, 1  ;;  %v16605_v9 = vld [vmem:[#allocation3 + $0x70] sm:$0xff]  }
 0x413   : > { %15318 = vmatprep.subr.bf16.mxu1 %v16552_v10  ;;  %v16586_v20 = vld [vmem:[#allocation3 + $0x90] ss:$0 sps:$4 sm:$0x11]  }
 0x414   : > { %v7920_v43 = vor.u32 %v7918_v51, %v7916_v14  ;;  %v7917_v48 = vsel %vm1500_vm1, %v7912_v42, %v7916_v14  ;;  %v8458_v49 = vsel %vm2147_vm2, %v8455_v23, %v8457_v40  ;;  %v8461_v14 = vrot.slane %v16581_v56, 1  ;;  %v16583_v51 = vld [vmem:[#allocation3 + $0x80] sm:$0xff]  }
 0x415   : > { %v8467_v0 = vrot.slane %v16586_v20, 1  ;;  %v16608_v56 = vld [vmem:[#allocation3 + $0x80] sm:$0xff]  }
 0x416   : > { %15319 = vmatpush3.bf16.msra.mxu1 %v16552_v10  ;;  %v7925_v10 = vsel %vm1500_vm1, %v7920_v43, %v7924_v6  ;;  %v16584_v43 = vld [vmem:[#allocation3 + $0x88] sm:$0xff]   ;;  %vm18771_vm1 = vmor %vm19083_vm0, %vm12672_vm15 }
 0x417   : > { %15320 = vmatprep.subr.bf16.mxu1 %v16555_v7  ;;  %v8465_v16 = vrot.slane %v16584_v43, 1  ;;  %v16611_v43 = vld [vmem:[#allocation3 + $0x90] sm:$0xff]  }
 0x418   : > { %v9000_v20 = vrot.slane %v16611_v43, 1  ;;  %v16630_v43 = vld [vmem:[%s19045_s3 + $0x160] sm:$0xff]  }
 0x419   : > { %15285 = vmatmul.mubr.bf16.gmra.mrb[12].mxu1 %v7853_v38 }
 0x41a   : > { %15288 = vmatprep.mubr.bf16.mxu1 %v7861_v19  ;;  %15321 = vmatpush3.bf16.msra.mxu1 %v16555_v7  ;;  %v8433_v7 = vrot.slane %v16561_v34, 1  ;;  %v16565_v19 = vld [vmem:[#allocation3 + $0x20] sm:$0xff]  }
 0x41b   : > { %15322 = vmatprep.subr.bf16.mxu1 %v16558_v54  ;;  %v8439_v4 = vrot.slane %v16565_v19, 1  ;;  %v16592_v19 = vld [vmem:[#allocation3 + $0x28] sm:$0xff]  }
 0x41c   : > { %v8434_v50 = vsel %vm2147_vm2, %v8432_v12, %v8433_v7  ;;  %v8436_v38 = vsel %vm2147_vm2, %v8433_v7, %v8435_v28  ;;  %v8968_v12 = vrot.slane %v16588_v53, 1  ;;  %v8967_v7 = vrot.slane %v16587_v41, 1 }
 0x41d   : > { %v8440_v13 = vsel %vm2147_vm2, %v8437_v26, %v8439_v4  ;;  %v8442_v1 = vsel %vm2147_vm2, %v8439_v4, %v8441_v3  ;;  %v8970_v28 = vrot.slane %v16589_v37, 1  ;;  %v8972_v26 = vrot.slane %v16591_v2, 1  ;;  %v16618_v2 = vld [vmem:[#allocation3 + $0x20] sm:$0xff]  }
 0x41e   : > { %15323 = vmatpush3.bf16.msra.mxu1 %v16558_v54  ;;  %v16567_v54 = vld [vmem:[%s19045_s3 + $0xc8] sm:$0xff]   ;;  %v8974_v4 = vrot.slane %v16592_v19, 1 }
 0x41f   : > { %15360 = vmatprep.subr.bf16.mxu1 %v18282_v46 }
 0x421   : > { %15289 = vmatmul.mubr.bf16.gmra.mrb[16].mxu1 %v7869_v32  ;;  %v8443_v32 = vrot.slane %v16568_v57, 1  ;;  %v16595_v57 = vld [vmem:[#allocation3 + $0x38] sm:$0xff]  }
 0x422   : > { %15292 = vmatprep.mubr.bf16.mxu1 %v7877_v59 }
 0x423   : > { %v8444_v58 = vsel %vm2147_vm2, %v8441_v3, %v8443_v32  ;;  %v8976_v3 = vrot.slane %v16593_v62, 1  ;;  %v9529_v62 = vshrl.u32 %v16618_v2, 16 }
 0x429   : > { %15293 = vmatmul.mubr.bf16.gmra.mrb[20].mxu1 %v7885_v45  ;;  %v16574_v45 = vld [vmem:[#allocation3 + $0x50] sm:$0xff]  }
 0x42a   : > { %15296 = vmatprep.mubr.bf16.mxu1 %v7893_v24  ;;  %v8450_v24 = vsel %vm2147_vm2, %v8447_v63, %v8449_v29  ;;  %v8451_v47 = vrot.slane %v16574_v45, 1  ;;  %v16601_v45 = vld [vmem:[#allocation3 + $0x58] sm:$0xff]  }
 0x42c   : > { %v8452_v30 = vsel %vm2147_vm2, %v8449_v29, %v8451_v47  ;;  %v8454_v55 = vsel %vm2147_vm2, %v8451_v47, %v8453_v35  ;;  %v8984_v29 = vrot.slane %v16599_v11, 1  ;;  %v8986_v47 = vrot.slane %v16601_v45, 1  ;;  %v16622_v45 = vld [vmem:[#allocation3 + $0x38] sm:$0xff]  }
 0x431   : > { %15297 = vmatmul.mubr.bf16.gmra.mrb[24].mxu1 %v7901_v27  ;;  %v8456_v27 = vsel %vm2147_vm2, %v8453_v35, %v8455_v23  ;;  %v8988_v35 = vrot.slane %v16602_v8, 1  ;;  %v8990_v23 = vrot.slane %v16604_v39, 1 }
 0x432   : > { %15300 = vmatprep.mubr.bf16.mxu1 %v7909_v36  ;;  %v16580_v36 = vld [vmem:[#allocation3 + $0x70] sm:$0xff]  }
 0x433   : > { %v8459_v5 = vrot.slane %v16580_v36, 1  ;;  %v16607_v36 = vld [vmem:[#allocation3 + $0x78] sm:$0xff]  }
 0x435   : > { %v8460_v42 = vsel %vm2147_vm2, %v8457_v40, %v8459_v5  ;;  %v8462_v6 = vsel %vm2147_vm2, %v8459_v5, %v8461_v14  ;;  %v8992_v40 = vrot.slane %v16605_v9, 1  ;;  %v8994_v5 = vrot.slane %v16607_v36, 1  ;;  %v16627_v36 = vld [vmem:[%s19045_s3 + $0x158] sm:$0xff]  }
 0x436   : > { %v9559_v9 = vshll.u32 %v16622_v45, 16 }
 0x439   : > { %15301 = vmatmul.mubr.bf16.gmra.mrb[28].mxu1 %v7917_v48  ;;  %v8463_v48 = vrot.slane %v16583_v51, 1  ;;  %v16610_v51 = vld [vmem:[#allocation3 + $0x88] sm:$0xff]  }
 0x43a   : > { %15304 = vmatprep.mubr.bf16.mxu1 %v7925_v10 }
 0x43b   : > { %v8464_v10 = vsel %vm2147_vm2, %v8461_v14, %v8463_v48  ;;  %v8466_v34 = vsel %vm2147_vm2, %v8463_v48, %v8465_v16  ;;  %v8996_v14 = vrot.slane %v16608_v56, 1  ;;  %v16615_v48 = vld [vmem:[#allocation3 + $0x10] sm:$0xff]   ;;  %v9561_v56 = vrot.slane %v9559_v9, 2 }
 0x43c   : > { %v9514_v53 = vshll.u32 %v16615_v48, 16 }
 0x441   : > { %15305 = vmatmul.mubr.bf16.gmra.mrb[32].mxu1 %v7933_v31  ;;  %v8468_v31 = vsel %vm2147_vm2, %v8465_v16, %v8467_v0  ;;  %v16614_v16 = vld [vmem:[#allocation3 + $0x8] sm:$0xfe]  }
 0x442   : > { %15324 = vmatprep.mubr.bf16.mxu1 %v8434_v50  ;;  %v8969_v50 = vsel %vm2147_vm2, %v8967_v7, %v8968_v12  ;;  %v9503_v41 = vshrl.u32 %v16614_v16, 16  ;;  %v9506_v0 = vshll.u32 %v16614_v16, 16  ;;  %v16616_v7 = vld [vmem:[#allocation3 + $0x18] sm:$0xff]  }
 0x443   : > { %v9523_v19 = vshll.u32 %v16616_v7, 16 }
 0x449   : > { %15325 = vmatmul.mubr.bf16.vlgmr.msra.gmra.mrb[0].mxu1 %v8436_v38  ;;  %v8971_v38 = vsel %vm2147_vm2, %v8968_v12, %v8970_v28 }
 0x44a   : > { %15328 = vmatprep.mubr.bf16.mxu1 %v8438_v61  ;;  %15361 = vmatpush3.bf16.msra.mxu1 %v18282_v46  ;;  %v16569_v46 = vld [vmem:[#allocation3 + $0x38] sm:$0xff]   ;;  %v8973_v61 = vsel %vm2147_vm2, %v8970_v28, %v8972_v26 }
 0x44b   : > { %15362 = vmatprep.subr.bf16.mxu1 %v16567_v54  ;;  %v8445_v59 = vrot.slane %v16569_v46, 1  ;;  %v16596_v46 = vld [vmem:[#allocation3 + $0x40] sm:$0xff]   ;;  %v16613_v28 = vld [vmem:[#allocation3 + $0x98] ss:$0 sps:$4 sm:$0x11]  }
 0x44d   : > { %v8446_v17 = vsel %vm2147_vm2, %v8443_v32, %v8445_v59  ;;  %v8448_v33 = vsel %vm2147_vm2, %v8445_v59, %v8447_v63  ;;  %v8978_v32 = vrot.slane %v16595_v57, 1  ;;  %v8980_v59 = vrot.slane %v16596_v46, 1 }
 0x44e   : > { %15363 = vmatpush3.bf16.msra.mxu1 %v16567_v54  ;;  %v16594_v54 = vld [vmem:[%s19045_s3 + $0x108] sm:$0xff]   ;;  %v8982_v63 = vrot.slane %v16598_v25, 1  ;;  %v9525_v57 = vrot.slane %v9523_v19, 2 }
 0x44f   : > { %15364 = vmatprep.subr.bf16.mxu1 %v16570_v15 }
 0x451   : > { %15329 = vmatmul.mubr.bf16.gmra.mrb[4].mxu1 %v8440_v13  ;;  %v8975_v13 = vsel %vm2147_vm2, %v8972_v26, %v8974_v4  ;;  %v9505_v26 = vrot.slane %v9503_v41, 1  ;;  %v16633_v41 = vld [vmem:[%s19045_s3 + $0x168] sm:$0xff]  }
 0x452   : > { %15332 = vmatprep.mubr.bf16.mxu1 %v8442_v1  ;;  %15365 = vmatpush3.bf16.msra.mxu1 %v16570_v15  ;;  %v16597_v15 = vld [vmem:[%s19045_s3 + $0x110] sm:$0xff]   ;;  %v8977_v1 = vsel %vm2147_vm2, %v8974_v4, %v8976_v3  ;;  %v9002_v4 = vrot.slane %v16613_v28, 1 }
 0x453   : > { %15366 = vmatprep.subr.bf16.mxu1 %v16573_v52  ;;  %v16629_v28 = vld [vmem:[#allocation3 + $0x60] sm:$0xff]  }
 0x456   : > { %15367 = vmatpush3.bf16.msra.mxu1 %v16573_v52  ;;  %v16600_v52 = vld [vmem:[%s19045_s3 + $0x118] sm:$0xff]  }
 0x457   : > { %15368 = vmatprep.subr.bf16.mxu1 %v16576_v22 }
 0x459   : > { %15333 = vmatmul.mubr.bf16.gmra.mrb[8].mxu1 %v8444_v58  ;;  %v8979_v58 = vsel %vm2147_vm2, %v8976_v3, %v8978_v32 }
 0x45a   : > { %15336 = vmatprep.mubr.bf16.mxu1 %v8446_v17  ;;  %15369 = vmatpush3.bf16.msra.mxu1 %v16576_v22  ;;  %v16603_v22 = vld [vmem:[%s19045_s3 + $0x120] sm:$0xff]   ;;  %v8981_v17 = vsel %vm2147_vm2, %v8978_v32, %v8980_v59 }
 0x45b   : > { %15370 = vmatprep.subr.bf16.mxu1 %v16579_v18 }
 0x45e   : > { %15371 = vmatpush3.bf16.msra.mxu1 %v16579_v18  ;;  %v16606_v18 = vld [vmem:[%s19045_s3 + $0x128] sm:$0xff]  }
 0x45f   : > { %15372 = vmatprep.subr.bf16.mxu1 %v16582_v44 }
 0x461   : > { %15337 = vmatmul.mubr.bf16.gmra.mrb[12].mxu1 %v8448_v33  ;;  %v8983_v33 = vsel %vm2147_vm2, %v8980_v59, %v8982_v63  ;;  %v16620_v59 = vld [vmem:[#allocation3 + $0x30] sm:$0xff]  }
 0x462   : > { %15340 = vmatprep.mubr.bf16.mxu1 %v8450_v24  ;;  %15373 = vmatpush3.bf16.msra.mxu1 %v16582_v44  ;;  %v16609_v44 = vld [vmem:[%s19045_s3 + $0x130] sm:$0xff]   ;;  %v8985_v24 = vsel %vm2147_vm2, %v8982_v63, %v8984_v29  ;;  %v9547_v11 = vshrl.u32 %v16620_v59, 16  ;;  %v16621_v63 = vld [vmem:[%s19045_s3 + $0x148] sm:$0xff]  }
 0x463   : > { %15374 = vmatprep.subr.bf16.mxu1 %v16585_v60 }
 0x464   : > { %v9549_v8 = vrot.slane %v9547_v11, 1 }
 0x466   : > { %15375 = vmatpush3.bf16.msra.mxu1 %v16585_v60  ;;  %v16612_v60 = vld [vmem:[%s19045_s3 + $0x138] sm:$0xff]  }
 0x467   : > { %15412 = vmatprep.subr.bf16.mxu1 %v16590_v21 }
 0x469   : > { %15341 = vmatmul.mubr.bf16.gmra.mrb[16].mxu1 %v8452_v30  ;;  %v8987_v30 = vsel %vm2147_vm2, %v8984_v29, %v8986_v47 }
 0x46a   : > { %15344 = vmatprep.mubr.bf16.mxu1 %v8454_v55  ;;  %v8989_v55 = vsel %vm2147_vm2, %v8986_v47, %v8988_v35 }
 0x471   : > { %15345 = vmatmul.mubr.bf16.gmra.mrb[20].mxu1 %v8456_v27  ;;  %v8991_v27 = vsel %vm2147_vm2, %v8988_v35, %v8990_v23  ;;  %v16623_v35 = vld [vmem:[#allocation3 + $0x40] sm:$0xff]  }
 0x472   : > { %15348 = vmatprep.mubr.bf16.mxu1 %v8458_v49  ;;  %v8993_v49 = vsel %vm2147_vm2, %v8990_v23, %v8992_v40 }
 0x479   : > { %15349 = vmatmul.mubr.bf16.gmra.mrb[24].mxu1 %v8460_v42  ;;  %v8995_v42 = vsel %vm2147_vm2, %v8992_v40, %v8994_v5  ;;  %v9565_v40 = vshrl.u32 %v16623_v35, 16 }
 0x47a   : > { %15352 = vmatprep.mubr.bf16.mxu1 %v8462_v6  ;;  %v8997_v6 = vsel %vm2147_vm2, %v8994_v5, %v8996_v14  ;;  %v16625_v5 = vld [vmem:[#allocation3 + $0x48] sm:$0xff]  }
 0x47b   : > { %v9574_v16 = vshrl.u32 %v16625_v5, 16 }
 0x481   : > { %15353 = vmatmul.mubr.bf16.gmra.mrb[28].mxu1 %v8464_v10  ;;  %v8998_v10 = vrot.slane %v16610_v51, 1 }
 0x482   : > { %15356 = vmatprep.mubr.bf16.mxu1 %v8466_v34  ;;  %v9511_v34 = vshrl.u32 %v16615_v48, 16 }
 0x483   : > { %v8999_v12 = vsel %vm2147_vm2, %v8996_v14, %v8998_v10 }
 0x484   : > { %v9513_v37 = vrot.slane %v9511_v34, 1 }
 0x489   : > { %15357 = vmatmul.mubr.bf16.gmra.mrb[32].mxu1 %v8468_v31  ;;  %v9001_v31 = vsel %vm2147_vm2, %v8998_v10, %v9000_v20  ;;  %v9577_v10 = vshll.u32 %v16625_v5, 16 }
 0x48a   : > { %15376 = vmatprep.mubr.bf16.mxu1 %v8969_v50  ;;  %v9516_v50 = vrot.slane %v9514_v53, 2 }
 0x491   : > { %15377 = vmatmul.mubr.bf16.vlgmr.msra.gmra.mrb[0].mxu1 %v8971_v38  ;;  %v9520_v38 = vshrl.u32 %v16616_v7, 16  ;;  %v9579_v7 = vrot.slane %v9577_v10, 2 }
 0x492   : > { %15380 = vmatprep.mubr.bf16.mxu1 %v8973_v61  ;;  %15413 = vmatpush3.bf16.msra.mxu1 %v16590_v21  ;;  %v18370_v21 = vld [vmem:[%s19045_s3 + $0x140] sm:$0xff]   ;;  %v9517_v61 = vor.u32 %v9516_v50, %v9513_v37 }
 0x493   : > { %15414 = vmatprep.subr.bf16.mxu1 %v16594_v54 }
 0x496   : > { %15415 = vmatpush3.bf16.msra.mxu1 %v16594_v54  ;;  %v9508_v54 = vrot.slane %v9506_v0, 2 }
 0x497   : > { %15416 = vmatprep.subr.bf16.mxu1 %v16597_v15 }
 0x498   : > { %v9509_v3 = vor.u32 %v9508_v54, %v9505_v26  ;;  %v16636_v26 = vld [vmem:[%s19045_s3 + $0x170] sm:$0xff]  }
 0x499   : > { %15381 = vmatmul.mubr.bf16.gmra.mrb[4].mxu1 %v8975_v13  ;;  %v9522_v13 = vrot.slane %v9520_v38, 1 }
 0x49a   : > { %15384 = vmatprep.mubr.bf16.mxu1 %v8977_v1  ;;  %15417 = vmatpush3.bf16.msra.mxu1 %v16597_v15  ;;  %v9532_v15 = vshll.u32 %v16618_v2, 16  ;;  %v16619_v1 = vld [vmem:[#allocation3 + $0x28] sm:$0xff]   ;;  %v9518_v46 = vsel %vm3218_vm8, %v9509_v3, %v9517_v61 }
 0x49b   : > { %15418 = vmatprep.subr.bf16.mxu1 %v16600_v52  ;;  %v9541_v25 = vshll.u32 %v16619_v1, 16 }
 0x49c   : > { %v9534_v32 = vrot.slane %v9532_v15, 2  ;;  %v9604_v15 = vshll.u32 %v16629_v28, 16 }
 0x49e   : > { %15419 = vmatpush3.bf16.msra.mxu1 %v16600_v52  ;;  %v9003_v52 = vsel %vm2147_vm2, %v9000_v20, %v9002_v4  ;;  %v16639_v4 = vld [vmem:[%s19045_s3 + $0x178] sm:$0xff]   ;;  %vm19086_vm2 = vmmov %vm19083_vm0 }
 0x49f   : > { %15420 = vmatprep.subr.bf16.mxu1 %v16603_v22 }
 0x4a1   : > { %15385 = vmatmul.mubr.bf16.gmra.mrb[8].mxu1 %v8979_v58  ;;  %v9538_v58 = vshrl.u32 %v16619_v1, 16 }
 0x4a2   : > { %15388 = vmatprep.mubr.bf16.mxu1 %v8981_v17  ;;  %15421 = vmatpush3.bf16.msra.mxu1 %v16603_v22  ;;  %v9531_v22 = vrot.slane %v9529_v62, 1  ;;  %v9601_v62 = vshrl.u32 %v16629_v28, 16 }
 0x4a3   : > { %15422 = vmatprep.subr.bf16.mxu1 %v16606_v18 }
 0x4a4   : > { %v9535_v17 = vor.u32 %v9534_v32, %v9531_v22  ;;  %v9606_v22 = vrot.slane %v9604_v15, 2  ;;  %v16632_v32 = vld [vmem:[#allocation3 + $0x70] sm:$0xff]  }
 0x4a5   : > { %v9619_v11 = vshrl.u32 %v16632_v32, 16 }
 0x4a6   : > { %15423 = vmatpush3.bf16.msra.mxu1 %v16606_v18  ;;  %v9526_v18 = vor.u32 %v9525_v57, %v9522_v13  ;;  %v16631_v57 = vld [vmem:[#allocation3 + $0x68] sm:$0xff]  }
 0x4a7   : > { %15424 = vmatprep.subr.bf16.mxu1 %v16609_v44 }
 0x4a8   : > { %v9527_v29 = vsel %vm3218_vm8, %v9517_v61, %v9526_v18 }
 0x4a9   : > { %15389 = vmatmul.mubr.bf16.gmra.mrb[12].mxu1 %v8983_v33  ;;  %v9543_v33 = vrot.slane %v9541_v25, 2  ;;  %v9613_v25 = vshll.u32 %v16631_v57, 16 }
 0x4aa   : > { %15392 = vmatprep.mubr.bf16.mxu1 %v8985_v24  ;;  %15425 = vmatpush3.bf16.msra.mxu1 %v16609_v44  ;;  %v9550_v44 = vshll.u32 %v16620_v59, 16  ;;  %v9536_v24 = vsel %vm3218_vm8, %v9526_v18, %v9535_v17  ;;  %v18416_v59 = vld [vmem:[%s19045_s3 + $0x180] sm:$0xff]  }
 0x4ab   : > { %15426 = vmatprep.subr.bf16.mxu1 %v16612_v60 }
 0x4ac   : > { %v9552_v47 = vrot.slane %v9550_v44, 2  ;;  %v9622_v44 = vshll.u32 %v16632_v32, 16  ;;  %v16646_v32 = vld [vmem:[#allocation3 + $0x28] sm:$0xff]  }
 0x4ae   : > { %15427 = vmatpush3.bf16.msra.mxu1 %v16612_v60  ;;  %v9540_v60 = vrot.slane %v9538_v58, 1  ;;  %v9553_v23 = vor.u32 %v9552_v47, %v9549_v8  ;;  %v9610_v58 = vshrl.u32 %v16631_v57, 16  ;;  %v9624_v8 = vrot.slane %v9622_v44, 2  ;;  %v16635_v47 = vld [vmem:[#allocation3 + $0x80] sm:$0xff]   ;;  %v16654_v44 = vld [vmem:[%s19045_s3 + $0x198] sm:$0xff]  }
 0x4af   : > { %15464 = vmatprep.subr.bf16.mxu1 %v18370_v21  ;;  %v9637_v9 = vshrl.u32 %v16635_v47, 16 }
 0x4b0   : > { %v9544_v39 = vor.u32 %v9543_v33, %v9540_v60  ;;  %v9615_v60 = vrot.slane %v9613_v25, 2  ;;  %v16634_v33 = vld [vmem:[#allocation3 + $0x78] sm:$0xff]   ;;  %v16651_v25 = vld [vmem:[%s19045_s3 + $0x190] sm:$0xff]  }
 0x4b1   : > { %15393 = vmatmul.mubr.bf16.gmra.mrb[16].mxu1 %v8987_v30  ;;  %v16624_v30 = vld [vmem:[%s19045_s3 + $0x150] sm:$0xff]  }
 0x4b2   : > { %15396 = vmatprep.mubr.bf16.mxu1 %v8989_v55  ;;  %v9556_v55 = vshrl.u32 %v16622_v45, 16  ;;  %v9554_v14 = vsel %vm3218_vm8, %v9544_v39, %v9553_v23 }
 0x4b9   : > { %15397 = vmatmul.mubr.bf16.gmra.mrb[20].mxu1 %v8991_v27  ;;  %v9568_v27 = vshll.u32 %v16623_v35, 16 }
 0x4ba   : > { %15400 = vmatprep.mubr.bf16.mxu1 %v8993_v49  ;;  %v9545_v49 = vsel %vm3218_vm8, %v9535_v17, %v9544_v39  ;;  %v9631_v39 = vshll.u32 %v16634_v33, 16 }
 0x4bb   : > { %v9570_v51 = vrot.slane %v9568_v27, 2 }
 0x4c1   : > { %15401 = vmatmul.mubr.bf16.gmra.mrb[24].mxu1 %v8995_v42  ;;  %v9567_v42 = vrot.slane %v9565_v40, 1 }
 0x4c2   : > { %15404 = vmatprep.mubr.bf16.mxu1 %v8997_v6  ;;  %v16626_v6 = vld [vmem:[#allocation3 + $0x50] sm:$0xff]  }
 0x4c3   : > { %v9571_v20 = vor.u32 %v9570_v51, %v9567_v42  ;;  %v9583_v34 = vshrl.u32 %v16626_v6, 16  ;;  %v9586_v53 = vshll.u32 %v16626_v6, 16 }
 0x4c5   : > { %v9585_v50 = vrot.slane %v9583_v34, 1  ;;  %v9588_v2 = vrot.slane %v9586_v53, 2 }
 0x4c7   : > { %v9589_v61 = vor.u32 %v9588_v2, %v9585_v50 }
 0x4c9   : > { %15405 = vmatmul.mubr.bf16.gmra.mrb[28].mxu1 %v8999_v12  ;;  %v9576_v12 = vrot.slane %v9574_v16, 1 }
 0x4ca   : > { %15408 = vmatprep.mubr.bf16.mxu1 %v9001_v31  ;;  %v16628_v31 = vld [vmem:[#allocation3 + $0x58] sm:$0xff]  }
 0x4cb   : > { %v9580_v54 = vor.u32 %v9579_v7, %v9576_v12  ;;  %v9592_v38 = vshrl.u32 %v16628_v31, 16  ;;  %v9595_v19 = vshll.u32 %v16628_v31, 16  ;;  %v16640_v12 = vld [vmem:[#allocation3 + $0x98] ss:$0 sps:$4 sm:$0x33]  }
 0x4cc   : > { %v9667_v50 = vshll.u32 %v16640_v12, 16 }
 0x4cd   : > { %v9581_v3 = vsel %vm3218_vm8, %v9571_v20, %v9580_v54  ;;  %v9597_v13 = vrot.slane %v9595_v19, 2  ;;  %v9590_v1 = vsel %vm3218_vm8, %v9580_v54, %v9589_v61  ;;  %v16641_v19 = vld [vmem:[#allocation3 + $0x8] sm:$0xfc]  }
 0x4ce   : > { %v10170_v15 = vrot.slane %v16641_v19, 2  ;;  %v16668_v19 = vld [vmem:[#allocation3 + $0x10] sm:$0xfc]  }
 0x4d1   : > { %15409 = vmatmul.mubr.bf16.gmra.mrb[32].mxu1 %v9003_v52  ;;  %v9594_v52 = vrot.slane %v9592_v38, 1  ;;  %v9669_v38 = vrot.slane %v9667_v50, 2 }
 0x4d2   : > { %15428 = vmatprep.mubr.bf16.mxu1 %v9518_v46  ;;  %v9603_v46 = vrot.slane %v9601_v62, 1 }
 0x4d3   : > { %v9598_v18 = vor.u32 %v9597_v13, %v9594_v52  ;;  %v16645_v13 = vld [vmem:[#allocation3 + $0x20] sm:$0xff]  }
 0x4d4   : > { %v9607_v17 = vor.u32 %v9606_v22, %v9603_v46  ;;  %v16648_v46 = vld [vmem:[%s19045_s3 + $0x188] sm:$0xff]  }
 0x4d6   : > { %v9608_v45 = vsel %vm3218_vm8, %v9598_v18, %v9607_v17 }
 0x4d9   : > { %15429 = vmatmul.mubr.bf16.vlgmr.msra.gmra.mrb[0].mxu1 %v9527_v29  ;;  %v9612_v29 = vrot.slane %v9610_v58, 1  ;;  %v16647_v58 = vld [vmem:[#allocation3 + $0x30] sm:$0xff]  }
 0x4da   : > { %15432 = vmatprep.mubr.bf16.mxu1 %v9536_v24  ;;  %15465 = vmatpush3.bf16.msra.mxu1 %v18370_v21  ;;  %v9558_v21 = vrot.slane %v9556_v55, 1  ;;  %v9621_v24 = vrot.slane %v9619_v11, 1  ;;  %v10179_v11 = vrot.slane %v16647_v58, 2  ;;  %v16674_v58 = vld [vmem:[#allocation3 + $0x38] sm:$0xff]  }
 0x4db   : > { %15466 = vmatprep.subr.bf16.mxu1 %v16621_v63  ;;  %v9616_v35 = vor.u32 %v9615_v60, %v9612_v29  ;;  %v16649_v29 = vld [vmem:[#allocation3 + $0x38] sm:$0xff]  }
 0x4dc   : > { %v9562_v48 = vor.u32 %v9561_v56, %v9558_v21  ;;  %v9625_v55 = vor.u32 %v9624_v8, %v9621_v24  ;;  %v9639_v56 = vrot.slane %v9637_v9, 1  ;;  %v16660_v8 = vld [vmem:[%s19045_s3 + $0x1a8] sm:$0xff]  }
 0x4dd   : > { %v9617_v40 = vsel %vm3218_vm8, %v9607_v17, %v9616_v35  ;;  %v10177_v17 = vrot.slane %v16646_v32, 2  ;;  %v16673_v32 = vld [vmem:[#allocation3 + $0x30] sm:$0xff]  }
 0x4de   : > { %15467 = vmatpush3.bf16.msra.mxu1 %v16621_v63  ;;  %v9563_v0 = vsel %vm3218_vm8, %v9553_v23, %v9562_v48  ;;  %v9572_v37 = vsel %vm3218_vm8, %v9562_v48, %v9571_v20  ;;  %v9599_v63 = vsel %vm3218_vm8, %v9589_v61, %v9598_v18  ;;  %v9640_v23 = vshll.u32 %v16635_v47, 16 }
 0x4df   : > { %15468 = vmatprep.subr.bf16.mxu1 %v16624_v30  ;;  %v9626_v21 = vsel %vm3218_vm8, %v9616_v35, %v9625_v55  ;;  %v10180_v60 = vsel %vm3887_vm14, %v10177_v17, %v10179_v11  ;;  %v16652_v35 = vld [vmem:[#allocation3 + $0x48] sm:$0xff]  }
 0x4e0   : > { %v9642_v5 = vrot.slane %v9640_v23, 2  ;;  %v10185_v9 = vrot.slane %v16652_v35, 2  ;;  %v16679_v35 = vld [vmem:[#allocation3 + $0x50] sm:$0xff]  }
 0x4e1   : > { %15433 = vmatmul.mubr.bf16.gmra.mrb[4].mxu1 %v9545_v49  ;;  %v16637_v49 = vld [vmem:[#allocation3 + $0x88] sm:$0xff]  }
 0x4e2   : > { %15436 = vmatprep.mubr.bf16.mxu1 %v9554_v14  ;;  %15469 = vmatpush3.bf16.msra.mxu1 %v16624_v30  ;;  %v9628_v30 = vshrl.u32 %v16634_v33, 16  ;;  %v16638_v14 = vld [vmem:[#allocation3 + $0x90] sm:$0xff]   ;;  %v9646_v51 = vshrl.u32 %v16637_v49, 16  ;;  %v9649_v6 = vshll.u32 %v16637_v49, 16 }
 0x4e3   : > { %15470 = vmatprep.subr.bf16.mxu1 %v16627_v36  ;;  %v9655_v48 = vshrl.u32 %v16638_v14, 16  ;;  %v9658_v16 = vshll.u32 %v16638_v14, 16  ;;  %v16657_v33 = vld [vmem:[%s19045_s3 + $0x1a0] sm:$0xff]  }
 0x4e4   : > { %v9630_v27 = vrot.slane %v9628_v30, 1  ;;  %v9648_v20 = vrot.slane %v9646_v51, 1  ;;  %v9651_v34 = vrot.slane %v9649_v6, 2  ;;  %v16658_v51 = vld [vmem:[#allocation3 + $0x68] sm:$0xff]  }
 0x4e6   : > { %15471 = vmatpush3.bf16.msra.mxu1 %v16627_v36  ;;  %v9633_v36 = vrot.slane %v9631_v39, 2  ;;  %v9652_v7 = vor.u32 %v9651_v34, %v9648_v20  ;;  %v16653_v39 = vld [vmem:[#allocation3 + $0x50] sm:$0xff]   ;;  %v16661_v20 = vld [vmem:[#allocation3 + $0x78] sm:$0xff]  }
 0x4e7   : > { %15472 = vmatprep.subr.bf16.mxu1 %v16630_v43  ;;  %v10187_v23 = vrot.slane %v16653_v39, 2  ;;  %v16680_v39 = vld [vmem:[#allocation3 + $0x58] sm:$0xff]  }
 0x4e8   : > { %v9634_v42 = vor.u32 %v9633_v36, %v9630_v27  ;;  %v16655_v36 = vld [vmem:[#allocation3 + $0x58] sm:$0xff]  }
 0x4e9   : > { %15437 = vmatmul.mubr.bf16.gmra.mrb[8].mxu1 %v9563_v0  ;;  %v9660_v0 = vrot.slane %v9658_v16, 2  ;;  %v10188_v49 = vsel %vm3887_vm14, %v10185_v9, %v10187_v23 }
 0x4ea   : > { %15440 = vmatprep.mubr.bf16.mxu1 %v9572_v37  ;;  %15473 = vmatpush3.bf16.msra.mxu1 %v16630_v43  ;;  %v9643_v43 = vor.u32 %v9642_v5, %v9639_v56  ;;  %v9635_v10 = vsel %vm3218_vm8, %v9625_v55, %v9634_v42  ;;  %v9664_v37 = vshrl.u32 %v16640_v12, 16  ;;  %v16663_v55 = vld [vmem:[%s19045_s3 + $0x1b0] sm:$0xff]   ;;  %v16671_v56 = vld [vmem:[%s19045_s3 + $0x1c0] sm:$0xff]   ;;  %v10189_v5 = vrot.slane %v16655_v36, 2 }
 0x4eb   : > { %15474 = vmatprep.subr.bf16.mxu1 %v16633_v41  ;;  %v16682_v36 = vld [vmem:[#allocation3 + $0x60] sm:$0xff]  }
 0x4ec   : > { %v9644_v53 = vsel %vm3218_vm8, %v9634_v42, %v9643_v43  ;;  %v9653_v2 = vsel %vm3218_vm8, %v9643_v43, %v9652_v7  ;;  %v9666_v54 = vrot.slane %v9664_v37, 1  ;;  %v10190_v42 = vsel %vm3887_vm14, %v10187_v23, %v10189_v5  ;;  %v16659_v43 = vld [vmem:[#allocation3 + $0x70] sm:$0xff]  }
 0x4ed   : > { %v10195_v16 = vrot.slane %v16659_v43, 2  ;;  %v16665_v37 = vld [vmem:[#allocation3 + $0x90] sm:$0xff]   ;;  %v10722_v23 = vrot.slane %v16680_v39, 2  ;;  %v16686_v43 = vld [vmem:[#allocation3 + $0x78] sm:$0xff]  }
 0x4ee   : > { %15475 = vmatpush3.bf16.msra.mxu1 %v16633_v41  ;;  %v9657_v41 = vrot.slane %v9655_v48, 1  ;;  %v9670_v62 = vor.u32 %v9669_v38, %v9666_v54  ;;  %v10193_v48 = vrot.slane %v16658_v51, 2  ;;  %v16669_v54 = vld [vmem:[#allocation3 + $0x18] sm:$0xff]   ;;  %v16685_v51 = vld [vmem:[#allocation3 + $0x70] sm:$0xff]  }
 0x4ef   : > { %15476 = vmatprep.subr.bf16.mxu1 %v16636_v26  ;;  %v16667_v38 = vld [vmem:[#allocation3 + $0x98] ss:$0 sps:$4 sm:$0x33]  }
 0x4f0   : > { %v9661_v31 = vor.u32 %v9660_v0, %v9657_v41  ;;  %v10196_v34 = vsel %vm3887_vm14, %v10193_v48, %v10195_v16  ;;  %v10197_v41 = vrot.slane %v16661_v20, 2  ;;  %v16688_v20 = vld [vmem:[#allocation3 + $0x80] sm:$0xff]  }
 0x4f1   : > { %15441 = vmatmul.mubr.bf16.gmra.mrb[12].mxu1 %v9581_v3  ;;  %v16643_v3 = vld [vmem:[#allocation3 + $0x18] sm:$0xff]  }
 0x4f2   : > { %15444 = vmatprep.mubr.bf16.mxu1 %v9590_v1  ;;  %15477 = vmatpush3.bf16.msra.mxu1 %v16636_v26  ;;  %v9662_v28 = vsel %vm3218_vm8, %v9652_v7, %v9661_v31  ;;  %v16642_v26 = vld [vmem:[#allocation3 + $0x10] sm:$0xff]   ;;  %v10173_v57 = vrot.slane %v16643_v3, 2  ;;  %v10175_v1 = vrot.slane %v16645_v13, 2  ;;  %v10198_v12 = vsel %vm3887_vm14, %v10195_v16, %v10197_v41  ;;  %v16664_v7 = vld [vmem:[#allocation3 + $0x88] sm:$0xff]   ;;  %v16670_v3 = vld [vmem:[#allocation3 + $0x20] sm:$0xff]  }
 0x4f3   : > { %15478 = vmatprep.subr.bf16.mxu1 %v16639_v4  ;;  %v10171_v61 = vrot.slane %v16642_v26, 2  ;;  %v10201_v50 = vrot.slane %v16664_v7, 2  ;;  %v16672_v13 = vld [vmem:[#allocation3 + $0x28] sm:$0xff]   ;;  %v10730_v16 = vrot.slane %v16686_v43, 2  ;;  %v16691_v7 = vld [vmem:[#allocation3 + $0x90] sm:$0xff]  }
 0x4f4   : > { %v10176_v18 = vsel %vm3887_vm14, %v10173_v57, %v10175_v1 }
 0x4f5   : > { %v10172_v52 = vsel %vm3887_vm14, %v10170_v15, %v10171_v61  ;;  %v10174_v22 = vsel %vm3887_vm14, %v10171_v61, %v10173_v57  ;;  %v10706_v61 = vrot.slane %v16669_v54, 2  ;;  %v10705_v15 = vrot.slane %v16668_v19, 2 }
 0x4f6   : > { %15479 = vmatpush3.bf16.msra.mxu1 %v16639_v4  ;;  %v9671_v4 = vsel %vm3218_vm8, %v9661_v31, %v9670_v62  ;;  %v10205_v62 = vrot.slane %v16667_v38, 2  ;;  %v10708_v57 = vrot.slane %v16670_v3, 2  ;;  %vm19087_vm8 = vmmov %vm19083_vm0 }
 0x4f7   : > { %15516 = vmatprep.subr.bf16.mxu1 %v18416_v59 }
 0x4f9   : > { %15445 = vmatmul.mubr.bf16.gmra.mrb[16].mxu1 %v9599_v63  ;;  %v10178_v63 = vsel %vm3887_vm14, %v10175_v1, %v10177_v17  ;;  %v10710_v1 = vrot.slane %v16672_v13, 2  ;;  %v10712_v17 = vrot.slane %v16673_v32, 2 }
 0x4fa   : > { %15448 = vmatprep.mubr.bf16.mxu1 %v9608_v45  ;;  %v10181_v45 = vrot.slane %v16649_v29, 2  ;;  %v16676_v29 = vld [vmem:[#allocation3 + $0x40] sm:$0xff]  }
 0x4fc   : > { %v10182_v47 = vsel %vm3887_vm14, %v10179_v11, %v10181_v45  ;;  %v10714_v11 = vrot.slane %v16674_v58, 2 }
 0x501   : > { %15449 = vmatmul.mubr.bf16.gmra.mrb[20].mxu1 %v9617_v40  ;;  %v16666_v40 = vld [vmem:[%s19045_s3 + $0x1b8] sm:$0xff]  }
 0x502   : > { %15452 = vmatprep.mubr.bf16.mxu1 %v9626_v21  ;;  %v16656_v21 = vld [vmem:[#allocation3 + $0x60] sm:$0xff]  }
 0x503   : > { %v10191_v14 = vrot.slane %v16656_v21, 2  ;;  %v16683_v21 = vld [vmem:[#allocation3 + $0x68] sm:$0xff]  }
 0x505   : > { %v10192_v6 = vsel %vm3887_vm14, %v10189_v5, %v10191_v14  ;;  %v10724_v5 = vrot.slane %v16682_v36, 2  ;;  %v16703_v36 = vld [vmem:[#allocation3 + $0x40] sm:$0xff]  }
 0x506   : > { %v11297_v43 = vshll.u32 %v16703_v36, 16 }
 0x509   : > { %15453 = vmatmul.mubr.bf16.gmra.mrb[24].mxu1 %v9635_v10  ;;  %v10194_v10 = vsel %vm3887_vm14, %v10191_v14, %v10193_v48  ;;  %v10726_v14 = vrot.slane %v16683_v21, 2  ;;  %v10728_v48 = vrot.slane %v16685_v51, 2 }
 0x50a   : > { %15456 = vmatprep.mubr.bf16.mxu1 %v9644_v53  ;;  %v16662_v53 = vld [vmem:[#allocation3 + $0x80] sm:$0xff]  }
 0x50b   : > { %v10199_v0 = vrot.slane %v16662_v53, 2  ;;  %v16689_v53 = vld [vmem:[#allocation3 + $0x88] sm:$0xff]  }
 0x50d   : > { %v10200_v31 = vsel %vm3887_vm14, %v10197_v41, %v10199_v0  ;;  %v10732_v41 = vrot.slane %v16688_v20, 2  ;;  %v16708_v20 = vld [vmem:[%s19045_s3 + $0x218] sm:$0xff]  }
 0x511   : > { %15457 = vmatmul.mubr.bf16.gmra.mrb[28].mxu1 %v9653_v2  ;;  %v10203_v2 = vrot.slane %v16665_v37, 2  ;;  %v16696_v37 = vld [vmem:[#allocation3 + $0x18] sm:$0xff]  }
 0x512   : > { %15460 = vmatprep.mubr.bf16.mxu1 %v9662_v28  ;;  %v10202_v28 = vsel %vm3887_vm14, %v10199_v0, %v10201_v50  ;;  %v10734_v0 = vrot.slane %v16689_v53, 2  ;;  %v11252_v54 = vshll.u32 %v16696_v37, 16  ;;  %v11299_v53 = vrot.slane %v11297_v43, 3 }
 0x513   : > { %v10204_v26 = vsel %vm3887_vm14, %v10201_v50, %v10203_v2  ;;  %v16692_v50 = vld [vmem:[#allocation3 + $0x98] sm:$0xff]  }
 0x514   : > { %v10738_v38 = vrot.slane %v16692_v50, 2  ;;  %v11254_v13 = vrot.slane %v11252_v54, 3 }
 0x519   : > { %15461 = vmatmul.mubr.bf16.gmra.mrb[32].mxu1 %v9671_v4  ;;  %v10206_v4 = vsel %vm3887_vm14, %v10203_v2, %v10205_v62  ;;  %v16695_v2 = vld [vmem:[#allocation3 + $0x10] sm:$0xfc]  }
 0x51a   : > { %15480 = vmatprep.mubr.bf16.mxu1 %v10172_v52  ;;  %v10707_v52 = vsel %vm3887_vm14, %v10705_v15, %v10706_v61  ;;  %v11241_v19 = vshrl.u32 %v16695_v2, 16  ;;  %v16694_v15 = vld [vmem:[#allocation3 + $0xa0] ss:$0 sps:$4 sm:$0x33]  }
 0x521   : > { %15481 = vmatmul.mubr.bf16.vlgmr.msra.gmra.mrb[0].mxu1 %v10174_v22  ;;  %v10709_v22 = vsel %vm3887_vm14, %v10706_v61, %v10708_v57  ;;  %v11244_v61 = vshll.u32 %v16695_v2, 16 }
 0x522   : > { %15484 = vmatprep.mubr.bf16.mxu1 %v10176_v18  ;;  %15517 = vmatpush3.bf16.msra.mxu1 %v18416_v59  ;;  %v16650_v59 = vld [vmem:[#allocation3 + $0x40] sm:$0xff]   ;;  %v10711_v18 = vsel %vm3887_vm14, %v10708_v57, %v10710_v1  ;;  %v16699_v57 = vld [vmem:[#allocation3 + $0x28] sm:$0xff]  }
 0x523   : > { %15518 = vmatprep.subr.bf16.mxu1 %v16648_v46  ;;  %v10183_v24 = vrot.slane %v16650_v59, 2  ;;  %v16677_v59 = vld [vmem:[#allocation3 + $0x48] sm:$0xff]  }
 0x525   : > { %v10184_v30 = vsel %vm3887_vm14, %v10181_v45, %v10183_v24  ;;  %v10186_v27 = vsel %vm3887_vm14, %v10183_v24, %v10185_v9  ;;  %v10716_v45 = vrot.slane %v16676_v29, 2  ;;  %v10718_v24 = vrot.slane %v16677_v59, 2 }
 0x526   : > { %15519 = vmatpush3.bf16.msra.mxu1 %v16648_v46  ;;  %v16675_v46 = vld [vmem:[%s19045_s3 + $0x1c8] sm:$0xff]   ;;  %v10720_v9 = vrot.slane %v16679_v35, 2 }
 0x527   : > { %15520 = vmatprep.subr.bf16.mxu1 %v16651_v25 }
 0x529   : > { %15485 = vmatmul.mubr.bf16.gmra.mrb[4].mxu1 %v10178_v63  ;;  %v10713_v63 = vsel %vm3887_vm14, %v10710_v1, %v10712_v17  ;;  %v11243_v1 = vrot.slane %v11241_v19, 2  ;;  %v16714_v19 = vld [vmem:[%s19045_s3 + $0x228] sm:$0xff]  }
 0x52a   : > { %15488 = vmatprep.mubr.bf16.mxu1 %v10180_v60  ;;  %15521 = vmatpush3.bf16.msra.mxu1 %v16651_v25  ;;  %v16678_v25 = vld [vmem:[%s19045_s3 + $0x1d0] sm:$0xff]   ;;  %v10715_v60 = vsel %vm3887_vm14, %v10712_v17, %v10714_v11  ;;  %v11270_v17 = vshll.u32 %v16699_v57, 16 }
 0x52b   : > { %15522 = vmatprep.subr.bf16.mxu1 %v16654_v44 }
 0x52e   : > { %15523 = vmatpush3.bf16.msra.mxu1 %v16654_v44  ;;  %v16681_v44 = vld [vmem:[%s19045_s3 + $0x1d8] sm:$0xff]  }
 0x52f   : > { %15524 = vmatprep.subr.bf16.mxu1 %v16657_v33 }
 0x531   : > { %15489 = vmatmul.mubr.bf16.gmra.mrb[8].mxu1 %v10182_v47  ;;  %v10717_v47 = vsel %vm3887_vm14, %v10714_v11, %v10716_v45 }
 0x532   : > { %15492 = vmatprep.mubr.bf16.mxu1 %v10184_v30  ;;  %15525 = vmatpush3.bf16.msra.mxu1 %v16657_v33  ;;  %v16684_v33 = vld [vmem:[%s19045_s3 + $0x1e0] sm:$0xff]   ;;  %v10719_v30 = vsel %vm3887_vm14, %v10716_v45, %v10718_v24  ;;  %v11272_v45 = vrot.slane %v11270_v17, 3  ;;  %v16720_v17 = vld [vmem:[%s19045_s3 + $0x238] sm:$0xff]  }
 0x533   : > { %15526 = vmatprep.subr.bf16.mxu1 %v16660_v8 }
 0x536   : > { %15527 = vmatpush3.bf16.msra.mxu1 %v16660_v8  ;;  %v16687_v8 = vld [vmem:[%s19045_s3 + $0x1e8] sm:$0xff]  }
 0x537   : > { %15528 = vmatprep.subr.bf16.mxu1 %v16663_v55 }
 0x539   : > { %15493 = vmatmul.mubr.bf16.gmra.mrb[12].mxu1 %v10186_v27  ;;  %v10721_v27 = vsel %vm3887_vm14, %v10718_v24, %v10720_v9  ;;  %v16701_v24 = vld [vmem:[#allocation3 + $0x38] sm:$0xff]  }
 0x53a   : > { %15496 = vmatprep.mubr.bf16.mxu1 %v10188_v49  ;;  %15529 = vmatpush3.bf16.msra.mxu1 %v16663_v55  ;;  %v16690_v55 = vld [vmem:[%s19045_s3 + $0x1f0] sm:$0xff]   ;;  %v10723_v49 = vsel %vm3887_vm14, %v10720_v9, %v10722_v23  ;;  %v11285_v39 = vshrl.u32 %v16701_v24, 16  ;;  %v16702_v9 = vld [vmem:[%s19045_s3 + $0x208] sm:$0xff]  }
 0x53b   : > { %15530 = vmatprep.subr.bf16.mxu1 %v16666_v40 }
 0x53c   : > { %v11287_v21 = vrot.slane %v11285_v39, 2 }
 0x53e   : > { %15531 = vmatpush3.bf16.msra.mxu1 %v16666_v40  ;;  %v16693_v40 = vld [vmem:[%s19045_s3 + $0x1f8] sm:$0xff]  }
 0x53f   : > { %15568 = vmatprep.subr.bf16.mxu1 %v16671_v56 }
 0x541   : > { %15497 = vmatmul.mubr.bf16.gmra.mrb[16].mxu1 %v10190_v42  ;;  %v10725_v42 = vsel %vm3887_vm14, %v10722_v23, %v10724_v5 }
 0x542   : > { %15500 = vmatprep.mubr.bf16.mxu1 %v10192_v6  ;;  %v10727_v6 = vsel %vm3887_vm14, %v10724_v5, %v10726_v14 }
 0x549   : > { %15501 = vmatmul.mubr.bf16.gmra.mrb[20].mxu1 %v10194_v10  ;;  %v10729_v10 = vsel %vm3887_vm14, %v10726_v14, %v10728_v48  ;;  %v16704_v14 = vld [vmem:[#allocation3 + $0x48] sm:$0xff]  }
 0x54a   : > { %15504 = vmatprep.mubr.bf16.mxu1 %v10196_v34  ;;  %v10731_v34 = vsel %vm3887_vm14, %v10728_v48, %v10730_v16 }
 0x551   : > { %15505 = vmatmul.mubr.bf16.gmra.mrb[24].mxu1 %v10198_v12  ;;  %v10733_v12 = vsel %vm3887_vm14, %v10730_v16, %v10732_v41  ;;  %v11303_v16 = vshrl.u32 %v16704_v14, 16 }
 0x552   : > { %15508 = vmatprep.mubr.bf16.mxu1 %v10200_v31  ;;  %v10735_v31 = vsel %vm3887_vm14, %v10732_v41, %v10734_v0  ;;  %v16706_v41 = vld [vmem:[#allocation3 + $0x50] sm:$0xff]  }
 0x553   : > { %v11312_v2 = vshrl.u32 %v16706_v41, 16 }
 0x559   : > { %15509 = vmatmul.mubr.bf16.gmra.mrb[28].mxu1 %v10202_v28  ;;  %v10736_v28 = vrot.slane %v16691_v7, 2 }
 0x55a   : > { %15512 = vmatprep.mubr.bf16.mxu1 %v10204_v26  ;;  %v11249_v26 = vshrl.u32 %v16696_v37, 16  ;;  %v16711_v37 = vld [vmem:[%s19045_s3 + $0x220] sm:$0xff]  }
 0x55b   : > { %v10737_v62 = vsel %vm3887_vm14, %v10734_v0, %v10736_v28  ;;  %v10739_v3 = vsel %vm3887_vm14, %v10736_v28, %v10738_v38  ;;  %v11315_v28 = vshll.u32 %v16706_v41, 16  ;;  %v16719_v41 = vld [vmem:[#allocation3 + $0x98] sm:$0xff]  }
 0x561   : > { %15513 = vmatmul.mubr.bf16.gmra.mrb[32].mxu1 %v10206_v4  ;;  %v16697_v4 = vld [vmem:[#allocation3 + $0x20] sm:$0xff]  }
 0x562   : > { %15532 = vmatprep.mubr.bf16.mxu1 %v10707_v52  ;;  %v11251_v52 = vrot.slane %v11249_v26, 2  ;;  %v11258_v32 = vshrl.u32 %v16697_v4, 16 }
 0x564   : > { %v11255_v58 = vor.u32 %v11254_v13, %v11251_v52 }
 0x569   : > { %15533 = vmatmul.mubr.bf16.vlgmr.msra.gmra.mrb[0].mxu1 %v10709_v22  ;;  %v10740_v22 = vrot.slane %v16694_v15, 2  ;;  %v11317_v15 = vrot.slane %v11315_v28, 3 }
 0x56a   : > { %15536 = vmatprep.mubr.bf16.mxu1 %v10711_v18  ;;  %15569 = vmatpush3.bf16.msra.mxu1 %v16671_v56  ;;  %v18504_v56 = vld [vmem:[%s19045_s3 + $0x200] sm:$0xff]   ;;  %v11261_v18 = vshll.u32 %v16697_v4, 16  ;;  %v16709_v4 = vld [vmem:[#allocation3 + $0x60] sm:$0xff]  }
 0x56b   : > { %15570 = vmatprep.subr.bf16.mxu1 %v16675_v46 }
 0x56c   : > { %v11263_v29 = vrot.slane %v11261_v18, 3 }
 0x56e   : > { %15571 = vmatpush3.bf16.msra.mxu1 %v16675_v46  ;;  %v11246_v46 = vrot.slane %v11244_v61, 3 }
 0x56f   : > { %15572 = vmatprep.subr.bf16.mxu1 %v16678_v25 }
 0x570   : > { %v11247_v11 = vor.u32 %v11246_v46, %v11243_v1  ;;  %v16717_v1 = vld [vmem:[%s19045_s3 + $0x230] sm:$0xff]  }
 0x571   : > { %15537 = vmatmul.mubr.bf16.gmra.mrb[4].mxu1 %v10713_v63  ;;  %v11260_v63 = vrot.slane %v11258_v32, 2  ;;  %v11333_v32 = vshll.u32 %v16709_v4, 16 }
 0x572   : > { %15540 = vmatprep.mubr.bf16.mxu1 %v10715_v60  ;;  %15573 = vmatpush3.bf16.msra.mxu1 %v16678_v25  ;;  %v11267_v25 = vshrl.u32 %v16699_v57, 16  ;;  %v16700_v60 = vld [vmem:[#allocation3 + $0x30] sm:$0xff]   ;;  %v11256_v59 = vsel %vm4958_vm9, %v11247_v11, %v11255_v58  ;;  %v16710_v57 = vld [vmem:[#allocation3 + $0x68] sm:$0xff]  }
 0x573   : > { %15574 = vmatprep.subr.bf16.mxu1 %v16681_v44  ;;  %v11279_v35 = vshll.u32 %v16700_v60, 16 }
 0x576   : > { %15575 = vmatpush3.bf16.msra.mxu1 %v16681_v44  ;;  %v10741_v44 = vsel %vm3887_vm14, %v10738_v38, %v10740_v22  ;;  %v11330_v22 = vshrl.u32 %v16709_v4, 16 }
 0x577   : > { %15576 = vmatprep.subr.bf16.mxu1 %v16684_v33 }
 0x579   : > { %15541 = vmatmul.mubr.bf16.gmra.mrb[8].mxu1 %v10717_v47  ;;  %v11276_v47 = vshrl.u32 %v16700_v60, 16 }
 0x57a   : > { %15544 = vmatprep.mubr.bf16.mxu1 %v10719_v30  ;;  %15577 = vmatpush3.bf16.msra.mxu1 %v16684_v33  ;;  %v11269_v33 = vrot.slane %v11267_v25, 2  ;;  %v11342_v25 = vshll.u32 %v16710_v57, 16 }
 0x57b   : > { %15578 = vmatprep.subr.bf16.mxu1 %v16687_v8 }
 0x57c   : > { %v11273_v30 = vor.u32 %v11272_v45, %v11269_v33  ;;  %v11344_v33 = vrot.slane %v11342_v25, 3  ;;  %v16713_v45 = vld [vmem:[#allocation3 + $0x78] sm:$0xff]  }
 0x57d   : > { %v11360_v39 = vshll.u32 %v16713_v45, 16 }
 0x57e   : > { %15579 = vmatpush3.bf16.msra.mxu1 %v16687_v8  ;;  %v11264_v8 = vor.u32 %v11263_v29, %v11260_v63  ;;  %v11335_v63 = vrot.slane %v11333_v32, 3  ;;  %v16712_v29 = vld [vmem:[#allocation3 + $0x70] sm:$0xff]  }
 0x57f   : > { %15580 = vmatprep.subr.bf16.mxu1 %v16690_v55 }
 0x580   : > { %v11265_v23 = vsel %vm4958_vm9, %v11255_v58, %v11264_v8  ;;  %v11339_v58 = vshrl.u32 %v16710_v57, 16 }
 0x581   : > { %15545 = vmatmul.mubr.bf16.gmra.mrb[12].mxu1 %v10721_v27  ;;  %v11281_v27 = vrot.slane %v11279_v35, 3 }
 0x582   : > { %15548 = vmatprep.mubr.bf16.mxu1 %v10723_v49  ;;  %15581 = vmatpush3.bf16.msra.mxu1 %v16690_v55  ;;  %v11288_v55 = vshll.u32 %v16701_v24, 16  ;;  %v11274_v49 = vsel %vm4958_vm9, %v11264_v8, %v11273_v30  ;;  %v11348_v8 = vshrl.u32 %v16712_v29, 16 }
 0x583   : > { %15582 = vmatprep.subr.bf16.mxu1 %v16693_v40 }
 0x584   : > { %v11290_v5 = vrot.slane %v11288_v55, 3 }
 0x586   : > { %15583 = vmatpush3.bf16.msra.mxu1 %v16693_v40  ;;  %v11278_v40 = vrot.slane %v11276_v47, 2  ;;  %v11291_v48 = vor.u32 %v11290_v5, %v11287_v21  ;;  %v11351_v47 = vshll.u32 %v16712_v29, 16  ;;  %v16716_v21 = vld [vmem:[#allocation3 + $0x88] sm:$0xff]  }
 0x587   : > { %15620 = vmatprep.subr.bf16.mxu1 %v18504_v56  ;;  %v11378_v43 = vshll.u32 %v16716_v21, 16 }
 0x588   : > { %v11282_v51 = vor.u32 %v11281_v27, %v11278_v40  ;;  %v16715_v40 = vld [vmem:[#allocation3 + $0x80] sm:$0xff]  }
 0x589   : > { %15549 = vmatmul.mubr.bf16.gmra.mrb[16].mxu1 %v10725_v42  ;;  %v16705_v42 = vld [vmem:[%s19045_s3 + $0x210] sm:$0xff]  }
 0x58a   : > { %15552 = vmatprep.mubr.bf16.mxu1 %v10727_v6  ;;  %v11294_v6 = vshrl.u32 %v16703_v36, 16  ;;  %v11292_v0 = vsel %vm4958_vm9, %v11282_v51, %v11291_v48 }
 0x591   : > { %15553 = vmatmul.mubr.bf16.gmra.mrb[20].mxu1 %v10729_v10  ;;  %v11306_v10 = vshll.u32 %v16704_v14, 16  ;;  %v11366_v14 = vshrl.u32 %v16715_v40, 16 }
 0x592   : > { %15556 = vmatprep.mubr.bf16.mxu1 %v10731_v34  ;;  %v11283_v34 = vsel %vm4958_vm9, %v11273_v30, %v11282_v51  ;;  %v11357_v30 = vshrl.u32 %v16713_v45, 16  ;;  %v16727_v45 = vld [vmem:[#allocation3 + $0x38] sm:$0xff]  }
 0x593   : > { %v11308_v7 = vrot.slane %v11306_v10, 3 }
 0x594   : > { %v11359_v36 = vrot.slane %v11357_v30, 2 }
 0x599   : > { %15557 = vmatmul.mubr.bf16.gmra.mrb[24].mxu1 %v10733_v12  ;;  %v11305_v12 = vrot.slane %v11303_v16, 2  ;;  %v11368_v16 = vrot.slane %v11366_v14, 2  ;;  %v16732_v14 = vld [vmem:[#allocation3 + $0x60] sm:$0xff]  }
 0x59a   : > { %15560 = vmatprep.mubr.bf16.mxu1 %v10735_v31  ;;  %v16707_v31 = vld [vmem:[#allocation3 + $0x58] sm:$0xff]  }
 0x59b   : > { %v11309_v26 = vor.u32 %v11308_v7, %v11305_v12  ;;  %v11321_v54 = vshrl.u32 %v16707_v31, 16  ;;  %v11324_v38 = vshll.u32 %v16707_v31, 16 }
 0x59d   : > { %v11323_v52 = vrot.slane %v11321_v54, 2  ;;  %v11326_v13 = vrot.slane %v11324_v38, 3  ;;  %v16721_v54 = vld [vmem:[#allocation3 + $0xa0] ss:$0 sps:$4 sm:$0x77]  }
 0x59e   : > { %v11405_v4 = vshll.u32 %v16721_v54, 16 }
 0x59f   : > { %v11327_v18 = vor.u32 %v11326_v13, %v11323_v52 }
 0x5a0   : > { %v11407_v57 = vrot.slane %v11405_v4, 3  ;;  %v18577_v4 = vld [vmem:[%s19046_s4] ss:$0 sm:$0xff] }
 0x5a1   : > { %15561 = vmatmul.mubr.bf16.gmra.mrb[28].mxu1 %v10737_v62  ;;  %v11314_v62 = vrot.slane %v11312_v2, 2 }
 0x5a2   : > { %15564 = vmatprep.mubr.bf16.mxu1 %v10739_v3 }
 0x5a3   : > { %v11318_v46 = vor.u32 %v11317_v15, %v11314_v62  ;;  %v11402_v15 = vshrl.u32 %v16721_v54, 16 }
 0x5a5   : > { %v11319_v11 = vsel %vm4958_vm9, %v11309_v26, %v11318_v46  ;;  %v11328_v60 = vsel %vm4958_vm9, %v11318_v46, %v11327_v18  ;;  %v11404_v13 = vrot.slane %v11402_v15, 2  ;;  %v16723_v46 = vld [vmem:[#allocation3 + $0x18] sm:$0xff]  }
 0x5a7   : > { %v11408_v32 = vor.u32 %v11407_v57, %v11404_v13 }
 0x5a9   : > { %15565 = vmatmul.mubr.bf16.gmra.mrb[32].mxu1 %v10741_v44  ;;  %v11332_v44 = vrot.slane %v11330_v22, 2  ;;  %v16722_v22 = vld [vmem:[#allocation3 + $0x10] sm:$0xf8]  }
 0x5aa   : > { %15584 = vmatprep.mubr.bf16.mxu1 %v11256_v59  ;;  %v11341_v59 = vrot.slane %v11339_v58, 2  ;;  %v11908_v58 = vrot.slane %v16722_v22, 3 }
 0x5ab   : > { %v11336_v24 = vor.u32 %v11335_v63, %v11332_v44  ;;  %v16725_v44 = vld [vmem:[#allocation3 + $0x28] sm:$0xff]  }
 0x5ac   : > { %v11345_v35 = vor.u32 %v11344_v33, %v11341_v59  ;;  %v11913_v29 = vrot.slane %v16725_v44, 3  ;;  %v16726_v59 = vld [vmem:[#allocation3 + $0x30] sm:$0xff]  }
 0x5ad   : > { %v11337_v55 = vsel %vm4958_vm9, %v11327_v18, %v11336_v24  ;;  %v11909_v18 = vrot.slane %v16723_v46, 3 }
 0x5ae   : > { %v11346_v27 = vsel %vm4958_vm9, %v11336_v24, %v11345_v35  ;;  %v11915_v24 = vrot.slane %v16726_v59, 3 }
 0x5b1   : > { %15585 = vmatmul.mubr.bf16.vlgmr.msra.gmra.mrb[0].mxu1 %v11265_v23  ;;  %v11353_v23 = vrot.slane %v11351_v47, 3  ;;  %v11916_v47 = vsel %vm5627_vm4, %v11913_v29, %v11915_v24 }
 0x5b2   : > { %15588 = vmatprep.mubr.bf16.mxu1 %v11274_v49  ;;  %15621 = vmatpush3.bf16.msra.mxu1 %v18504_v56  ;;  %v11296_v56 = vrot.slane %v11294_v6, 2  ;;  %v11362_v49 = vrot.slane %v11360_v39, 3  ;;  %v11375_v6 = vshrl.u32 %v16716_v21, 16  ;;  %v16729_v39 = vld [vmem:[#allocation3 + $0x48] sm:$0xff]  }
 0x5b3   : > { %15622 = vmatprep.subr.bf16.mxu1 %v16702_v9 }
 0x5b4   : > { %v11300_v50 = vor.u32 %v11299_v53, %v11296_v56  ;;  %v11363_v51 = vor.u32 %v11362_v49, %v11359_v36  ;;  %v11377_v56 = vrot.slane %v11375_v6, 2  ;;  %v11380_v53 = vrot.slane %v11378_v43, 3  ;;  %v16731_v36 = vld [vmem:[#allocation3 + $0x58] sm:$0xff]  }
 0x5b5   : > { %v11925_v21 = vrot.slane %v16731_v36, 3  ;;  %v11927_v6 = vrot.slane %v16732_v14, 3 }
 0x5b6   : > { %15623 = vmatpush3.bf16.msra.mxu1 %v16702_v9  ;;  %v11301_v61 = vsel %vm4958_vm9, %v11291_v48, %v11300_v50  ;;  %v11310_v3 = vsel %vm4958_vm9, %v11300_v50, %v11309_v26  ;;  %v11350_v9 = vrot.slane %v11348_v8, 2  ;;  %v11381_v31 = vor.u32 %v11380_v53, %v11377_v56 }
 0x5b7   : > { %15624 = vmatprep.subr.bf16.mxu1 %v16705_v42  ;;  %v11396_v50 = vshll.u32 %v16719_v41, 16  ;;  %v11917_v8 = vrot.slane %v16727_v45, 3  ;;  %v14252_v45 = vld [vmem:[%s17188_s29 + $0x18] sm:$0xff]  }
 0x5b8   : > { %v11354_v5 = vor.u32 %v11353_v23, %v11350_v9  ;;  %v11921_v9 = vrot.slane %v16729_v39, 3 }
 0x5b9   : > { %15589 = vmatmul.mubr.bf16.gmra.mrb[4].mxu1 %v11283_v34  ;;  %v11918_v30 = vsel %vm5627_vm4, %v11915_v24, %v11917_v8 }
 0x5ba   : > { %15592 = vmatprep.mubr.bf16.mxu1 %v11292_v0  ;;  %15625 = vmatpush3.bf16.msra.mxu1 %v16705_v42  ;;  %v11369_v42 = vshll.u32 %v16715_v40, 16  ;;  %v11355_v48 = vsel %vm4958_vm9, %v11345_v35, %v11354_v5  ;;  %v11364_v34 = vsel %vm4958_vm9, %v11354_v5, %v11363_v51  ;;  %v16728_v35 = vld [vmem:[#allocation3 + $0x40] sm:$0xff]   ;;  %v16730_v40 = vld [vmem:[#allocation3 + $0x50] sm:$0xff]  }
 0x5bb   : > { %15626 = vmatprep.subr.bf16.mxu1 %v16708_v20  ;;  %v11923_v49 = vrot.slane %v16730_v40, 3 }
 0x5bc   : > { %v11371_v10 = vrot.slane %v11369_v42, 3 }
 0x5bd   : > { %v11924_v5 = vsel %vm5627_vm4, %v11921_v9, %v11923_v49  ;;  %v11926_v42 = vsel %vm5627_vm4, %v11923_v49, %v11925_v21 }
 0x5be   : > { %15627 = vmatpush3.bf16.msra.mxu1 %v16708_v20  ;;  %v16718_v20 = vld [vmem:[#allocation3 + $0x90] sm:$0xff]   ;;  %v11372_v0 = vor.u32 %v11371_v10, %v11368_v16 }
 0x5bf   : > { %15628 = vmatprep.subr.bf16.mxu1 %v16711_v37  ;;  %v11384_v12 = vshrl.u32 %v16718_v20, 16  ;;  %v11387_v7 = vshll.u32 %v16718_v20, 16  ;;  %v16734_v16 = vld [vmem:[#allocation3 + $0x70] sm:$0xff]   ;;  %v16735_v20 = vld [vmem:[#allocation3 + $0x78] sm:$0xff]  }
 0x5c0   : > { %v11373_v2 = vsel %vm4958_vm9, %v11363_v51, %v11372_v0  ;;  %v11382_v38 = vsel %vm4958_vm9, %v11372_v0, %v11381_v31  ;;  %v16733_v51 = vld [vmem:[#allocation3 + $0x68] sm:$0xff]   ;;  %v11933_v56 = vrot.slane %v16735_v20, 3 }
 0x5c1   : > { %15593 = vmatmul.mubr.bf16.gmra.mrb[8].mxu1 %v11301_v61  ;;  %v11386_v28 = vrot.slane %v11384_v12, 2  ;;  %v11389_v26 = vrot.slane %v11387_v7, 3  ;;  %v11398_v61 = vrot.slane %v11396_v50, 3  ;;  %v11929_v43 = vrot.slane %v16733_v51, 3  ;;  %v16737_v12 = vld [vmem:[#allocation3 + $0x88] sm:$0xff]   ;;  %v16738_v50 = vld [vmem:[#allocation3 + $0x90] sm:$0xff]  }
 0x5c2   : > { %15596 = vmatprep.mubr.bf16.mxu1 %v11310_v3  ;;  %15629 = vmatpush3.bf16.msra.mxu1 %v16711_v37  ;;  %v11393_v37 = vshrl.u32 %v16719_v41, 16  ;;  %v16736_v41 = vld [vmem:[#allocation3 + $0x80] sm:$0xff]  }
 0x5c3   : > { %15630 = vmatprep.subr.bf16.mxu1 %v16714_v19  ;;  %v11390_v62 = vor.u32 %v11389_v26, %v11386_v28  ;;  %v11930_v10 = vsel %vm5627_vm4, %v11927_v6, %v11929_v43  ;;  %v11935_v7 = vrot.slane %v16736_v41, 3  ;;  %v16739_v28 = vld [vmem:[#allocation3 + $0x98] sm:$0xff]   ;;  %v11939_v26 = vrot.slane %v16738_v50, 3  ;;  %v14256_v50 = vld [vmem:[%s17188_s29 + $0x30] sm:$0xff]  }
 0x5c4   : > { %v11941_v54 = vrot.slane %v16739_v28, 3 }
 0x5c5   : > { %v11391_v52 = vsel %vm4958_vm9, %v11381_v31, %v11390_v62  ;;  %v11937_v31 = vrot.slane %v16737_v12, 3 }
 0x5c6   : > { %15631 = vmatpush3.bf16.msra.mxu1 %v16714_v19  ;;  %v11395_v19 = vrot.slane %v11393_v37, 2  ;;  %v11936_v37 = vsel %vm5627_vm4, %v11933_v56, %v11935_v7 }
 0x5c7   : > { %15632 = vmatprep.subr.bf16.mxu1 %v16717_v1 }
 0x5c8   : > { %v11399_v3 = vor.u32 %v11398_v61, %v11395_v19  ;;  %v16740_v19 = vld [vmem:[#allocation3 + $0xa0] ss:$0 sps:$4 sm:$0x77]   ;;  %v11942_v61 = vsel %vm5627_vm4, %v11939_v26, %v11941_v54 }
 0x5c9   : > { %15597 = vmatmul.mubr.bf16.gmra.mrb[12].mxu1 %v11319_v11  ;;  %v11910_v11 = vsel %vm5627_vm4, %v11908_v58, %v11909_v18 }
 0x5ca   : > { %15600 = vmatprep.mubr.bf16.mxu1 %v11328_v60  ;;  %15633 = vmatpush3.bf16.msra.mxu1 %v16717_v1  ;;  %v11400_v1 = vsel %vm4958_vm9, %v11390_v62, %v11399_v3  ;;  %v11409_v25 = vsel %vm4958_vm9, %v11399_v3, %v11408_v32  ;;  %v11943_v62 = vrot.slane %v16740_v19, 3  ;;  %v18646_v19 = vld [vmem:[%s17188_s29 + $0x20] sm:$0xff]  }
 0x5cb   : > { %15634 = vmatprep.subr.bf16.mxu1 %v16720_v17 }
 0x5cc   : > { %v11944_v15 = vsel %vm5627_vm4, %v11941_v54, %v11943_v62 }
 0x5ce   : > { %15635 = vmatpush3.bf16.msra.mxu1 %v16720_v17  ;;  %v16724_v17 = vld [vmem:[#allocation3 + $0x20] sm:$0xff]  }
 0x5cf   : > { %v11911_v63 = vrot.slane %v16724_v17, 3 }
 0x5d1   : > { %15601 = vmatmul.mubr.bf16.gmra.mrb[16].mxu1 %v11337_v55  ;;  %v11912_v60 = vsel %vm5627_vm4, %v11909_v18, %v11911_v63  ;;  %v11914_v33 = vsel %vm5627_vm4, %v11911_v63, %v11913_v29  ;;  %v11919_v55 = vrot.slane %v16728_v35, 3 }
 0x5d2   : > { %15604 = vmatprep.mubr.bf16.mxu1 %v11346_v27 }
 0x5d3   : > { %v11920_v23 = vsel %vm5627_vm4, %v11917_v8, %v11919_v55  ;;  %v11922_v27 = vsel %vm5627_vm4, %v11919_v55, %v11921_v9  ;;  %v18611_v55 = vld [vmem:[%s17188_s29] sm:$0xff]  }
 0x5d9   : > { %15605 = vmatmul.mubr.bf16.gmra.mrb[20].mxu1 %v11355_v48  ;;  %v11928_v48 = vsel %vm5627_vm4, %v11925_v21, %v11927_v6  ;;  %v14186_v21 = vunpack.c.h.bf16 %v14252_v45 }
 0x5da   : > { %15608 = vmatprep.mubr.bf16.mxu1 %v11364_v34  ;;  %v11931_v34 = vrot.slane %v16734_v16, 3 }
 0x5dc   : > { %v11932_v53 = vsel %vm5627_vm4, %v11929_v43, %v11931_v34  ;;  %v11934_v0 = vsel %vm5627_vm4, %v11931_v34, %v11933_v56 }
 0x5e1   : > { %15609 = vmatmul.mubr.bf16.gmra.mrb[24].mxu1 %v11373_v2  ;;  %v11938_v2 = vsel %vm5627_vm4, %v11935_v7, %v11937_v31  ;;  %v18634_v7 = vrot.slane %v14186_v21, 2 }
 0x5e2   : > { %15612 = vmatprep.mubr.bf16.mxu1 %v11382_v38  ;;  %v11940_v38 = vsel %vm5627_vm4, %v11937_v31, %v11939_v26  ;;  %vm19080_vm4 = vcmask 1040384  }
 0x5e3   : > { %vm18765_vm5 = vmor %vm19080_vm4, %vm12711_vm13 }
 0x5e9   : > { %15613 = vmatmul.mubr.bf16.gmra.mrb[28].mxu1 %v11391_v52 }
 0x5ea   : > { %15616 = vmatprep.mubr.bf16.mxu1 %v11400_v1 }
 0x5f1   : > { %15617 = vmatmul.mubr.bf16.gmra.mrb[32].mxu1 %v11409_v25  ;;  %v14250_v25 = vld [vmem:[%s17188_s29 + $0x8] sm:$0xff]  }
 0x5f2   : > { %15636 = vmatprep.mubr.bf16.mxu1 %v11910_v11  ;;  %v14177_v44 = vunpack.c.l.bf16 %v14250_v25  ;;  %v14178_v63 = vunpack.c.h.bf16 %v14250_v25 }
 0x5f4   : > { %v18608_v39 = vrot.slane %v14177_v44, 6  ;;  %v18613_v9 = vrot.slane %v14178_v63, 6  ;;  %v14189_v44 = vunpack.c.l.bf16 %v18646_v19 }
 0x5f6   : > { %v18625_v43 = vsel %vm19075_vm6, %v18608_v39, %v18613_v9 }
 0x5f9   : > { %15637 = vmatmul.mubr.bf16.vlgmr.msra.gmra.mrb[0].mxu1 %v11912_v60 }
 0x5fa   : > { %15640 = vmatprep.mubr.bf16.mxu1 %v11914_v33  ;;  %v14251_v33 = vld [vmem:[%s17188_s29 + $0x10] sm:$0xff]  }
 0x5fb   : > { %v14181_v36 = vunpack.c.l.bf16 %v14251_v33 }
 0x5fd   : > { %v18629_v56 = vrot.slane %v14181_v36, 4 }
 0x601   : > { %15641 = vmatmul.mubr.bf16.gmra.mrb[4].mxu1 %v11916_v47 }
 0x602   : > { %15644 = vmatprep.mubr.bf16.mxu1 %v11918_v30 }
 0x609   : > { %15645 = vmatmul.mubr.bf16.gmra.mrb[8].mxu1 %v11920_v23 }
 0x60a   : > { %15648 = vmatprep.mubr.bf16.mxu1 %v11922_v27  ;;  %v14185_v27 = vunpack.c.l.bf16 %v14252_v45 }
 0x60c   : > { %v18627_v34 = vrot.slane %v14185_v27, 2 }
 0x611   : > { %15649 = vmatmul.mubr.bf16.gmra.mrb[12].mxu1 %v11924_v5 }
 0x612   : > { %15652 = vmatprep.mubr.bf16.mxu1 %v11926_v42  ;;  %v14168_v42 = vunpack.c.l.bf16 %v18611_v55 }
 0x619   : > { %15653 = vmatmul.mubr.bf16.gmra.mrb[16].mxu1 %v11928_v48  ;;  %v14182_v48 = vunpack.c.h.bf16 %v14251_v33 }
 0x61a   : > { %15656 = vmatprep.mubr.bf16.mxu1 %v11930_v10 }
 0x621   : > { %15657 = vmatmul.mubr.bf16.gmra.mrb[20].mxu1 %v11932_v53 }
 0x622   : > { %15660 = vmatprep.mubr.bf16.mxu1 %v11934_v0 }
 0x629   : > { %15661 = vmatmul.mubr.bf16.gmra.mrb[24].mxu1 %v11936_v37 }
 0x62a   : > { %15664 = vmatprep.mubr.bf16.mxu1 %v11938_v2 }
 0x631   : > { %15665 = vmatmul.mubr.bf16.gmra.mrb[28].mxu1 %v11940_v38  ;;  %v14169_v38 = vunpack.c.h.bf16 %v18611_v55 }
 0x632   : > { %15668 = vmatprep.mubr.bf16.mxu1 %v11942_v61 }
 0x639   : > { %15669 = vmatmul.mubr.bf16.gmra.mrb[32].mxu1 %v11944_v15  ;;  %v18652_v15 = vrot.slane %v14182_v48, 4 }
 0x6cc   : > { %v15638_v3 = vpop.f32.mrb[0].mxu1 }
 0x6cd   : > { %v18580_v52 = vadd.f32 %v15638_v3, %v18577_v4  ;;  %v12045_v13 = vpop.f32.mrb[1].mxu1 }
 0x6ce   : > { %v18583_v57 = vadd.f32 %v18577_v4, %v12045_v13  ;;  %v15639_v1 = vpop.f32.mrb[2].mxu1  ;;  %v14255_v13 = vld [vmem:[%s17188_s29 + $0x28] sm:$0xff]  }
 0x6cf   : > { %v13984_v46 = vmul.f32 -1.442695, %v18580_v52  ;;  %v18587_v22 = vadd.f32 %v15639_v1, %v18577_v4  ;;  %v12048_v32 = vpop.f32.mrb[3].mxu1  ;;  %v14202_v1 = vunpack.c.l.bf16 %v14256_v50  ;;  %v14199_v45 = vunpack.c.h.bf16 %v14255_v13 }
 0x6d0   : > { %v13982_v18 = vmul.f32 -1.442695, %v18583_v57  ;;  %v18591_v58 = vadd.f32 %v18577_v4, %v12048_v32 }
 0x6d1   : > { %16885 = vpow2.f32 %v13984_v46  ;;  %v13985_v17 = vmul.f32 -1.442695, %v18587_v22  ;;  %v18659_v46 = vsel %vm3887_vm14, %v18627_v34, %v18634_v7 }
 0x6d2   : > { %16887 = vpow2.f32 %v13982_v18  ;;  %v13983_v11 = vmul.f32 -1.442695, %v18591_v58  ;;  %v14203_v18 = vunpack.c.h.bf16 %v14256_v50 }
 0x6d3   : > { %16889 = vpow2.f32 %v13985_v17  ;;  %v18665_v17 = vsel %vm381_vm12, %v18629_v56, %v18652_v15 }
 0x6d4   : > { %16891 = vpow2.f32 %v13983_v11  ;;  %v15642_v29 = vpop.f32.mrb[4].mxu1  ;;  %v14190_v11 = vunpack.c.h.bf16 %v18646_v19  ;;  %v18674_v21 = vrot.slane %v14203_v18, 4 }
 0x6d5   : > { %v18597_v60 = vadd.f32 %v15642_v29, %v18577_v4  ;;  %v12061_v59 = vpop.f32.mrb[5].mxu1 }
 0x6d6   : > { %v18602_v24 = vadd.f32 %v18577_v4, %v12061_v59  ;;  %v15643_v8 = vpop.f32.mrb[6].mxu1  ;;  %v14198_v59 = vunpack.c.l.bf16 %v14255_v13 }
 0x6d7   : > { %v13988_v47 = vmul.f32 -1.442695, %v18597_v60  ;;  %v18606_v35 = vadd.f32 %v15643_v8, %v18577_v4  ;;  %v12064_v30 = vpop.f32.mrb[7].mxu1 }
 0x6d8   : > { %v13986_v23 = vmul.f32 -1.442695, %v18602_v24  ;;  %v18617_v40 = vadd.f32 %v18577_v4, %v12064_v30 }
 0x6d9   : > { %16893 = vpow2.f32 %v13988_v47  ;;  %v13989_v49 = vmul.f32 -1.442695, %v18606_v35 }
 0x6da   : > { %16895 = vpow2.f32 %v13986_v23  ;;  %v13987_v5 = vmul.f32 -1.442695, %v18617_v40  ;;  %v18672_v23 = vrot.slane %v14202_v1, 4 }
 0x6db   : > { %v16886_v14 = vpop.eup %16885  ;;  %16897 = vpow2.f32 %v13989_v49 }
 0x6dc   : > { %v16888_v51 = vpop.eup %16887  ;;  %v12449_v6 = vadd.f32 1.0, %v16886_v14  ;;  %16899 = vpow2.f32 %v13987_v5  ;;  %v15646_v16 = vpop.f32.mrb[8].mxu1 }
 0x6dd   : > { %v16890_v10 = vpop.eup %16889  ;;  %v12447_v20 = vadd.f32 1.0, %v16888_v51  ;;  %v18632_v53 = vadd.f32 %v15646_v16, %v18577_v4  ;;  %v12077_v41 = vpop.f32.mrb[9].mxu1 }
 0x6de   : > { %v16892_v0 = vpop.eup %16891  ;;  %16901 = vrcp.f32 %v12449_v6  ;;  %v12450_v12 = vadd.f32 1.0, %v16890_v10  ;;  %v18637_v31 = vadd.f32 %v18577_v4, %v12077_v41  ;;  %v15647_v37 = vpop.f32.mrb[10].mxu1  ;;  %v18684_v41 = vrot.slane %v14199_v45, 6 }
 0x6df   : > { %16903 = vrcp.f32 %v12447_v20  ;;  %v12448_v2 = vadd.f32 1.0, %v16892_v0  ;;  %v13992_v28 = vmul.f32 -1.442695, %v18632_v53  ;;  %v18642_v26 = vadd.f32 %v15647_v37, %v18577_v4  ;;  %v12080_v54 = vpop.f32.mrb[11].mxu1  ;;  %v18687_v0 = vld [vmem:[%s17188_s29 + $0x38] sm:$0xff]  }
 0x6e0   : > { %16905 = vrcp.f32 %v12450_v12  ;;  %v13990_v61 = vmul.f32 -1.442695, %v18637_v31  ;;  %v18650_v62 = vadd.f32 %v18577_v4, %v12080_v54  ;;  %v14206_v18 = vunpack.c.l.bf16 %v18687_v0 }
 0x6e1   : > { %16907 = vrcp.f32 %v12448_v2  ;;  %v13993_v3 = vmul.f32 -1.442695, %v18642_v26  ;;  %v18693_v2 = vrot.slane %v14198_v59, 6 }
 0x6e2   : > { %16909 = vpow2.f32 %v13992_v28  ;;  %v13991_v32 = vmul.f32 -1.442695, %v18650_v62 }
 0x6e3   : > { %v16894_v25 = vpop.eup %16893  ;;  %16911 = vpow2.f32 %v13990_v61 }
 0x6e4   : > { %v16896_v63 = vpop.eup %16895  ;;  %v12453_v29 = vadd.f32 1.0, %v16894_v25  ;;  %16913 = vpow2.f32 %v13993_v3  ;;  %v15650_v33 = vpop.f32.mrb[12].mxu1  ;;  %v18700_v3 = vsel %vm381_vm12, %v18672_v23, %v18674_v21 }
 0x6e5   : > { %v16898_v8 = vpop.eup %16897  ;;  %v12451_v47 = vadd.f32 1.0, %v16896_v63  ;;  %16915 = vpow2.f32 %v13991_v32  ;;  %v18670_v30 = vadd.f32 %v15650_v33, %v18577_v4  ;;  %v12093_v27 = vpop.f32.mrb[13].mxu1 }
 0x6e6   : > { %v16900_v36 = vpop.eup %16899  ;;  %16917 = vrcp.f32 %v12453_v29  ;;  %v12454_v49 = vadd.f32 1.0, %v16898_v8  ;;  %v18677_v5 = vadd.f32 %v18577_v4, %v12093_v27  ;;  %v15651_v14 = vpop.f32.mrb[14].mxu1  ;;  %v18712_v29 = vsel %vm19076_vm10, %v18693_v2, %v18684_v41 }
 0x6e7   : > { %16919 = vrcp.f32 %v12451_v47  ;;  %v12452_v51 = vadd.f32 1.0, %v16900_v36  ;;  %v13996_v6 = vmul.f32 -1.442695, %v18670_v30  ;;  %v18681_v48 = vadd.f32 %v15651_v14, %v18577_v4  ;;  %v12096_v16 = vpop.f32.mrb[15].mxu1 }
 0x6e8   : > { %v16902_v10 = vpop.eup %16901  ;;  %16921 = vrcp.f32 %v12454_v49  ;;  %v13994_v20 = vmul.f32 -1.442695, %v18677_v5  ;;  %v18690_v12 = vadd.f32 %v18577_v4, %v12096_v16 }
 0x6e9   : > { %v16904_v37 = vpop.eup %16903  ;;  %v12557_v50 = vmul.f32 %v16902_v10, %v18580_v52  ;;  %16923 = vrcp.f32 %v12452_v51  ;;  %v13997_v28 = vmul.f32 -1.442695, %v18681_v48 }
 0x6ea   : > { %v16906_v54 = vpop.eup %16905  ;;  %v12555_v61 = vmul.f32 %v16904_v37, %v18583_v57  ;;  %16925 = vpow2.f32 %v13996_v6  ;;  %v13995_v13 = vmul.f32 -1.442695, %v18690_v12 }
 0x6eb   : > { %v16908_v1 = vpop.eup %16907  ;;  %v12620_v32 = vadd.f32 %v18608_v39, %v12557_v50  ;;  %v12558_v52 = vmul.f32 %v16906_v54, %v18587_v22  ;;  %16927 = vpow2.f32 %v13994_v20 }
 0x6ec   : > { %v16910_v25 = vpop.eup %16909  ;;  %v12595_v57 = vadd.f32 %v14168_v42, %v12555_v61  ;;  %v12556_v63 = vmul.f32 %v16908_v1, %v18591_v58  ;;  %16929 = vpow2.f32 %v13997_v28  ;;  %v15654_v59 = vpop.f32.mrb[16].mxu1 }
 0x6ed   : > { %v16912_v39 = vpop.eup %16911  ;;  %v14124_v33 = vpack.c.bf16 %v12620_v32, %v12620_v32  ;;  %v12621_v22 = vadd.f32 %v18625_v43, %v12558_v52  ;;  %v12457_v45 = vadd.f32 1.0, %v16910_v25  ;;  %16931 = vpow2.f32 %v13995_v13  ;;  %v12109_v8 = vpop.f32.mrb[17].mxu1 }
 0x6ee   : > { %v16914_v47 = vpop.eup %16913  ;;  %v12596_v58 = vadd.f32 %v14169_v38, %v12556_v63  ;;  %v12455_v42 = vadd.f32 1.0, %v16912_v39  ;;  %v18718_v27 = vadd.f32 %v15654_v59, %v18577_v4  ;;  %v18721_v36 = vadd.f32 %v18577_v4, %v12109_v8  ;;  %v15655_v49 = vpop.f32.mrb[18].mxu1 }
 0x6ef   : > { %v16916_v14 = vpop.eup %16915  ;;  %v14125_v43 = vpack.c.bf16 %v12621_v22, %v12621_v22  ;;  %16933 = vrcp.f32 %v12457_v45  ;;  %v12458_v55 = vadd.f32 1.0, %v16914_v47  ;;  %v18730_v38 = vrot.slane %v14206_v18, 2  ;;  %v12112_v51 = vpop.f32.mrb[19].mxu1 }
 0x6f0   : > { %v16918_v6 = vpop.eup %16917  ;;  %v14023_v16 = vrot.slane %v14124_v33, 9  ;;  %v14173_v20 = vpack.c.bf16 %v12596_v58, %v12595_v57  ;;  %16935 = vrcp.f32 %v12455_v42  ;;  %v12456_v37 = vadd.f32 1.0, %v16916_v14 }
 0x6f1   : > { %v16920_v50 = vpop.eup %16919  ;;  %v12637_v28 = vrot.slane %v14125_v43, 5  ;;  %v12561_v54 = vmul.f32 %v16918_v6, %v18597_v60  ;;  %16937 = vrcp.f32 %v12458_v55  ;;  %v14000_v61 = vmul.f32 -1.442695, %v18718_v27 }
 0x6f2   : > { %v16922_v13 = vpop.eup %16921  ;;  %14174 = vst [vmem:[%s18728_s27] sm:$0xff] %v14173_v20   ;;  %v12559_v1 = vmul.f32 %v16920_v50, %v18602_v24  ;;  %16939 = vrcp.f32 %v12456_v37  ;;  %v18743_v32 = vmul.f32 -1.442695, %v18721_v36  ;;  %v14207_v52 = vunpack.c.h.bf16 %v18687_v0 }
 0x6f3   : > { %v16924_v18 = vpop.eup %16923  ;;  %v12638_v25 = vsel %vm18734_vm11, %v14023_v16, %v12637_v28  ;;  %v12661_v57 = vadd.f32 %v18652_v15, %v12561_v54  ;;  %v12698_v60 = vadd.f32 %v18627_v34, %v12561_v54  ;;  %v18751_v63 = vadd.f32 %v15655_v49, %v18577_v4 }
 0x6f4   : > { %v16926_v59 = vpop.eup %16925  ;;  %12644 = vst [vmem:[%s18728_s27 + $0x8] sm:$0xf] %v12638_v25  ;;  %v12622_v24 = vadd.f32 %v18613_v9, %v12559_v1  ;;  %v12659_v39 = vadd.f32 %v18629_v56, %v12559_v1  ;;  %v12562_v33 = vmul.f32 %v16922_v13, %v18606_v35  ;;  %v12560_v22 = vmul.f32 %v16924_v18, %v18617_v40  ;;  %v15658_v45 = vpop.f32.mrb[20].mxu1 }
 0x6f5   : > { %v16928_v8 = vpop.eup %16927  ;;  %v14130_v47 = vpack.c.bf16 %v12698_v60, %v12698_v60  ;;  %v12461_v58 = vadd.f32 1.0, %v16926_v59  ;;  %16941 = vpow2.f32 %v14000_v61  ;;  %v18759_v34 = vadd.f32 %v18577_v4, %v12112_v51  ;;  %v12125_v15 = vpop.f32.mrb[21].mxu1 }
 0x6f6   : > { %v16930_v42 = vpop.eup %16929  ;;  %v14126_v49 = vpack.c.bf16 %v12622_v24, %v12622_v24  ;;  %v14127_v14 = vpack.c.bf16 %v12659_v39, %v12659_v39  ;;  %v12699_v9 = vadd.f32 %v18659_v46, %v12562_v33  ;;  %v12660_v56 = vadd.f32 %v18665_v17, %v12560_v22  ;;  %v15659_v43 = vpop.f32.mrb[22].mxu1 }
 0x6f7   : > { %v16932_v35 = vpop.eup %16931  ;;  %v12639_v55 = vrot.slane %v12637_v28, 4  ;;  %v14129_v40 = vpack.c.bf16 %v12661_v57, %v12661_v57  ;;  %16943 = vrcp.f32 %v12461_v58  ;;  %v12459_v6 = vadd.f32 1.0, %v16928_v8  ;;  %v12128_v16 = vpop.f32.mrb[23].mxu1 }
 0x6f8   : > { %v14031_v20 = vrot.slane %v14130_v47, 11  ;;  %v12640_v37 = vrot.slane %v14126_v49, 5  ;;  %v14131_v50 = vpack.c.bf16 %v12699_v9, %v12699_v9  ;;  %v14128_v46 = vpack.c.bf16 %v12660_v56, %v12660_v56 }
 0x6f9   : > { %v16934_v54 = vpop.eup %16933  ;;  %v14027_v17 = vrot.slane %v14127_v14, 10  ;;  %16945 = vrcp.f32 %v12459_v6  ;;  %v12462_v61 = vadd.f32 1.0, %v16930_v42  ;;  %v12460_v13 = vadd.f32 1.0, %v16932_v35  ;;  %v18807_v6 = vld [vmem:[%s17188_s29 + $0x40] sm:$0xff]  }
 0x6fa   : > { %v16936_v1 = vpop.eup %16935  ;;  %v12641_v18 = vsel %vm18734_vm11, %v12639_v55, %v12640_v37  ;;  %v12715_v25 = vrot.slane %v14131_v50, 7  ;;  %v12676_v57 = vrot.slane %v14128_v46, 6  ;;  %v12565_v60 = vmul.f32 %v16934_v54, %v18632_v53 }
 0x6fb   : > { %v16938_v59 = vpop.eup %16937  ;;  %v12679_v24 = vrot.slane %v14129_v40, 6  ;;  %12645 = vst [vmem:[%s18728_s27 + $0xc] sm:$0xf] %v12641_v18  ;;  %v12563_v39 = vmul.f32 %v16936_v1, %v18637_v31  ;;  %16947 = vrcp.f32 %v12462_v61  ;;  %v18781_v33 = vadd.f32 %v15658_v45, %v18577_v4 }
 0x6fc   : > { %v16940_v22 = vpop.eup %16939  ;;  %v12716_v8 = vsel %vm18765_vm5, %v14031_v20, %v12715_v25  ;;  %v12677_v47 = vsel %vm18771_vm1, %v14027_v17, %v12676_v57  ;;  %v12678_v58 = vrot.slane %v12676_v57, 4  ;;  %v14001_v53 = vmul.f32 -1.442695, %v18751_v63  ;;  %v15662_v42 = vpop.f32.mrb[24].mxu1  ;;  %v18835_v57 = vld [vmem:[%s17188_s29 + $0x48] sm:$0xff]  }
 0x6fd   : > { %12722 = vst [vmem:[%s18728_s27 + $0x18] sm:$0xf] %v12716_v8  ;;  %12683 = vst [vmem:[%s18728_s27 + $0x10] sm:$0xf] %v12677_v47  ;;  %v12700_v31 = vadd.f32 %v18634_v7, %v12563_v39  ;;  %v12566_v45 = vmul.f32 %v16938_v59, %v18642_v26  ;;  %v12564_v49 = vmul.f32 %v16940_v22, %v18650_v62  ;;  %v13999_v14 = vmul.f32 -1.442695, %v18759_v34 }
 0x6fe   : > { %v12141_v9 = vpop.f32.mrb[25].mxu1  ;;  %v12680_v56 = vsel %vm18771_vm1, %v12678_v58, %v12679_v24  ;;  %v12729_v35 = vadd.f32 %v14190_v11, %v12565_v60  ;;  %16949 = vrcp.f32 %v12460_v13  ;;  %v18799_v55 = vadd.f32 %v18577_v4, %v12125_v15 }
 0x6ff   : > { %v18801_v40 = vpop.f32.mrb[26].mxu1  ;;  %v16942_v7 = vpop.eup %16941  ;;  %12684 = vst [vmem:[%s18728_s27 + $0x14] sm:$0xf] %v12680_v56  ;;  %v14132_v26 = vpack.c.bf16 %v12700_v31, %v12700_v31  ;;  %v12728_v62 = vadd.f32 %v14189_v44, %v12564_v49  ;;  %16951 = vpow2.f32 %v18743_v32  ;;  %v14004_v20 = vmul.f32 -1.442695, %v18781_v33 }
 0x700   : > { %v18811_v37 = vpop.f32.mrb[27].mxu1  ;;  %v12717_v11 = vrot.slane %v12715_v25, 4  ;;  %16953 = vpow2.f32 %v14001_v53  ;;  %v14002_v15 = vmul.f32 -1.442695, %v18799_v55  ;;  %v18815_v50 = vadd.f32 %v15659_v43, %v18577_v4 }
 0x701   : > { %v16944_v46 = vpop.eup %16943  ;;  %v12718_v19 = vrot.slane %v14132_v26, 7  ;;  %v12752_v44 = vadd.f32 %v18693_v2, %v12566_v45  ;;  %v14194_v54 = vpack.c.bf16 %v12729_v35, %v12728_v62  ;;  %16955 = vpow2.f32 %v13999_v14 }
 0x702   : > { %v12569_v32 = vmul.f32 %v16944_v46, %v18670_v30  ;;  %v14210_v17 = vunpack.c.l.bf16 %v18807_v6  ;;  %v14005_v61 = vmul.f32 -1.442695, %v18815_v50  ;;  %v18822_v13 = vadd.f32 %v18577_v4, %v12128_v16  ;;  %v18838_v16 = vld [vmem:[%s17188_s29 + $0x50] sm:$0xff]  }
 0x703   : > { %v16946_v43 = vpop.eup %16945  ;;  %v12719_v1 = vsel %vm18765_vm5, %v12717_v11, %v12718_v19  ;;  %14254 = vst [vmem:[%s18728_s27 + $0x20] sm:$0xff] %v14194_v54   ;;  %v12465_v18 = vadd.f32 1.0, %v16942_v7  ;;  %v18829_v2 = vrot.slane %v14207_v52, 2  ;;  %16957 = vpow2.f32 %v14004_v20 }
 0x704   : > { %12723 = vst [vmem:[%s18728_s27 + $0x1c] sm:$0xf] %v12719_v1  ;;  %v12789_v30 = vadd.f32 %v18700_v3, %v12569_v32  ;;  %v12567_v25 = vmul.f32 %v16946_v43, %v18677_v5  ;;  %16959 = vpow2.f32 %v14002_v15  ;;  %v14003_v60 = vmul.f32 -1.442695, %v18822_v13  ;;  %v18841_v59 = vpop.f32.mrb[28].mxu1 }
 0x705   : > { %v16948_v24 = vpop.eup %16947  ;;  %v14135_v39 = vpack.c.bf16 %v12752_v44, %v12752_v44  ;;  %16961 = vpow2.f32 %v14005_v61  ;;  %v18844_v0 = vadd.f32 %v15662_v42, %v18577_v4  ;;  %v18847_v52 = vadd.f32 %v18577_v4, %v12141_v9  ;;  %v18849_v3 = vpop.f32.mrb[29].mxu1 }
 0x706   : > { %v14139_v5 = vpack.c.bf16 %v12789_v30, %v12789_v30  ;;  %v12753_v22 = vadd.f32 %v18712_v29, %v12567_v25  ;;  %v18853_v8 = vmul.f32 %v16948_v24, %v18681_v48  ;;  %16963 = vpow2.f32 %v14003_v60  ;;  %v18855_v47 = vpop.f32.mrb[30].mxu1 }
 0x707   : > { %v18860_v58 = vsel %vm3887_vm14, %v18730_v38, %v18829_v2  ;;  %v14220_v53 = vunpack.c.h.bf16 %v18835_v57  ;;  %v14223_v42 = vunpack.c.l.bf16 %v18838_v16  ;;  %v14006_v31 = vmul.f32 -1.442695, %v18847_v52  ;;  %v18865_v45 = vpop.f32.mrb[31].mxu1 }
 0x708   : > { %v16950_v29 = vpop.eup %16949  ;;  %v12803_v49 = vrot.slane %v14139_v5, 6  ;;  %v14136_v48 = vpack.c.bf16 %v12753_v22, %v12753_v22  ;;  %v12790_v14 = vadd.f32 %v18674_v21, %v18853_v8  ;;  %16965 = vrcp.f32 %v12465_v18 }
 0x709   : > { %v16952_v9 = vpop.eup %16951  ;;  %v14037_v56 = vrot.slane %v14135_v39, 9  ;;  %v12568_v35 = vmul.f32 %v16950_v29, %v18690_v12  ;;  %v14219_v7 = vunpack.c.l.bf16 %v18835_v57  ;;  %16967 = vpow2.f32 %v14006_v31 }
 0x70a   : > { %v16954_v26 = vpop.eup %16953  ;;  %v12805_v62 = vrot.slane %v12803_v49, 4  ;;  %v12767_v20 = vrot.slane %v14136_v48, 5  ;;  %v14140_v11 = vpack.c.bf16 %v12790_v14, %v12790_v14  ;;  %v14008_v15 = vmul.f32 -1.442695, %v18844_v0 }
 0x70b   : > { %v16956_v46 = vpop.eup %16955  ;;  %v12754_v19 = vadd.f32 %v18684_v41, %v12568_v35  ;;  %v12788_v21 = vadd.f32 %v18672_v23, %v12568_v35  ;;  %v12463_v44 = vadd.f32 1.0, %v16952_v9  ;;  %v12466_v54 = vadd.f32 1.0, %v16954_v26 }
 0x70c   : > { %v12768_v12 = vsel %vm18734_vm11, %v14037_v56, %v12767_v20  ;;  %v12806_v32 = vrot.slane %v14140_v11, 6  ;;  %v14224_v61 = vunpack.c.h.bf16 %v18838_v16  ;;  %v18879_v43 = vadd.f32 %v18801_v40, %v18577_v4  ;;  %v15670_v1 = vpop.f32.mrb[32].mxu1 }
 0x70d   : > { %v16958_v18 = vpop.eup %16957  ;;  %v12769_v30 = vrot.slane %v12767_v20, 4  ;;  %12774 = vst [vmem:[%s18728_s27 + $0x28] sm:$0xf] %v12768_v12  ;;  %v14137_v41 = vpack.c.bf16 %v12754_v19, %v12754_v19  ;;  %v14138_v25 = vpack.c.bf16 %v12788_v21, %v12788_v21  ;;  %16969 = vrcp.f32 %v12463_v44  ;;  %v12173_v23 = vpop.f32.mrb[33].mxu1 }
 0x70e   : > { %v16960_v60 = vpop.eup %16959  ;;  %v12807_v24 = vsel %vm18771_vm1, %v12805_v62, %v12806_v32  ;;  %16971 = vrcp.f32 %v12466_v54  ;;  %v12464_v39 = vadd.f32 1.0, %v16956_v46  ;;  %v12469_v16 = vadd.f32 1.0, %v16958_v18  ;;  %v18884_v5 = vpop.f32.mrb[34].mxu1 }
 0x70f   : > { %v16962_v40 = vpop.eup %16961  ;;  %12811 = vst [vmem:[%s18728_s27 + $0x34] sm:$0xf] %v12807_v24  ;;  %v12770_v22 = vrot.slane %v14137_v41, 5  ;;  %v14041_v31 = vrot.slane %v14138_v25, 10  ;;  %v12467_v29 = vadd.f32 1.0, %v16960_v60  ;;  %16973 = vpow2.f32 %v14008_v15  ;;  %v18887_v48 = vpop.f32.mrb[35].mxu1 }
 0x710   : > { %v16964_v14 = vpop.eup %16963  ;;  %16975 = vrcp.f32 %v12464_v39  ;;  %v12470_v9 = vadd.f32 1.0, %v16962_v40  ;;  %v18891_v56 = vadd.f32 %v18577_v4, %v18811_v37  ;;  %v18895_v35 = vadd.f32 %v18841_v59, %v18577_v4 }
 0x711   : > { %v12771_v26 = vsel %vm18734_vm11, %v12769_v30, %v12770_v22  ;;  %v12804_v62 = vsel %vm18771_vm1, %v14041_v31, %v12803_v49  ;;  %16977 = vrcp.f32 %v12469_v16  ;;  %v12468_v20 = vadd.f32 1.0, %v16964_v14 }
 0x712   : > { %v16966_v11 = vpop.eup %16965  ;;  %v12824_v15 = vadd.f32 %v18730_v38, %v18853_v8  ;;  %12775 = vst [vmem:[%s18728_s27 + $0x2c] sm:$0xf] %v12771_v26  ;;  %12810 = vst [vmem:[%s18728_s27 + $0x30] sm:$0xf] %v12804_v62  ;;  %v12906_v37 = vrot.slane %v14223_v42, 4  ;;  %16979 = vrcp.f32 %v12467_v29  ;;  %v18907_v59 = vadd.f32 %v18577_v4, %v18849_v3 }
 0x713   : > { %v16968_v46 = vpop.eup %16967  ;;  %16981 = vrcp.f32 %v12470_v9  ;;  %v18909_v19 = vrot.slane %v14224_v61, 4  ;;  %v14009_v49 = vmul.f32 -1.442695, %v18879_v43  ;;  %v18914_v21 = vadd.f32 %v18855_v47, %v18577_v4 }
 0x714   : > { %16983 = vrcp.f32 %v12468_v20  ;;  %v12471_v38 = vadd.f32 1.0, %v16968_v46  ;;  %v14007_v8 = vmul.f32 -1.442695, %v18891_v56  ;;  %v18919_v42 = vadd.f32 %v18577_v4, %v18865_v45 }
 0x715   : > { %v14211_v3 = vunpack.c.h.bf16 %v18807_v6  ;;  %v12870_v44 = vrot.slane %v14219_v7, 6  ;;  %v14012_v54 = vmul.f32 -1.442695, %v18895_v35  ;;  %v18924_v12 = vadd.f32 %v15670_v1, %v18577_v4 }
 0x716   : > { %v14141_v32 = vpack.c.bf16 %v12824_v15, %v12824_v15  ;;  %v12573_v47 = vmul.f32 %v16966_v11, %v18718_v27  ;;  %16985 = vrcp.f32 %v12471_v38  ;;  %v14010_v61 = vmul.f32 -1.442695, %v18907_v59 }
 0x717   : > { %v16970_v18 = vpop.eup %16969  ;;  %v12871_v30 = vrot.slane %v14220_v53, 6  ;;  %16987 = vpow2.f32 %v14009_v49  ;;  %v14013_v45 = vmul.f32 -1.442695, %v18914_v21  ;;  %v18932_v7 = vadd.f32 %v18577_v4, %v12173_v23 }
 0x718   : > { %v16972_v41 = vpop.eup %16971  ;;  %v12571_v1 = vmul.f32 %v16970_v18, %v18721_v36  ;;  %v12908_v25 = vsel %vm381_vm12, %v12906_v37, %v18909_v19  ;;  %16989 = vpow2.f32 %v14007_v8  ;;  %v14011_v27 = vmul.f32 -1.442695, %v18919_v42 }
 0x719   : > { %v16974_v60 = vpop.eup %16973  ;;  %v12574_v24 = vmul.f32 %v16972_v41, %v18751_v63  ;;  %v12872_v57 = vsel %vm19086_vm2, %v12870_v44, %v12871_v30  ;;  %16991 = vpow2.f32 %v14012_v54  ;;  %v14016_v53 = vmul.f32 -1.442695, %v18924_v12  ;;  %v18955_v54 = vld [vmem:[%s17188_s29 + $0x58] sm:$0xff]  }
 0x71a   : > { %v16976_v39 = vpop.eup %16975  ;;  %v14045_v23 = vrot.slane %v14141_v32, 11  ;;  %v12852_v16 = vadd.f32 %v14210_v17, %v12573_v47  ;;  %v12825_v36 = vadd.f32 %v18860_v58, %v12571_v1  ;;  %16993 = vpow2.f32 %v14010_v61 }
 0x71b   : > { %v16978_v40 = vpop.eup %16977  ;;  %v12853_v22 = vadd.f32 %v14211_v3, %v12574_v24  ;;  %v12572_v31 = vmul.f32 %v16976_v39, %v18759_v34  ;;  %16995 = vpow2.f32 %v14013_v45  ;;  %v14014_v63 = vmul.f32 -1.442695, %v18932_v7 }
 0x71c   : > { %v16980_v29 = vpop.eup %16979  ;;  %v14142_v14 = vpack.c.bf16 %v12825_v36, %v12825_v36  ;;  %v12577_v9 = vmul.f32 %v16978_v40, %v18781_v33  ;;  %v12473_v26 = vadd.f32 1.0, %v16974_v60  ;;  %16997 = vpow2.f32 %v14011_v27 }
 0x71d   : > { %v16982_v62 = vpop.eup %16981  ;;  %v14215_v6 = vpack.c.bf16 %v12853_v22, %v12852_v16  ;;  %v12826_v17 = vadd.f32 %v18829_v2, %v12572_v31  ;;  %v12575_v58 = vmul.f32 %v16980_v29, %v18799_v55  ;;  %16999 = vpow2.f32 %v14016_v53 }
 0x71e   : > { %v16984_v20 = vpop.eup %16983  ;;  %v12839_v34 = vrot.slane %v14142_v14, 7  ;;  %v12878_v11 = vadd.f32 %v12871_v30, %v12577_v9  ;;  %v12912_v15 = vadd.f32 %v12906_v37, %v12577_v9  ;;  %v12578_v46 = vmul.f32 %v16982_v62, %v18815_v50  ;;  %v14265_v62 = vld [vmem:[%s17188_s29 + $0x68] sm:$0xff]  }
 0x71f   : > { %14259 = vst [vmem:[%s18728_s27 + $0x40] sm:$0xff] %v14215_v6   ;;  %v14143_v49 = vpack.c.bf16 %v12826_v17, %v12826_v17  ;;  %v12876_v33 = vadd.f32 %v12870_v44, %v12575_v58  ;;  %v12576_v38 = vmul.f32 %v16984_v20, %v18822_v13  ;;  %17001 = vpow2.f32 %v14014_v63 }
 0x720   : > { %v16986_v8 = vpop.eup %16985  ;;  %v12840_v2 = vsel %vm18765_vm5, %v14045_v23, %v12839_v34  ;;  %v12841_v55 = vrot.slane %v12839_v34, 4  ;;  %v14149_v3 = vpack.c.bf16 %v12912_v15, %v12912_v15  ;;  %v12913_v50 = vadd.f32 %v12908_v25, %v12578_v46 }
 0x721   : > { %v16988_v32 = vpop.eup %16987  ;;  %12846 = vst [vmem:[%s18728_s27 + $0x38] sm:$0xf] %v12840_v2  ;;  %v12842_v37 = vrot.slane %v14143_v49, 7  ;;  %v14146_v47 = vpack.c.bf16 %v12876_v33, %v12876_v33  ;;  %v12877_v61 = vadd.f32 %v12872_v57, %v12576_v38  ;;  %v14148_v44 = vpack.c.bf16 %v12878_v11, %v12878_v11 }
 0x722   : > { %v16990_v18 = vpop.eup %16989  ;;  %17003 = vrcp.f32 %v12473_v26  ;;  %v18959_v13 = vmul.f32 %v16986_v8, %v18847_v52  ;;  %v14150_v41 = vpack.c.bf16 %v12913_v50, %v12913_v50  ;;  %v14228_v27 = vunpack.c.h.bf16 %v18955_v54  ;;  %v14267_v50 = vld [vmem:[%s17188_s29 + $0x78] sm:$0xff]  }
 0x723   : > { %v16992_v30 = vpop.eup %16991  ;;  %v12843_v45 = vsel %vm18765_vm5, %v12841_v55, %v12842_v37  ;;  %v14147_v1 = vpack.c.bf16 %v12877_v61, %v12877_v61  ;;  %v14055_v24 = vrot.slane %v14149_v3, 10  ;;  %v14051_v53 = vrot.slane %v14146_v47, 9 }
 0x724   : > { %v16994_v60 = vpop.eup %16993  ;;  %12847 = vst [vmem:[%s18728_s27 + $0x3c] sm:$0xf] %v12843_v45  ;;  %v12914_v25 = vadd.f32 %v18909_v19, %v18959_v13  ;;  %v12474_v57 = vadd.f32 1.0, %v16988_v32  ;;  %v12927_v52 = vrot.slane %v14150_v41, 6  ;;  %v12472_v16 = vadd.f32 1.0, %v16990_v18  ;;  %v14266_v32 = vld [vmem:[%s17188_s29 + $0x70] sm:$0xff]  }
 0x725   : > { %v16996_v39 = vpop.eup %16995  ;;  %v12891_v23 = vrot.slane %v14147_v1, 5  ;;  %v12477_v36 = vadd.f32 1.0, %v16992_v30  ;;  %v12894_v22 = vrot.slane %v14148_v44, 5  ;;  %v14227_v63 = vunpack.c.l.bf16 %v18955_v54  ;;  %v14263_v30 = vld [vmem:[%s17188_s29 + $0x60] sm:$0xff]  }
 0x726   : > { %v16998_v40 = vpop.eup %16997  ;;  %v14151_v31 = vpack.c.bf16 %v12914_v25, %v12914_v25  ;;  %v18970_v29 = vadd.f32 %v18884_v5, %v18577_v4  ;;  %v12928_v19 = vsel %vm18771_vm1, %v14055_v24, %v12927_v52  ;;  %17005 = vrcp.f32 %v12474_v57 }
 0x727   : > { %v17000_v14 = vpop.eup %16999  ;;  %v12892_v9 = vsel %vm18734_vm11, %v14051_v53, %v12891_v23  ;;  %v12893_v26 = vrot.slane %v12891_v23, 4  ;;  %v12929_v6 = vrot.slane %v12927_v52, 4  ;;  %12934 = vst [vmem:[%s18728_s27 + $0x50] sm:$0xf] %v12928_v19  ;;  %17007 = vrcp.f32 %v12472_v16 }
 0x728   : > { %12898 = vst [vmem:[%s18728_s27 + $0x48] sm:$0xf] %v12892_v9  ;;  %v12930_v17 = vrot.slane %v14151_v31, 6  ;;  %v18981_v5 = vadd.f32 %v18577_v4, %v18887_v48  ;;  %17009 = vrcp.f32 %v12477_v36  ;;  %v12475_v34 = vadd.f32 1.0, %v16994_v60 }
 0x729   : > { %v17002_v58 = vpop.eup %17001  ;;  %v12895_v20 = vsel %vm18734_vm11, %v12893_v26, %v12894_v22  ;;  %v12478_v11 = vadd.f32 1.0, %v16996_v39  ;;  %v14240_v46 = vunpack.c.l.bf16 %v14265_v62  ;;  %v12476_v49 = vadd.f32 1.0, %v16998_v40 }
 0x72a   : > { %12899 = vst [vmem:[%s18728_s27 + $0x4c] sm:$0xf] %v12895_v20  ;;  %v12931_v15 = vsel %vm18771_vm1, %v12929_v6, %v12930_v17  ;;  %v12481_v33 = vadd.f32 1.0, %v17000_v14  ;;  %v14241_v38 = vunpack.c.h.bf16 %v14265_v62  ;;  %17011 = vrcp.f32 %v12475_v34 }
 0x72b   : > { %12935 = vst [vmem:[%s18728_s27 + $0x54] sm:$0xf] %v12931_v15  ;;  %v12479_v4 = vadd.f32 1.0, %v17002_v58  ;;  %17013 = vrcp.f32 %v12478_v11  ;;  %v14017_v8 = vmul.f32 -1.442695, %v18970_v29  ;;  %v12942_v2 = vrot.slane %v14227_v63, 2 }
 0x72c   : > { %v17004_v48 = vpop.eup %17003  ;;  %17015 = vrcp.f32 %v12476_v49  ;;  %v14015_v55 = vmul.f32 -1.442695, %v18981_v5  ;;  %v12943_v3 = vrot.slane %v14228_v27, 2  ;;  %v12994_v54 = vrot.slane %v14240_v46, 6 }
 0x72d   : > { %17017 = vrcp.f32 %v12481_v33  ;;  %v12581_v37 = vmul.f32 %v17004_v48, %v18844_v0  ;;  %v12995_v47 = vrot.slane %v14241_v38, 6  ;;  %v14245_v61 = vunpack.c.h.bf16 %v14266_v32 }
 0x72e   : > { %17019 = vrcp.f32 %v12479_v4  ;;  %v12948_v44 = vadd.f32 %v12942_v2, %v18959_v13  ;;  %v14244_v45 = vunpack.c.l.bf16 %v14266_v32  ;;  %v12944_v1 = vsel %vm3887_vm14, %v12942_v2, %v12943_v3 }
 0x72f   : > { %17021 = vpow2.f32 %v14017_v8  ;;  %v14248_v27 = vunpack.c.l.bf16 %v14267_v50  ;;  %v14249_v60 = vunpack.c.h.bf16 %v14267_v50  ;;  %v12950_v53 = vadd.f32 %v12943_v3, %v12581_v37 }
 0x730   : > { %v17006_v18 = vpop.eup %17005  ;;  %17023 = vpow2.f32 %v14015_v55  ;;  %v12996_v25 = vsel %vm19087_vm8, %v12994_v54, %v12995_v47  ;;  %v18999_v57 = vrot.slane %v14245_v61, 4  ;;  %v14231_v52 = vunpack.c.l.bf16 %v14263_v30 }
 0x731   : > { %v17008_v41 = vpop.eup %17007  ;;  %v12582_v39 = vmul.f32 %v17006_v18, %v18879_v43  ;;  %v14232_v23 = vunpack.c.h.bf16 %v14263_v30  ;;  %v14152_v36 = vpack.c.bf16 %v12948_v44, %v12948_v44  ;;  %v13030_v22 = vrot.slane %v14244_v45, 4 }
 0x732   : > { %v17010_v24 = vpop.eup %17009  ;;  %v12580_v0 = vmul.f32 %v17008_v41, %v18891_v56  ;;  %v13066_v19 = vrot.slane %v14248_v27, 2  ;;  %v13067_v56 = vrot.slane %v14249_v60, 2  ;;  %v14154_v26 = vpack.c.bf16 %v12950_v53, %v12950_v53 }
 0x733   : > { %v12585_v13 = vmul.f32 %v17010_v24, %v18895_v35  ;;  %v13032_v43 = vsel %vm381_vm12, %v13030_v22, %v18999_v57  ;;  %v12976_v17 = vadd.f32 %v14231_v52, %v12582_v39  ;;  %v14059_v15 = vrot.slane %v14152_v36, 11 }
 0x734   : > { %v17012_v16 = vpop.eup %17011  ;;  %v12949_v40 = vadd.f32 %v12944_v1, %v12580_v0  ;;  %v12966_v2 = vrot.slane %v14154_v26, 7  ;;  %v13068_v1 = vsel %vm3887_vm14, %v13066_v19, %v13067_v56 }
 0x735   : > { %v17014_v31 = vpop.eup %17013  ;;  %v13001_v63 = vadd.f32 %v12996_v25, %v12585_v13  ;;  %v12583_v14 = vmul.f32 %v17012_v16, %v18907_v59 }
 0x736   : > { %v17016_v9 = vpop.eup %17015  ;;  %v14153_v62 = vpack.c.bf16 %v12949_v40, %v12949_v40  ;;  %v12586_v6 = vmul.f32 %v17014_v31, %v18914_v21 }
 0x737   : > { %v17018_v35 = vpop.eup %17017  ;;  %v14158_v58 = vpack.c.bf16 %v13001_v63, %v13001_v63  ;;  %v12977_v20 = vadd.f32 %v14232_v23, %v12583_v14  ;;  %v12584_v34 = vmul.f32 %v17016_v9, %v18919_v42 }
 0x738   : > { %v17020_v11 = vpop.eup %17019  ;;  %v12963_v59 = vrot.slane %v14153_v62, 7  ;;  %v13002_v46 = vadd.f32 %v12995_v47, %v12586_v6  ;;  %v13036_v49 = vadd.f32 %v13030_v22, %v12586_v6  ;;  %v12589_v44 = vmul.f32 %v17018_v35, %v18924_v12 }
 0x739   : > { %v17022_v33 = vpop.eup %17021  ;;  %v13015_v38 = vrot.slane %v14158_v58, 5  ;;  %v14236_v4 = vpack.c.bf16 %v12977_v20, %v12976_v17  ;;  %v13000_v21 = vadd.f32 %v12994_v54, %v12584_v34  ;;  %v12587_v48 = vmul.f32 %v17020_v11, %v18932_v7 }
 0x73a   : > { %v17024_v8 = vpop.eup %17023  ;;  %v12964_v55 = vsel %vm18765_vm5, %v14059_v15, %v12963_v59  ;;  %v12965_v42 = vrot.slane %v12963_v59, 4  ;;  %v14159_v3 = vpack.c.bf16 %v13002_v46, %v13002_v46  ;;  %v14160_v37 = vpack.c.bf16 %v13036_v49, %v13036_v49 }
 0x73b   : > { %12970 = vst [vmem:[%s18728_s27 + $0x58] sm:$0xf] %v12964_v55  ;;  %v13017_v32 = vrot.slane %v13015_v38, 4  ;;  %14264 = vst [vmem:[%s18728_s27 + $0x60] sm:$0xff] %v14236_v4   ;;  %v14157_v47 = vpack.c.bf16 %v13000_v21, %v13000_v21  ;;  %v13037_v50 = vadd.f32 %v13032_v43, %v12587_v48  ;;  %v12482_v7 = vadd.f32 1.0, %v17022_v33 }
 0x73c   : > { %v12967_v54 = vsel %vm18765_vm5, %v12965_v42, %v12966_v2  ;;  %v13018_v61 = vrot.slane %v14159_v3, 5  ;;  %v12480_v45 = vadd.f32 1.0, %v17024_v8  ;;  %v14069_v27 = vrot.slane %v14160_v37, 10 }
 0x73d   : > { %12971 = vst [vmem:[%s18728_s27 + $0x5c] sm:$0xf] %v12967_v54  ;;  %v14065_v18 = vrot.slane %v14157_v47, 9  ;;  %v14161_v30 = vpack.c.bf16 %v13037_v50, %v13037_v50  ;;  %17025 = vrcp.f32 %v12482_v7  ;;  %v13073_v53 = vadd.f32 %v13068_v1, %v12589_v44 }
 0x73e   : > { %v13019_v41 = vsel %vm18734_vm11, %v13017_v32, %v13018_v61  ;;  %17027 = vrcp.f32 %v12480_v45 }
 0x73f   : > { %13023 = vst [vmem:[%s18728_s27 + $0x6c] sm:$0xf] %v13019_v41  ;;  %v13016_v60 = vsel %vm18734_vm11, %v14065_v18, %v13015_v38  ;;  %v13051_v24 = vrot.slane %v14161_v30, 6  ;;  %v14164_v0 = vpack.c.bf16 %v13073_v53, %v13073_v53 }
 0x740   : > { %13022 = vst [vmem:[%s18728_s27 + $0x68] sm:$0xf] %v13016_v60 }
 0x741   : > { %v13052_v12 = vsel %vm18771_vm1, %v14069_v27, %v13051_v24  ;;  %v13087_v52 = vrot.slane %v14164_v0, 7  ;;  %v13053_v31 = vrot.slane %v13051_v24, 4 }
 0x742   : > { %13058 = vst [vmem:[%s18728_s27 + $0x70] sm:$0xf] %v13052_v12 }
 0x743   : > { %v13089_v40 = vrot.slane %v13087_v52, 4 }
 0x747   : > { %v17026_v25 = vpop.eup %17025 }
 0x748   : > { %v17028_v39 = vpop.eup %17027  ;;  %v12590_v13 = vmul.f32 %v17026_v25, %v18970_v29 }
 0x749   : > { %v12588_v23 = vmul.f32 %v17028_v39, %v18981_v5 }
 0x74a   : > { %v13074_v10 = vadd.f32 %v13067_v56, %v12590_v13 }
 0x74b   : > { %v13038_v16 = vadd.f32 %v18999_v57, %v12588_v23  ;;  %v13072_v36 = vadd.f32 %v13066_v19, %v12588_v23 }
 0x74c   : > { %v14165_v22 = vpack.c.bf16 %v13074_v10, %v13074_v10 }
 0x74d   : > { %v14162_v63 = vpack.c.bf16 %v13038_v16, %v13038_v16  ;;  %v14163_v14 = vpack.c.bf16 %v13072_v36, %v13072_v36 }
 0x74e   : > { %v13090_v9 = vrot.slane %v14165_v22, 7 }
 0x74f   : > { %v13054_v26 = vrot.slane %v14162_v63, 6  ;;  %v14073_v62 = vrot.slane %v14163_v14, 11 }
 0x750   : > { %v13091_v6 = vsel %vm18765_vm5, %v13089_v40, %v13090_v9 }
 0x751   : > { %13095 = vst [vmem:[%s18728_s27 + $0x7c] sm:$0xf] %v13091_v6  ;;  %v13055_v29 = vsel %vm18771_vm1, %v13053_v31, %v13054_v26  ;;  %v13088_v5 = vsel %vm18765_vm5, %v14073_v62, %v13087_v52 }
 0x752   : > { %13059 = vst [vmem:[%s18728_s27 + $0x74] sm:$0xf] %v13055_v29  ;;  %13094 = vst [vmem:[%s18728_s27 + $0x78] sm:$0xf] %v13088_v5 }
 0x753 PF: > { %s15_s18 = sadd.s32 1, %s17037_s18  }
 0x754   : > { %p12_p4 = scmp.ge.s32.totalorder %s15_s18, 4  }
 0x756   :  { %14 = sbr.rel (!%p12_p4) target bundleno = 1 (0x1), region = 86 }

</bundles_post_ra>
